<compile_context>
chip_gen: v6e
topology: v6e:2x2x1
jax: 0.10.0
libtpu: 0.0.40
codegen_flags: <defaults>
</compile_context>

<pallas_src>
import jax
import jax.numpy as jnp
import numpy as np
from jax.experimental import pallas as pl
from jax.experimental.pallas import tpu as pltpu

BN_EPS = 1e-5
TB = 8  # batch rows per grid step (multiple of 8 sublanes)


# ---------------------------------------------------------------------------
# Fused kernel: conv1 -> pool -> conv2 -> pool -> flatten -> MLP head
# ---------------------------------------------------------------------------
def _fused_actor_kernel(p1_ref, vg_ref,
                        w1k_ref, shift1_ref,
                        w2_ref, shift2_ref,
                        wvg_ref, bvg_ref,
                        w1c_ref, b1_ref,
                        w2c_ref, b2_ref,
                        wa_ref, ba_ref,
                        o_ref, comb_ref):
    """One batch tile of the whole CNNActorV3 forward.

    p1_ref:   (256, TB, 576) bf16  conv1 patch rows; dim0 = (conv1-pool quad d,
              conv2-pool quad e, conv2 pooled pos s); features = conv2 tap k (16)
              x conv1 6x6 patch (36).
    vg_ref:   (TB, 4)    f32   [vel | goal]
    w1k_ref:  (576, 128) bf16  kron(I_16, conv1 weight * BN1 scale)
    shift1:   (1, 128)   f32   folded conv1 bias + BN1 shift, tiled per tap
    w2_ref:   (128, 16)  bf16  conv2 weight * BN2 scale  (dense, no kron padding)
    shift2:   (1, 16)    f32   folded conv2 bias + BN2 shift
    wvg/bvg:  (4,64)/(1,64) f32 block-diag fc_vel|fc_goal
    w1c_ref:  (320, 128) bf16  fc_combined[0], image rows permuted to (s,c) order
    w2c_ref:  (128, 64)  bf16  fc_combined[3]
    wa_ref:   (64, 128)  bf16  fc_actor zero-padded to 128 lanes
    o_ref:    (TB, 128)  f32   actor output in cols [:2]  (lane-dense store)
    comb_ref: (TB, 320)  f32   VMEM scratch = concat([img(s,c), vel_h, goal_h])
    """
    f32 = jnp.float32
    bf16 = jnp.bfloat16
    relu = lambda v: jnp.maximum(v, 0.0)
    tb = o_ref.shape[0]

    # conv1 (+ folded BN1) over every (pool-quad, conv2-tap) row: one MXU matmul.
    p1 = p1_ref[...].reshape(256 * tb, 576)
    z1 = jnp.dot(p1, w1k_ref[...], preferred_element_type=f32)        # (256*tb,128)
    n = 64 * tb                                                       # rows per pool quad
    z1 = jnp.maximum(jnp.maximum(z1[0:n], z1[n:2 * n]),
                     jnp.maximum(z1[2 * n:3 * n], z1[3 * n:4 * n]))   # conv1 2x2 pool
    pt2 = relu(z1 + shift1_ref[...])              # (64*tb,128) == conv2 im2col rows

    # conv2 (+ folded BN2): dense (128,16) weight, then 2x2 max-pool over quads.
    z2 = jnp.dot(pt2.astype(bf16), w2_ref[...], preferred_element_type=f32)
    m = 16 * tb
    z2 = jnp.maximum(jnp.maximum(z2[0:m], z2[m:2 * m]),
                     jnp.maximum(z2[2 * m:3 * m], z2[3 * m:4 * m]))
    img = relu(z2 + shift2_ref[...])              # (16*tb, 16), rows ordered (s, b)

    # fc_vel / fc_goal on the VPU: a K=4, N=64 matmul is a wasted MXU pass.
    vg = vg_ref[...]
    wvg = wvg_ref[...]
    vg_h = relu(vg[:, 0:1] * wvg[0:1, :] + vg[:, 1:2] * wvg[1:2, :]
                + vg[:, 2:3] * wvg[2:3, :] + vg[:, 3:4] * wvg[3:4, :]
                + bvg_ref[...])                   # (tb, 64)

    # Pack concat([image in (s,c) order, vel_h, goal_h]) into one lane-dense operand.
    for s in range(16):
        comb_ref[:, 16 * s:16 * (s + 1)] = img[tb * s:tb * (s + 1), :]
    comb_ref[:, 256:320] = vg_h
    comb = comb_ref[...].astype(bf16)             # (tb, 320)

    # MLP head.  Dropout(0.1) is identity at inference time.
    h1 = relu(jnp.dot(comb, w1c_ref[...], preferred_element_type=f32) + b1_ref[...])
    h2 = relu(jnp.dot(h1.astype(bf16), w2c_ref[...], preferred_element_type=f32)
              + b2_ref[...])
    o_ref[...] = (jnp.dot(h2.astype(bf16), wa_ref[...], preferred_element_type=f32)
                  + ba_ref[...])


# ---------------------------------------------------------------------------
# Plain-JAX glue: build the conv1 patch-row tensor (pure data movement)
# ---------------------------------------------------------------------------
def _extract_patches(x, kh, kw, stride):
    """x: (B, H, W, C) -> (B, OH, OW, kh*kw*C); feature order (kh, kw, c)."""
    B, H, W, C = x.shape
    oh = (H - kh) // stride + 1
    ow = (W - kw) // stride + 1
    cols = []
    for i in range(kh):
        for j in range(kw):
            cols.append(x[:, i:i + stride * (oh - 1) + 1:stride,
                            j:j + stride * (ow - 1) + 1:stride, :])
    patches = jnp.stack(cols, axis=3)             # (B, oh, ow, kh*kw, C)
    return patches.reshape(B, oh, ow, kh * kw * C)


def _conv1_patch_rows(x):
    """(B,112,112,1) NHWC image -> (256, B, 576) bf16 conv1 patch-row tensor.

    dim0 = (conv1-pool quad d=(di,dj), conv2-pool quad e=(ei,ej), conv2 pooled
    position s=(si,sj)); per row, features = conv2 tap k=(ki,kj) (16) x conv1
    patch (36).  The conv1 output position feeding tap k of pooled position s,
    quads (e, d) is r = 8*si + 4*ei + 2*ki + di (same formula per axis), so a
    single static gather builds the whole tensor.
    """
    B = x.shape[0]
    patches = _extract_patches(x, 6, 6, 3)        # (B, 36, 36, 36)
    si = np.arange(4); ei = np.arange(2); ki = np.arange(4); di = np.arange(2)
    idx = (8 * si[:, None, None, None] + 4 * ei[None, :, None, None]
           + 2 * ki[None, None, :, None] + di[None, None, None, :]).reshape(-1)
    idx = jnp.asarray(idx, jnp.int32)             # (64,) ordered (si, ei, ki, di)
    g = jnp.take(patches, idx, axis=1)            # (B, 64, 36, 36)
    g = jnp.take(g, idx, axis=2)                  # (B, 64, 64, 36)
    g = g.reshape(B, 4, 2, 4, 2, 4, 2, 4, 2, 36)  # (b,si,ei,ki,di,sj,ej,kj,dj,f)
    g = g.transpose(4, 8, 2, 6, 1, 5, 0, 3, 7, 9)  # (di,dj,ei,ej,si,sj,b,ki,kj,f)
    return g.reshape(256, B, 576).astype(jnp.bfloat16)


def _round_up(x, m):
    return -(-x // m) * m


# ---------------------------------------------------------------------------
# Full forward (single fused pallas_call)
# ---------------------------------------------------------------------------
@jax.jit
def cnn_actor_v3_forward(image, vel, goal, params):
    # image: (B, H, W) or (B, 1, H, W)  (torch NCHW with C=1)
    if image.ndim == 3:
        image = image[:, None, :, :]
    assert image.shape[-2:] == (112, 112), (
        "the hard-coded 256-dim flatten implies a 112x112 input")
    B = image.shape[0]
    x = jnp.transpose(image, (0, 2, 3, 1)).astype(jnp.float32)      # NCHW -> NHWC

    p1 = _conv1_patch_rows(x)                                       # (256, B, 576)
    vg = jnp.concatenate([vel, goal], axis=1).astype(jnp.float32)   # (B, 4)
    Bp = _round_up(B, TB)
    if Bp != B:
        p1 = jnp.pad(p1, ((0, 0), (0, Bp - B), (0, 0)))
        vg = jnp.pad(vg, ((0, Bp - B), (0, 0)))

    def const(shape):                     # weight blocks: resident across grid steps
        return pl.BlockSpec(shape, lambda i: (0, 0))

    out = pl.pallas_call(
        _fused_actor_kernel,
        out_shape=jax.ShapeDtypeStruct((Bp, 128), jnp.float32),
        grid=(Bp // TB,),
        in_specs=[
            pl.BlockSpec((256, TB, 576), lambda i: (0, i, 0)),  # patch rows: batch-tiled
            pl.BlockSpec((TB, 4), lambda i: (i, 0)),            # vel/goal:   batch-tiled
            const((576, 128)), const((1, 128)),                 # conv1 kron weight/shift
            const((128, 16)), const((1, 16)),                   # conv2 weight/shift
            const((4, 64)), const((1, 64)),                     # fc_vel|fc_goal
            const((320, 128)), const((1, 128)),                 # fc_combined[0]
            const((128, 64)), const((1, 64)),                   # fc_combined[3]
            const((64, 128)), const((1, 128)),                  # fc_actor (padded)
        ],
        out_specs=pl.BlockSpec((TB, 128), lambda i: (i, 0)),
        scratch_shapes=[pltpu.VMEM((TB, 320), jnp.float32)],
        compiler_params=pltpu.CompilerParams(
            dimension_semantics=("parallel",),
            vmem_limit_bytes=32 * 1024 * 1024),
    )(p1, vg,
      params["w1k"], params["shift1"],
      params["w2f"], params["shift2"],
      params["wvg"], params["bvg"],
      params["w1c"], params["b1"],
      params["w2c"], params["b2"],
      params["wa"], params["ba"])
    return out[:B, :2]


# ---------------------------------------------------------------------------
# Deterministic synthetic parameters (shapes from CNNActorV3.__init__)
# ---------------------------------------------------------------------------
def init_raw_params(key):
    """Synthetic params.  Conv weights are (kh,kw,cin,cout) (= torch weight
    permuted (2,3,1,0)); linear weights are (in,out) (= torch weight .T)."""
    ks = jax.random.split(key, 22)
    n = lambda k, shape, s=0.1: (s * jax.random.normal(k, shape)).astype(jnp.float32)
    return {
        "w1": n(ks[0], (6, 6, 1, 8)), "b1": n(ks[1], (8,)),
        "g1": 1.0 + n(ks[2], (8,)), "be1": n(ks[3], (8,)),
        "m1": n(ks[4], (8,)), "v1": 1.0 + jnp.abs(n(ks[5], (8,))),
        "w2": n(ks[6], (4, 4, 8, 16)), "b2": n(ks[7], (16,)),
        "g2": 1.0 + n(ks[8], (16,)), "be2": n(ks[9], (16,)),
        "m2": n(ks[10], (16,)), "v2": 1.0 + jnp.abs(n(ks[11], (16,))),
        "wv": n(ks[12], (2, 32)), "bv": n(ks[13], (32,)),
        "wg": n(ks[14], (2, 32)), "bg": n(ks[15], (32,)),
        "wc1": n(ks[16], (320, 128)), "bc1": n(ks[17], (128,)),
        "wc2": n(ks[18], (128, 64)), "bc2": n(ks[19], (64,)),
        "wa": n(ks[20], (64, 2)), "ba": n(ks[21], (2,)),
    }


def pack_params(raw):
    """Fold BN(eval) into conv weights and pack everything into kernel layout."""
    f32, bf16 = jnp.float32, jnp.bfloat16

    s1 = raw["g1"] / jnp.sqrt(raw["v1"] + BN_EPS)
    shift1 = raw["b1"] * s1 + raw["be1"] - raw["m1"] * s1
    w1f = raw["w1"].reshape(36, 8) * s1[None, :]
    w1k = jnp.kron(jnp.eye(16, dtype=f32), w1f).astype(bf16)        # (576, 128)
    shift1 = jnp.tile(shift1, 16).reshape(1, 128)                   # per-tap shift

    s2 = raw["g2"] / jnp.sqrt(raw["v2"] + BN_EPS)
    shift2 = (raw["b2"] * s2 + raw["be2"] - raw["m2"] * s2).reshape(1, 16)
    w2f = (raw["w2"].reshape(128, 16) * s2[None, :]).astype(bf16)

    wvg = jnp.zeros((4, 64), f32).at[:2, :32].set(raw["wv"]).at[2:, 32:].set(raw["wg"])
    bvg = jnp.concatenate([raw["bv"], raw["bg"]]).reshape(1, 64)

    # fc_combined[0]: torch flattens the conv tower in (c, s) order; the kernel's
    # image feature order is (s, c) -> permute the first 256 weight rows offline.
    w1_img = raw["wc1"][:256].reshape(16, 16, 128).transpose(1, 0, 2).reshape(256, 128)
    w1c = jnp.concatenate([w1_img, raw["wc1"][256:]], axis=0).astype(bf16)

    wa = jnp.zeros((64, 128), f32).at[:, :2].set(raw["wa"]).astype(bf16)
    ba = jnp.zeros((1, 128), f32).at[:, :2].set(raw["ba"].reshape(1, 2))

    return {
        "w1k": w1k, "shift1": shift1,
        "w2f": w2f, "shift2": shift2,
        "wvg": wvg, "bvg": bvg,
        "w1c": w1c, "b1": raw["bc1"].reshape(1, 128),
        "w2c": raw["wc2"].astype(bf16), "b2": raw["bc2"].reshape(1, 64),
        "wa": wa, "ba": ba,
    }


# ---------------------------------------------------------------------------
# Pure-JAX f32 reference (eval-mode semantics) for a numerical cross-check
# ---------------------------------------------------------------------------
def reference_forward(image, vel, goal, raw):
    if image.ndim == 3:
        image = image[:, None, :, :]
    x = jnp.transpose(image, (0, 2, 3, 1)).astype(jnp.float32)

    def block(x, w, b, g, be, m, v, stride):
        y = jax.lax.conv_general_dilated(
            x, w, (stride, stride), "VALID",
            dimension_numbers=("NHWC", "HWIO", "NHWC")) + b
        y = (y - m) / jnp.sqrt(v + BN_EPS) * g + be
        y = jnp.maximum(y, 0.0)
        return jax.lax.reduce_window(y, -jnp.inf, jax.lax.max,
                                     (1, 2, 2, 1), (1, 2, 2, 1), "VALID")

    y = block(x, raw["w1"], raw["b1"], raw["g1"], raw["be1"], raw["m1"], raw["v1"], 3)
    y = block(y, raw["w2"], raw["b2"], raw["g2"], raw["be2"], raw["m2"], raw["v2"], 2)
    img = jnp.transpose(y, (0, 3, 1, 2)).reshape(y.shape[0], -1)    # torch NCHW flatten
    vh = jnp.maximum(vel @ raw["wv"] + raw["bv"], 0.0)
    gh = jnp.maximum(goal @ raw["wg"] + raw["bg"], 0.0)
    comb = jnp.concatenate([img, vh, gh], axis=1)
    h1 = jnp.maximum(comb @ raw["wc1"] + raw["bc1"], 0.0)
    h2 = jnp.maximum(h1 @ raw["wc2"] + raw["bc2"], 0.0)
    return h2 @ raw["wa"] + raw["ba"]


if __name__ == "__main__":
    key = jax.random.PRNGKey(0)
    k_img, k_vel, k_goal, k_par = jax.random.split(key, 4)

    # Smallest spatial size compatible with the hard-coded 256-dim flatten:
    # 112x112 -> conv1 36x36 -> pool 18x18 -> conv2 8x8 -> pool 4x4; 16*4*4 = 256.
    image = jax.random.normal(k_img, (2, 112, 112), dtype=jnp.float32)
    vel = jax.random.normal(k_vel, (2, 2), dtype=jnp.float32)
    goal = jax.random.normal(k_goal, (2, 2), dtype=jnp.float32)

    raw = init_raw_params(k_par)
    params = pack_params(raw)

    out = cnn_actor_v3_forward(image, vel, goal, params)
    out = jax.block_until_ready(out)
    assert out.shape == (2, 2) and out.dtype == jnp.float32

    ref = reference_forward(image, vel, goal, raw)
    np.testing.assert_allclose(np.asarray(out), np.asarray(ref), rtol=0.05, atol=0.03)
    print("KERNEL_OK")
</pallas_src>

<mosaic_0001>
module attributes {stable_mosaic.version = 11 : i64} {
  func.func @_fused_actor_kernel(%arg0: i32, %arg1: memref<256x8x576xbf16, #tpu.memory_space<vmem>>, %arg2: memref<8x4xf32, #tpu.memory_space<vmem>>, %arg3: memref<576x128xbf16, #tpu.memory_space<vmem>>, %arg4: memref<1x128xf32, #tpu.memory_space<vmem>>, %arg5: memref<128x16xbf16, #tpu.memory_space<vmem>>, %arg6: memref<1x16xf32, #tpu.memory_space<vmem>>, %arg7: memref<4x64xf32, #tpu.memory_space<vmem>>, %arg8: memref<1x64xf32, #tpu.memory_space<vmem>>, %arg9: memref<320x128xbf16, #tpu.memory_space<vmem>>, %arg10: memref<1x128xf32, #tpu.memory_space<vmem>>, %arg11: memref<128x64xbf16, #tpu.memory_space<vmem>>, %arg12: memref<1x64xf32, #tpu.memory_space<vmem>>, %arg13: memref<64x128xbf16, #tpu.memory_space<vmem>>, %arg14: memref<1x128xf32, #tpu.memory_space<vmem>>, %arg15: memref<8x128xf32, #tpu.memory_space<vmem>>, %arg16: memref<8x320xf32, #tpu.memory_space<vmem>>) attributes {dimension_semantics = [#tpu.dimension_semantics<parallel>], iteration_bounds = array<i64: 1>, scalar_prefetch = 0 : i64, scratch_operands = 1 : i64, tpu.core_type = #tpu.core_type<tc>, window_params = [{transform_indices = @transform_0, window_bounds = array<i64: 256, 8, 576>}, {transform_indices = @transform_1, window_bounds = array<i64: 8, 4>}, {pipeline_mode = #tpu.pipeline_mode<synchronous>, transform_indices = @transform_2, window_bounds = array<i64: 576, 128>}, {pipeline_mode = #tpu.pipeline_mode<synchronous>, transform_indices = @transform_3, window_bounds = array<i64: 1, 128>}, {pipeline_mode = #tpu.pipeline_mode<synchronous>, transform_indices = @transform_4, window_bounds = array<i64: 128, 16>}, {pipeline_mode = #tpu.pipeline_mode<synchronous>, transform_indices = @transform_5, window_bounds = array<i64: 1, 16>}, {pipeline_mode = #tpu.pipeline_mode<synchronous>, transform_indices = @transform_6, window_bounds = array<i64: 4, 64>}, {pipeline_mode = #tpu.pipeline_mode<synchronous>, transform_indices = @transform_7, window_bounds = array<i64: 1, 64>}, {pipeline_mode = #tpu.pipeline_mode<synchronous>, transform_indices = @transform_8, window_bounds = array<i64: 320, 128>}, {pipeline_mode = #tpu.pipeline_mode<synchronous>, transform_indices = @transform_9, window_bounds = array<i64: 1, 128>}, {pipeline_mode = #tpu.pipeline_mode<synchronous>, transform_indices = @transform_10, window_bounds = array<i64: 128, 64>}, {pipeline_mode = #tpu.pipeline_mode<synchronous>, transform_indices = @transform_11, window_bounds = array<i64: 1, 64>}, {pipeline_mode = #tpu.pipeline_mode<synchronous>, transform_indices = @transform_12, window_bounds = array<i64: 64, 128>}, {pipeline_mode = #tpu.pipeline_mode<synchronous>, transform_indices = @transform_13, window_bounds = array<i64: 1, 128>}, {transform_indices = @transform_14, window_bounds = array<i64: 8, 128>}]} {
    %c0 = arith.constant 0 : index
    %c0_0 = arith.constant 0 : index
    %c0_1 = arith.constant 0 : index
    %0 = vector.load %arg1[%c0, %c0_0, %c0_1] : memref<256x8x576xbf16, #tpu.memory_space<vmem>>, vector<256x8x576xbf16>
    %1 = vector.shape_cast %0 : vector<256x8x576xbf16> to vector<2048x576xbf16>
    %c0_2 = arith.constant 0 : index
    %c0_3 = arith.constant 0 : index
    %2 = vector.load %arg3[%c0_2, %c0_3] : memref<576x128xbf16, #tpu.memory_space<vmem>>, vector<576x128xbf16>
    %cst = arith.constant dense<0.000000e+00> : vector<2048x128xf32>
    %3 = tpu.matmul %1, %2, %cst {dimension_numbers = #tpu.dot_dimension_numbers<[1], [0], [0], [1], [0, 0, 1, 1], [], []>} : vector<2048x576xbf16>, vector<576x128xbf16>, vector<2048x128xf32> -> vector<2048x128xf32>
    %4 = vector.extract_strided_slice %3 {offsets = [0, 0], sizes = [512, 128], strides = [1, 1]} : vector<2048x128xf32> to vector<512x128xf32>
    %5 = vector.extract_strided_slice %3 {offsets = [512, 0], sizes = [512, 128], strides = [1, 1]} : vector<2048x128xf32> to vector<512x128xf32>
    %6 = arith.maximumf %4, %5 : vector<512x128xf32>
    %7 = vector.extract_strided_slice %3 {offsets = [1024, 0], sizes = [512, 128], strides = [1, 1]} : vector<2048x128xf32> to vector<512x128xf32>
    %8 = vector.extract_strided_slice %3 {offsets = [1536, 0], sizes = [512, 128], strides = [1, 1]} : vector<2048x128xf32> to vector<512x128xf32>
    %9 = arith.maximumf %7, %8 : vector<512x128xf32>
    %10 = arith.maximumf %6, %9 : vector<512x128xf32>
    %c0_4 = arith.constant 0 : index
    %c0_5 = arith.constant 0 : index
    %11 = vector.load %arg4[%c0_4, %c0_5] : memref<1x128xf32, #tpu.memory_space<vmem>>, vector<1x128xf32>
    %12 = vector.broadcast %11 : vector<1x128xf32> to vector<512x128xf32>
    %13 = arith.addf %10, %12 : vector<512x128xf32>
    %cst_6 = arith.constant 0.000000e+00 : f32
    %14 = vector.broadcast %cst_6 : f32 to vector<512x128xf32>
    %15 = arith.maximumf %13, %14 : vector<512x128xf32>
    %16 = arith.truncf %15 : vector<512x128xf32> to vector<512x128xbf16>
    %c0_7 = arith.constant 0 : index
    %c0_8 = arith.constant 0 : index
    %17 = vector.load %arg5[%c0_7, %c0_8] : memref<128x16xbf16, #tpu.memory_space<vmem>>, vector<128x16xbf16>
    %cst_9 = arith.constant dense<0.000000e+00> : vector<512x16xf32>
    %18 = tpu.matmul %16, %17, %cst_9 {dimension_numbers = #tpu.dot_dimension_numbers<[1], [0], [0], [1], [0, 0, 1, 1], [], []>} : vector<512x128xbf16>, vector<128x16xbf16>, vector<512x16xf32> -> vector<512x16xf32>
    %19 = vector.extract_strided_slice %18 {offsets = [0, 0], sizes = [128, 16], strides = [1, 1]} : vector<512x16xf32> to vector<128x16xf32>
    %20 = vector.extract_strided_slice %18 {offsets = [128, 0], sizes = [128, 16], strides = [1, 1]} : vector<512x16xf32> to vector<128x16xf32>
    %21 = arith.maximumf %19, %20 : vector<128x16xf32>
    %22 = vector.extract_strided_slice %18 {offsets = [256, 0], sizes = [128, 16], strides = [1, 1]} : vector<512x16xf32> to vector<128x16xf32>
    %23 = vector.extract_strided_slice %18 {offsets = [384, 0], sizes = [128, 16], strides = [1, 1]} : vector<512x16xf32> to vector<128x16xf32>
    %24 = arith.maximumf %22, %23 : vector<128x16xf32>
    %25 = arith.maximumf %21, %24 : vector<128x16xf32>
    %c0_10 = arith.constant 0 : index
    %c0_11 = arith.constant 0 : index
    %26 = vector.load %arg6[%c0_10, %c0_11] : memref<1x16xf32, #tpu.memory_space<vmem>>, vector<1x16xf32>
    %27 = vector.broadcast %26 : vector<1x16xf32> to vector<128x16xf32>
    %28 = arith.addf %25, %27 : vector<128x16xf32>
    %cst_12 = arith.constant 0.000000e+00 : f32
    %29 = vector.broadcast %cst_12 : f32 to vector<128x16xf32>
    %30 = arith.maximumf %28, %29 : vector<128x16xf32>
    %c0_13 = arith.constant 0 : index
    %c0_14 = arith.constant 0 : index
    %31 = vector.load %arg2[%c0_13, %c0_14] : memref<8x4xf32, #tpu.memory_space<vmem>>, vector<8x4xf32>
    %c0_15 = arith.constant 0 : index
    %c0_16 = arith.constant 0 : index
    %32 = vector.load %arg7[%c0_15, %c0_16] : memref<4x64xf32, #tpu.memory_space<vmem>>, vector<4x64xf32>
    %33 = vector.extract_strided_slice %31 {offsets = [0, 0], sizes = [8, 1], strides = [1, 1]} : vector<8x4xf32> to vector<8x1xf32>
    %34 = vector.extract_strided_slice %32 {offsets = [0, 0], sizes = [1, 64], strides = [1, 1]} : vector<4x64xf32> to vector<1x64xf32>
    %35 = vector.broadcast %33 : vector<8x1xf32> to vector<8x64xf32>
    %36 = vector.broadcast %34 : vector<1x64xf32> to vector<8x64xf32>
    %37 = arith.mulf %35, %36 : vector<8x64xf32>
    %38 = vector.extract_strided_slice %31 {offsets = [0, 1], sizes = [8, 1], strides = [1, 1]} : vector<8x4xf32> to vector<8x1xf32>
    %39 = vector.extract_strided_slice %32 {offsets = [1, 0], sizes = [1, 64], strides = [1, 1]} : vector<4x64xf32> to vector<1x64xf32>
    %40 = vector.broadcast %38 : vector<8x1xf32> to vector<8x64xf32>
    %41 = vector.broadcast %39 : vector<1x64xf32> to vector<8x64xf32>
    %42 = arith.mulf %40, %41 : vector<8x64xf32>
    %43 = arith.addf %37, %42 : vector<8x64xf32>
    %44 = vector.extract_strided_slice %31 {offsets = [0, 2], sizes = [8, 1], strides = [1, 1]} : vector<8x4xf32> to vector<8x1xf32>
    %45 = vector.extract_strided_slice %32 {offsets = [2, 0], sizes = [1, 64], strides = [1, 1]} : vector<4x64xf32> to vector<1x64xf32>
    %46 = vector.broadcast %44 : vector<8x1xf32> to vector<8x64xf32>
    %47 = vector.broadcast %45 : vector<1x64xf32> to vector<8x64xf32>
    %48 = arith.mulf %46, %47 : vector<8x64xf32>
    %49 = arith.addf %43, %48 : vector<8x64xf32>
    %50 = vector.extract_strided_slice %31 {offsets = [0, 3], sizes = [8, 1], strides = [1, 1]} : vector<8x4xf32> to vector<8x1xf32>
    %51 = vector.extract_strided_slice %32 {offsets = [3, 0], sizes = [1, 64], strides = [1, 1]} : vector<4x64xf32> to vector<1x64xf32>
    %52 = vector.broadcast %50 : vector<8x1xf32> to vector<8x64xf32>
    %53 = vector.broadcast %51 : vector<1x64xf32> to vector<8x64xf32>
    %54 = arith.mulf %52, %53 : vector<8x64xf32>
    %55 = arith.addf %49, %54 : vector<8x64xf32>
    %c0_17 = arith.constant 0 : index
    %c0_18 = arith.constant 0 : index
    %56 = vector.load %arg8[%c0_17, %c0_18] : memref<1x64xf32, #tpu.memory_space<vmem>>, vector<1x64xf32>
    %57 = vector.broadcast %56 : vector<1x64xf32> to vector<8x64xf32>
    %58 = arith.addf %55, %57 : vector<8x64xf32>
    %cst_19 = arith.constant 0.000000e+00 : f32
    %59 = vector.broadcast %cst_19 : f32 to vector<8x64xf32>
    %60 = arith.maximumf %58, %59 : vector<8x64xf32>
    %61 = vector.extract_strided_slice %30 {offsets = [0, 0], sizes = [8, 16], strides = [1, 1]} : vector<128x16xf32> to vector<8x16xf32>
    %c0_20 = arith.constant 0 : index
    %c0_21 = arith.constant 0 : index
    %62 = vector.load %arg16[%c0_20, %c0_21] : memref<8x320xf32, #tpu.memory_space<vmem>>, vector<8x16xf32>
    tpu.vector_store %arg16[%c0_20, %c0_21], %61 {strides = array<i32>} : memref<8x320xf32, #tpu.memory_space<vmem>>, vector<8x16xf32>,
    %63 = vector.extract_strided_slice %30 {offsets = [8, 0], sizes = [8, 16], strides = [1, 1]} : vector<128x16xf32> to vector<8x16xf32>
    %c0_22 = arith.constant 0 : index
    %c16 = arith.constant 16 : index
    %64 = vector.load %arg16[%c0_22, %c16] : memref<8x320xf32, #tpu.memory_space<vmem>>, vector<8x16xf32>
    tpu.vector_store %arg16[%c0_22, %c16], %63 {strides = array<i32>} : memref<8x320xf32, #tpu.memory_space<vmem>>, vector<8x16xf32>,
    %65 = vector.extract_strided_slice %30 {offsets = [16, 0], sizes = [8, 16], strides = [1, 1]} : vector<128x16xf32> to vector<8x16xf32>
    %c0_23 = arith.constant 0 : index
    %c32 = arith.constant 32 : index
    %66 = vector.load %arg16[%c0_23, %c32] : memref<8x320xf32, #tpu.memory_space<vmem>>, vector<8x16xf32>
    tpu.vector_store %arg16[%c0_23, %c32], %65 {strides = array<i32>} : memref<8x320xf32, #tpu.memory_space<vmem>>, vector<8x16xf32>,
    %67 = vector.extract_strided_slice %30 {offsets = [24, 0], sizes = [8, 16], strides = [1, 1]} : vector<128x16xf32> to vector<8x16xf32>
    %c0_24 = arith.constant 0 : index
    %c48 = arith.constant 48 : index
    %68 = vector.load %arg16[%c0_24, %c48] : memref<8x320xf32, #tpu.memory_space<vmem>>, vector<8x16xf32>
    tpu.vector_store %arg16[%c0_24, %c48], %67 {strides = array<i32>} : memref<8x320xf32, #tpu.memory_space<vmem>>, vector<8x16xf32>,
    %69 = vector.extract_strided_slice %30 {offsets = [32, 0], sizes = [8, 16], strides = [1, 1]} : vector<128x16xf32> to vector<8x16xf32>
    %c0_25 = arith.constant 0 : index
    %c64 = arith.constant 64 : index
    %70 = vector.load %arg16[%c0_25, %c64] : memref<8x320xf32, #tpu.memory_space<vmem>>, vector<8x16xf32>
    tpu.vector_store %arg16[%c0_25, %c64], %69 {strides = array<i32>} : memref<8x320xf32, #tpu.memory_space<vmem>>, vector<8x16xf32>,
    %71 = vector.extract_strided_slice %30 {offsets = [40, 0], sizes = [8, 16], strides = [1, 1]} : vector<128x16xf32> to vector<8x16xf32>
    %c0_26 = arith.constant 0 : index
    %c80 = arith.constant 80 : index
    %72 = vector.load %arg16[%c0_26, %c80] : memref<8x320xf32, #tpu.memory_space<vmem>>, vector<8x16xf32>
    tpu.vector_store %arg16[%c0_26, %c80], %71 {strides = array<i32>} : memref<8x320xf32, #tpu.memory_space<vmem>>, vector<8x16xf32>,
    %73 = vector.extract_strided_slice %30 {offsets = [48, 0], sizes = [8, 16], strides = [1, 1]} : vector<128x16xf32> to vector<8x16xf32>
    %c0_27 = arith.constant 0 : index
    %c96 = arith.constant 96 : index
    %74 = vector.load %arg16[%c0_27, %c96] : memref<8x320xf32, #tpu.memory_space<vmem>>, vector<8x16xf32>
    tpu.vector_store %arg16[%c0_27, %c96], %73 {strides = array<i32>} : memref<8x320xf32, #tpu.memory_space<vmem>>, vector<8x16xf32>,
    %75 = vector.extract_strided_slice %30 {offsets = [56, 0], sizes = [8, 16], strides = [1, 1]} : vector<128x16xf32> to vector<8x16xf32>
    %c0_28 = arith.constant 0 : index
    %c112 = arith.constant 112 : index
    %76 = vector.load %arg16[%c0_28, %c112] : memref<8x320xf32, #tpu.memory_space<vmem>>, vector<8x16xf32>
    tpu.vector_store %arg16[%c0_28, %c112], %75 {strides = array<i32>} : memref<8x320xf32, #tpu.memory_space<vmem>>, vector<8x16xf32>,
    %77 = vector.extract_strided_slice %30 {offsets = [64, 0], sizes = [8, 16], strides = [1, 1]} : vector<128x16xf32> to vector<8x16xf32>
    %c0_29 = arith.constant 0 : index
    %c128 = arith.constant 128 : index
    %78 = vector.load %arg16[%c0_29, %c128] : memref<8x320xf32, #tpu.memory_space<vmem>>, vector<8x16xf32>
    tpu.vector_store %arg16[%c0_29, %c128], %77 {strides = array<i32>} : memref<8x320xf32, #tpu.memory_space<vmem>>, vector<8x16xf32>,
    %79 = vector.extract_strided_slice %30 {offsets = [72, 0], sizes = [8, 16], strides = [1, 1]} : vector<128x16xf32> to vector<8x16xf32>
    %c0_30 = arith.constant 0 : index
    %c144 = arith.constant 144 : index
    %80 = vector.load %arg16[%c0_30, %c144] : memref<8x320xf32, #tpu.memory_space<vmem>>, vector<8x16xf32>
    tpu.vector_store %arg16[%c0_30, %c144], %79 {strides = array<i32>} : memref<8x320xf32, #tpu.memory_space<vmem>>, vector<8x16xf32>,
    %81 = vector.extract_strided_slice %30 {offsets = [80, 0], sizes = [8, 16], strides = [1, 1]} : vector<128x16xf32> to vector<8x16xf32>
    %c0_31 = arith.constant 0 : index
    %c160 = arith.constant 160 : index
    %82 = vector.load %arg16[%c0_31, %c160] : memref<8x320xf32, #tpu.memory_space<vmem>>, vector<8x16xf32>
    tpu.vector_store %arg16[%c0_31, %c160], %81 {strides = array<i32>} : memref<8x320xf32, #tpu.memory_space<vmem>>, vector<8x16xf32>,
    %83 = vector.extract_strided_slice %30 {offsets = [88, 0], sizes = [8, 16], strides = [1, 1]} : vector<128x16xf32> to vector<8x16xf32>
    %c0_32 = arith.constant 0 : index
    %c176 = arith.constant 176 : index
    %84 = vector.load %arg16[%c0_32, %c176] : memref<8x320xf32, #tpu.memory_space<vmem>>, vector<8x16xf32>
    tpu.vector_store %arg16[%c0_32, %c176], %83 {strides = array<i32>} : memref<8x320xf32, #tpu.memory_space<vmem>>, vector<8x16xf32>,
    %85 = vector.extract_strided_slice %30 {offsets = [96, 0], sizes = [8, 16], strides = [1, 1]} : vector<128x16xf32> to vector<8x16xf32>
    %c0_33 = arith.constant 0 : index
    %c192 = arith.constant 192 : index
    %86 = vector.load %arg16[%c0_33, %c192] : memref<8x320xf32, #tpu.memory_space<vmem>>, vector<8x16xf32>
    tpu.vector_store %arg16[%c0_33, %c192], %85 {strides = array<i32>} : memref<8x320xf32, #tpu.memory_space<vmem>>, vector<8x16xf32>,
    %87 = vector.extract_strided_slice %30 {offsets = [104, 0], sizes = [8, 16], strides = [1, 1]} : vector<128x16xf32> to vector<8x16xf32>
    %c0_34 = arith.constant 0 : index
    %c208 = arith.constant 208 : index
    %88 = vector.load %arg16[%c0_34, %c208] : memref<8x320xf32, #tpu.memory_space<vmem>>, vector<8x16xf32>
    tpu.vector_store %arg16[%c0_34, %c208], %87 {strides = array<i32>} : memref<8x320xf32, #tpu.memory_space<vmem>>, vector<8x16xf32>,
    %89 = vector.extract_strided_slice %30 {offsets = [112, 0], sizes = [8, 16], strides = [1, 1]} : vector<128x16xf32> to vector<8x16xf32>
    %c0_35 = arith.constant 0 : index
    %c224 = arith.constant 224 : index
    %90 = vector.load %arg16[%c0_35, %c224] : memref<8x320xf32, #tpu.memory_space<vmem>>, vector<8x16xf32>
    tpu.vector_store %arg16[%c0_35, %c224], %89 {strides = array<i32>} : memref<8x320xf32, #tpu.memory_space<vmem>>, vector<8x16xf32>,
    %91 = vector.extract_strided_slice %30 {offsets = [120, 0], sizes = [8, 16], strides = [1, 1]} : vector<128x16xf32> to vector<8x16xf32>
    %c0_36 = arith.constant 0 : index
    %c240 = arith.constant 240 : index
    %92 = vector.load %arg16[%c0_36, %c240] : memref<8x320xf32, #tpu.memory_space<vmem>>, vector<8x16xf32>
    tpu.vector_store %arg16[%c0_36, %c240], %91 {strides = array<i32>} : memref<8x320xf32, #tpu.memory_space<vmem>>, vector<8x16xf32>,
    %c0_37 = arith.constant 0 : index
    %c256 = arith.constant 256 : index
    %93 = vector.load %arg16[%c0_37, %c256] : memref<8x320xf32, #tpu.memory_space<vmem>>, vector<8x64xf32>
    tpu.vector_store %arg16[%c0_37, %c256], %60 {strides = array<i32>} : memref<8x320xf32, #tpu.memory_space<vmem>>, vector<8x64xf32>,
    %c0_38 = arith.constant 0 : index
    %c0_39 = arith.constant 0 : index
    %94 = vector.load %arg16[%c0_38, %c0_39] : memref<8x320xf32, #tpu.memory_space<vmem>>, vector<8x320xf32>
    %95 = arith.truncf %94 : vector<8x320xf32> to vector<8x320xbf16>
    %c0_40 = arith.constant 0 : index
    %c0_41 = arith.constant 0 : index
    %96 = vector.load %arg9[%c0_40, %c0_41] : memref<320x128xbf16, #tpu.memory_space<vmem>>, vector<320x128xbf16>
    %cst_42 = arith.constant dense<0.000000e+00> : vector<8x128xf32>
    %97 = tpu.matmul %95, %96, %cst_42 {dimension_numbers = #tpu.dot_dimension_numbers<[1], [0], [0], [1], [0, 0, 1, 1], [], []>} : vector<8x320xbf16>, vector<320x128xbf16>, vector<8x128xf32> -> vector<8x128xf32>
    %c0_43 = arith.constant 0 : index
    %c0_44 = arith.constant 0 : index
    %98 = vector.load %arg10[%c0_43, %c0_44] : memref<1x128xf32, #tpu.memory_space<vmem>>, vector<1x128xf32>
    %99 = vector.broadcast %98 : vector<1x128xf32> to vector<8x128xf32>
    %100 = arith.addf %97, %99 : vector<8x128xf32>
    %cst_45 = arith.constant 0.000000e+00 : f32
    %101 = vector.broadcast %cst_45 : f32 to vector<8x128xf32>
    %102 = arith.maximumf %100, %101 : vector<8x128xf32>
    %103 = arith.truncf %102 : vector<8x128xf32> to vector<8x128xbf16>
    %c0_46 = arith.constant 0 : index
    %c0_47 = arith.constant 0 : index
    %104 = vector.load %arg11[%c0_46, %c0_47] : memref<128x64xbf16, #tpu.memory_space<vmem>>, vector<128x64xbf16>
    %cst_48 = arith.constant dense<0.000000e+00> : vector<8x64xf32>
    %105 = tpu.matmul %103, %104, %cst_48 {dimension_numbers = #tpu.dot_dimension_numbers<[1], [0], [0], [1], [0, 0, 1, 1], [], []>} : vector<8x128xbf16>, vector<128x64xbf16>, vector<8x64xf32> -> vector<8x64xf32>
    %c0_49 = arith.constant 0 : index
    %c0_50 = arith.constant 0 : index
    %106 = vector.load %arg12[%c0_49, %c0_50] : memref<1x64xf32, #tpu.memory_space<vmem>>, vector<1x64xf32>
    %107 = vector.broadcast %106 : vector<1x64xf32> to vector<8x64xf32>
    %108 = arith.addf %105, %107 : vector<8x64xf32>
    %cst_51 = arith.constant 0.000000e+00 : f32
    %109 = vector.broadcast %cst_51 : f32 to vector<8x64xf32>
    %110 = arith.maximumf %108, %109 : vector<8x64xf32>
    %111 = arith.truncf %110 : vector<8x64xf32> to vector<8x64xbf16>
    %c0_52 = arith.constant 0 : index
    %c0_53 = arith.constant 0 : index
    %112 = vector.load %arg13[%c0_52, %c0_53] : memref<64x128xbf16, #tpu.memory_space<vmem>>, vector<64x128xbf16>
    %cst_54 = arith.constant dense<0.000000e+00> : vector<8x128xf32>
    %113 = tpu.matmul %111, %112, %cst_54 {dimension_numbers = #tpu.dot_dimension_numbers<[1], [0], [0], [1], [0, 0, 1, 1], [], []>} : vector<8x64xbf16>, vector<64x128xbf16>, vector<8x128xf32> -> vector<8x128xf32>
    %c0_55 = arith.constant 0 : index
    %c0_56 = arith.constant 0 : index
    %114 = vector.load %arg14[%c0_55, %c0_56] : memref<1x128xf32, #tpu.memory_space<vmem>>, vector<1x128xf32>
    %115 = vector.broadcast %114 : vector<1x128xf32> to vector<8x128xf32>
    %116 = arith.addf %113, %115 : vector<8x128xf32>
    %c0_57 = arith.constant 0 : index
    %c0_58 = arith.constant 0 : index
    %117 = vector.load %arg15[%c0_57, %c0_58] : memref<8x128xf32, #tpu.memory_space<vmem>>, vector<8x128xf32>
    tpu.vector_store %arg15[%c0_57, %c0_58], %116 {strides = array<i32>} : memref<8x128xf32, #tpu.memory_space<vmem>>, vector<8x128xf32>,
    return
  }
  func.func @transform_0(%arg0: i32) -> (i32, i32, i32) {
    %c0_i32 = arith.constant 0 : i32
    %c0_i32_0 = arith.constant 0 : i32
    %c0_i32_1 = arith.constant 0 : i32
    return %c0_i32, %arg0, %c0_i32_0 : i32, i32, i32
  }
  func.func @transform_1(%arg0: i32) -> (i32, i32) {
    %c0_i32 = arith.constant 0 : i32
    %c0_i32_0 = arith.constant 0 : i32
    return %arg0, %c0_i32 : i32, i32
  }
  func.func @transform_2(%arg0: i32) -> (i32, i32) {
    %c0_i32 = arith.constant 0 : i32
    %c0_i32_0 = arith.constant 0 : i32
    %c0_i32_1 = arith.constant 0 : i32
    return %c0_i32, %c0_i32_0 : i32, i32
  }
  func.func @transform_3(%arg0: i32) -> (i32, i32) {
    %c0_i32 = arith.constant 0 : i32
    %c0_i32_0 = arith.constant 0 : i32
    %c0_i32_1 = arith.constant 0 : i32
    return %c0_i32, %c0_i32_0 : i32, i32
  }
  func.func @transform_4(%arg0: i32) -> (i32, i32) {
    %c0_i32 = arith.constant 0 : i32
    %c0_i32_0 = arith.constant 0 : i32
    %c0_i32_1 = arith.constant 0 : i32
    return %c0_i32, %c0_i32_0 : i32, i32
  }
  func.func @transform_5(%arg0: i32) -> (i32, i32) {
    %c0_i32 = arith.constant 0 : i32
    %c0_i32_0 = arith.constant 0 : i32
    %c0_i32_1 = arith.constant 0 : i32
    return %c0_i32, %c0_i32_0 : i32, i32
  }
  func.func @transform_6(%arg0: i32) -> (i32, i32) {
    %c0_i32 = arith.constant 0 : i32
    %c0_i32_0 = arith.constant 0 : i32
    %c0_i32_1 = arith.constant 0 : i32
    return %c0_i32, %c0_i32_0 : i32, i32
  }
  func.func @transform_7(%arg0: i32) -> (i32, i32) {
    %c0_i32 = arith.constant 0 : i32
    %c0_i32_0 = arith.constant 0 : i32
    %c0_i32_1 = arith.constant 0 : i32
    return %c0_i32, %c0_i32_0 : i32, i32
  }
  func.func @transform_8(%arg0: i32) -> (i32, i32) {
    %c0_i32 = arith.constant 0 : i32
    %c0_i32_0 = arith.constant 0 : i32
    %c0_i32_1 = arith.constant 0 : i32
    return %c0_i32, %c0_i32_0 : i32, i32
  }
  func.func @transform_9(%arg0: i32) -> (i32, i32) {
    %c0_i32 = arith.constant 0 : i32
    %c0_i32_0 = arith.constant 0 : i32
    %c0_i32_1 = arith.constant 0 : i32
    return %c0_i32, %c0_i32_0 : i32, i32
  }
  func.func @transform_10(%arg0: i32) -> (i32, i32) {
    %c0_i32 = arith.constant 0 : i32
    %c0_i32_0 = arith.constant 0 : i32
    %c0_i32_1 = arith.constant 0 : i32
    return %c0_i32, %c0_i32_0 : i32, i32
  }
  func.func @transform_11(%arg0: i32) -> (i32, i32) {
    %c0_i32 = arith.constant 0 : i32
    %c0_i32_0 = arith.constant 0 : i32
    %c0_i32_1 = arith.constant 0 : i32
    return %c0_i32, %c0_i32_0 : i32, i32
  }
  func.func @transform_12(%arg0: i32) -> (i32, i32) {
    %c0_i32 = arith.constant 0 : i32
    %c0_i32_0 = arith.constant 0 : i32
    %c0_i32_1 = arith.constant 0 : i32
    return %c0_i32, %c0_i32_0 : i32, i32
  }
  func.func @transform_13(%arg0: i32) -> (i32, i32) {
    %c0_i32 = arith.constant 0 : i32
    %c0_i32_0 = arith.constant 0 : i32
    %c0_i32_1 = arith.constant 0 : i32
    return %c0_i32, %c0_i32_0 : i32, i32
  }
  func.func @transform_14(%arg0: i32) -> (i32, i32) {
    %c0_i32 = arith.constant 0 : i32
    %c0_i32_0 = arith.constant 0 : i32
    return %arg0, %c0_i32 : i32, i32
  }
}

</mosaic_0001>

<bundles_post_ra>
// kernel: cnn_actor_v3_forward.1
= control target key start
LH: loop header
LB: loop body
LE: loop exit
PB: predicated region body
PF: predicated region fallthrough
CT: control target
= control target key end

     0   :  { %v11724_v0 = vmov 0   ;;  %vm4304_vm0 = vcmask 523264   ;;  %vm8710_vm1 = vcmask 130048   ;;  %s11729_s25 = smov 48   ;;  %s11730_s30 = smov 16   ;;  %vm8716_vm2 = vcmask 261248   ;;  %s16764_s2 = inlined_call_operand.vmem [shape: bf16[576,128], index: 2, kind: input, shape index: {}]   ;;  %s16765_s0 = inlined_call_operand.vmem [shape: bf16[256,8,576], index: 0, kind: input, shape index: {}]   ;;  %s16766_s4 = inlined_call_operand.vmem [shape: bf16[128,16], index: 4, kind: input, shape index: {}]   ;;  %s16767_s3 = inlined_call_operand.vmem [shape: f32[1,128], index: 3, kind: input, shape index: {}]   ;;  %s16768_s1 = inlined_call_operand.vmem [shape: f32[8,4], index: 1, kind: input, shape index: {}]   ;;  %s16769_s8 = inlined_call_operand.vmem [shape: bf16[320,128], index: 8, kind: input, shape index: {}]   ;;  %s16770_s5 = inlined_call_operand.vmem [shape: f32[1,16], index: 5, kind: input, shape index: {}]   ;;  %s16771_s10 = inlined_call_operand.vmem [shape: bf16[128,64], index: 10, kind: input, shape index: {}]   ;;  %s16772_s6 = inlined_call_operand.vmem [shape: f32[4,64], index: 6, kind: input, shape index: {}]   ;;  %s16773_s7 = inlined_call_operand.vmem [shape: f32[1,64], index: 7, kind: input, shape index: {}]   ;;  %s16774_s12 = inlined_call_operand.vmem [shape: bf16[64,128], index: 12, kind: input, shape index: {}]   ;;  %s16775_s9 = inlined_call_operand.vmem [shape: f32[1,128], index: 9, kind: input, shape index: {}]   ;;  %s16776_s11 = inlined_call_operand.vmem [shape: f32[1,64], index: 11, kind: input, shape index: {}]   ;;  %s16777_s13 = inlined_call_operand.vmem [shape: f32[1,128], index: 13, kind: input, shape index: {}]   ;;  %s16778_s14 = inlined_call_operand.vmem [shape: f32[8,128], index: 14, kind: output, shape index: {}]  }
   0x1   :  { %4689 = vmatprep.subr.bf16.mxu0 %v11724_v0  ;;  %10702 = vmatprep.subr.bf16.mxu1 %v11724_v0  ;;  %v10752_v1 = vld [vmem:[%s16764_s2 + $0x38] sm:$0xff]   ;;  %v10753_v2 = vld [vmem:[%s16764_s2 + $0x30] sm:$0xff]   ;;  %v10754_v3 = vld [vmem:[%s16764_s2 + $0x28] sm:$0xff]   ;;  %s11732_s15 = smov 64   ;;  %s11733_s16 = smov 80   ;;  %vm8722_vm3 = vcmask 392448  }
   0x2   :  { %10747 = vset.pattern.permute.xlu1 %v11724_v0  ;;  %4690 = vmatpush1.bf16.msra.mxu0 %v10752_v1  ;;  %v10755_v4 = vld [vmem:[%s16764_s2 + $0x20] sm:$0xff]   ;;  %v10756_v5 = vld [vmem:[%s16764_s2 + $0x18] sm:$0xff]   ;;  %v10757_v7 = vld [vmem:[%s16764_s2 + $0x10] sm:$0xff]   ;;  %s11734_s20 = smov 112   ;;  %vm8728_vm4 = vcmask 523648   ;;  %vm8734_vm5 = vcmask 654848  }
   0x3   :  { %10718 = vmatpush1.bf16.msra.mxu1 %v10752_v1  ;;  %4691 = vmatprep.subr.bf16.mxu0 %v11724_v0  ;;  %v10770_v6 = vld [vmem:[%s16765_s0 + $0x4] ss:$20 sps:$4 sm:$0xff]   ;;  %v10773_v8 = vld [vmem:[%s16765_s0 + $0x110c] ss:$20 sps:$4 sm:$0xff]   ;;  %v10761_v12 = vld [vmem:[%s16764_s2 + $0x70] sm:$0xff]   ;;  %vm8740_vm6 = vcmask 786048  }
   0x4   :  { %10703 = vmatprep.subr.bf16.mxu1 %v11724_v0  ;;  %4721 = vmatprep.mubr.bf16.mxu0 %v10770_v6  ;;  %v10758_v9 = vld [vmem:[%s16764_s2 + $0x8] sm:$0xff]   ;;  %v10759_v10 = vld [vmem:[%s16764_s2] sm:$0xff]   ;;  %v10760_v11 = vld [vmem:[%s16764_s2 + $0x78] sm:$0xff]   ;;  %vm8746_vm7 = vcmask 917248   ;;  %vm8752_vm8 = vcmask 1048448   ;;  %vm11736_vm9 = vmmov 0  }
   0x5   :  { %5593 = vmatprep.mubr.bf16.mxu1 %v10773_v8  ;;  %v10762_v13 = vld [vmem:[%s16764_s2 + $0x68] sm:$0xff]   ;;  %v10763_v14 = vld [vmem:[%s16764_s2 + $0x60] sm:$0xff]   ;;  %v10764_v15 = vld [vmem:[%s16764_s2 + $0x58] sm:$0xff]  }
   0x6   :  { %4692 = vmatpush1.bf16.msra.mxu0 %v10753_v2  ;;  %v10765_v16 = vld [vmem:[%s16764_s2 + $0x50] sm:$0xff]   ;;  %v10766_v17 = vld [vmem:[%s16764_s2 + $0x48] sm:$0xff]   ;;  %v10767_v18 = vld [vmem:[%s16764_s2 + $0x40] sm:$0xff]  }
   0x7   :  { %10719 = vmatpush1.bf16.msra.mxu1 %v10753_v2  ;;  %4693 = vmatprep.subr.bf16.mxu0 %v11724_v0  ;;  %v10774_v19 = vld [vmem:[%s16764_s2 + $0x118] sm:$0xff]   ;;  %v10768_v20 = vld [vmem:[%s16765_s0] ss:$20 sps:$4 sm:$0xff]   ;;  %v10780_v27 = vld [vmem:[%s16765_s0 + $0x1130] ss:$20 sps:$4 sm:$0xff]  }
   0x8   :  { %10704 = vmatprep.subr.bf16.mxu1 %v11724_v0  ;;  %v10771_v21 = vld [vmem:[%s16765_s0 + $0x1108] ss:$20 sps:$4 sm:$0xff]   ;;  %v10775_v22 = vld [vmem:[%s16765_s0 + $0x2c] ss:$20 sps:$4 sm:$0xff]   ;;  %v10842_v26 = vld [vmem:[%s16764_s2 + $0xb0] sm:$0xff]  }
   0x9   :  { %v10777_v23 = vld [vmem:[%s16765_s0 + $0x1134] ss:$20 sps:$4 sm:$0xff]   ;;  %v10841_v24 = vld [vmem:[%s16764_s2 + $0xb8] sm:$0xff]   ;;  %v10850_v31 = vld [vmem:[%s16764_s2 + $0xa0] sm:$0xff]  }
   0xa   :  { %4694 = vmatpush1.bf16.msra.mxu0 %v10754_v3  ;;  %v10779_v25 = vld [vmem:[%s16765_s0 + $0x28] ss:$20 sps:$4 sm:$0xff]   ;;  %v10785_v32 = vld [vmem:[%s16765_s0 + $0x50] ss:$20 sps:$4 sm:$0xff]   ;;  %v10786_v33 = vld [vmem:[%s16765_s0 + $0x1158] ss:$20 sps:$4 sm:$0xff]  }
   0xb   :  { %10720 = vmatpush1.bf16.msra.mxu1 %v10754_v3  ;;  %4695 = vmatprep.subr.bf16.mxu0 %v11724_v0  ;;  %v10781_v28 = vld [vmem:[%s16765_s0 + $0x54] ss:$20 sps:$4 sm:$0xff]   ;;  %v10783_v29 = vld [vmem:[%s16765_s0 + $0x115c] ss:$20 sps:$4 sm:$0xff]   ;;  %v10789_v35 = vld [vmem:[%s16765_s0 + $0x1184] ss:$20 sps:$4 sm:$0xff]  }
   0xc   :  { %10705 = vmatprep.subr.bf16.mxu1 %v11724_v0  ;;  %v10849_v30 = vld [vmem:[%s16764_s2 + $0xa8] sm:$0xff]   ;;  %v10787_v34 = vld [vmem:[%s16765_s0 + $0x7c] ss:$20 sps:$4 sm:$0xff]   ;;  %v10792_v39 = vld [vmem:[%s16765_s0 + $0x1180] ss:$20 sps:$4 sm:$0xff]  }
   0xd   :  { %v10857_v36 = vld [vmem:[%s16764_s2 + $0x98] sm:$0xff]   ;;  %v10858_v38 = vld [vmem:[%s16764_s2 + $0x90] sm:$0xff]   ;;  %v10795_v41 = vld [vmem:[%s16765_s0 + $0x11ac] ss:$20 sps:$4 sm:$0xff]  }
   0xe   :  { %4696 = vmatpush1.bf16.msra.mxu0 %v10755_v4  ;;  %v10791_v37 = vld [vmem:[%s16765_s0 + $0x78] ss:$20 sps:$4 sm:$0xff]   ;;  %v10866_v43 = vld [vmem:[%s16764_s2 + $0x80] sm:$0xff]   ;;  %v10798_v45 = vld [vmem:[%s16765_s0 + $0x11a8] ss:$20 sps:$4 sm:$0xff]  }
   0xf   :  { %10721 = vmatpush1.bf16.msra.mxu1 %v10755_v4  ;;  %4697 = vmatprep.subr.bf16.mxu0 %v11724_v0  ;;  %v10793_v40 = vld [vmem:[%s16765_s0 + $0xa4] ss:$20 sps:$4 sm:$0xff]   ;;  %v10865_v42 = vld [vmem:[%s16764_s2 + $0x88] sm:$0xff]   ;;  %v10797_v44 = vld [vmem:[%s16765_s0 + $0xa0] ss:$20 sps:$4 sm:$0xff]  }
  0x10   :  { %10706 = vmatprep.subr.bf16.mxu1 %v11724_v0  ;;  %v10799_v46 = vld [vmem:[%s16765_s0 + $0xcc] ss:$20 sps:$4 sm:$0xff]   ;;  %v10801_v47 = vld [vmem:[%s16765_s0 + $0x11d4] ss:$20 sps:$4 sm:$0xff]   ;;  %v10873_v48 = vld [vmem:[%s16764_s2 + $0xf8] sm:$0xff]  }
  0x11   :  { %v10874_v49 = vld [vmem:[%s16764_s2 + $0xf0] sm:$0xff]   ;;  %v10803_v50 = vld [vmem:[%s16765_s0 + $0xc8] ss:$20 sps:$4 sm:$0xff]   ;;  %v10882_v55 = vld [vmem:[%s16764_s2 + $0xe0] sm:$0xff]  }
  0x12   :  { %4698 = vmatpush1.bf16.msra.mxu0 %v10756_v5  ;;  %v10804_v51 = vld [vmem:[%s16765_s0 + $0x11d0] ss:$20 sps:$4 sm:$0xff]   ;;  %v10805_v52 = vld [vmem:[%s16765_s0 + $0xf4] ss:$20 sps:$4 sm:$0xff]   ;;  %v10810_v57 = vld [vmem:[%s16765_s0 + $0x11f8] ss:$20 sps:$4 sm:$0xff]  }
  0x13   :  { %10722 = vmatpush1.bf16.msra.mxu1 %v10756_v5  ;;  %4699 = vmatprep.subr.bf16.mxu0 %v11724_v0  ;;  %v10807_v53 = vld [vmem:[%s16765_s0 + $0x11fc] ss:$20 sps:$4 sm:$0xff]   ;;  %v10881_v54 = vld [vmem:[%s16764_s2 + $0xe8] sm:$0xff]   ;;  %v10813_v59 = vld [vmem:[%s16765_s0 + $0x1224] ss:$20 sps:$4 sm:$0xff]  }
  0x14   :  { %10707 = vmatprep.subr.bf16.mxu1 %v11724_v0  ;;  %v10809_v56 = vld [vmem:[%s16765_s0 + $0xf0] ss:$20 sps:$4 sm:$0xff]   ;;  %v10889_v60 = vld [vmem:[%s16764_s2 + $0xd8] sm:$0xff]   ;;  %v10816_v63 = vld [vmem:[%s16765_s0 + $0x1220] ss:$20 sps:$4 sm:$0xff]  }
  0x15   :  { %v10811_v58 = vld [vmem:[%s16765_s0 + $0x11c] ss:$20 sps:$4 sm:$0xff]   ;;  %v10815_v62 = vld [vmem:[%s16765_s0 + $0x118] ss:$20 sps:$4 sm:$0xff]   ;;  %v10898_v4 = vld [vmem:[%s16764_s2 + $0xc0] sm:$0xff]  }
  0x16   :  { %4700 = vmatpush1.bf16.msra.mxu0 %v10757_v7  ;;  %v10890_v61 = vld [vmem:[%s16764_s2 + $0xd0] sm:$0xff]   ;;  %v10817_v1 = vld [vmem:[%s16765_s0 + $0x144] ss:$20 sps:$4 sm:$0xff]   ;;  %v10819_v2 = vld [vmem:[%s16765_s0 + $0x124c] ss:$20 sps:$4 sm:$0xff]  }
  0x17   :  { %10723 = vmatpush1.bf16.msra.mxu1 %v10757_v7  ;;  %4701 = vmatprep.subr.bf16.mxu0 %v11724_v0  ;;  %v10897_v3 = vld [vmem:[%s16764_s2 + $0xc8] sm:$0xff]   ;;  %v10821_v5 = vld [vmem:[%s16765_s0 + $0x140] ss:$20 sps:$4 sm:$0xff]  }
  0x18   :  { %10708 = vmatprep.subr.bf16.mxu1 %v11724_v0  ;;  %v10822_v6 = vld [vmem:[%s16765_s0 + $0x1248] ss:$20 sps:$4 sm:$0xff]   ;;  %v10823_v7 = vld [vmem:[%s16765_s0 + $0x16c] ss:$20 sps:$4 sm:$0xff]  }
  0x19   :  { %v10825_v8 = vld [vmem:[%s16765_s0 + $0x1274] ss:$20 sps:$4 sm:$0xff]  }
  0x1a   :  { %4702 = vmatpush1.bf16.msra.mxu0 %v10758_v9 }
  0x1b   :  { %10724 = vmatpush1.bf16.msra.mxu1 %v10758_v9  ;;  %4703 = vmatprep.subr.bf16.mxu0 %v11724_v0  ;;  %v10827_v9 = vld [vmem:[%s16765_s0 + $0x168] ss:$20 sps:$4 sm:$0xff]  }
  0x1c   :  { %10709 = vmatprep.subr.bf16.mxu1 %v11724_v0 }
  0x1e   :  { %4704 = vmatpush1.bf16.msra.mxu0 %v10759_v10 }
  0x1f   :  { %10725 = vmatpush1.bf16.msra.mxu1 %v10759_v10  ;;  %4705 = vmatprep.subr.bf16.mxu0 %v11724_v0  ;;  %v10828_v10 = vld [vmem:[%s16765_s0 + $0x1270] ss:$20 sps:$4 sm:$0xff]  }
  0x20   :  { %10710 = vmatprep.subr.bf16.mxu1 %v11724_v0 }
  0x22   :  { %4706 = vmatpush2.bf16.msra.mxu0 %v10760_v11 }
  0x23   :  { %10726 = vmatpush2.bf16.msra.mxu1 %v10760_v11  ;;  %4707 = vmatprep.subr.bf16.mxu0 %v11724_v0  ;;  %v10829_v11 = vld [vmem:[%s16765_s0 + $0x194] ss:$20 sps:$4 sm:$0xff]  }
  0x24   :  { %10711 = vmatprep.subr.bf16.mxu1 %v11724_v0 }
  0x26   :  { %4708 = vmatpush2.bf16.msra.mxu0 %v10761_v12 }
  0x27   :  { %10727 = vmatpush2.bf16.msra.mxu1 %v10761_v12  ;;  %4709 = vmatprep.subr.bf16.mxu0 %v11724_v0  ;;  %v10833_v12 = vld [vmem:[%s16765_s0 + $0x190] ss:$20 sps:$4 sm:$0xff]  }
  0x28   :  { %10712 = vmatprep.subr.bf16.mxu1 %v11724_v0 }
  0x2a   :  { %4710 = vmatpush2.bf16.msra.mxu0 %v10762_v13 }
  0x2b   :  { %10728 = vmatpush2.bf16.msra.mxu1 %v10762_v13  ;;  %4711 = vmatprep.subr.bf16.mxu0 %v11724_v0  ;;  %v10834_v13 = vld [vmem:[%s16765_s0 + $0x1298] ss:$20 sps:$4 sm:$0xff]  }
  0x2c   :  { %10713 = vmatprep.subr.bf16.mxu1 %v11724_v0 }
  0x2e   :  { %4712 = vmatpush2.bf16.msra.mxu0 %v10763_v14 }
  0x2f   :  { %10729 = vmatpush2.bf16.msra.mxu1 %v10763_v14  ;;  %4713 = vmatprep.subr.bf16.mxu0 %v11724_v0  ;;  %v10835_v14 = vld [vmem:[%s16765_s0 + $0x1bc] ss:$20 sps:$4 sm:$0xff]  }
  0x30   :  { %10714 = vmatprep.subr.bf16.mxu1 %v11724_v0 }
  0x32   :  { %4714 = vmatpush2.bf16.msra.mxu0 %v10764_v15 }
  0x33   :  { %10730 = vmatpush2.bf16.msra.mxu1 %v10764_v15  ;;  %4715 = vmatprep.subr.bf16.mxu0 %v11724_v0  ;;  %v10837_v15 = vld [vmem:[%s16765_s0 + $0x12c4] ss:$20 sps:$4 sm:$0xff]  }
  0x34   :  { %10715 = vmatprep.subr.bf16.mxu1 %v11724_v0 }
  0x36   :  { %4716 = vmatpush2.bf16.msra.mxu0 %v10765_v16 }
  0x37   :  { %10731 = vmatpush2.bf16.msra.mxu1 %v10765_v16  ;;  %4717 = vmatprep.subr.bf16.mxu0 %v11724_v0  ;;  %v10839_v16 = vld [vmem:[%s16765_s0 + $0x1b8] ss:$20 sps:$4 sm:$0xff]  }
  0x38   :  { %10716 = vmatprep.subr.bf16.mxu1 %v11724_v0 }
  0x3a   :  { %4718 = vmatpush2.bf16.msra.mxu0 %v10766_v17 }
  0x3b   :  { %10732 = vmatpush2.bf16.msra.mxu1 %v10766_v17  ;;  %4719 = vmatprep.subr.bf16.mxu0 %v11724_v0  ;;  %v10840_v17 = vld [vmem:[%s16765_s0 + $0x12c0] ss:$20 sps:$4 sm:$0xff]  }
  0x3c   :  { %10717 = vmatprep.subr.bf16.mxu1 %v11724_v0 }
  0x3e   :  { %4720 = vmatpush2.bf16.msra.mxu0 %v10767_v18 }
  0x3f   :  { %10733 = vmatpush2.bf16.msra.mxu1 %v10767_v18  ;;  %10314 = vmatprep.subr.bf16.mxu0 %v10774_v19  ;;  %v10843_v18 = vld [vmem:[%s16765_s0 + $0x1e4] ss:$20 sps:$4 sm:$0xff]  }
  0x40   :  { %5746 = vmatprep.subr.bf16.mxu1 %v11724_v0 }
  0x41   :  { %4722 = vmatmul.mubr.bf16.vlgmr.msra.gmra.mxu0 %v10768_v20  ;;  %v10847_v20 = vld [vmem:[%s16765_s0 + $0x1e0] ss:$20 sps:$4 sm:$0xff]  }
  0x42   :  { %5594 = vmatmul.mubr.bf16.vlgmr.msra.gmra.mxu1 %v10771_v21  ;;  %10315 = vmatpush3.bf16.msra.mxu0 %v10774_v19  ;;  %v10845_v19 = vld [vmem:[%s16765_s0 + $0x12ec] ss:$20 sps:$4 sm:$0xff]   ;;  %v10848_v21 = vld [vmem:[%s16765_s0 + $0x12e8] ss:$20 sps:$4 sm:$0xff]  }
  0x43   :  { %4729 = vmatprep.mubr.bf16.mxu0 %v10775_v22  ;;  %5601 = vmatprep.mubr.bf16.mxu1 %v10777_v23  ;;  %v10953_v22 = vld [vmem:[%s16764_s2 + $0x110] sm:$0xff]   ;;  %v10851_v23 = vld [vmem:[%s16765_s0 + $0x20c] ss:$20 sps:$4 sm:$0xff]  }
  0x44   :  { %5747 = vmatpush1.bf16.msra.mxu1 %v10841_v24  ;;  %10316 = vmatprep.subr.bf16.mxu0 %v10953_v22  ;;  %v10853_v24 = vld [vmem:[%s16765_s0 + $0x1314] ss:$20 sps:$4 sm:$0xff]  }
  0x45   :  { %5748 = vmatprep.subr.bf16.mxu1 %v11724_v0 }
  0x46   :  { %10317 = vmatpush3.bf16.msra.mxu0 %v10953_v22 }
  0x48   :  { %5749 = vmatpush1.bf16.msra.mxu1 %v10842_v26  ;;  %v10856_v26 = vld [vmem:[%s16765_s0 + $0x1310] ss:$20 sps:$4 sm:$0xff]  }
  0x49   :  { %5750 = vmatprep.subr.bf16.mxu1 %v11724_v0  ;;  %4730 = vmatmul.mubr.bf16.gmra.mxu0 %v10779_v25  ;;  %v10855_v25 = vld [vmem:[%s16765_s0 + $0x208] ss:$20 sps:$4 sm:$0xff]  }
  0x4a   :  { %5602 = vmatmul.mubr.bf16.gmra.mxu1 %v10780_v27  ;;  %4737 = vmatprep.mubr.bf16.mxu0 %v10781_v28  ;;  %v10859_v27 = vld [vmem:[%s16765_s0 + $0x234] ss:$20 sps:$4 sm:$0xff]   ;;  %v10861_v28 = vld [vmem:[%s16765_s0 + $0x133c] ss:$20 sps:$4 sm:$0xff]  }
  0x4b   :  { %5609 = vmatprep.mubr.bf16.mxu1 %v10783_v29  ;;  %v10863_v29 = vld [vmem:[%s16765_s0 + $0x230] ss:$20 sps:$4 sm:$0xff]  }
  0x4c   :  { %5751 = vmatpush1.bf16.msra.mxu1 %v10849_v30  ;;  %v10864_v30 = vld [vmem:[%s16765_s0 + $0x1338] ss:$20 sps:$4 sm:$0xff]  }
  0x4d   :  { %5752 = vmatprep.subr.bf16.mxu1 %v11724_v0 }
  0x50   :  { %5753 = vmatpush1.bf16.msra.mxu1 %v10850_v31  ;;  %v10867_v31 = vld [vmem:[%s16765_s0 + $0x25c] ss:$20 sps:$4 sm:$0xff]  }
  0x51   :  { %5754 = vmatprep.subr.bf16.mxu1 %v11724_v0  ;;  %4738 = vmatmul.mubr.bf16.gmra.mxu0 %v10785_v32  ;;  %v10869_v32 = vld [vmem:[%s16765_s0 + $0x1364] ss:$20 sps:$4 sm:$0xff]  }
  0x52   :  { %5610 = vmatmul.mubr.bf16.gmra.mxu1 %v10786_v33  ;;  %4745 = vmatprep.mubr.bf16.mxu0 %v10787_v34  ;;  %v10871_v33 = vld [vmem:[%s16765_s0 + $0x258] ss:$20 sps:$4 sm:$0xff]   ;;  %v10872_v34 = vld [vmem:[%s16765_s0 + $0x1360] ss:$20 sps:$4 sm:$0xff]  }
  0x53   :  { %5617 = vmatprep.mubr.bf16.mxu1 %v10789_v35  ;;  %v10875_v35 = vld [vmem:[%s16765_s0 + $0x284] ss:$20 sps:$4 sm:$0xff]  }
  0x54   :  { %5755 = vmatpush1.bf16.msra.mxu1 %v10857_v36  ;;  %v10877_v36 = vld [vmem:[%s16765_s0 + $0x138c] ss:$20 sps:$4 sm:$0xff]  }
  0x55   :  { %5756 = vmatprep.subr.bf16.mxu1 %v11724_v0 }
  0x58   :  { %5757 = vmatpush1.bf16.msra.mxu1 %v10858_v38  ;;  %v10880_v38 = vld [vmem:[%s16765_s0 + $0x1388] ss:$20 sps:$4 sm:$0xff]  }
  0x59   :  { %5758 = vmatprep.subr.bf16.mxu1 %v11724_v0  ;;  %4746 = vmatmul.mubr.bf16.gmra.mxu0 %v10791_v37  ;;  %v10879_v37 = vld [vmem:[%s16765_s0 + $0x280] ss:$20 sps:$4 sm:$0xff]  }
  0x5a   :  { %5618 = vmatmul.mubr.bf16.gmra.mxu1 %v10792_v39  ;;  %4753 = vmatprep.mubr.bf16.mxu0 %v10793_v40  ;;  %v10883_v39 = vld [vmem:[%s16765_s0 + $0x2ac] ss:$20 sps:$4 sm:$0xff]   ;;  %v10885_v40 = vld [vmem:[%s16765_s0 + $0x13b4] ss:$20 sps:$4 sm:$0xff]  }
  0x5b   :  { %5625 = vmatprep.mubr.bf16.mxu1 %v10795_v41  ;;  %v10887_v41 = vld [vmem:[%s16765_s0 + $0x2a8] ss:$20 sps:$4 sm:$0xff]  }
  0x5c   :  { %5759 = vmatpush1.bf16.msra.mxu1 %v10865_v42  ;;  %v10888_v42 = vld [vmem:[%s16765_s0 + $0x13b0] ss:$20 sps:$4 sm:$0xff]  }
  0x5d   :  { %5760 = vmatprep.subr.bf16.mxu1 %v11724_v0 }
  0x60   :  { %5761 = vmatpush1.bf16.msra.mxu1 %v10866_v43  ;;  %v10891_v43 = vld [vmem:[%s16765_s0 + $0x2d4] ss:$20 sps:$4 sm:$0xff]  }
  0x61   :  { %5762 = vmatprep.subr.bf16.mxu1 %v11724_v0  ;;  %4754 = vmatmul.mubr.bf16.gmra.mxu0 %v10797_v44  ;;  %v10893_v44 = vld [vmem:[%s16765_s0 + $0x13dc] ss:$20 sps:$4 sm:$0xff]  }
  0x62   :  { %5626 = vmatmul.mubr.bf16.gmra.mxu1 %v10798_v45  ;;  %4761 = vmatprep.mubr.bf16.mxu0 %v10799_v46  ;;  %v10895_v45 = vld [vmem:[%s16765_s0 + $0x2d0] ss:$20 sps:$4 sm:$0xff]   ;;  %v10896_v46 = vld [vmem:[%s16765_s0 + $0x13d8] ss:$20 sps:$4 sm:$0xff]  }
  0x63   :  { %5633 = vmatprep.mubr.bf16.mxu1 %v10801_v47  ;;  %v10899_v47 = vld [vmem:[%s16765_s0 + $0x2fc] ss:$20 sps:$4 sm:$0xff]  }
  0x64   :  { %5763 = vmatpush2.bf16.msra.mxu1 %v10873_v48  ;;  %v10903_v48 = vld [vmem:[%s16765_s0 + $0xc] ss:$20 sps:$4 sm:$0xff]  }
  0x65   :  { %5764 = vmatprep.subr.bf16.mxu1 %v11724_v0 }
  0x68   :  { %5765 = vmatpush2.bf16.msra.mxu1 %v10874_v49  ;;  %v10901_v49 = vld [vmem:[%s16765_s0 + $0x8] ss:$20 sps:$4 sm:$0xff]  }
  0x69   :  { %5766 = vmatprep.subr.bf16.mxu1 %v11724_v0  ;;  %4762 = vmatmul.mubr.bf16.gmra.mxu0 %v10803_v50  ;;  %v10904_v50 = vld [vmem:[%s16765_s0 + $0x2f8] ss:$20 sps:$4 sm:$0xff]  }
  0x6a   :  { %5634 = vmatmul.mubr.bf16.gmra.mxu1 %v10804_v51  ;;  %4769 = vmatprep.mubr.bf16.mxu0 %v10805_v52  ;;  %v10905_v51 = vld [vmem:[%s16765_s0 + $0x324] ss:$20 sps:$4 sm:$0xff]   ;;  %v10907_v52 = vld [vmem:[%s16765_s0 + $0x34] ss:$20 sps:$4 sm:$0xff]  }
  0x6b   :  { %5641 = vmatprep.mubr.bf16.mxu1 %v10807_v53  ;;  %v10909_v53 = vld [vmem:[%s16765_s0 + $0x320] ss:$20 sps:$4 sm:$0xff]  }
  0x6c   :  { %5767 = vmatpush2.bf16.msra.mxu1 %v10881_v54  ;;  %v10910_v54 = vld [vmem:[%s16765_s0 + $0x30] ss:$20 sps:$4 sm:$0xff]  }
  0x6d   :  { %5768 = vmatprep.subr.bf16.mxu1 %v11724_v0 }
  0x70   :  { %5769 = vmatpush2.bf16.msra.mxu1 %v10882_v55  ;;  %v10911_v55 = vld [vmem:[%s16765_s0 + $0x34c] ss:$20 sps:$4 sm:$0xff]  }
  0x71   :  { %5770 = vmatprep.subr.bf16.mxu1 %v11724_v0  ;;  %4770 = vmatmul.mubr.bf16.gmra.mxu0 %v10809_v56  ;;  %v10913_v56 = vld [vmem:[%s16765_s0 + $0x5c] ss:$20 sps:$4 sm:$0xff]  }
  0x72   :  { %5642 = vmatmul.mubr.bf16.gmra.mxu1 %v10810_v57  ;;  %4777 = vmatprep.mubr.bf16.mxu0 %v10811_v58  ;;  %v10915_v57 = vld [vmem:[%s16765_s0 + $0x348] ss:$20 sps:$4 sm:$0xff]   ;;  %v10916_v58 = vld [vmem:[%s16765_s0 + $0x58] ss:$20 sps:$4 sm:$0xff]  }
  0x73   :  { %5649 = vmatprep.mubr.bf16.mxu1 %v10813_v59  ;;  %v10917_v59 = vld [vmem:[%s16765_s0 + $0x374] ss:$20 sps:$4 sm:$0xff]  }
  0x74   :  { %5771 = vmatpush2.bf16.msra.mxu1 %v10889_v60  ;;  %v10919_v60 = vld [vmem:[%s16765_s0 + $0x84] ss:$20 sps:$4 sm:$0xff]  }
  0x75   :  { %5772 = vmatprep.subr.bf16.mxu1 %v11724_v0 }
  0x78   :  { %5773 = vmatpush2.bf16.msra.mxu1 %v10890_v61  ;;  %v10921_v61 = vld [vmem:[%s16765_s0 + $0x370] ss:$20 sps:$4 sm:$0xff]  }
  0x79   :  { %5774 = vmatprep.subr.bf16.mxu1 %v11724_v0  ;;  %4778 = vmatmul.mubr.bf16.gmra.mxu0 %v10815_v62  ;;  %v10922_v62 = vld [vmem:[%s16765_s0 + $0x80] ss:$20 sps:$4 sm:$0xff]  }
  0x7a   :  { %5650 = vmatmul.mubr.bf16.gmra.mxu1 %v10816_v63  ;;  %4785 = vmatprep.mubr.bf16.mxu0 %v10817_v1  ;;  %v10923_v63 = vld [vmem:[%s16765_s0 + $0x39c] ss:$20 sps:$4 sm:$0xff]   ;;  %v10925_v1 = vld [vmem:[%s16765_s0 + $0xac] ss:$20 sps:$4 sm:$0xff]  }
  0x7b   :  { %5657 = vmatprep.mubr.bf16.mxu1 %v10819_v2  ;;  %v10927_v2 = vld [vmem:[%s16765_s0 + $0x398] ss:$20 sps:$4 sm:$0xff]  }
  0x7c   :  { %5775 = vmatpush2.bf16.msra.mxu1 %v10897_v3  ;;  %v10928_v3 = vld [vmem:[%s16765_s0 + $0xa8] ss:$20 sps:$4 sm:$0xff]  }
  0x7d   :  { %5776 = vmatprep.subr.bf16.mxu1 %v11724_v0  ;;  %v10831_v0 = vld [vmem:[%s16765_s0 + $0x129c] ss:$20 sps:$4 sm:$0xff]  }
  0x80   :  { %5777 = vmatpush2.bf16.msra.mxu1 %v10898_v4  ;;  %v10929_v4 = vld [vmem:[%s16765_s0 + $0x3c4] ss:$20 sps:$4 sm:$0xff]  }
  0x81   :  { %4786 = vmatmul.mubr.bf16.gmra.mxu0 %v10821_v5  ;;  %v10931_v5 = vld [vmem:[%s16765_s0 + $0xd4] ss:$20 sps:$4 sm:$0xff]  }
  0x82   :  { %5658 = vmatmul.mubr.bf16.gmra.mxu1 %v10822_v6  ;;  %4793 = vmatprep.mubr.bf16.mxu0 %v10823_v7  ;;  %v10933_v6 = vld [vmem:[%s16765_s0 + $0x3c0] ss:$20 sps:$4 sm:$0xff]   ;;  %v10934_v7 = vld [vmem:[%s16765_s0 + $0xd0] ss:$20 sps:$4 sm:$0xff]  }
  0x83   :  { %5665 = vmatprep.mubr.bf16.mxu1 %v10825_v8  ;;  %v10935_v8 = vld [vmem:[%s16765_s0 + $0x3ec] ss:$20 sps:$4 sm:$0xff]  }
  0x89   :  { %4794 = vmatmul.mubr.bf16.gmra.mxu0 %v10827_v9  ;;  %v10937_v9 = vld [vmem:[%s16765_s0 + $0xfc] ss:$20 sps:$4 sm:$0xff]  }
  0x8a   :  { %5666 = vmatmul.mubr.bf16.gmra.mxu1 %v10828_v10  ;;  %4801 = vmatprep.mubr.bf16.mxu0 %v10829_v11 }
  0x8b   :  { %5673 = vmatprep.mubr.bf16.mxu1 %v10831_v0 }
  0x91   :  { %4802 = vmatmul.mubr.bf16.gmra.mxu0 %v10833_v12 }
  0x92   :  { %5674 = vmatmul.mubr.bf16.gmra.mxu1 %v10834_v13  ;;  %4809 = vmatprep.mubr.bf16.mxu0 %v10835_v14  ;;  %v10939_v13 = vld [vmem:[%s16765_s0 + $0x3e8] ss:$20 sps:$4 sm:$0xff]   ;;  %v10940_v14 = vld [vmem:[%s16765_s0 + $0xf8] ss:$20 sps:$4 sm:$0xff]  }
  0x93   :  { %5681 = vmatprep.mubr.bf16.mxu1 %v10837_v15 }
  0x99   :  { %4810 = vmatmul.mubr.bf16.gmra.mxu0 %v10839_v16 }
  0x9a   :  { %5682 = vmatmul.mubr.bf16.gmra.mxu1 %v10840_v17  ;;  %4817 = vmatprep.mubr.bf16.mxu0 %v10843_v18  ;;  %v10941_v17 = vld [vmem:[%s16765_s0 + $0x414] ss:$20 sps:$4 sm:$0xff]   ;;  %v10943_v18 = vld [vmem:[%s16765_s0 + $0x124] ss:$20 sps:$4 sm:$0xff]  }
  0x9b   :  { %5689 = vmatprep.mubr.bf16.mxu1 %v10845_v19 }
  0xa1   :  { %4818 = vmatmul.mubr.bf16.gmra.mxu0 %v10847_v20 }
  0xa2   :  { %5690 = vmatmul.mubr.bf16.gmra.mxu1 %v10848_v21  ;;  %4825 = vmatprep.mubr.bf16.mxu0 %v10851_v23 }
  0xa3   :  { %5697 = vmatprep.mubr.bf16.mxu1 %v10853_v24 }
  0xa9   :  { %4826 = vmatmul.mubr.bf16.gmra.mxu0 %v10855_v25  ;;  %v10945_v25 = vld [vmem:[%s16765_s0 + $0x410] ss:$20 sps:$4 sm:$0xff]  }
  0xaa   :  { %5698 = vmatmul.mubr.bf16.gmra.mxu1 %v10856_v26  ;;  %4833 = vmatprep.mubr.bf16.mxu0 %v10859_v27  ;;  %v10946_v26 = vld [vmem:[%s16765_s0 + $0x120] ss:$20 sps:$4 sm:$0xff]  }
  0xab   :  { %5705 = vmatprep.mubr.bf16.mxu1 %v10861_v28 }
  0xb1   :  { %4834 = vmatmul.mubr.bf16.gmra.mxu0 %v10863_v29  ;;  %v10947_v29 = vld [vmem:[%s16765_s0 + $0x43c] ss:$20 sps:$4 sm:$0xff]  }
  0xb2   :  { %5706 = vmatmul.mubr.bf16.gmra.mxu1 %v10864_v30  ;;  %4841 = vmatprep.mubr.bf16.mxu0 %v10867_v31  ;;  %v10949_v30 = vld [vmem:[%s16765_s0 + $0x14c] ss:$20 sps:$4 sm:$0xff]  }
  0xb3   :  { %5713 = vmatprep.mubr.bf16.mxu1 %v10869_v32 }
  0xb9   :  { %4842 = vmatmul.mubr.bf16.gmra.mxu0 %v10871_v33 }
  0xba   :  { %5714 = vmatmul.mubr.bf16.gmra.mxu1 %v10872_v34  ;;  %4849 = vmatprep.mubr.bf16.mxu0 %v10875_v35 }
  0xbb   :  { %5721 = vmatprep.mubr.bf16.mxu1 %v10877_v36 }
  0xc1   :  { %4850 = vmatmul.mubr.bf16.gmra.mxu0 %v10879_v37  ;;  %v10951_v37 = vld [vmem:[%s16765_s0 + $0x438] ss:$20 sps:$4 sm:$0xff]  }
  0xc2   :  { %5722 = vmatmul.mubr.bf16.gmra.mxu1 %v10880_v38  ;;  %4857 = vmatprep.mubr.bf16.mxu0 %v10883_v39  ;;  %v10952_v38 = vld [vmem:[%s16765_s0 + $0x148] ss:$20 sps:$4 sm:$0xff]  }
  0xc3   :  { %5729 = vmatprep.mubr.bf16.mxu1 %v10885_v40 }
  0xc9   :  { %4858 = vmatmul.mubr.bf16.gmra.mxu0 %v10887_v41  ;;  %v10956_v41 = vld [vmem:[%s16765_s0 + $0x464] ss:$20 sps:$4 sm:$0xff]  }
  0xca   :  { %5730 = vmatmul.mubr.bf16.gmra.mxu1 %v10888_v42  ;;  %4865 = vmatprep.mubr.bf16.mxu0 %v10891_v43  ;;  %v10959_v42 = vld [vmem:[%s16765_s0 + $0x174] ss:$20 sps:$4 sm:$0xff]  }
  0xcb   :  { %5737 = vmatprep.mubr.bf16.mxu1 %v10893_v44 }
  0xd1   :  { %4866 = vmatmul.mubr.bf16.gmra.mxu0 %v10895_v45 }
  0xd2   :  { %5738 = vmatmul.mubr.bf16.gmra.mxu1 %v10896_v46  ;;  %4873 = vmatprep.mubr.bf16.mxu0 %v10899_v47 }
  0xd3   :  { %5778 = vmatprep.mubr.bf16.mxu1 %v10903_v48 }
  0xd9   :  { %4874 = vmatmul.mubr.bf16.gmra.mxu0 %v10904_v50  ;;  %v10957_v50 = vld [vmem:[%s16765_s0 + $0x170] ss:$20 sps:$4 sm:$0xff]  }
  0xda   :  { %5779 = vmatmul.mubr.bf16.vlgmr.msra.gmra.mxu1 %v10901_v49  ;;  %4881 = vmatprep.mubr.bf16.mxu0 %v10905_v51  ;;  %v10954_v49 = vld [vmem:[%s16765_s0 + $0x460] ss:$20 sps:$4 sm:$0xff]  }
  0xdb   :  { %5786 = vmatprep.mubr.bf16.mxu1 %v10907_v52 }
  0xe1   :  { %4882 = vmatmul.mubr.bf16.gmra.mxu0 %v10909_v53  ;;  %v10962_v53 = vld [vmem:[%s16765_s0 + $0x48c] ss:$20 sps:$4 sm:$0xff]  }
  0xe2   :  { %5787 = vmatmul.mubr.bf16.gmra.mxu1 %v10910_v54  ;;  %4889 = vmatprep.mubr.bf16.mxu0 %v10911_v55  ;;  %v10965_v54 = vld [vmem:[%s16765_s0 + $0x19c] ss:$20 sps:$4 sm:$0xff]  }
  0xe3   :  { %5794 = vmatprep.mubr.bf16.mxu1 %v10913_v56 }
  0xe9   :  { %4890 = vmatmul.mubr.bf16.gmra.mxu0 %v10915_v57 }
  0xea   :  { %5795 = vmatmul.mubr.bf16.gmra.mxu1 %v10916_v58  ;;  %4897 = vmatprep.mubr.bf16.mxu0 %v10917_v59 }
  0xeb   :  { %5802 = vmatprep.mubr.bf16.mxu1 %v10919_v60 }
  0xf1   :  { %4898 = vmatmul.mubr.bf16.gmra.mxu0 %v10921_v61  ;;  %v10960_v61 = vld [vmem:[%s16765_s0 + $0x488] ss:$20 sps:$4 sm:$0xff]  }
  0xf2   :  { %5803 = vmatmul.mubr.bf16.gmra.mxu1 %v10922_v62  ;;  %4905 = vmatprep.mubr.bf16.mxu0 %v10923_v63  ;;  %v10963_v62 = vld [vmem:[%s16765_s0 + $0x198] ss:$20 sps:$4 sm:$0xff]  }
  0xf3   :  { %5810 = vmatprep.mubr.bf16.mxu1 %v10925_v1 }
  0xf9   :  { %4906 = vmatmul.mubr.bf16.gmra.mxu0 %v10927_v2  ;;  %v10968_v2 = vld [vmem:[%s16765_s0 + $0x4b4] ss:$20 sps:$4 sm:$0xff]  }
  0xfa   :  { %5811 = vmatmul.mubr.bf16.gmra.mxu1 %v10928_v3  ;;  %4913 = vmatprep.mubr.bf16.mxu0 %v10929_v4  ;;  %v10971_v3 = vld [vmem:[%s16765_s0 + $0x1c4] ss:$20 sps:$4 sm:$0xff]  }
  0xfb   :  { %5818 = vmatprep.mubr.bf16.mxu1 %v10931_v5 }
 0x101   :  { %v12269_v10 = vpop.f32.mrf.mxu0  ;;  %4914 = vmatmul.mubr.bf16.gmra.mxu0 %v10933_v6 }
 0x102   :  { %v12271_v11 = vpop.f32.mrf.mxu1  ;;  %5819 = vmatmul.mubr.bf16.gmra.mxu1 %v10934_v7  ;;  %4921 = vmatprep.mubr.bf16.mxu0 %v10935_v8 }
 0x103   :  { %16886 = vst [vmem:[#allocation3_spill] sm:$0xff] %v12271_v11  ;;  %5826 = vmatprep.mubr.bf16.mxu1 %v10937_v9  ;;  %v4725_v0 = vpop.f32.mrf.mxu0 }
 0x104   :  { %v5597_v12 = vpop.f32.mrf.mxu1  ;;  %v10966_v0 = vld [vmem:[%s16765_s0 + $0x4b0] ss:$20 sps:$4 sm:$0xff]  }
 0x105   :  { %v12279_v15 = vpop.f32.mrf.mxu0  ;;  %v10969_v12 = vld [vmem:[%s16765_s0 + $0x1c0] ss:$20 sps:$4 sm:$0xff]  }
 0x106   :  { %v12281_v16 = vpop.f32.mrf.mxu1 }
 0x107   :  { %16887 = vst [vmem:[#allocation4_spill] sm:$0xff] %v12281_v16  ;;  %v4728_v19 = vpop.f32.mrf.mxu0  ;;  %v11068_v16 = vld [vmem:[%s16765_s0 + $0x758] ss:$20 sps:$4 sm:$0xff]  }
 0x108   :  { %v5600_v20 = vpop.f32.mrf.mxu1 }
 0x109   :  { %v12289_v21 = vpop.f32.mrf.mxu0  ;;  %4922 = vmatmul.mubr.bf16.gmra.mxu0 %v10939_v13 }
 0x10a   :  { %v12291_v22 = vpop.f32.mrf.mxu1  ;;  %5827 = vmatmul.mubr.bf16.gmra.mxu1 %v10940_v14  ;;  %4929 = vmatprep.mubr.bf16.mxu0 %v10941_v17  ;;  %v10974_v17 = vld [vmem:[%s16765_s0 + $0x4dc] ss:$20 sps:$4 sm:$0xff]  }
 0x10b   :  { %16888 = vst [vmem:[#allocation5_spill] sm:$0xff] %v12291_v22  ;;  %5834 = vmatprep.mubr.bf16.mxu1 %v10943_v18  ;;  %v4733_v23 = vpop.f32.mrf.mxu0  ;;  %v10977_v18 = vld [vmem:[%s16765_s0 + $0x1ec] ss:$20 sps:$4 sm:$0xff]  }
 0x10c   :  { %v5605_v24 = vpop.f32.mrf.mxu1 }
 0x10d   :  { %v12299_v27 = vpop.f32.mrf.mxu0 }
 0x10e   :  { %v12301_v28 = vpop.f32.mrf.mxu1 }
 0x10f   :  { %16889 = vst [vmem:[#allocation6_spill] sm:$0xff] %v12301_v28  ;;  %v4736_v31 = vpop.f32.mrf.mxu0  ;;  %v11062_v28 = vld [vmem:[%s16765_s0 + $0x730] ss:$20 sps:$4 sm:$0xff]  }
 0x110   :  { %v5608_v32 = vpop.f32.mrf.mxu1 }
 0x111   :  { %v12309_v33 = vpop.f32.mrf.mxu0  ;;  %4930 = vmatmul.mubr.bf16.gmra.mxu0 %v10945_v25 }
 0x112   :  { %v12311_v34 = vpop.f32.mrf.mxu1  ;;  %5835 = vmatmul.mubr.bf16.gmra.mxu1 %v10946_v26  ;;  %4937 = vmatprep.mubr.bf16.mxu0 %v10947_v29  ;;  %v10972_v29 = vld [vmem:[%s16765_s0 + $0x4d8] ss:$20 sps:$4 sm:$0xff]  }
 0x113   :  { %16890 = vst [vmem:[#allocation7_spill] sm:$0xff] %v12311_v34  ;;  %5842 = vmatprep.mubr.bf16.mxu1 %v10949_v30  ;;  %v4741_v35 = vpop.f32.mrf.mxu0  ;;  %v10975_v30 = vld [vmem:[%s16765_s0 + $0x1e8] ss:$20 sps:$4 sm:$0xff]  }
 0x114   :  { %v5613_v36 = vpop.f32.mrf.mxu1  ;;  %v10980_v35 = vld [vmem:[%s16765_s0 + $0x504] ss:$20 sps:$4 sm:$0xff]  }
 0x115   :  { %v12319_v39 = vpop.f32.mrf.mxu0  ;;  %v10983_v36 = vld [vmem:[%s16765_s0 + $0x214] ss:$20 sps:$4 sm:$0xff]  }
 0x116   :  { %v12321_v40 = vpop.f32.mrf.mxu1 }
 0x117   :  { %16891 = vst [vmem:[#allocation8_spill] sm:$0xff] %v12321_v40  ;;  %v4744_v43 = vpop.f32.mrf.mxu0 }
 0x118   :  { %v5616_v44 = vpop.f32.mrf.mxu1 }
 0x119   :  { %v12329_v45 = vpop.f32.mrf.mxu0  ;;  %4938 = vmatmul.mubr.bf16.gmra.mxu0 %v10951_v37 }
 0x11a   :  { %v12331_v46 = vpop.f32.mrf.mxu1  ;;  %5843 = vmatmul.mubr.bf16.gmra.mxu1 %v10952_v38  ;;  %4945 = vmatprep.mubr.bf16.mxu0 %v10956_v41 }
 0x11b   :  { %16892 = vst [vmem:[#allocation9_spill] sm:$0xff] %v12331_v46  ;;  %5850 = vmatprep.mubr.bf16.mxu1 %v10959_v42  ;;  %v4749_v47 = vpop.f32.mrf.mxu0 }
 0x11c   :  { %v5621_v48 = vpop.f32.mrf.mxu1  ;;  %v10978_v47 = vld [vmem:[%s16765_s0 + $0x500] ss:$20 sps:$4 sm:$0xff]  }
 0x11d   :  { %v12339_v51 = vpop.f32.mrf.mxu0  ;;  %v10981_v48 = vld [vmem:[%s16765_s0 + $0x210] ss:$20 sps:$4 sm:$0xff]  }
 0x11e   :  { %v12341_v52 = vpop.f32.mrf.mxu1 }
 0x11f   :  { %16893 = vst [vmem:[#allocation10_spill] sm:$0xff] %v12341_v52  ;;  %v4752_v55 = vpop.f32.mrf.mxu0  ;;  %v11056_v52 = vld [vmem:[%s16765_s0 + $0x708] ss:$20 sps:$4 sm:$0xff]  }
 0x120   :  { %v5624_v56 = vpop.f32.mrf.mxu1 }
 0x121   :  { %v12349_v57 = vpop.f32.mrf.mxu0  ;;  %4946 = vmatmul.mubr.bf16.gmra.mxu0 %v10954_v49 }
 0x122   :  { %v12351_v58 = vpop.f32.mrf.mxu1  ;;  %5851 = vmatmul.mubr.bf16.gmra.mxu1 %v10957_v50  ;;  %4953 = vmatprep.mubr.bf16.mxu0 %v10962_v53  ;;  %v10986_v53 = vld [vmem:[%s16765_s0 + $0x52c] ss:$20 sps:$4 sm:$0xff]  }
 0x123   :  { %16894 = vst [vmem:[#allocation11_spill] sm:$0xff] %v12351_v58  ;;  %5858 = vmatprep.mubr.bf16.mxu1 %v10965_v54  ;;  %v4757_v59 = vpop.f32.mrf.mxu0  ;;  %v10989_v54 = vld [vmem:[%s16765_s0 + $0x23c] ss:$20 sps:$4 sm:$0xff]  }
 0x124   :  { %v5629_v60 = vpop.f32.mrf.mxu1 }
 0x125   :  { %v12359_v63 = vpop.f32.mrf.mxu0 }
 0x126   :  { %v12361_v1 = vpop.f32.mrf.mxu1 }
 0x127   :  { %16895 = vst [vmem:[#allocation12_spill] sm:$0xff] %v12361_v1  ;;  %v4760_v4 = vpop.f32.mrf.mxu0 }
 0x128   :  { %v5632_v5 = vpop.f32.mrf.mxu1 }
 0x129   :  { %v12369_v6 = vpop.f32.mrf.mxu0  ;;  %4954 = vmatmul.mubr.bf16.gmra.mxu0 %v10960_v61 }
 0x12a   :  { %v12371_v7 = vpop.f32.mrf.mxu1  ;;  %5859 = vmatmul.mubr.bf16.gmra.mxu1 %v10963_v62  ;;  %4961 = vmatprep.mubr.bf16.mxu0 %v10968_v2  ;;  %v10984_v2 = vld [vmem:[%s16765_s0 + $0x528] ss:$20 sps:$4 sm:$0xff]  }
 0x12b   :  { %16896 = vst [vmem:[#allocation13_spill] sm:$0xff] %v12371_v7  ;;  %5866 = vmatprep.mubr.bf16.mxu1 %v10971_v3  ;;  %v4765_v8 = vpop.f32.mrf.mxu0  ;;  %v10987_v3 = vld [vmem:[%s16765_s0 + $0x238] ss:$20 sps:$4 sm:$0xff]  }
 0x12c   :  { %v5637_v9 = vpop.f32.mrf.mxu1  ;;  %v10992_v8 = vld [vmem:[%s16765_s0 + $0x554] ss:$20 sps:$4 sm:$0xff]  }
 0x12d   :  { %v12379_v13 = vpop.f32.mrf.mxu0  ;;  %v10995_v9 = vld [vmem:[%s16765_s0 + $0x264] ss:$20 sps:$4 sm:$0xff]  }
 0x12e   :  { %v12381_v14 = vpop.f32.mrf.mxu1 }
 0x12f   :  { %16897 = vst [vmem:[#allocation14_spill] sm:$0xff] %v12381_v14  ;;  %v4768_v19 = vpop.f32.mrf.mxu0  ;;  %v11050_v14 = vld [vmem:[%s16765_s0 + $0x6e0] ss:$20 sps:$4 sm:$0xff]  }
 0x130   :  { %v5640_v20 = vpop.f32.mrf.mxu1 }
 0x131   :  { %v12389_v23 = vpop.f32.mrf.mxu0  ;;  %4962 = vmatmul.mubr.bf16.gmra.mxu0 %v10966_v0 }
 0x132   :  { %v12391_v24 = vpop.f32.mrf.mxu1  ;;  %5867 = vmatmul.mubr.bf16.gmra.mxu1 %v10969_v12  ;;  %4969 = vmatprep.mubr.bf16.mxu0 %v10974_v17 }
 0x133   :  { %16898 = vst [vmem:[#allocation15_spill] sm:$0xff] %v12391_v24  ;;  %5874 = vmatprep.mubr.bf16.mxu1 %v10977_v18  ;;  %v4773_v25 = vpop.f32.mrf.mxu0 }
 0x134   :  { %v5645_v26 = vpop.f32.mrf.mxu1  ;;  %v10990_v25 = vld [vmem:[%s16765_s0 + $0x550] ss:$20 sps:$4 sm:$0xff]  }
 0x135   :  { %v12399_v31 = vpop.f32.mrf.mxu0  ;;  %v10993_v26 = vld [vmem:[%s16765_s0 + $0x260] ss:$20 sps:$4 sm:$0xff]  }
 0x136   :  { %v12401_v32 = vpop.f32.mrf.mxu1 }
 0x137   :  { %16899 = vst [vmem:[#allocation16_spill] sm:$0xff] %v12401_v32  ;;  %v4776_v37 = vpop.f32.mrf.mxu0 }
 0x138   :  { %v5648_v38 = vpop.f32.mrf.mxu1 }
 0x139   :  { %v12409_v41 = vpop.f32.mrf.mxu0  ;;  %4970 = vmatmul.mubr.bf16.gmra.mxu0 %v10972_v29 }
 0x13a   :  { %v12411_v42 = vpop.f32.mrf.mxu1  ;;  %5875 = vmatmul.mubr.bf16.gmra.mxu1 %v10975_v30  ;;  %4977 = vmatprep.mubr.bf16.mxu0 %v10980_v35  ;;  %v10998_v35 = vld [vmem:[%s16765_s0 + $0x57c] ss:$20 sps:$4 sm:$0xff]  }
 0x13b   :  { %16900 = vst [vmem:[#allocation17_spill] sm:$0xff] %v12411_v42  ;;  %5882 = vmatprep.mubr.bf16.mxu1 %v10983_v36  ;;  %v4781_v43 = vpop.f32.mrf.mxu0  ;;  %v11001_v36 = vld [vmem:[%s16765_s0 + $0x28c] ss:$20 sps:$4 sm:$0xff]  }
 0x13c   :  { %v5653_v44 = vpop.f32.mrf.mxu1  ;;  %v11044_v42 = vld [vmem:[%s16765_s0 + $0x6b8] ss:$20 sps:$4 sm:$0xff]  }
 0x13d   :  { %v12419_v49 = vpop.f32.mrf.mxu0 }
 0x13e   :  { %v12421_v50 = vpop.f32.mrf.mxu1 }
 0x13f   :  { %16901 = vst [vmem:[#allocation18_spill] sm:$0xff] %v12421_v50  ;;  %v4784_v55 = vpop.f32.mrf.mxu0  ;;  %v11038_v50 = vld [vmem:[%s16765_s0 + $0x690] ss:$20 sps:$4 sm:$0xff]  }
 0x140   :  { %v5656_v56 = vpop.f32.mrf.mxu1 }
 0x141   :  { %v12429_v59 = vpop.f32.mrf.mxu0  ;;  %4978 = vmatmul.mubr.bf16.gmra.mxu0 %v10978_v47 }
 0x142   :  { %v12431_v60 = vpop.f32.mrf.mxu1  ;;  %5883 = vmatmul.mubr.bf16.gmra.mxu1 %v10981_v48  ;;  %4985 = vmatprep.mubr.bf16.mxu0 %v10986_v53  ;;  %v10996_v53 = vld [vmem:[%s16765_s0 + $0x578] ss:$20 sps:$4 sm:$0xff]  }
 0x143   :  { %16902 = vst [vmem:[#allocation19_spill] sm:$0xff] %v12431_v60  ;;  %5890 = vmatprep.mubr.bf16.mxu1 %v10989_v54  ;;  %v4789_v61 = vpop.f32.mrf.mxu0  ;;  %v10999_v54 = vld [vmem:[%s16765_s0 + $0x288] ss:$20 sps:$4 sm:$0xff]  }
 0x144   :  { %v5661_v62 = vpop.f32.mrf.mxu1  ;;  %v11004_v61 = vld [vmem:[%s16765_s0 + $0x5a4] ss:$20 sps:$4 sm:$0xff]  }
 0x145   :  { %v12439_v4 = vpop.f32.mrf.mxu0  ;;  %v11007_v62 = vld [vmem:[%s16765_s0 + $0x2b4] ss:$20 sps:$4 sm:$0xff]  }
 0x146   :  { %v12441_v5 = vpop.f32.mrf.mxu1 }
 0x147   :  { %16903 = vst [vmem:[#allocation20_spill] sm:$0xff] %v12441_v5  ;;  %v4792_v0 = vpop.f32.mrf.mxu0 }
 0x148   :  { %v5664_v12 = vpop.f32.mrf.mxu1 }
 0x149   :  { %v12449_v17 = vpop.f32.mrf.mxu0  ;;  %4986 = vmatmul.mubr.bf16.gmra.mxu0 %v10984_v2 }
 0x14a   :  { %v12451_v18 = vpop.f32.mrf.mxu1  ;;  %5891 = vmatmul.mubr.bf16.gmra.mxu1 %v10987_v3  ;;  %4993 = vmatprep.mubr.bf16.mxu0 %v10992_v8 }
 0x14b   :  { %16904 = vst [vmem:[#allocation21_spill] sm:$0xff] %v12451_v18  ;;  %5898 = vmatprep.mubr.bf16.mxu1 %v10995_v9  ;;  %v4797_v19 = vpop.f32.mrf.mxu0 }
 0x14c   :  { %v5669_v20 = vpop.f32.mrf.mxu1  ;;  %v11002_v19 = vld [vmem:[%s16765_s0 + $0x5a0] ss:$20 sps:$4 sm:$0xff]  }
 0x14d   :  { %v12459_v29 = vpop.f32.mrf.mxu0  ;;  %v11005_v20 = vld [vmem:[%s16765_s0 + $0x2b0] ss:$20 sps:$4 sm:$0xff]  }
 0x14e   :  { %v12461_v30 = vpop.f32.mrf.mxu1 }
 0x14f   :  { %16905 = vst [vmem:[#allocation22_spill] sm:$0xff] %v12461_v30  ;;  %v4800_v37 = vpop.f32.mrf.mxu0 }
 0x150   :  { %v5672_v38 = vpop.f32.mrf.mxu1 }
 0x151   :  { %v12469_v43 = vpop.f32.mrf.mxu0  ;;  %4994 = vmatmul.mubr.bf16.gmra.mxu0 %v10990_v25 }
 0x152   :  { %v12471_v44 = vpop.f32.mrf.mxu1  ;;  %5899 = vmatmul.mubr.bf16.gmra.mxu1 %v10993_v26  ;;  %5001 = vmatprep.mubr.bf16.mxu0 %v10998_v35  ;;  %v11010_v35 = vld [vmem:[%s16765_s0 + $0x5cc] ss:$20 sps:$4 sm:$0xff]  }
 0x153   :  { %16906 = vst [vmem:[#allocation23_spill] sm:$0xff] %v12471_v44  ;;  %5906 = vmatprep.mubr.bf16.mxu1 %v11001_v36  ;;  %v4805_v47 = vpop.f32.mrf.mxu0  ;;  %v11013_v36 = vld [vmem:[%s16765_s0 + $0x2dc] ss:$20 sps:$4 sm:$0xff]  }
 0x154   :  { %v5677_v48 = vpop.f32.mrf.mxu1 }
 0x155   :  { %v12479_v55 = vpop.f32.mrf.mxu0 }
 0x156   :  { %v12481_v56 = vpop.f32.mrf.mxu1 }
 0x157   :  { %16907 = vst [vmem:[#allocation24_spill] sm:$0xff] %v12481_v56  ;;  %v4808_v2 = vpop.f32.mrf.mxu0 }
 0x158   :  { %v5680_v3 = vpop.f32.mrf.mxu1 }
 0x159   :  { %v12489_v8 = vpop.f32.mrf.mxu0  ;;  %5002 = vmatmul.mubr.bf16.gmra.mxu0 %v10996_v53 }
 0x15a   :  { %v12491_v9 = vpop.f32.mrf.mxu1  ;;  %5907 = vmatmul.mubr.bf16.gmra.mxu1 %v10999_v54  ;;  %5009 = vmatprep.mubr.bf16.mxu0 %v11004_v61  ;;  %v11008_v61 = vld [vmem:[%s16765_s0 + $0x5c8] ss:$20 sps:$4 sm:$0xff]  }
 0x15b   :  { %16908 = vst [vmem:[#allocation25_spill] sm:$0xff] %v12491_v9  ;;  %5914 = vmatprep.mubr.bf16.mxu1 %v11007_v62  ;;  %v4813_v0 = vpop.f32.mrf.mxu0  ;;  %v11011_v62 = vld [vmem:[%s16765_s0 + $0x2d8] ss:$20 sps:$4 sm:$0xff]  }
 0x15c   :  { %v5685_v12 = vpop.f32.mrf.mxu1  ;;  %v11016_v0 = vld [vmem:[%s16765_s0 + $0x5f4] ss:$20 sps:$4 sm:$0xff]   ;;  %v11020_v9 = vld [vmem:[%s16765_s0 + $0x618] ss:$20 sps:$4 sm:$0xff]  }
 0x15d   :  { %v12499_v25 = vpop.f32.mrf.mxu0  ;;  %v11019_v12 = vld [vmem:[%s16765_s0 + $0x304] ss:$20 sps:$4 sm:$0xff]  }
 0x15e   :  { %v12501_v26 = vpop.f32.mrf.mxu1 }
 0x15f   :  { %16909 = vst [vmem:[#allocation26_spill] sm:$0xff] %v12501_v26  ;;  %v4816_v37 = vpop.f32.mrf.mxu0  ;;  %v11014_v26 = vld [vmem:[%s16765_s0 + $0x5f0] ss:$20 sps:$4 sm:$0xff]  }
 0x160   :  { %v5688_v38 = vpop.f32.mrf.mxu1 }
 0x161   :  { %v12509_v47 = vpop.f32.mrf.mxu0  ;;  %5010 = vmatmul.mubr.bf16.gmra.mxu0 %v11002_v19 }
 0x162   :  { %v12511_v48 = vpop.f32.mrf.mxu1  ;;  %5915 = vmatmul.mubr.bf16.gmra.mxu1 %v11005_v20  ;;  %5017 = vmatprep.mubr.bf16.mxu0 %v11010_v35 }
 0x163   :  { %16910 = vst [vmem:[#allocation27_spill] sm:$0xff] %v12511_v48  ;;  %5922 = vmatprep.mubr.bf16.mxu1 %v11013_v36  ;;  %v4821_v53 = vpop.f32.mrf.mxu0 }
 0x164   :  { %v5693_v54 = vpop.f32.mrf.mxu1 }
 0x165   :  { %v12519_v2 = vpop.f32.mrf.mxu0 }
 0x166   :  { %16911 = vst [vmem:[#allocation28_spill] sm:$0xff] %v12519_v2  ;;  %v12521_v3 = vpop.f32.mrf.mxu1  ;;  %v11124_v2 = vld [vmem:[%s16765_s0 + $0x8c0] ss:$20 sps:$4 sm:$0xff]  }
 0x167   :  { %16912 = vst [vmem:[#allocation29_spill] sm:$0xff] %v12521_v3  ;;  %v4824_v19 = vpop.f32.mrf.mxu0 }
 0x168   :  { %v5696_v20 = vpop.f32.mrf.mxu1  ;;  %v11017_v19 = vld [vmem:[%s16765_s0 + $0x300] ss:$20 sps:$4 sm:$0xff]  }
 0x169   :  { %v12529_v35 = vpop.f32.mrf.mxu0  ;;  %5018 = vmatmul.mubr.bf16.gmra.mxu0 %v11008_v61  ;;  %v11022_v61 = vld [vmem:[%s16765_s0 + $0x61c] ss:$20 sps:$4 sm:$0xff]  }
 0x16a   :  { %v12531_v36 = vpop.f32.mrf.mxu1  ;;  %5923 = vmatmul.mubr.bf16.gmra.mxu1 %v11011_v62  ;;  %5025 = vmatprep.mubr.bf16.mxu0 %v11016_v0  ;;  %v11025_v62 = vld [vmem:[%s16765_s0 + $0x32c] ss:$20 sps:$4 sm:$0xff]  }
 0x16b   :  { %16913 = vst [vmem:[#allocation30_spill] sm:$0xff] %v12531_v36  ;;  %5930 = vmatprep.mubr.bf16.mxu1 %v11019_v12  ;;  %v4829_v37 = vpop.f32.mrf.mxu0 }
 0x16c   :  { %v5701_v38 = vpop.f32.mrf.mxu1 }
 0x16d   :  { %v12533_v53 = vpop.f32.mrf.mxu0 }
 0x16e   :  { %16914 = vst [vmem:[#allocation31_spill] sm:$0xff] %v12533_v53  ;;  %v12535_v54 = vpop.f32.mrf.mxu1 }
 0x16f   :  { %16915 = vst [vmem:[#allocation32_spill] sm:$0xff] %v12535_v54  ;;  %v4832_v0 = vpop.f32.mrf.mxu0 }
 0x170   :  { %v5704_v12 = vpop.f32.mrf.mxu1  ;;  %v11023_v0 = vld [vmem:[%s16765_s0 + $0x328] ss:$20 sps:$4 sm:$0xff]  }
 0x171   :  { %v12549_v20 = vpop.f32.mrf.mxu0  ;;  %5026 = vmatmul.mubr.bf16.gmra.mxu0 %v11014_v26  ;;  %v11028_v26 = vld [vmem:[%s16765_s0 + $0x644] ss:$20 sps:$4 sm:$0xff]  }
 0x172   :  { %16916 = vst [vmem:[#allocation33_spill] sm:$0xff] %v12549_v20  ;;  %v12551_v37 = vpop.f32.mrf.mxu1  ;;  %5931 = vmatmul.mubr.bf16.gmra.mxu1 %v11017_v19  ;;  %5033 = vmatprep.mubr.bf16.mxu0 %v11022_v61  ;;  %v11116_v19 = vld [vmem:[%s16764_s2 + $0x108] sm:$0xff]  }
 0x173   :  { %16917 = vst [vmem:[#allocation34_spill] sm:$0xff] %v12551_v37  ;;  %5938 = vmatprep.mubr.bf16.mxu1 %v11025_v62  ;;  %v4837_v38 = vpop.f32.mrf.mxu0  ;;  %10318 = vmatprep.subr.bf16.mxu0 %v11116_v19  ;;  %v11117_v20 = vld [vmem:[%s16765_s0 + $0x898] ss:$20 sps:$4 sm:$0xff]  }
 0x174   :  { %v5709_v54 = vpop.f32.mrf.mxu1  ;;  %10319 = vmatpush3.bf16.msra.mxu0 %v11116_v19 }
 0x175   :  { %v12553_v36 = vpop.f32.mrf.mxu0  ;;  %v11031_v54 = vld [vmem:[%s16765_s0 + $0x354] ss:$20 sps:$4 sm:$0xff]  }
 0x176   :  { %16918 = vst [vmem:[#allocation35_spill] sm:$0xff] %v12553_v36  ;;  %v12555_v3 = vpop.f32.mrf.mxu1  ;;  %v11110_v36 = vld [vmem:[%s16765_s0 + $0x870] ss:$20 sps:$4 sm:$0xff]  }
 0x177   :  { %16919 = vst [vmem:[#allocation36_spill] sm:$0xff] %v12555_v3  ;;  %v4840_v61 = vpop.f32.mrf.mxu0 }
 0x178   :  { %v5712_v62 = vpop.f32.mrf.mxu1  ;;  %v11026_v61 = vld [vmem:[%s16765_s0 + $0x640] ss:$20 sps:$4 sm:$0xff]  }
 0x179   :  { %v12572_v12 = vpop.f32.mrf.mxu0  ;;  %5034 = vmatmul.mubr.bf16.gmra.mxu0 %v11020_v9  ;;  %v11029_v9 = vld [vmem:[%s16765_s0 + $0x350] ss:$20 sps:$4 sm:$0xff]  }
 0x17a   :  { %16920 = vst [vmem:[#allocation37_spill] sm:$0xff] %v12572_v12  ;;  %v12574_v38 = vpop.f32.mrf.mxu1  ;;  %5939 = vmatmul.mubr.bf16.gmra.mxu1 %v11023_v0  ;;  %5041 = vmatprep.mubr.bf16.mxu0 %v11028_v26  ;;  %v11034_v0 = vld [vmem:[%s16765_s0 + $0x66c] ss:$20 sps:$4 sm:$0xff]  }
 0x17b   :  { %16921 = vst [vmem:[#allocation38_spill] sm:$0xff] %v12574_v38  ;;  %5946 = vmatprep.mubr.bf16.mxu1 %v11031_v54  ;;  %v4845_v3 = vpop.f32.mrf.mxu0  ;;  %v11123_v54 = vld [vmem:[%s16766_s4 + $0x38] sm:$0xff]  }
 0x17c   :  { %v5717_v37 = vpop.f32.mrf.mxu1  ;;  %v11037_v3 = vld [vmem:[%s16765_s0 + $0x37c] ss:$20 sps:$4 sm:$0xff]   ;;  %10578 = vmatprep.subr.bf16.mxu1 %v11123_v54 }
 0x17d   :  { %v12576_v48 = vpop.f32.mrf.mxu0  ;;  %10579 = vmatpush3.bf16.msra.mxu1 %v11123_v54 }
 0x17e   :  { %16922 = vst [vmem:[#allocation39_spill] sm:$0xff] %v12576_v48  ;;  %v12578_v30 = vpop.f32.mrf.mxu1 }
 0x17f   :  { %16923 = vst [vmem:[#allocation40_spill] sm:$0xff] %v12578_v30  ;;  %v4848_v37 = vpop.f32.mrf.mxu0 }
 0x180   :  { %v5720_v26 = vpop.f32.mrf.mxu1 }
 0x181   :  { %v12595_v19 = vpop.f32.mrf.mxu0  ;;  %5042 = vmatmul.mubr.bf16.gmra.mxu0 %v11026_v61  ;;  %v11032_v26 = vld [vmem:[%s16765_s0 + $0x668] ss:$20 sps:$4 sm:$0xff]   ;;  %v11035_v61 = vld [vmem:[%s16765_s0 + $0x378] ss:$20 sps:$4 sm:$0xff]  }
 0x182   :  { %16924 = vst [vmem:[#allocation41_spill] sm:$0xff] %v12595_v19  ;;  %v12597_v62 = vpop.f32.mrf.mxu1  ;;  %5947 = vmatmul.mubr.bf16.gmra.mxu1 %v11029_v9  ;;  %5049 = vmatprep.mubr.bf16.mxu0 %v11034_v0  ;;  %v11040_v9 = vld [vmem:[%s16765_s0 + $0x694] ss:$20 sps:$4 sm:$0xff]  }
 0x183   :  { %16925 = vst [vmem:[#allocation42_spill] sm:$0xff] %v12597_v62  ;;  %5954 = vmatprep.mubr.bf16.mxu1 %v11037_v3  ;;  %v4853_v30 = vpop.f32.mrf.mxu0  ;;  %v11104_v19 = vld [vmem:[%s16765_s0 + $0x848] ss:$20 sps:$4 sm:$0xff]  }
 0x184   :  { %v5725_v38 = vpop.f32.mrf.mxu1  ;;  %v11043_v30 = vld [vmem:[%s16765_s0 + $0x3a4] ss:$20 sps:$4 sm:$0xff]  }
 0x185   :  { %v12599_v56 = vpop.f32.mrf.mxu0 }
 0x186   :  { %16926 = vst [vmem:[#allocation43_spill] sm:$0xff] %v12599_v56  ;;  %v12601_v37 = vpop.f32.mrf.mxu1  ;;  %v11098_v56 = vld [vmem:[%s16765_s0 + $0x820] ss:$20 sps:$4 sm:$0xff]  }
 0x187   :  { %16927 = vst [vmem:[#allocation44_spill] sm:$0xff] %v12601_v37  ;;  %v4856_v38 = vpop.f32.mrf.mxu0 }
 0x188   :  { %v5728_v0 = vpop.f32.mrf.mxu1  ;;  %v11041_v38 = vld [vmem:[%s16765_s0 + $0x3a0] ss:$20 sps:$4 sm:$0xff]  }
 0x189   :  { %v12615_v3 = vpop.f32.mrf.mxu0  ;;  %5050 = vmatmul.mubr.bf16.gmra.mxu0 %v11032_v26  ;;  %v11046_v26 = vld [vmem:[%s16765_s0 + $0x6bc] ss:$20 sps:$4 sm:$0xff]  }
 0x18a   :  { %16928 = vst [vmem:[#allocation45_spill] sm:$0xff] %v12615_v3  ;;  %v12617_v54 = vpop.f32.mrf.mxu1  ;;  %5955 = vmatmul.mubr.bf16.gmra.mxu1 %v11035_v61  ;;  %5057 = vmatprep.mubr.bf16.mxu0 %v11040_v9 }
 0x18b   :  { %16929 = vst [vmem:[#allocation46_spill] sm:$0xff] %v12617_v54  ;;  %5962 = vmatprep.mubr.bf16.mxu1 %v11043_v30  ;;  %v4861_v37 = vpop.f32.mrf.mxu0 }
 0x18c   :  { %v5733_v62 = vpop.f32.mrf.mxu1 }
 0x18d   :  { %v12619_v18 = vpop.f32.mrf.mxu0  ;;  %v11049_v62 = vld [vmem:[%s16765_s0 + $0x3cc] ss:$20 sps:$4 sm:$0xff]  }
 0x18e   :  { %16930 = vst [vmem:[#allocation47_spill] sm:$0xff] %v12619_v18  ;;  %v12621_v44 = vpop.f32.mrf.mxu1 }
 0x18f   :  { %16931 = vst [vmem:[#allocation48_spill] sm:$0xff] %v12621_v44  ;;  %v4864_v37 = vpop.f32.mrf.mxu0 }
 0x190   :  { %v5736_v61 = vpop.f32.mrf.mxu1  ;;  %v11047_v37 = vld [vmem:[%s16765_s0 + $0x3c8] ss:$20 sps:$4 sm:$0xff]  }
 0x191   :  { %v12635_v9 = vpop.f32.mrf.mxu0  ;;  %5058 = vmatmul.mubr.bf16.gmra.mxu0 %v11038_v50  ;;  %v11052_v50 = vld [vmem:[%s16765_s0 + $0x6e4] ss:$20 sps:$4 sm:$0xff]  }
 0x192   :  { %16932 = vst [vmem:[#allocation49_spill] sm:$0xff] %v12635_v9  ;;  %v12637_v30 = vpop.f32.mrf.mxu1  ;;  %5963 = vmatmul.mubr.bf16.gmra.mxu1 %v11041_v38  ;;  %5065 = vmatprep.mubr.bf16.mxu0 %v11046_v26  ;;  %v11092_v9 = vld [vmem:[%s16765_s0 + $0x7f8] ss:$20 sps:$4 sm:$0xff]  }
 0x193   :  { %16933 = vst [vmem:[#allocation50_spill] sm:$0xff] %v12637_v30  ;;  %5970 = vmatprep.mubr.bf16.mxu1 %v11049_v62  ;;  %v4869_v0 = vpop.f32.mrf.mxu0 }
 0x194   :  { %v5741_v44 = vpop.f32.mrf.mxu1 }
 0x195   :  { %v12639_v54 = vpop.f32.mrf.mxu0  ;;  %v11055_v44 = vld [vmem:[%s16765_s0 + $0x3f4] ss:$20 sps:$4 sm:$0xff]  }
 0x196   :  { %16934 = vst [vmem:[#allocation51_spill] sm:$0xff] %v12639_v54  ;;  %v12641_v5 = vpop.f32.mrf.mxu1  ;;  %v11086_v54 = vld [vmem:[%s16765_s0 + $0x7d0] ss:$20 sps:$4 sm:$0xff]  }
 0x197   :  { %16935 = vst [vmem:[#allocation52_spill] sm:$0xff] %v12641_v5  ;;  %v4872_v38 = vpop.f32.mrf.mxu0 }
 0x198   :  { %v5744_v26 = vpop.f32.mrf.mxu1  ;;  %v11053_v38 = vld [vmem:[%s16765_s0 + $0x3f0] ss:$20 sps:$4 sm:$0xff]  }
 0x199   :  { %v12655_v62 = vpop.f32.mrf.mxu0  ;;  %5066 = vmatmul.mubr.bf16.gmra.mxu0 %v11044_v42  ;;  %v11058_v42 = vld [vmem:[%s16765_s0 + $0x70c] ss:$20 sps:$4 sm:$0xff]  }
 0x19a   :  { %16936 = vst [vmem:[#allocation53_spill] sm:$0xff] %v12655_v62  ;;  %v12657_v61 = vpop.f32.mrf.mxu1  ;;  %5971 = vmatmul.mubr.bf16.gmra.mxu1 %v11047_v37  ;;  %5073 = vmatprep.mubr.bf16.mxu0 %v11052_v50 }
 0x19b   :  { %5978 = vmatprep.mubr.bf16.mxu1 %v11055_v44  ;;  %v4877_v0 = vpop.f32.mrf.mxu0 }
 0x19c   :  { %v5782_v5 = vpop.f32.mrf.mxu1 }
 0x19d   :  { %v12659_v30 = vpop.f32.mrf.mxu0  ;;  %v11061_v5 = vld [vmem:[%s16765_s0 + $0x41c] ss:$20 sps:$4 sm:$0xff]  }
 0x19e   :  { %16937 = vst [vmem:[#allocation54_spill] sm:$0xff] %v12659_v30  ;;  %v12661_v60 = vpop.f32.mrf.mxu1 }
 0x19f   :  { %v4880_v37 = vpop.f32.mrf.mxu0 }
 0x1a0   :  { %v5785_v50 = vpop.f32.mrf.mxu1  ;;  %v11059_v37 = vld [vmem:[%s16765_s0 + $0x418] ss:$20 sps:$4 sm:$0xff]  }
 0x1a1   :  { %v12675_v44 = vpop.f32.mrf.mxu0  ;;  %5074 = vmatmul.mubr.bf16.gmra.mxu0 %v11050_v14  ;;  %v11064_v14 = vld [vmem:[%s16765_s0 + $0x734] ss:$20 sps:$4 sm:$0xff]  }
 0x1a2   :  { %16938 = vst [vmem:[#allocation55_spill] sm:$0xff] %v12675_v44  ;;  %v12677_v26 = vpop.f32.mrf.mxu1  ;;  %5979 = vmatmul.mubr.bf16.gmra.mxu1 %v11053_v38  ;;  %5081 = vmatprep.mubr.bf16.mxu0 %v11058_v42  ;;  %v11080_v44 = vld [vmem:[%s16765_s0 + $0x7a8] ss:$20 sps:$4 sm:$0xff]  }
 0x1a3   :  { %5986 = vmatprep.mubr.bf16.mxu1 %v11061_v5  ;;  %v4885_v0 = vpop.f32.mrf.mxu0 }
 0x1a4   :  { %v5790_v32 = vpop.f32.mrf.mxu1 }
 0x1a5   :  { %v12679_v7 = vpop.f32.mrf.mxu0  ;;  %v11067_v32 = vld [vmem:[%s16765_s0 + $0x444] ss:$20 sps:$4 sm:$0xff]  }
 0x1a6   :  { %16939 = vst [vmem:[#allocation56_spill] sm:$0xff] %v12679_v7  ;;  %v12681_v24 = vpop.f32.mrf.mxu1  ;;  %v11074_v7 = vld [vmem:[%s16765_s0 + $0x780] ss:$20 sps:$4 sm:$0xff]  }
 0x1a7   :  { %v4888_v38 = vpop.f32.mrf.mxu0 }
 0x1a8   :  { %v5793_v42 = vpop.f32.mrf.mxu1  ;;  %v11065_v38 = vld [vmem:[%s16765_s0 + $0x440] ss:$20 sps:$4 sm:$0xff]  }
 0x1a9   :  { %v12695_v5 = vpop.f32.mrf.mxu0  ;;  %5082 = vmatmul.mubr.bf16.gmra.mxu0 %v11056_v52  ;;  %v11070_v52 = vld [vmem:[%s16765_s0 + $0x75c] ss:$20 sps:$4 sm:$0xff]  }
 0x1aa   :  { %16940 = vst [vmem:[#allocation57_spill] sm:$0xff] %v12695_v5  ;;  %v12697_v50 = vpop.f32.mrf.mxu1  ;;  %5987 = vmatmul.mubr.bf16.gmra.mxu1 %v11059_v37  ;;  %5089 = vmatprep.mubr.bf16.mxu0 %v11064_v14 }
 0x1ab   :  { %5994 = vmatprep.mubr.bf16.mxu1 %v11067_v32  ;;  %v4893_v0 = vpop.f32.mrf.mxu0 }
 0x1ac   :  { %v5798_v1 = vpop.f32.mrf.mxu1 }
 0x1ad   :  { %v12699_v46 = vpop.f32.mrf.mxu0  ;;  %v11073_v1 = vld [vmem:[%s16765_s0 + $0x46c] ss:$20 sps:$4 sm:$0xff]  }
 0x1ae   :  { %16941 = vst [vmem:[#allocation58_spill] sm:$0xff] %v12699_v46  ;;  %v12701_v58 = vpop.f32.mrf.mxu1 }
 0x1af   :  { %v4896_v37 = vpop.f32.mrf.mxu0 }
 0x1b0   :  { %v5801_v14 = vpop.f32.mrf.mxu1  ;;  %v11071_v37 = vld [vmem:[%s16765_s0 + $0x468] ss:$20 sps:$4 sm:$0xff]  }
 0x1b1   :  { %v12715_v32 = vpop.f32.mrf.mxu0  ;;  %5090 = vmatmul.mubr.bf16.gmra.mxu0 %v11062_v28  ;;  %v11076_v28 = vld [vmem:[%s16765_s0 + $0x784] ss:$20 sps:$4 sm:$0xff]  }
 0x1b2   :  { %16942 = vst [vmem:[#allocation59_spill] sm:$0xff] %v12715_v32  ;;  %v12717_v42 = vpop.f32.mrf.mxu1  ;;  %5995 = vmatmul.mubr.bf16.gmra.mxu1 %v11065_v38  ;;  %5097 = vmatprep.mubr.bf16.mxu0 %v11070_v52 }
 0x1b3   :  { %6002 = vmatprep.mubr.bf16.mxu1 %v11073_v1  ;;  %v4901_v0 = vpop.f32.mrf.mxu0 }
 0x1b4   :  { %v5806_v40 = vpop.f32.mrf.mxu1 }
 0x1b5   :  { %v12719_v22 = vpop.f32.mrf.mxu0  ;;  %v11079_v40 = vld [vmem:[%s16765_s0 + $0x494] ss:$20 sps:$4 sm:$0xff]  }
 0x1b6   :  { %16943 = vst [vmem:[#allocation60_spill] sm:$0xff] %v12719_v22  ;;  %v12721_v34 = vpop.f32.mrf.mxu1 }
 0x1b7   :  { %v4904_v38 = vpop.f32.mrf.mxu0 }
 0x1b8   :  { %v5809_v52 = vpop.f32.mrf.mxu1  ;;  %v11077_v38 = vld [vmem:[%s16765_s0 + $0x490] ss:$20 sps:$4 sm:$0xff]  }
 0x1b9   :  { %v12735_v1 = vpop.f32.mrf.mxu0  ;;  %5098 = vmatmul.mubr.bf16.gmra.mxu0 %v11068_v16  ;;  %v11082_v16 = vld [vmem:[%s16765_s0 + $0x7ac] ss:$20 sps:$4 sm:$0xff]  }
 0x1ba   :  { %16944 = vst [vmem:[#allocation61_spill] sm:$0xff] %v12735_v1  ;;  %v12737_v14 = vpop.f32.mrf.mxu1  ;;  %6003 = vmatmul.mubr.bf16.gmra.mxu1 %v11071_v37  ;;  %5105 = vmatprep.mubr.bf16.mxu0 %v11076_v28 }
 0x1bb   :  { %6010 = vmatprep.mubr.bf16.mxu1 %v11079_v40  ;;  %v4909_v0 = vpop.f32.mrf.mxu0 }
 0x1bc   :  { %v5814_v11 = vpop.f32.mrf.mxu1 }
 0x1bd   :  { %v12739_v22 = vpop.f32.mrf.mxu0  ;;  %v11085_v11 = vld [vmem:[%s16765_s0 + $0x4bc] ss:$20 sps:$4 sm:$0xff]  }
 0x1be   :  { %16945 = vst [vmem:[#allocation62_spill] sm:$0xff] %v12739_v22  ;;  %v12741_v32 = vpop.f32.mrf.mxu1 }
 0x1bf   :  { %v4912_v37 = vpop.f32.mrf.mxu0 }
 0x1c0   :  { %v5817_v28 = vpop.f32.mrf.mxu1  ;;  %v11083_v37 = vld [vmem:[%s16765_s0 + $0x4b8] ss:$20 sps:$4 sm:$0xff]  }
 0x1c1   :  { %v12755_v40 = vpop.f32.mrf.mxu0  ;;  %5106 = vmatmul.mubr.bf16.gmra.mxu0 %v11074_v7  ;;  %v11088_v7 = vld [vmem:[%s16765_s0 + $0x7d4] ss:$20 sps:$4 sm:$0xff]  }
 0x1c2   :  { %16946 = vst [vmem:[#allocation63_spill] sm:$0xff] %v12755_v40  ;;  %v12757_v52 = vpop.f32.mrf.mxu1  ;;  %6011 = vmatmul.mubr.bf16.gmra.mxu1 %v11077_v38  ;;  %5113 = vmatprep.mubr.bf16.mxu0 %v11082_v16 }
 0x1c3   :  { %6018 = vmatprep.mubr.bf16.mxu1 %v11085_v11  ;;  %v4917_v0 = vpop.f32.mrf.mxu0 }
 0x1c4   :  { %v5822_v22 = vpop.f32.mrf.mxu1 }
 0x1c5   :  { %v12759_v1 = vpop.f32.mrf.mxu0  ;;  %v11091_v22 = vld [vmem:[%s16765_s0 + $0x4e4] ss:$20 sps:$4 sm:$0xff]  }
 0x1c6   :  { %16947 = vst [vmem:[#allocation64_spill] sm:$0xff] %v12759_v1  ;;  %v12761_v46 = vpop.f32.mrf.mxu1 }
 0x1c7   :  { %v4920_v38 = vpop.f32.mrf.mxu0 }
 0x1c8   :  { %v5825_v16 = vpop.f32.mrf.mxu1  ;;  %v11089_v38 = vld [vmem:[%s16765_s0 + $0x4e0] ss:$20 sps:$4 sm:$0xff]  }
 0x1c9   :  { %v12775_v11 = vpop.f32.mrf.mxu0  ;;  %5114 = vmatmul.mubr.bf16.gmra.mxu0 %v11080_v44  ;;  %v11094_v44 = vld [vmem:[%s16765_s0 + $0x7fc] ss:$20 sps:$4 sm:$0xff]  }
 0x1ca   :  { %16948 = vst [vmem:[#allocation65_spill] sm:$0xff] %v12775_v11  ;;  %v12777_v28 = vpop.f32.mrf.mxu1  ;;  %6019 = vmatmul.mubr.bf16.gmra.mxu1 %v11083_v37  ;;  %5121 = vmatprep.mubr.bf16.mxu0 %v11088_v7 }
 0x1cb   :  { %6026 = vmatprep.mubr.bf16.mxu1 %v11091_v22  ;;  %v4925_v0 = vpop.f32.mrf.mxu0 }
 0x1cc   :  { %v5830_v1 = vpop.f32.mrf.mxu1 }
 0x1cd   :  { %v12779_v40 = vpop.f32.mrf.mxu0  ;;  %v11097_v1 = vld [vmem:[%s16765_s0 + $0x50c] ss:$20 sps:$4 sm:$0xff]  }
 0x1ce   :  { %16949 = vst [vmem:[#allocation66_spill] sm:$0xff] %v12779_v40  ;;  %v12781_v5 = vpop.f32.mrf.mxu1 }
 0x1cf   :  { %v4928_v37 = vpop.f32.mrf.mxu0 }
 0x1d0   :  { %v5833_v7 = vpop.f32.mrf.mxu1  ;;  %v11095_v37 = vld [vmem:[%s16765_s0 + $0x508] ss:$20 sps:$4 sm:$0xff]  }
 0x1d1   :  { %v12795_v22 = vpop.f32.mrf.mxu0  ;;  %5122 = vmatmul.mubr.bf16.gmra.mxu0 %v11086_v54  ;;  %v11100_v54 = vld [vmem:[%s16765_s0 + $0x824] ss:$20 sps:$4 sm:$0xff]  }
 0x1d2   :  { %16950 = vst [vmem:[#allocation67_spill] sm:$0xff] %v12795_v22  ;;  %v12797_v16 = vpop.f32.mrf.mxu1  ;;  %6027 = vmatmul.mubr.bf16.gmra.mxu1 %v11089_v38  ;;  %5129 = vmatprep.mubr.bf16.mxu0 %v11094_v44 }
 0x1d3   :  { %6034 = vmatprep.mubr.bf16.mxu1 %v11097_v1  ;;  %v4933_v0 = vpop.f32.mrf.mxu0 }
 0x1d4   :  { %v5838_v40 = vpop.f32.mrf.mxu1 }
 0x1d5   :  { %v12799_v11 = vpop.f32.mrf.mxu0  ;;  %v11103_v40 = vld [vmem:[%s16765_s0 + $0x534] ss:$20 sps:$4 sm:$0xff]  }
 0x1d6   :  { %16951 = vst [vmem:[#allocation68_spill] sm:$0xff] %v12799_v11  ;;  %v12801_v30 = vpop.f32.mrf.mxu1 }
 0x1d7   :  { %v4936_v38 = vpop.f32.mrf.mxu0 }
 0x1d8   :  { %v5841_v44 = vpop.f32.mrf.mxu1  ;;  %v11101_v38 = vld [vmem:[%s16765_s0 + $0x530] ss:$20 sps:$4 sm:$0xff]  }
 0x1d9   :  { %v12815_v1 = vpop.f32.mrf.mxu0  ;;  %5130 = vmatmul.mubr.bf16.gmra.mxu0 %v11092_v9  ;;  %v11106_v9 = vld [vmem:[%s16765_s0 + $0x84c] ss:$20 sps:$4 sm:$0xff]  }
 0x1da   :  { %16952 = vst [vmem:[#allocation69_spill] sm:$0xff] %v12815_v1  ;;  %v12817_v7 = vpop.f32.mrf.mxu1  ;;  %6035 = vmatmul.mubr.bf16.gmra.mxu1 %v11095_v37  ;;  %5137 = vmatprep.mubr.bf16.mxu0 %v11100_v54 }
 0x1db   :  { %6042 = vmatprep.mubr.bf16.mxu1 %v11103_v40  ;;  %v4941_v0 = vpop.f32.mrf.mxu0 }
 0x1dc   :  { %v5846_v11 = vpop.f32.mrf.mxu1 }
 0x1dd   :  { %v12819_v22 = vpop.f32.mrf.mxu0  ;;  %v11109_v11 = vld [vmem:[%s16765_s0 + $0x55c] ss:$20 sps:$4 sm:$0xff]  }
 0x1de   :  { %16953 = vst [vmem:[#allocation70_spill] sm:$0xff] %v12819_v22  ;;  %v12821_v62 = vpop.f32.mrf.mxu1 }
 0x1df   :  { %v4944_v37 = vpop.f32.mrf.mxu0 }
 0x1e0   :  { %v5849_v54 = vpop.f32.mrf.mxu1  ;;  %v11107_v37 = vld [vmem:[%s16765_s0 + $0x558] ss:$20 sps:$4 sm:$0xff]  }
 0x1e1   :  { %v12835_v40 = vpop.f32.mrf.mxu0  ;;  %5138 = vmatmul.mubr.bf16.gmra.mxu0 %v11098_v56  ;;  %v11112_v56 = vld [vmem:[%s16765_s0 + $0x874] ss:$20 sps:$4 sm:$0xff]  }
 0x1e2   :  { %16954 = vst [vmem:[#allocation71_spill] sm:$0xff] %v12835_v40  ;;  %v12837_v44 = vpop.f32.mrf.mxu1  ;;  %6043 = vmatmul.mubr.bf16.gmra.mxu1 %v11101_v38  ;;  %5145 = vmatprep.mubr.bf16.mxu0 %v11106_v9 }
 0x1e3   :  { %6050 = vmatprep.mubr.bf16.mxu1 %v11109_v11  ;;  %v4949_v0 = vpop.f32.mrf.mxu0 }
 0x1e4   :  { %v5854_v22 = vpop.f32.mrf.mxu1 }
 0x1e5   :  { %v12839_v1 = vpop.f32.mrf.mxu0  ;;  %v11115_v22 = vld [vmem:[%s16765_s0 + $0x584] ss:$20 sps:$4 sm:$0xff]  }
 0x1e6   :  { %16955 = vst [vmem:[#allocation72_spill] sm:$0xff] %v12839_v1  ;;  %v12841_v18 = vpop.f32.mrf.mxu1 }
 0x1e7   :  { %v4952_v38 = vpop.f32.mrf.mxu0 }
 0x1e8   :  { %v5857_v9 = vpop.f32.mrf.mxu1  ;;  %v11113_v38 = vld [vmem:[%s16765_s0 + $0x580] ss:$20 sps:$4 sm:$0xff]  }
 0x1e9   :  { %v12855_v11 = vpop.f32.mrf.mxu0  ;;  %5146 = vmatmul.mubr.bf16.gmra.mxu0 %v11104_v19  ;;  %v11119_v19 = vld [vmem:[%s16765_s0 + $0x89c] ss:$20 sps:$4 sm:$0xff]  }
 0x1ea   :  { %16956 = vst [vmem:[#allocation73_spill] sm:$0xff] %v12855_v11  ;;  %v12857_v54 = vpop.f32.mrf.mxu1  ;;  %6051 = vmatmul.mubr.bf16.gmra.mxu1 %v11107_v37  ;;  %5153 = vmatprep.mubr.bf16.mxu0 %v11112_v56 }
 0x1eb   :  { %6058 = vmatprep.mubr.bf16.mxu1 %v11115_v22  ;;  %v4957_v0 = vpop.f32.mrf.mxu0 }
 0x1ec   :  { %v5862_v1 = vpop.f32.mrf.mxu1 }
 0x1ed   :  { %v12859_v40 = vpop.f32.mrf.mxu0  ;;  %v11122_v1 = vld [vmem:[%s16765_s0 + $0x5ac] ss:$20 sps:$4 sm:$0xff]  }
 0x1ee   :  { %16957 = vst [vmem:[#allocation74_spill] sm:$0xff] %v12859_v40  ;;  %v12861_v3 = vpop.f32.mrf.mxu1 }
 0x1ef   :  { %v4960_v37 = vpop.f32.mrf.mxu0 }
 0x1f0   :  { %v5865_v56 = vpop.f32.mrf.mxu1  ;;  %v11120_v37 = vld [vmem:[%s16765_s0 + $0x5a8] ss:$20 sps:$4 sm:$0xff]  }
 0x1f1   :  { %v12875_v22 = vpop.f32.mrf.mxu0  ;;  %5154 = vmatmul.mubr.bf16.gmra.mxu0 %v11110_v36  ;;  %v11126_v36 = vld [vmem:[%s16765_s0 + $0x8c4] ss:$20 sps:$4 sm:$0xff]  }
 0x1f2   :  { %16958 = vst [vmem:[#allocation75_spill] sm:$0xff] %v12875_v22  ;;  %v12877_v9 = vpop.f32.mrf.mxu1  ;;  %6059 = vmatmul.mubr.bf16.gmra.mxu1 %v11113_v38  ;;  %5161 = vmatprep.mubr.bf16.mxu0 %v11119_v19 }
 0x1f3   :  { %6066 = vmatprep.mubr.bf16.mxu1 %v11122_v1  ;;  %v4965_v0 = vpop.f32.mrf.mxu0 }
 0x1f4   :  { %v5870_v40 = vpop.f32.mrf.mxu1 }
 0x1f5   :  { %v12879_v11 = vpop.f32.mrf.mxu0  ;;  %v11129_v40 = vld [vmem:[%s16765_s0 + $0x5d4] ss:$20 sps:$4 sm:$0xff]  }
 0x1f6   :  { %16959 = vst [vmem:[#allocation76_spill] sm:$0xff] %v12879_v11  ;;  %v12881_v48 = vpop.f32.mrf.mxu1 }
 0x1f7   :  { %v4968_v38 = vpop.f32.mrf.mxu0 }
 0x1f8   :  { %v5873_v19 = vpop.f32.mrf.mxu1  ;;  %v11127_v38 = vld [vmem:[%s16765_s0 + $0x5d0] ss:$20 sps:$4 sm:$0xff]  }
 0x1f9   :  { %v12895_v1 = vpop.f32.mrf.mxu0  ;;  %5162 = vmatmul.mubr.bf16.gmra.mxu0 %v11117_v20  ;;  %v11132_v20 = vld [vmem:[%s16765_s0 + $0x8ec] ss:$20 sps:$4 sm:$0xff]  }
 0x1fa   :  { %16960 = vst [vmem:[#allocation77_spill] sm:$0xff] %v12895_v1  ;;  %v12897_v56 = vpop.f32.mrf.mxu1  ;;  %6067 = vmatmul.mubr.bf16.gmra.mxu1 %v11120_v37  ;;  %5169 = vmatprep.mubr.bf16.mxu0 %v11126_v36  ;;  %v11220_v37 = vld [vmem:[%s16766_s4 + $0x30] sm:$0xff]  }
 0x1fb   :  { %16961 = vst [vmem:[#allocation78_spill] sm:$0xff] %v12897_v56  ;;  %6074 = vmatprep.mubr.bf16.mxu1 %v11129_v40  ;;  %v4973_v0 = vpop.f32.mrf.mxu0  ;;  %10580 = vmatprep.subr.bf16.mxu1 %v11220_v37  ;;  %v11136_v56 = vld [vmem:[%s16765_s0 + $0x910] ss:$20 sps:$4 sm:$0xff]  }
 0x1fc   :  { %v5878_v11 = vpop.f32.mrf.mxu1  ;;  %10581 = vmatpush3.bf16.msra.mxu1 %v11220_v37 }
 0x1fd   :  { %v12899_v22 = vpop.f32.mrf.mxu0  ;;  %v11135_v11 = vld [vmem:[%s16765_s0 + $0x5fc] ss:$20 sps:$4 sm:$0xff]  }
 0x1fe   :  { %16962 = vst [vmem:[#allocation79_spill] sm:$0xff] %v12899_v22  ;;  %v12901_v12 = vpop.f32.mrf.mxu1 }
 0x1ff   :  { %16963 = vst [vmem:[#allocation80_spill] sm:$0xff] %v12901_v12  ;;  %v4976_v36 = vpop.f32.mrf.mxu0 }
 0x200   :  { %v5881_v40 = vpop.f32.mrf.mxu1  ;;  %v11130_v36 = vld [vmem:[%s16765_s0 + $0x8e8] ss:$20 sps:$4 sm:$0xff]  }
 0x201   :  { %v12918_v19 = vpop.f32.mrf.mxu0  ;;  %5170 = vmatmul.mubr.bf16.gmra.mxu0 %v11124_v2  ;;  %v11133_v2 = vld [vmem:[%s16765_s0 + $0x5f8] ss:$20 sps:$4 sm:$0xff]  }
 0x202   :  { %16964 = vst [vmem:[#allocation81_spill] sm:$0xff] %v12918_v19  ;;  %v12920_v0 = vpop.f32.mrf.mxu1  ;;  %6075 = vmatmul.mubr.bf16.gmra.mxu1 %v11127_v38  ;;  %5177 = vmatprep.mubr.bf16.mxu0 %v11132_v20  ;;  %v11138_v38 = vld [vmem:[%s16765_s0 + $0x914] ss:$20 sps:$4 sm:$0xff]  }
 0x203   :  { %6082 = vmatprep.mubr.bf16.mxu1 %v11135_v11  ;;  %v4981_v22 = vpop.f32.mrf.mxu0 }
 0x204   :  { %v5886_v1 = vpop.f32.mrf.mxu1  ;;  %v11141_v22 = vld [vmem:[%s16765_s0 + $0x624] ss:$20 sps:$4 sm:$0xff]  }
 0x205   :  { %v12922_v12 = vpop.f32.mrf.mxu0 }
 0x206   :  { %16965 = vst [vmem:[#allocation82_spill] sm:$0xff] %v12922_v12  ;;  %v12924_v53 = vpop.f32.mrf.mxu1 }
 0x207   :  { %16966 = vst [vmem:[#allocation83_spill] sm:$0xff] %v12924_v53  ;;  %v4984_v1 = vpop.f32.mrf.mxu0 }
 0x208   :  { %v5889_v20 = vpop.f32.mrf.mxu1  ;;  %v11139_v1 = vld [vmem:[%s16765_s0 + $0x620] ss:$20 sps:$4 sm:$0xff]  }
 0x209   :  { %v12938_v11 = vpop.f32.mrf.mxu0  ;;  %5178 = vmatmul.mubr.bf16.gmra.mxu0 %v11130_v36  ;;  %v11144_v36 = vld [vmem:[%s16765_s0 + $0x93c] ss:$20 sps:$4 sm:$0xff]  }
 0x20a   :  { %16967 = vst [vmem:[#allocation84_spill] sm:$0xff] %v12938_v11  ;;  %v12940_v37 = vpop.f32.mrf.mxu1  ;;  %6083 = vmatmul.mubr.bf16.gmra.mxu1 %v11133_v2  ;;  %5185 = vmatprep.mubr.bf16.mxu0 %v11138_v38 }
 0x20b   :  { %16968 = vst [vmem:[#allocation85_spill] sm:$0xff] %v12940_v37  ;;  %6090 = vmatprep.mubr.bf16.mxu1 %v11141_v22  ;;  %v4989_v40 = vpop.f32.mrf.mxu0  ;;  %v11142_v37 = vld [vmem:[%s16765_s0 + $0x938] ss:$20 sps:$4 sm:$0xff]  }
 0x20c   :  { %v5894_v12 = vpop.f32.mrf.mxu1 }
 0x20d   :  { %v12942_v19 = vpop.f32.mrf.mxu0  ;;  %v11147_v12 = vld [vmem:[%s16765_s0 + $0x64c] ss:$20 sps:$4 sm:$0xff]  }
 0x20e   :  { %16969 = vst [vmem:[#allocation86_spill] sm:$0xff] %v12942_v19  ;;  %v12944_v53 = vpop.f32.mrf.mxu1 }
 0x20f   :  { %16970 = vst [vmem:[#allocation87_spill] sm:$0xff] %v12944_v53  ;;  %v4992_v2 = vpop.f32.mrf.mxu0 }
 0x210   :  { %v5897_v38 = vpop.f32.mrf.mxu1  ;;  %v11145_v2 = vld [vmem:[%s16765_s0 + $0x648] ss:$20 sps:$4 sm:$0xff]  }
 0x211   :  { %v12958_v22 = vpop.f32.mrf.mxu0  ;;  %5186 = vmatmul.mubr.bf16.gmra.mxu0 %v11136_v56  ;;  %v11150_v56 = vld [vmem:[%s16765_s0 + $0x964] ss:$20 sps:$4 sm:$0xff]  }
 0x212   :  { %16971 = vst [vmem:[#allocation88_spill] sm:$0xff] %v12958_v22  ;;  %v12960_v20 = vpop.f32.mrf.mxu1  ;;  %6091 = vmatmul.mubr.bf16.gmra.mxu1 %v11139_v1  ;;  %5193 = vmatprep.mubr.bf16.mxu0 %v11144_v36 }
 0x213   :  { %16972 = vst [vmem:[#allocation89_spill] sm:$0xff] %v12960_v20  ;;  %6098 = vmatprep.mubr.bf16.mxu1 %v11147_v12  ;;  %v4997_v40 = vpop.f32.mrf.mxu0  ;;  %v11148_v20 = vld [vmem:[%s16765_s0 + $0x960] ss:$20 sps:$4 sm:$0xff]  }
 0x214   :  { %v5902_v19 = vpop.f32.mrf.mxu1 }
 0x215   :  { %v12962_v11 = vpop.f32.mrf.mxu0  ;;  %v11153_v19 = vld [vmem:[%s16765_s0 + $0x674] ss:$20 sps:$4 sm:$0xff]  }
 0x216   :  { %16973 = vst [vmem:[#allocation90_spill] sm:$0xff] %v12962_v11  ;;  %v12964_v53 = vpop.f32.mrf.mxu1 }
 0x217   :  { %16974 = vst [vmem:[#allocation91_spill] sm:$0xff] %v12964_v53  ;;  %v5000_v1 = vpop.f32.mrf.mxu0 }
 0x218   :  { %v5905_v36 = vpop.f32.mrf.mxu1  ;;  %v11151_v1 = vld [vmem:[%s16765_s0 + $0x670] ss:$20 sps:$4 sm:$0xff]  }
 0x219   :  { %v12978_v12 = vpop.f32.mrf.mxu0  ;;  %5194 = vmatmul.mubr.bf16.gmra.mxu0 %v11142_v37  ;;  %v11156_v37 = vld [vmem:[%s16765_s0 + $0x98c] ss:$20 sps:$4 sm:$0xff]  }
 0x21a   :  { %16975 = vst [vmem:[#allocation92_spill] sm:$0xff] %v12978_v12  ;;  %v12980_v38 = vpop.f32.mrf.mxu1  ;;  %6099 = vmatmul.mubr.bf16.gmra.mxu1 %v11145_v2  ;;  %5201 = vmatprep.mubr.bf16.mxu0 %v11150_v56 }
 0x21b   :  { %16976 = vst [vmem:[#allocation93_spill] sm:$0xff] %v12980_v38  ;;  %6106 = vmatprep.mubr.bf16.mxu1 %v11153_v19  ;;  %v5005_v40 = vpop.f32.mrf.mxu0  ;;  %v11154_v38 = vld [vmem:[%s16765_s0 + $0x988] ss:$20 sps:$4 sm:$0xff]  }
 0x21c   :  { %v5910_v11 = vpop.f32.mrf.mxu1 }
 0x21d   :  { %v12982_v22 = vpop.f32.mrf.mxu0  ;;  %v11159_v11 = vld [vmem:[%s16765_s0 + $0x69c] ss:$20 sps:$4 sm:$0xff]  }
 0x21e   :  { %16977 = vst [vmem:[#allocation94_spill] sm:$0xff] %v12982_v22  ;;  %v12984_v53 = vpop.f32.mrf.mxu1 }
 0x21f   :  { %16978 = vst [vmem:[#allocation95_spill] sm:$0xff] %v12984_v53  ;;  %v5008_v2 = vpop.f32.mrf.mxu0 }
 0x220   :  { %v5913_v56 = vpop.f32.mrf.mxu1  ;;  %v11157_v2 = vld [vmem:[%s16765_s0 + $0x698] ss:$20 sps:$4 sm:$0xff]  }
 0x221   :  { %v12998_v19 = vpop.f32.mrf.mxu0  ;;  %5202 = vmatmul.mubr.bf16.gmra.mxu0 %v11148_v20  ;;  %v11162_v20 = vld [vmem:[%s16765_s0 + $0x9b4] ss:$20 sps:$4 sm:$0xff]  }
 0x222   :  { %16979 = vst [vmem:[#allocation96_spill] sm:$0xff] %v12998_v19  ;;  %v13000_v36 = vpop.f32.mrf.mxu1  ;;  %6107 = vmatmul.mubr.bf16.gmra.mxu1 %v11151_v1  ;;  %5209 = vmatprep.mubr.bf16.mxu0 %v11156_v37 }
 0x223   :  { %16980 = vst [vmem:[#allocation97_spill] sm:$0xff] %v13000_v36  ;;  %6114 = vmatprep.mubr.bf16.mxu1 %v11159_v11  ;;  %v5013_v40 = vpop.f32.mrf.mxu0  ;;  %v11160_v36 = vld [vmem:[%s16765_s0 + $0x9b0] ss:$20 sps:$4 sm:$0xff]  }
 0x224   :  { %v5918_v22 = vpop.f32.mrf.mxu1 }
 0x225   :  { %v13002_v12 = vpop.f32.mrf.mxu0  ;;  %v11165_v22 = vld [vmem:[%s16765_s0 + $0x6c4] ss:$20 sps:$4 sm:$0xff]  }
 0x226   :  { %16981 = vst [vmem:[#allocation98_spill] sm:$0xff] %v13002_v12  ;;  %v13004_v53 = vpop.f32.mrf.mxu1 }
 0x227   :  { %16982 = vst [vmem:[#allocation99_spill] sm:$0xff] %v13004_v53  ;;  %v5016_v1 = vpop.f32.mrf.mxu0 }
 0x228   :  { %v5921_v37 = vpop.f32.mrf.mxu1  ;;  %v11163_v1 = vld [vmem:[%s16765_s0 + $0x6c0] ss:$20 sps:$4 sm:$0xff]  }
 0x229   :  { %v13018_v11 = vpop.f32.mrf.mxu0  ;;  %5210 = vmatmul.mubr.bf16.gmra.mxu0 %v11154_v38  ;;  %v11168_v38 = vld [vmem:[%s16765_s0 + $0x9dc] ss:$20 sps:$4 sm:$0xff]  }
 0x22a   :  { %16983 = vst [vmem:[#allocation100_spill] sm:$0xff] %v13018_v11  ;;  %v13020_v56 = vpop.f32.mrf.mxu1  ;;  %6115 = vmatmul.mubr.bf16.gmra.mxu1 %v11157_v2  ;;  %5217 = vmatprep.mubr.bf16.mxu0 %v11162_v20 }
 0x22b   :  { %16984 = vst [vmem:[#allocation101_spill] sm:$0xff] %v13020_v56  ;;  %6122 = vmatprep.mubr.bf16.mxu1 %v11165_v22  ;;  %v5021_v40 = vpop.f32.mrf.mxu0  ;;  %v11166_v56 = vld [vmem:[%s16765_s0 + $0x9d8] ss:$20 sps:$4 sm:$0xff]  }
 0x22c   :  { %v5926_v12 = vpop.f32.mrf.mxu1 }
 0x22d   :  { %v13022_v19 = vpop.f32.mrf.mxu0  ;;  %v11171_v12 = vld [vmem:[%s16765_s0 + $0x6ec] ss:$20 sps:$4 sm:$0xff]  }
 0x22e   :  { %16985 = vst [vmem:[#allocation102_spill] sm:$0xff] %v13022_v19  ;;  %v13024_v53 = vpop.f32.mrf.mxu1 }
 0x22f   :  { %16986 = vst [vmem:[#allocation103_spill] sm:$0xff] %v13024_v53  ;;  %v5024_v2 = vpop.f32.mrf.mxu0 }
 0x230   :  { %v5929_v20 = vpop.f32.mrf.mxu1  ;;  %v11169_v2 = vld [vmem:[%s16765_s0 + $0x6e8] ss:$20 sps:$4 sm:$0xff]  }
 0x231   :  { %v13038_v22 = vpop.f32.mrf.mxu0  ;;  %5218 = vmatmul.mubr.bf16.gmra.mxu0 %v11160_v36  ;;  %v11174_v36 = vld [vmem:[%s16765_s0 + $0xa04] ss:$20 sps:$4 sm:$0xff]  }
 0x232   :  { %16987 = vst [vmem:[#allocation104_spill] sm:$0xff] %v13038_v22  ;;  %v13040_v37 = vpop.f32.mrf.mxu1  ;;  %6123 = vmatmul.mubr.bf16.gmra.mxu1 %v11163_v1  ;;  %5225 = vmatprep.mubr.bf16.mxu0 %v11168_v38 }
 0x233   :  { %16988 = vst [vmem:[#allocation105_spill] sm:$0xff] %v13040_v37  ;;  %6130 = vmatprep.mubr.bf16.mxu1 %v11171_v12  ;;  %v5029_v40 = vpop.f32.mrf.mxu0  ;;  %v11172_v37 = vld [vmem:[%s16765_s0 + $0xa00] ss:$20 sps:$4 sm:$0xff]  }
 0x234   :  { %v5934_v19 = vpop.f32.mrf.mxu1 }
 0x235   :  { %v13042_v11 = vpop.f32.mrf.mxu0  ;;  %v11177_v19 = vld [vmem:[%s16765_s0 + $0x714] ss:$20 sps:$4 sm:$0xff]  }
 0x236   :  { %16989 = vst [vmem:[#allocation106_spill] sm:$0xff] %v13042_v11  ;;  %v13044_v53 = vpop.f32.mrf.mxu1 }
 0x237   :  { %16990 = vst [vmem:[#allocation107_spill] sm:$0xff] %v13044_v53  ;;  %v5032_v1 = vpop.f32.mrf.mxu0 }
 0x238   :  { %v5937_v38 = vpop.f32.mrf.mxu1  ;;  %v11175_v1 = vld [vmem:[%s16765_s0 + $0x710] ss:$20 sps:$4 sm:$0xff]  }
 0x239   :  { %v13058_v12 = vpop.f32.mrf.mxu0  ;;  %5226 = vmatmul.mubr.bf16.gmra.mxu0 %v11166_v56  ;;  %v11180_v56 = vld [vmem:[%s16765_s0 + $0xa2c] ss:$20 sps:$4 sm:$0xff]  }
 0x23a   :  { %16991 = vst [vmem:[#allocation108_spill] sm:$0xff] %v13058_v12  ;;  %v13060_v20 = vpop.f32.mrf.mxu1  ;;  %6131 = vmatmul.mubr.bf16.gmra.mxu1 %v11169_v2  ;;  %5233 = vmatprep.mubr.bf16.mxu0 %v11174_v36 }
 0x23b   :  { %16992 = vst [vmem:[#allocation109_spill] sm:$0xff] %v13060_v20  ;;  %6138 = vmatprep.mubr.bf16.mxu1 %v11177_v19  ;;  %v5037_v40 = vpop.f32.mrf.mxu0  ;;  %v11178_v20 = vld [vmem:[%s16765_s0 + $0xa28] ss:$20 sps:$4 sm:$0xff]  }
 0x23c   :  { %v5942_v11 = vpop.f32.mrf.mxu1 }
 0x23d   :  { %v13062_v22 = vpop.f32.mrf.mxu0  ;;  %v11183_v11 = vld [vmem:[%s16765_s0 + $0x73c] ss:$20 sps:$4 sm:$0xff]  }
 0x23e   :  { %16993 = vst [vmem:[#allocation110_spill] sm:$0xff] %v13062_v22  ;;  %v13064_v53 = vpop.f32.mrf.mxu1 }
 0x23f   :  { %16994 = vst [vmem:[#allocation111_spill] sm:$0xff] %v13064_v53  ;;  %v5040_v2 = vpop.f32.mrf.mxu0 }
 0x240   :  { %v5945_v36 = vpop.f32.mrf.mxu1  ;;  %v11181_v2 = vld [vmem:[%s16765_s0 + $0x738] ss:$20 sps:$4 sm:$0xff]  }
 0x241   :  { %v13078_v19 = vpop.f32.mrf.mxu0  ;;  %5234 = vmatmul.mubr.bf16.gmra.mxu0 %v11172_v37  ;;  %v11186_v37 = vld [vmem:[%s16765_s0 + $0xa54] ss:$20 sps:$4 sm:$0xff]  }
 0x242   :  { %16995 = vst [vmem:[#allocation112_spill] sm:$0xff] %v13078_v19  ;;  %v13080_v38 = vpop.f32.mrf.mxu1  ;;  %6139 = vmatmul.mubr.bf16.gmra.mxu1 %v11175_v1  ;;  %5241 = vmatprep.mubr.bf16.mxu0 %v11180_v56 }
 0x243   :  { %16996 = vst [vmem:[#allocation113_spill] sm:$0xff] %v13080_v38  ;;  %6146 = vmatprep.mubr.bf16.mxu1 %v11183_v11  ;;  %v5045_v40 = vpop.f32.mrf.mxu0  ;;  %v11184_v38 = vld [vmem:[%s16765_s0 + $0xa50] ss:$20 sps:$4 sm:$0xff]  }
 0x244   :  { %v5950_v22 = vpop.f32.mrf.mxu1 }
 0x245   :  { %v13082_v12 = vpop.f32.mrf.mxu0  ;;  %v11189_v22 = vld [vmem:[%s16765_s0 + $0x764] ss:$20 sps:$4 sm:$0xff]  }
 0x246   :  { %16997 = vst [vmem:[#allocation114_spill] sm:$0xff] %v13082_v12  ;;  %v13084_v53 = vpop.f32.mrf.mxu1 }
 0x247   :  { %16998 = vst [vmem:[#allocation115_spill] sm:$0xff] %v13084_v53  ;;  %v5048_v1 = vpop.f32.mrf.mxu0 }
 0x248   :  { %v5953_v56 = vpop.f32.mrf.mxu1  ;;  %v11187_v1 = vld [vmem:[%s16765_s0 + $0x760] ss:$20 sps:$4 sm:$0xff]  }
 0x249   :  { %v13098_v11 = vpop.f32.mrf.mxu0  ;;  %5242 = vmatmul.mubr.bf16.gmra.mxu0 %v11178_v20  ;;  %v11192_v20 = vld [vmem:[%s16765_s0 + $0xa7c] ss:$20 sps:$4 sm:$0xff]  }
 0x24a   :  { %16999 = vst [vmem:[#allocation116_spill] sm:$0xff] %v13098_v11  ;;  %v13100_v36 = vpop.f32.mrf.mxu1  ;;  %6147 = vmatmul.mubr.bf16.gmra.mxu1 %v11181_v2  ;;  %5249 = vmatprep.mubr.bf16.mxu0 %v11186_v37 }
 0x24b   :  { %17000 = vst [vmem:[#allocation117_spill] sm:$0xff] %v13100_v36  ;;  %6154 = vmatprep.mubr.bf16.mxu1 %v11189_v22  ;;  %v5053_v40 = vpop.f32.mrf.mxu0  ;;  %v11281_v22 = vld [vmem:[%s16764_s2 + $0x100] sm:$0xff]  }
 0x24c   :  { %v5958_v12 = vpop.f32.mrf.mxu1  ;;  %10320 = vmatprep.subr.bf16.mxu0 %v11281_v22 }
 0x24d   :  { %v13102_v19 = vpop.f32.mrf.mxu0  ;;  %v11195_v12 = vld [vmem:[%s16765_s0 + $0x78c] ss:$20 sps:$4 sm:$0xff]   ;;  %10321 = vmatpush3.bf16.msra.mxu0 %v11281_v22 }
 0x24e   :  { %17001 = vst [vmem:[#allocation118_spill] sm:$0xff] %v13102_v19  ;;  %v13104_v53 = vpop.f32.mrf.mxu1 }
 0x24f   :  { %17002 = vst [vmem:[#allocation119_spill] sm:$0xff] %v13104_v53  ;;  %v5056_v2 = vpop.f32.mrf.mxu0 }
 0x250   :  { %v5961_v37 = vpop.f32.mrf.mxu1 }
 0x251   :  { %v13121_v56 = vpop.f32.mrf.mxu0  ;;  %5250 = vmatmul.mubr.bf16.gmra.mxu0 %v11184_v38  ;;  %v11190_v37 = vld [vmem:[%s16765_s0 + $0xa78] ss:$20 sps:$4 sm:$0xff]   ;;  %v11193_v38 = vld [vmem:[%s16765_s0 + $0x788] ss:$20 sps:$4 sm:$0xff]  }
 0x252   :  { %17003 = vst [vmem:[#allocation120_spill] sm:$0xff] %v13121_v56  ;;  %v13123_v40 = vpop.f32.mrf.mxu1  ;;  %6155 = vmatmul.mubr.bf16.gmra.mxu1 %v11187_v1  ;;  %5257 = vmatprep.mubr.bf16.mxu0 %v11192_v20  ;;  %v11198_v1 = vld [vmem:[%s16765_s0 + $0xaa4] ss:$20 sps:$4 sm:$0xff]  }
 0x253   :  { %17004 = vst [vmem:[#allocation121_spill] sm:$0xff] %v13123_v40  ;;  %6162 = vmatprep.mubr.bf16.mxu1 %v11195_v12  ;;  %v5061_v19 = vpop.f32.mrf.mxu0  ;;  %v11196_v40 = vld [vmem:[%s16765_s0 + $0xaa0] ss:$20 sps:$4 sm:$0xff]  }
 0x254   :  { %v5966_v11 = vpop.f32.mrf.mxu1  ;;  %v11201_v19 = vld [vmem:[%s16765_s0 + $0x7b4] ss:$20 sps:$4 sm:$0xff]  }
 0x255   :  { %v13125_v53 = vpop.f32.mrf.mxu0 }
 0x256   :  { %17005 = vst [vmem:[#allocation122_spill] sm:$0xff] %v13125_v53  ;;  %v13127_v2 = vpop.f32.mrf.mxu1 }
 0x257   :  { %17006 = vst [vmem:[#allocation123_spill] sm:$0xff] %v13127_v2  ;;  %v5064_v11 = vpop.f32.mrf.mxu0 }
 0x258   :  { %v5969_v20 = vpop.f32.mrf.mxu1  ;;  %v11199_v11 = vld [vmem:[%s16765_s0 + $0x7b0] ss:$20 sps:$4 sm:$0xff]  }
 0x259   :  { %v13141_v12 = vpop.f32.mrf.mxu0  ;;  %5258 = vmatmul.mubr.bf16.gmra.mxu0 %v11190_v37  ;;  %v11204_v37 = vld [vmem:[%s16765_s0 + $0xacc] ss:$20 sps:$4 sm:$0xff]  }
 0x25a   :  { %17007 = vst [vmem:[#allocation124_spill] sm:$0xff] %v13141_v12  ;;  %v13143_v22 = vpop.f32.mrf.mxu1  ;;  %6163 = vmatmul.mubr.bf16.gmra.mxu1 %v11193_v38  ;;  %5265 = vmatprep.mubr.bf16.mxu0 %v11198_v1 }
 0x25b   :  { %17008 = vst [vmem:[#allocation125_spill] sm:$0xff] %v13143_v22  ;;  %6170 = vmatprep.mubr.bf16.mxu1 %v11201_v19  ;;  %v5069_v53 = vpop.f32.mrf.mxu0  ;;  %v11202_v22 = vld [vmem:[%s16765_s0 + $0xac8] ss:$20 sps:$4 sm:$0xff]  }
 0x25c   :  { %v5974_v56 = vpop.f32.mrf.mxu1  ;;  %v11207_v53 = vld [vmem:[%s16765_s0 + $0x7dc] ss:$20 sps:$4 sm:$0xff]  }
 0x25d   :  { %v13145_v2 = vpop.f32.mrf.mxu0 }
 0x25e   :  { %17009 = vst [vmem:[#allocation126_spill] sm:$0xff] %v13145_v2  ;;  %v13147_v36 = vpop.f32.mrf.mxu1 }
 0x25f   :  { %17010 = vst [vmem:[#allocation127_spill] sm:$0xff] %v13147_v36  ;;  %v5072_v56 = vpop.f32.mrf.mxu0 }
 0x260   :  { %v5977_v38 = vpop.f32.mrf.mxu1  ;;  %v11205_v56 = vld [vmem:[%s16765_s0 + $0x7d8] ss:$20 sps:$4 sm:$0xff]  }
 0x261   :  { %v13161_v1 = vpop.f32.mrf.mxu0  ;;  %5266 = vmatmul.mubr.bf16.gmra.mxu0 %v11196_v40  ;;  %v11210_v40 = vld [vmem:[%s16765_s0 + $0xaf4] ss:$20 sps:$4 sm:$0xff]  }
 0x262   :  { %17011 = vst [vmem:[#allocation128_spill] sm:$0xff] %v13161_v1  ;;  %v13163_v19 = vpop.f32.mrf.mxu1  ;;  %6171 = vmatmul.mubr.bf16.gmra.mxu1 %v11199_v11  ;;  %5273 = vmatprep.mubr.bf16.mxu0 %v11204_v37 }
 0x263   :  { %17012 = vst [vmem:[#allocation129_spill] sm:$0xff] %v13163_v19  ;;  %6178 = vmatprep.mubr.bf16.mxu1 %v11207_v53  ;;  %v5077_v20 = vpop.f32.mrf.mxu0  ;;  %v11208_v19 = vld [vmem:[%s16765_s0 + $0xaf0] ss:$20 sps:$4 sm:$0xff]  }
 0x264   :  { %v5982_v2 = vpop.f32.mrf.mxu1 }
 0x265   :  { %v13165_v12 = vpop.f32.mrf.mxu0  ;;  %v11213_v2 = vld [vmem:[%s16765_s0 + $0x804] ss:$20 sps:$4 sm:$0xff]  }
 0x266   :  { %17013 = vst [vmem:[#allocation130_spill] sm:$0xff] %v13165_v12  ;;  %v13167_v36 = vpop.f32.mrf.mxu1 }
 0x267   :  { %17014 = vst [vmem:[#allocation131_spill] sm:$0xff] %v13167_v36  ;;  %v5080_v11 = vpop.f32.mrf.mxu0 }
 0x268   :  { %v5985_v37 = vpop.f32.mrf.mxu1  ;;  %v11211_v11 = vld [vmem:[%s16765_s0 + $0x800] ss:$20 sps:$4 sm:$0xff]  }
 0x269   :  { %v13181_v53 = vpop.f32.mrf.mxu0  ;;  %5274 = vmatmul.mubr.bf16.gmra.mxu0 %v11202_v22  ;;  %v11216_v22 = vld [vmem:[%s16765_s0 + $0xb1c] ss:$20 sps:$4 sm:$0xff]  }
 0x26a   :  { %17015 = vst [vmem:[#allocation132_spill] sm:$0xff] %v13181_v53  ;;  %v13183_v38 = vpop.f32.mrf.mxu1  ;;  %6179 = vmatmul.mubr.bf16.gmra.mxu1 %v11205_v56  ;;  %5281 = vmatprep.mubr.bf16.mxu0 %v11210_v40 }
 0x26b   :  { %17016 = vst [vmem:[#allocation133_spill] sm:$0xff] %v13183_v38  ;;  %6186 = vmatprep.mubr.bf16.mxu1 %v11213_v2  ;;  %v5085_v20 = vpop.f32.mrf.mxu0  ;;  %v11214_v38 = vld [vmem:[%s16765_s0 + $0xb18] ss:$20 sps:$4 sm:$0xff]  }
 0x26c   :  { %v5990_v12 = vpop.f32.mrf.mxu1 }
 0x26d   :  { %v13185_v1 = vpop.f32.mrf.mxu0  ;;  %v11219_v12 = vld [vmem:[%s16765_s0 + $0x82c] ss:$20 sps:$4 sm:$0xff]  }
 0x26e   :  { %17017 = vst [vmem:[#allocation134_spill] sm:$0xff] %v13185_v1  ;;  %v13187_v36 = vpop.f32.mrf.mxu1 }
 0x26f   :  { %17018 = vst [vmem:[#allocation135_spill] sm:$0xff] %v13187_v36  ;;  %v5088_v56 = vpop.f32.mrf.mxu0 }
 0x270   :  { %v5993_v40 = vpop.f32.mrf.mxu1  ;;  %v11217_v56 = vld [vmem:[%s16765_s0 + $0x828] ss:$20 sps:$4 sm:$0xff]  }
 0x271   :  { %v13201_v2 = vpop.f32.mrf.mxu0  ;;  %5282 = vmatmul.mubr.bf16.gmra.mxu0 %v11208_v19  ;;  %v11223_v19 = vld [vmem:[%s16765_s0 + $0xb44] ss:$20 sps:$4 sm:$0xff]  }
 0x272   :  { %17019 = vst [vmem:[#allocation136_spill] sm:$0xff] %v13201_v2  ;;  %v13203_v37 = vpop.f32.mrf.mxu1  ;;  %6187 = vmatmul.mubr.bf16.gmra.mxu1 %v11211_v11  ;;  %5289 = vmatprep.mubr.bf16.mxu0 %v11216_v22 }
 0x273   :  { %17020 = vst [vmem:[#allocation137_spill] sm:$0xff] %v13203_v37  ;;  %6194 = vmatprep.mubr.bf16.mxu1 %v11219_v12  ;;  %v5093_v20 = vpop.f32.mrf.mxu0  ;;  %v11221_v37 = vld [vmem:[%s16765_s0 + $0xb40] ss:$20 sps:$4 sm:$0xff]  }
 0x274   :  { %v5998_v1 = vpop.f32.mrf.mxu1 }
 0x275   :  { %v13205_v53 = vpop.f32.mrf.mxu0  ;;  %v11226_v1 = vld [vmem:[%s16765_s0 + $0x854] ss:$20 sps:$4 sm:$0xff]  }
 0x276   :  { %17021 = vst [vmem:[#allocation138_spill] sm:$0xff] %v13205_v53  ;;  %v13207_v36 = vpop.f32.mrf.mxu1 }
 0x277   :  { %17022 = vst [vmem:[#allocation139_spill] sm:$0xff] %v13207_v36  ;;  %v5096_v11 = vpop.f32.mrf.mxu0 }
 0x278   :  { %v6001_v22 = vpop.f32.mrf.mxu1  ;;  %v11224_v11 = vld [vmem:[%s16765_s0 + $0x850] ss:$20 sps:$4 sm:$0xff]  }
 0x279   :  { %v13221_v12 = vpop.f32.mrf.mxu0  ;;  %5290 = vmatmul.mubr.bf16.gmra.mxu0 %v11214_v38  ;;  %v11229_v38 = vld [vmem:[%s16765_s0 + $0xb6c] ss:$20 sps:$4 sm:$0xff]  }
 0x27a   :  { %17023 = vst [vmem:[#allocation140_spill] sm:$0xff] %v13221_v12  ;;  %v13223_v40 = vpop.f32.mrf.mxu1  ;;  %6195 = vmatmul.mubr.bf16.gmra.mxu1 %v11217_v56  ;;  %5297 = vmatprep.mubr.bf16.mxu0 %v11223_v19  ;;  %v11318_v56 = vld [vmem:[%s16766_s4 + $0x28] sm:$0xff]  }
 0x27b   :  { %17024 = vst [vmem:[#allocation141_spill] sm:$0xff] %v13223_v40  ;;  %6202 = vmatprep.mubr.bf16.mxu1 %v11226_v1  ;;  %v5101_v20 = vpop.f32.mrf.mxu0  ;;  %10582 = vmatprep.subr.bf16.mxu1 %v11318_v56 }
 0x27c   :  { %v6006_v53 = vpop.f32.mrf.mxu1  ;;  %10583 = vmatpush3.bf16.msra.mxu1 %v11318_v56 }
 0x27d   :  { %v13225_v2 = vpop.f32.mrf.mxu0  ;;  %v11232_v53 = vld [vmem:[%s16765_s0 + $0x87c] ss:$20 sps:$4 sm:$0xff]  }
 0x27e   :  { %17025 = vst [vmem:[#allocation142_spill] sm:$0xff] %v13225_v2  ;;  %v13227_v36 = vpop.f32.mrf.mxu1 }
 0x27f   :  { %17026 = vst [vmem:[#allocation143_spill] sm:$0xff] %v13227_v36  ;;  %v5104_v19 = vpop.f32.mrf.mxu0 }
 0x280   :  { %v6009_v1 = vpop.f32.mrf.mxu1  ;;  %v11227_v19 = vld [vmem:[%s16765_s0 + $0xb68] ss:$20 sps:$4 sm:$0xff]  }
 0x281   :  { %v13244_v22 = vpop.f32.mrf.mxu0  ;;  %5298 = vmatmul.mubr.bf16.gmra.mxu0 %v11221_v37  ;;  %v11230_v37 = vld [vmem:[%s16765_s0 + $0x878] ss:$20 sps:$4 sm:$0xff]  }
 0x282   :  { %17027 = vst [vmem:[#allocation144_spill] sm:$0xff] %v13244_v22  ;;  %v13246_v20 = vpop.f32.mrf.mxu1  ;;  %6203 = vmatmul.mubr.bf16.gmra.mxu1 %v11224_v11  ;;  %5305 = vmatprep.mubr.bf16.mxu0 %v11229_v38  ;;  %v11235_v11 = vld [vmem:[%s16765_s0 + $0xb94] ss:$20 sps:$4 sm:$0xff]  }
 0x283   :  { %17028 = vst [vmem:[#allocation145_spill] sm:$0xff] %v13246_v20  ;;  %6210 = vmatprep.mubr.bf16.mxu1 %v11232_v53  ;;  %v5109_v2 = vpop.f32.mrf.mxu0  ;;  %v11233_v20 = vld [vmem:[%s16765_s0 + $0xb90] ss:$20 sps:$4 sm:$0xff]  }
 0x284   :  { %v6014_v12 = vpop.f32.mrf.mxu1  ;;  %v11238_v2 = vld [vmem:[%s16765_s0 + $0x8a4] ss:$20 sps:$4 sm:$0xff]  }
 0x285   :  { %v13248_v36 = vpop.f32.mrf.mxu0 }
 0x286   :  { %17029 = vst [vmem:[#allocation146_spill] sm:$0xff] %v13248_v36  ;;  %v13250_v40 = vpop.f32.mrf.mxu1 }
 0x287   :  { %17030 = vst [vmem:[#allocation147_spill] sm:$0xff] %v13250_v40  ;;  %v5112_v12 = vpop.f32.mrf.mxu0 }
 0x288   :  { %v6017_v38 = vpop.f32.mrf.mxu1  ;;  %v11236_v12 = vld [vmem:[%s16765_s0 + $0x8a0] ss:$20 sps:$4 sm:$0xff]  }
 0x289   :  { %v13264_v53 = vpop.f32.mrf.mxu0  ;;  %5306 = vmatmul.mubr.bf16.gmra.mxu0 %v11227_v19  ;;  %v11241_v19 = vld [vmem:[%s16765_s0 + $0xbbc] ss:$20 sps:$4 sm:$0xff]  }
 0x28a   :  { %17031 = vst [vmem:[#allocation148_spill] sm:$0xff] %v13264_v53  ;;  %v13266_v56 = vpop.f32.mrf.mxu1  ;;  %6211 = vmatmul.mubr.bf16.gmra.mxu1 %v11230_v37  ;;  %5313 = vmatprep.mubr.bf16.mxu0 %v11235_v11 }
 0x28b   :  { %17032 = vst [vmem:[#allocation149_spill] sm:$0xff] %v13266_v56  ;;  %6218 = vmatprep.mubr.bf16.mxu1 %v11238_v2  ;;  %v5117_v1 = vpop.f32.mrf.mxu0  ;;  %v11239_v56 = vld [vmem:[%s16765_s0 + $0xbb8] ss:$20 sps:$4 sm:$0xff]  }
 0x28c   :  { %v6022_v36 = vpop.f32.mrf.mxu1 }
 0x28d   :  { %v13268_v22 = vpop.f32.mrf.mxu0  ;;  %v11244_v36 = vld [vmem:[%s16765_s0 + $0x8cc] ss:$20 sps:$4 sm:$0xff]  }
 0x28e   :  { %17033 = vst [vmem:[#allocation150_spill] sm:$0xff] %v13268_v22  ;;  %v13270_v40 = vpop.f32.mrf.mxu1 }
 0x28f   :  { %17034 = vst [vmem:[#allocation151_spill] sm:$0xff] %v13270_v40  ;;  %v5120_v37 = vpop.f32.mrf.mxu0 }
 0x290   :  { %v6025_v11 = vpop.f32.mrf.mxu1  ;;  %v11242_v37 = vld [vmem:[%s16765_s0 + $0x8c8] ss:$20 sps:$4 sm:$0xff]  }
 0x291   :  { %v13284_v2 = vpop.f32.mrf.mxu0  ;;  %5314 = vmatmul.mubr.bf16.gmra.mxu0 %v11233_v20  ;;  %v11247_v20 = vld [vmem:[%s16765_s0 + $0xbe4] ss:$20 sps:$4 sm:$0xff]  }
 0x292   :  { %17035 = vst [vmem:[#allocation152_spill] sm:$0xff] %v13284_v2  ;;  %v13286_v38 = vpop.f32.mrf.mxu1  ;;  %6219 = vmatmul.mubr.bf16.gmra.mxu1 %v11236_v12  ;;  %5321 = vmatprep.mubr.bf16.mxu0 %v11241_v19 }
 0x293   :  { %17036 = vst [vmem:[#allocation153_spill] sm:$0xff] %v13286_v38  ;;  %6226 = vmatprep.mubr.bf16.mxu1 %v11244_v36  ;;  %v5125_v1 = vpop.f32.mrf.mxu0  ;;  %v11245_v38 = vld [vmem:[%s16765_s0 + $0xbe0] ss:$20 sps:$4 sm:$0xff]  }
 0x294   :  { %v6030_v22 = vpop.f32.mrf.mxu1 }
 0x295   :  { %v13288_v53 = vpop.f32.mrf.mxu0  ;;  %v11250_v22 = vld [vmem:[%s16765_s0 + $0x8f4] ss:$20 sps:$4 sm:$0xff]  }
 0x296   :  { %17037 = vst [vmem:[#allocation154_spill] sm:$0xff] %v13288_v53  ;;  %v13290_v40 = vpop.f32.mrf.mxu1 }
 0x297   :  { %17038 = vst [vmem:[#allocation155_spill] sm:$0xff] %v13290_v40  ;;  %v5128_v12 = vpop.f32.mrf.mxu0 }
 0x298   :  { %v6033_v19 = vpop.f32.mrf.mxu1  ;;  %v11248_v12 = vld [vmem:[%s16765_s0 + $0x8f0] ss:$20 sps:$4 sm:$0xff]  }
 0x299   :  { %v13304_v36 = vpop.f32.mrf.mxu0  ;;  %5322 = vmatmul.mubr.bf16.gmra.mxu0 %v11239_v56  ;;  %v11253_v56 = vld [vmem:[%s16765_s0 + $0xc0c] ss:$20 sps:$4 sm:$0xff]  }
 0x29a   :  { %17039 = vst [vmem:[#allocation156_spill] sm:$0xff] %v13304_v36  ;;  %v13306_v11 = vpop.f32.mrf.mxu1  ;;  %6227 = vmatmul.mubr.bf16.gmra.mxu1 %v11242_v37  ;;  %5329 = vmatprep.mubr.bf16.mxu0 %v11247_v20 }
 0x29b   :  { %17040 = vst [vmem:[#allocation157_spill] sm:$0xff] %v13306_v11  ;;  %6234 = vmatprep.mubr.bf16.mxu1 %v11250_v22  ;;  %v5133_v1 = vpop.f32.mrf.mxu0  ;;  %v11251_v11 = vld [vmem:[%s16765_s0 + $0xc08] ss:$20 sps:$4 sm:$0xff]  }
 0x29c   :  { %v6038_v53 = vpop.f32.mrf.mxu1 }
 0x29d   :  { %v13308_v2 = vpop.f32.mrf.mxu0  ;;  %v11256_v53 = vld [vmem:[%s16765_s0 + $0x91c] ss:$20 sps:$4 sm:$0xff]  }
 0x29e   :  { %17041 = vst [vmem:[#allocation158_spill] sm:$0xff] %v13308_v2  ;;  %v13310_v40 = vpop.f32.mrf.mxu1 }
 0x29f   :  { %17042 = vst [vmem:[#allocation159_spill] sm:$0xff] %v13310_v40  ;;  %v5136_v37 = vpop.f32.mrf.mxu0 }
 0x2a0   :  { %v6041_v20 = vpop.f32.mrf.mxu1  ;;  %v11254_v37 = vld [vmem:[%s16765_s0 + $0x918] ss:$20 sps:$4 sm:$0xff]  }
 0x2a1   :  { %v13324_v22 = vpop.f32.mrf.mxu0  ;;  %5330 = vmatmul.mubr.bf16.gmra.mxu0 %v11245_v38  ;;  %v11259_v38 = vld [vmem:[%s16765_s0 + $0xc34] ss:$20 sps:$4 sm:$0xff]  }
 0x2a2   :  { %17043 = vst [vmem:[#allocation160_spill] sm:$0xff] %v13324_v22  ;;  %v13326_v19 = vpop.f32.mrf.mxu1  ;;  %6235 = vmatmul.mubr.bf16.gmra.mxu1 %v11248_v12  ;;  %5337 = vmatprep.mubr.bf16.mxu0 %v11253_v56 }
 0x2a3   :  { %17044 = vst [vmem:[#allocation161_spill] sm:$0xff] %v13326_v19  ;;  %6242 = vmatprep.mubr.bf16.mxu1 %v11256_v53  ;;  %v5141_v1 = vpop.f32.mrf.mxu0  ;;  %v11257_v19 = vld [vmem:[%s16765_s0 + $0xc30] ss:$20 sps:$4 sm:$0xff]  }
 0x2a4   :  { %v6046_v2 = vpop.f32.mrf.mxu1 }
 0x2a5   :  { %v13328_v36 = vpop.f32.mrf.mxu0  ;;  %v11262_v2 = vld [vmem:[%s16765_s0 + $0x944] ss:$20 sps:$4 sm:$0xff]  }
 0x2a6   :  { %17045 = vst [vmem:[#allocation162_spill] sm:$0xff] %v13328_v36  ;;  %v13330_v40 = vpop.f32.mrf.mxu1 }
 0x2a7   :  { %17046 = vst [vmem:[#allocation163_spill] sm:$0xff] %v13330_v40  ;;  %v5144_v12 = vpop.f32.mrf.mxu0 }
 0x2a8   :  { %v6049_v56 = vpop.f32.mrf.mxu1  ;;  %v11260_v12 = vld [vmem:[%s16765_s0 + $0x940] ss:$20 sps:$4 sm:$0xff]  }
 0x2a9   :  { %v13344_v53 = vpop.f32.mrf.mxu0  ;;  %5338 = vmatmul.mubr.bf16.gmra.mxu0 %v11251_v11  ;;  %v11265_v11 = vld [vmem:[%s16765_s0 + $0xc5c] ss:$20 sps:$4 sm:$0xff]  }
 0x2aa   :  { %17047 = vst [vmem:[#allocation164_spill] sm:$0xff] %v13344_v53  ;;  %v13346_v20 = vpop.f32.mrf.mxu1  ;;  %6243 = vmatmul.mubr.bf16.gmra.mxu1 %v11254_v37  ;;  %5345 = vmatprep.mubr.bf16.mxu0 %v11259_v38 }
 0x2ab   :  { %17048 = vst [vmem:[#allocation165_spill] sm:$0xff] %v13346_v20  ;;  %6250 = vmatprep.mubr.bf16.mxu1 %v11262_v2  ;;  %v5149_v1 = vpop.f32.mrf.mxu0  ;;  %v11263_v20 = vld [vmem:[%s16765_s0 + $0xc58] ss:$20 sps:$4 sm:$0xff]  }
 0x2ac   :  { %v6054_v36 = vpop.f32.mrf.mxu1 }
 0x2ad   :  { %v13348_v22 = vpop.f32.mrf.mxu0  ;;  %v11268_v36 = vld [vmem:[%s16765_s0 + $0x96c] ss:$20 sps:$4 sm:$0xff]  }
 0x2ae   :  { %17049 = vst [vmem:[#allocation166_spill] sm:$0xff] %v13348_v22  ;;  %v13350_v40 = vpop.f32.mrf.mxu1 }
 0x2af   :  { %17050 = vst [vmem:[#allocation167_spill] sm:$0xff] %v13350_v40  ;;  %v5152_v37 = vpop.f32.mrf.mxu0 }
 0x2b0   :  { %v6057_v38 = vpop.f32.mrf.mxu1  ;;  %v11266_v37 = vld [vmem:[%s16765_s0 + $0x968] ss:$20 sps:$4 sm:$0xff]  }
 0x2b1   :  { %v13364_v2 = vpop.f32.mrf.mxu0  ;;  %5346 = vmatmul.mubr.bf16.gmra.mxu0 %v11257_v19  ;;  %v11271_v19 = vld [vmem:[%s16765_s0 + $0xc84] ss:$20 sps:$4 sm:$0xff]  }
 0x2b2   :  { %17051 = vst [vmem:[#allocation168_spill] sm:$0xff] %v13364_v2  ;;  %v13366_v56 = vpop.f32.mrf.mxu1  ;;  %6251 = vmatmul.mubr.bf16.gmra.mxu1 %v11260_v12  ;;  %5353 = vmatprep.mubr.bf16.mxu0 %v11265_v11 }
 0x2b3   :  { %17052 = vst [vmem:[#allocation169_spill] sm:$0xff] %v13366_v56  ;;  %6258 = vmatprep.mubr.bf16.mxu1 %v11268_v36  ;;  %v5157_v1 = vpop.f32.mrf.mxu0  ;;  %v11269_v56 = vld [vmem:[%s16765_s0 + $0xc80] ss:$20 sps:$4 sm:$0xff]  }
 0x2b4   :  { %v6062_v22 = vpop.f32.mrf.mxu1 }
 0x2b5   :  { %v13368_v53 = vpop.f32.mrf.mxu0  ;;  %v11274_v22 = vld [vmem:[%s16765_s0 + $0x994] ss:$20 sps:$4 sm:$0xff]  }
 0x2b6   :  { %17053 = vst [vmem:[#allocation170_spill] sm:$0xff] %v13368_v53  ;;  %v13370_v40 = vpop.f32.mrf.mxu1 }
 0x2b7   :  { %17054 = vst [vmem:[#allocation171_spill] sm:$0xff] %v13370_v40  ;;  %v5160_v12 = vpop.f32.mrf.mxu0 }
 0x2b8   :  { %v6065_v11 = vpop.f32.mrf.mxu1  ;;  %v11272_v12 = vld [vmem:[%s16765_s0 + $0x990] ss:$20 sps:$4 sm:$0xff]  }
 0x2b9   :  { %v13384_v36 = vpop.f32.mrf.mxu0  ;;  %5354 = vmatmul.mubr.bf16.gmra.mxu0 %v11263_v20  ;;  %v11277_v20 = vld [vmem:[%s16765_s0 + $0xcac] ss:$20 sps:$4 sm:$0xff]  }
 0x2ba   :  { %17055 = vst [vmem:[#allocation172_spill] sm:$0xff] %v13384_v36  ;;  %v13386_v38 = vpop.f32.mrf.mxu1  ;;  %6259 = vmatmul.mubr.bf16.gmra.mxu1 %v11266_v37  ;;  %5361 = vmatprep.mubr.bf16.mxu0 %v11271_v19 }
 0x2bb   :  { %17056 = vst [vmem:[#allocation173_spill] sm:$0xff] %v13386_v38  ;;  %6266 = vmatprep.mubr.bf16.mxu1 %v11274_v22  ;;  %v5165_v1 = vpop.f32.mrf.mxu0  ;;  %v11275_v38 = vld [vmem:[%s16765_s0 + $0xca8] ss:$20 sps:$4 sm:$0xff]  }
 0x2bc   :  { %v6070_v53 = vpop.f32.mrf.mxu1 }
 0x2bd   :  { %v13388_v2 = vpop.f32.mrf.mxu0  ;;  %v11280_v53 = vld [vmem:[%s16765_s0 + $0x9bc] ss:$20 sps:$4 sm:$0xff]  }
 0x2be   :  { %17057 = vst [vmem:[#allocation174_spill] sm:$0xff] %v13388_v2  ;;  %v13390_v40 = vpop.f32.mrf.mxu1 }
 0x2bf   :  { %17058 = vst [vmem:[#allocation175_spill] sm:$0xff] %v13390_v40  ;;  %v5168_v37 = vpop.f32.mrf.mxu0 }
 0x2c0   :  { %v6073_v19 = vpop.f32.mrf.mxu1  ;;  %v11278_v37 = vld [vmem:[%s16765_s0 + $0x9b8] ss:$20 sps:$4 sm:$0xff]  }
 0x2c1   :  { %v13404_v22 = vpop.f32.mrf.mxu0  ;;  %5362 = vmatmul.mubr.bf16.gmra.mxu0 %v11269_v56  ;;  %v11284_v56 = vld [vmem:[%s16765_s0 + $0xcd4] ss:$20 sps:$4 sm:$0xff]  }
 0x2c2   :  { %17059 = vst [vmem:[#allocation176_spill] sm:$0xff] %v13404_v22  ;;  %v13406_v11 = vpop.f32.mrf.mxu1  ;;  %6267 = vmatmul.mubr.bf16.gmra.mxu1 %v11272_v12  ;;  %5369 = vmatprep.mubr.bf16.mxu0 %v11277_v20 }
 0x2c3   :  { %17060 = vst [vmem:[#allocation177_spill] sm:$0xff] %v13406_v11  ;;  %6274 = vmatprep.mubr.bf16.mxu1 %v11280_v53  ;;  %v5173_v1 = vpop.f32.mrf.mxu0  ;;  %v11282_v11 = vld [vmem:[%s16765_s0 + $0xcd0] ss:$20 sps:$4 sm:$0xff]  }
 0x2c4   :  { %v6078_v2 = vpop.f32.mrf.mxu1 }
 0x2c5   :  { %v13408_v36 = vpop.f32.mrf.mxu0  ;;  %v11287_v2 = vld [vmem:[%s16765_s0 + $0x9e4] ss:$20 sps:$4 sm:$0xff]  }
 0x2c6   :  { %17061 = vst [vmem:[#allocation178_spill] sm:$0xff] %v13408_v36  ;;  %v13410_v40 = vpop.f32.mrf.mxu1 }
 0x2c7   :  { %17062 = vst [vmem:[#allocation179_spill] sm:$0xff] %v13410_v40  ;;  %v5176_v12 = vpop.f32.mrf.mxu0 }
 0x2c8   :  { %v6081_v20 = vpop.f32.mrf.mxu1  ;;  %v11285_v12 = vld [vmem:[%s16765_s0 + $0x9e0] ss:$20 sps:$4 sm:$0xff]  }
 0x2c9   :  { %v13424_v53 = vpop.f32.mrf.mxu0  ;;  %5370 = vmatmul.mubr.bf16.gmra.mxu0 %v11275_v38  ;;  %v11290_v38 = vld [vmem:[%s16765_s0 + $0xcfc] ss:$20 sps:$4 sm:$0xff]  }
 0x2ca   :  { %17063 = vst [vmem:[#allocation180_spill] sm:$0xff] %v13424_v53  ;;  %v13426_v19 = vpop.f32.mrf.mxu1  ;;  %6275 = vmatmul.mubr.bf16.gmra.mxu1 %v11278_v37  ;;  %5377 = vmatprep.mubr.bf16.mxu0 %v11284_v56 }
 0x2cb   :  { %17064 = vst [vmem:[#allocation181_spill] sm:$0xff] %v13426_v19  ;;  %6282 = vmatprep.mubr.bf16.mxu1 %v11287_v2  ;;  %v5181_v1 = vpop.f32.mrf.mxu0  ;;  %v11288_v19 = vld [vmem:[%s16765_s0 + $0xcf8] ss:$20 sps:$4 sm:$0xff]  }
 0x2cc   :  { %v6086_v36 = vpop.f32.mrf.mxu1 }
 0x2cd   :  { %v13428_v22 = vpop.f32.mrf.mxu0  ;;  %v11293_v36 = vld [vmem:[%s16765_s0 + $0xa0c] ss:$20 sps:$4 sm:$0xff]  }
 0x2ce   :  { %17065 = vst [vmem:[#allocation182_spill] sm:$0xff] %v13428_v22  ;;  %v13430_v40 = vpop.f32.mrf.mxu1 }
 0x2cf   :  { %17066 = vst [vmem:[#allocation183_spill] sm:$0xff] %v13430_v40  ;;  %v5184_v37 = vpop.f32.mrf.mxu0 }
 0x2d0   :  { %v6089_v56 = vpop.f32.mrf.mxu1  ;;  %v11291_v37 = vld [vmem:[%s16765_s0 + $0xa08] ss:$20 sps:$4 sm:$0xff]  }
 0x2d1   :  { %v13444_v2 = vpop.f32.mrf.mxu0  ;;  %5378 = vmatmul.mubr.bf16.gmra.mxu0 %v11282_v11  ;;  %v11296_v11 = vld [vmem:[%s16765_s0 + $0xd24] ss:$20 sps:$4 sm:$0xff]  }
 0x2d2   :  { %17067 = vst [vmem:[#allocation184_spill] sm:$0xff] %v13444_v2  ;;  %v13446_v20 = vpop.f32.mrf.mxu1  ;;  %6283 = vmatmul.mubr.bf16.gmra.mxu1 %v11285_v12  ;;  %5385 = vmatprep.mubr.bf16.mxu0 %v11290_v38 }
 0x2d3   :  { %17068 = vst [vmem:[#allocation185_spill] sm:$0xff] %v13446_v20  ;;  %6290 = vmatprep.mubr.bf16.mxu1 %v11293_v36  ;;  %v5189_v1 = vpop.f32.mrf.mxu0  ;;  %v11294_v20 = vld [vmem:[%s16765_s0 + $0xd20] ss:$20 sps:$4 sm:$0xff]  }
 0x2d4   :  { %v6094_v22 = vpop.f32.mrf.mxu1 }
 0x2d5   :  { %v13448_v53 = vpop.f32.mrf.mxu0  ;;  %v11299_v22 = vld [vmem:[%s16765_s0 + $0xa34] ss:$20 sps:$4 sm:$0xff]  }
 0x2d6   :  { %17069 = vst [vmem:[#allocation186_spill] sm:$0xff] %v13448_v53  ;;  %v13450_v40 = vpop.f32.mrf.mxu1 }
 0x2d7   :  { %17070 = vst [vmem:[#allocation187_spill] sm:$0xff] %v13450_v40  ;;  %v5192_v12 = vpop.f32.mrf.mxu0 }
 0x2d8   :  { %v6097_v38 = vpop.f32.mrf.mxu1  ;;  %v11297_v12 = vld [vmem:[%s16765_s0 + $0xa30] ss:$20 sps:$4 sm:$0xff]  }
 0x2d9   :  { %v13464_v36 = vpop.f32.mrf.mxu0  ;;  %5386 = vmatmul.mubr.bf16.gmra.mxu0 %v11288_v19  ;;  %v11302_v19 = vld [vmem:[%s16765_s0 + $0xd4c] ss:$20 sps:$4 sm:$0xff]  }
 0x2da   :  { %17071 = vst [vmem:[#allocation188_spill] sm:$0xff] %v13464_v36  ;;  %v13466_v56 = vpop.f32.mrf.mxu1  ;;  %6291 = vmatmul.mubr.bf16.gmra.mxu1 %v11291_v37  ;;  %5393 = vmatprep.mubr.bf16.mxu0 %v11296_v11 }
 0x2db   :  { %17072 = vst [vmem:[#allocation189_spill] sm:$0xff] %v13466_v56  ;;  %6298 = vmatprep.mubr.bf16.mxu1 %v11299_v22  ;;  %v5197_v1 = vpop.f32.mrf.mxu0  ;;  %v11300_v56 = vld [vmem:[%s16765_s0 + $0xd48] ss:$20 sps:$4 sm:$0xff]  }
 0x2dc   :  { %v6102_v53 = vpop.f32.mrf.mxu1 }
 0x2dd   :  { %v13468_v2 = vpop.f32.mrf.mxu0  ;;  %v11305_v53 = vld [vmem:[%s16765_s0 + $0xa5c] ss:$20 sps:$4 sm:$0xff]  }
 0x2de   :  { %17073 = vst [vmem:[#allocation190_spill] sm:$0xff] %v13468_v2  ;;  %v13470_v40 = vpop.f32.mrf.mxu1 }
 0x2df   :  { %17074 = vst [vmem:[#allocation191_spill] sm:$0xff] %v13470_v40  ;;  %v5200_v37 = vpop.f32.mrf.mxu0 }
 0x2e0   :  { %v6105_v11 = vpop.f32.mrf.mxu1  ;;  %v11303_v37 = vld [vmem:[%s16765_s0 + $0xa58] ss:$20 sps:$4 sm:$0xff]  }
 0x2e1   :  { %v13484_v22 = vpop.f32.mrf.mxu0  ;;  %5394 = vmatmul.mubr.bf16.gmra.mxu0 %v11294_v20  ;;  %v11308_v20 = vld [vmem:[%s16765_s0 + $0xd74] ss:$20 sps:$4 sm:$0xff]  }
 0x2e2   :  { %17075 = vst [vmem:[#allocation192_spill] sm:$0xff] %v13484_v22  ;;  %v13486_v38 = vpop.f32.mrf.mxu1  ;;  %6299 = vmatmul.mubr.bf16.gmra.mxu1 %v11297_v12  ;;  %5401 = vmatprep.mubr.bf16.mxu0 %v11302_v19 }
 0x2e3   :  { %17076 = vst [vmem:[#allocation193_spill] sm:$0xff] %v13486_v38  ;;  %6306 = vmatprep.mubr.bf16.mxu1 %v11305_v53  ;;  %v5205_v1 = vpop.f32.mrf.mxu0  ;;  %v11306_v38 = vld [vmem:[%s16765_s0 + $0xd70] ss:$20 sps:$4 sm:$0xff]  }
 0x2e4   :  { %v6110_v2 = vpop.f32.mrf.mxu1 }
 0x2e5   :  { %v13488_v36 = vpop.f32.mrf.mxu0  ;;  %v11311_v2 = vld [vmem:[%s16765_s0 + $0xa84] ss:$20 sps:$4 sm:$0xff]  }
 0x2e6   :  { %17077 = vst [vmem:[#allocation194_spill] sm:$0xff] %v13488_v36  ;;  %v13490_v40 = vpop.f32.mrf.mxu1 }
 0x2e7   :  { %17078 = vst [vmem:[#allocation195_spill] sm:$0xff] %v13490_v40  ;;  %v5208_v12 = vpop.f32.mrf.mxu0 }
 0x2e8   :  { %v6113_v19 = vpop.f32.mrf.mxu1  ;;  %v11309_v12 = vld [vmem:[%s16765_s0 + $0xa80] ss:$20 sps:$4 sm:$0xff]  }
 0x2e9   :  { %v13504_v53 = vpop.f32.mrf.mxu0  ;;  %5402 = vmatmul.mubr.bf16.gmra.mxu0 %v11300_v56  ;;  %v11314_v56 = vld [vmem:[%s16765_s0 + $0xd9c] ss:$20 sps:$4 sm:$0xff]  }
 0x2ea   :  { %17079 = vst [vmem:[#allocation196_spill] sm:$0xff] %v13504_v53  ;;  %v13506_v11 = vpop.f32.mrf.mxu1  ;;  %6307 = vmatmul.mubr.bf16.gmra.mxu1 %v11303_v37  ;;  %5409 = vmatprep.mubr.bf16.mxu0 %v11308_v20 }
 0x2eb   :  { %17080 = vst [vmem:[#allocation197_spill] sm:$0xff] %v13506_v11  ;;  %6314 = vmatprep.mubr.bf16.mxu1 %v11311_v2  ;;  %v5213_v1 = vpop.f32.mrf.mxu0  ;;  %v11312_v11 = vld [vmem:[%s16765_s0 + $0xd98] ss:$20 sps:$4 sm:$0xff]  }
 0x2ec   :  { %v6118_v36 = vpop.f32.mrf.mxu1 }
 0x2ed   :  { %v13508_v22 = vpop.f32.mrf.mxu0  ;;  %v11317_v36 = vld [vmem:[%s16765_s0 + $0xaac] ss:$20 sps:$4 sm:$0xff]  }
 0x2ee   :  { %17081 = vst [vmem:[#allocation198_spill] sm:$0xff] %v13508_v22  ;;  %v13510_v40 = vpop.f32.mrf.mxu1 }
 0x2ef   :  { %17082 = vst [vmem:[#allocation199_spill] sm:$0xff] %v13510_v40  ;;  %v5216_v37 = vpop.f32.mrf.mxu0 }
 0x2f0   :  { %v6121_v20 = vpop.f32.mrf.mxu1  ;;  %v11315_v37 = vld [vmem:[%s16765_s0 + $0xaa8] ss:$20 sps:$4 sm:$0xff]  }
 0x2f1   :  { %v13524_v2 = vpop.f32.mrf.mxu0  ;;  %5410 = vmatmul.mubr.bf16.gmra.mxu0 %v11306_v38  ;;  %v11321_v38 = vld [vmem:[%s16765_s0 + $0xdc4] ss:$20 sps:$4 sm:$0xff]  }
 0x2f2   :  { %17083 = vst [vmem:[#allocation200_spill] sm:$0xff] %v13524_v2  ;;  %v13526_v19 = vpop.f32.mrf.mxu1  ;;  %6315 = vmatmul.mubr.bf16.gmra.mxu1 %v11309_v12  ;;  %5417 = vmatprep.mubr.bf16.mxu0 %v11314_v56 }
 0x2f3   :  { %17084 = vst [vmem:[#allocation201_spill] sm:$0xff] %v13526_v19  ;;  %6322 = vmatprep.mubr.bf16.mxu1 %v11317_v36  ;;  %v5221_v1 = vpop.f32.mrf.mxu0  ;;  %v11319_v19 = vld [vmem:[%s16765_s0 + $0xdc0] ss:$20 sps:$4 sm:$0xff]  }
 0x2f4   :  { %v6126_v22 = vpop.f32.mrf.mxu1 }
 0x2f5   :  { %v13528_v53 = vpop.f32.mrf.mxu0  ;;  %v11324_v22 = vld [vmem:[%s16765_s0 + $0xad4] ss:$20 sps:$4 sm:$0xff]  }
 0x2f6   :  { %17085 = vst [vmem:[#allocation202_spill] sm:$0xff] %v13528_v53  ;;  %v13530_v40 = vpop.f32.mrf.mxu1 }
 0x2f7   :  { %17086 = vst [vmem:[#allocation203_spill] sm:$0xff] %v13530_v40  ;;  %v5224_v12 = vpop.f32.mrf.mxu0 }
 0x2f8   :  { %v6129_v56 = vpop.f32.mrf.mxu1  ;;  %v11322_v12 = vld [vmem:[%s16765_s0 + $0xad0] ss:$20 sps:$4 sm:$0xff]  }
 0x2f9   :  { %v13544_v36 = vpop.f32.mrf.mxu0  ;;  %5418 = vmatmul.mubr.bf16.gmra.mxu0 %v11312_v11  ;;  %v11327_v11 = vld [vmem:[%s16765_s0 + $0xdec] ss:$20 sps:$4 sm:$0xff]  }
 0x2fa   :  { %17087 = vst [vmem:[#allocation204_spill] sm:$0xff] %v13544_v36  ;;  %v13546_v20 = vpop.f32.mrf.mxu1  ;;  %6323 = vmatmul.mubr.bf16.gmra.mxu1 %v11315_v37  ;;  %5425 = vmatprep.mubr.bf16.mxu0 %v11321_v38  ;;  %v11415_v37 = vld [vmem:[%s16766_s4 + $0x20] sm:$0xff]  }
 0x2fb   :  { %17088 = vst [vmem:[#allocation205_spill] sm:$0xff] %v13546_v20  ;;  %6330 = vmatprep.mubr.bf16.mxu1 %v11324_v22  ;;  %v5229_v1 = vpop.f32.mrf.mxu0  ;;  %10584 = vmatprep.subr.bf16.mxu1 %v11415_v37 }
 0x2fc   :  { %v6134_v53 = vpop.f32.mrf.mxu1  ;;  %10585 = vmatpush3.bf16.msra.mxu1 %v11415_v37 }
 0x2fd   :  { %v13548_v2 = vpop.f32.mrf.mxu0  ;;  %v11330_v53 = vld [vmem:[%s16765_s0 + $0xafc] ss:$20 sps:$4 sm:$0xff]  }
 0x2fe   :  { %17089 = vst [vmem:[#allocation206_spill] sm:$0xff] %v13548_v2  ;;  %v13550_v40 = vpop.f32.mrf.mxu1 }
 0x2ff   :  { %17090 = vst [vmem:[#allocation207_spill] sm:$0xff] %v13550_v40  ;;  %v5232_v38 = vpop.f32.mrf.mxu0 }
 0x300   :  { %v6137_v22 = vpop.f32.mrf.mxu1  ;;  %v11325_v38 = vld [vmem:[%s16765_s0 + $0xde8] ss:$20 sps:$4 sm:$0xff]  }
 0x301   :  { %v13567_v56 = vpop.f32.mrf.mxu0  ;;  %5426 = vmatmul.mubr.bf16.gmra.mxu0 %v11319_v19  ;;  %v11328_v19 = vld [vmem:[%s16765_s0 + $0xaf8] ss:$20 sps:$4 sm:$0xff]  }
 0x302   :  { %17091 = vst [vmem:[#allocation208_spill] sm:$0xff] %v13567_v56  ;;  %v13569_v1 = vpop.f32.mrf.mxu1  ;;  %6331 = vmatmul.mubr.bf16.gmra.mxu1 %v11322_v12  ;;  %5433 = vmatprep.mubr.bf16.mxu0 %v11327_v11  ;;  %v11333_v12 = vld [vmem:[%s16765_s0 + $0xe14] ss:$20 sps:$4 sm:$0xff]  }
 0x303   :  { %17092 = vst [vmem:[#allocation209_spill] sm:$0xff] %v13569_v1  ;;  %6338 = vmatprep.mubr.bf16.mxu1 %v11330_v53  ;;  %v5237_v2 = vpop.f32.mrf.mxu0  ;;  %v11331_v1 = vld [vmem:[%s16765_s0 + $0xe10] ss:$20 sps:$4 sm:$0xff]  }
 0x304   :  { %v6142_v36 = vpop.f32.mrf.mxu1  ;;  %v11336_v2 = vld [vmem:[%s16765_s0 + $0xb24] ss:$20 sps:$4 sm:$0xff]  }
 0x305   :  { %v13571_v40 = vpop.f32.mrf.mxu0 }
 0x306   :  { %17093 = vst [vmem:[#allocation210_spill] sm:$0xff] %v13571_v40  ;;  %v13573_v20 = vpop.f32.mrf.mxu1 }
 0x307   :  { %17094 = vst [vmem:[#allocation211_spill] sm:$0xff] %v13573_v20  ;;  %v5240_v36 = vpop.f32.mrf.mxu0 }
 0x308   :  { %v6145_v11 = vpop.f32.mrf.mxu1  ;;  %v11334_v36 = vld [vmem:[%s16765_s0 + $0xb20] ss:$20 sps:$4 sm:$0xff]  }
 0x309   :  { %v13587_v53 = vpop.f32.mrf.mxu0  ;;  %5434 = vmatmul.mubr.bf16.gmra.mxu0 %v11325_v38  ;;  %v11339_v38 = vld [vmem:[%s16765_s0 + $0xe3c] ss:$20 sps:$4 sm:$0xff]  }
 0x30a   :  { %17095 = vst [vmem:[#allocation212_spill] sm:$0xff] %v13587_v53  ;;  %v13589_v37 = vpop.f32.mrf.mxu1  ;;  %6339 = vmatmul.mubr.bf16.gmra.mxu1 %v11328_v19  ;;  %5441 = vmatprep.mubr.bf16.mxu0 %v11333_v12 }
 0x30b   :  { %17096 = vst [vmem:[#allocation213_spill] sm:$0xff] %v13589_v37  ;;  %6346 = vmatprep.mubr.bf16.mxu1 %v11336_v2  ;;  %v5245_v22 = vpop.f32.mrf.mxu0  ;;  %v11337_v37 = vld [vmem:[%s16765_s0 + $0xe38] ss:$20 sps:$4 sm:$0xff]  }
 0x30c   :  { %v6150_v40 = vpop.f32.mrf.mxu1 }
 0x30d   :  { %v13591_v56 = vpop.f32.mrf.mxu0  ;;  %v11342_v40 = vld [vmem:[%s16765_s0 + $0xb4c] ss:$20 sps:$4 sm:$0xff]  }
 0x30e   :  { %17097 = vst [vmem:[#allocation214_spill] sm:$0xff] %v13591_v56  ;;  %v13593_v20 = vpop.f32.mrf.mxu1 }
 0x30f   :  { %17098 = vst [vmem:[#allocation215_spill] sm:$0xff] %v13593_v20  ;;  %v5248_v19 = vpop.f32.mrf.mxu0 }
 0x310   :  { %v6153_v12 = vpop.f32.mrf.mxu1  ;;  %v11340_v19 = vld [vmem:[%s16765_s0 + $0xb48] ss:$20 sps:$4 sm:$0xff]  }
 0x311   :  { %v13607_v2 = vpop.f32.mrf.mxu0  ;;  %5442 = vmatmul.mubr.bf16.gmra.mxu0 %v11331_v1  ;;  %v11345_v1 = vld [vmem:[%s16765_s0 + $0xe64] ss:$20 sps:$4 sm:$0xff]  }
 0x312   :  { %17099 = vst [vmem:[#allocation216_spill] sm:$0xff] %v13607_v2  ;;  %v13609_v11 = vpop.f32.mrf.mxu1  ;;  %6347 = vmatmul.mubr.bf16.gmra.mxu1 %v11334_v36  ;;  %5449 = vmatprep.mubr.bf16.mxu0 %v11339_v38 }
 0x313   :  { %17100 = vst [vmem:[#allocation217_spill] sm:$0xff] %v13609_v11  ;;  %6354 = vmatprep.mubr.bf16.mxu1 %v11342_v40  ;;  %v5253_v22 = vpop.f32.mrf.mxu0  ;;  %v11343_v11 = vld [vmem:[%s16765_s0 + $0xe60] ss:$20 sps:$4 sm:$0xff]  }
 0x314   :  { %v6158_v56 = vpop.f32.mrf.mxu1 }
 0x315   :  { %v13611_v53 = vpop.f32.mrf.mxu0  ;;  %v11348_v56 = vld [vmem:[%s16765_s0 + $0xb74] ss:$20 sps:$4 sm:$0xff]  }
 0x316   :  { %17101 = vst [vmem:[#allocation218_spill] sm:$0xff] %v13611_v53  ;;  %v13613_v20 = vpop.f32.mrf.mxu1 }
 0x317   :  { %17102 = vst [vmem:[#allocation219_spill] sm:$0xff] %v13613_v20  ;;  %v5256_v36 = vpop.f32.mrf.mxu0 }
 0x318   :  { %v6161_v38 = vpop.f32.mrf.mxu1  ;;  %v11346_v36 = vld [vmem:[%s16765_s0 + $0xb70] ss:$20 sps:$4 sm:$0xff]  }
 0x319   :  { %v13627_v40 = vpop.f32.mrf.mxu0  ;;  %5450 = vmatmul.mubr.bf16.gmra.mxu0 %v11337_v37  ;;  %v11351_v37 = vld [vmem:[%s16765_s0 + $0xe8c] ss:$20 sps:$4 sm:$0xff]  }
 0x31a   :  { %17103 = vst [vmem:[#allocation220_spill] sm:$0xff] %v13627_v40  ;;  %v13629_v12 = vpop.f32.mrf.mxu1  ;;  %6355 = vmatmul.mubr.bf16.gmra.mxu1 %v11340_v19  ;;  %5457 = vmatprep.mubr.bf16.mxu0 %v11345_v1 }
 0x31b   :  { %17104 = vst [vmem:[#allocation221_spill] sm:$0xff] %v13629_v12  ;;  %6362 = vmatprep.mubr.bf16.mxu1 %v11348_v56  ;;  %v5261_v22 = vpop.f32.mrf.mxu0  ;;  %v11349_v12 = vld [vmem:[%s16765_s0 + $0xe88] ss:$20 sps:$4 sm:$0xff]  }
 0x31c   :  { %v6166_v53 = vpop.f32.mrf.mxu1 }
 0x31d   :  { %v13631_v2 = vpop.f32.mrf.mxu0  ;;  %v11354_v53 = vld [vmem:[%s16765_s0 + $0xb9c] ss:$20 sps:$4 sm:$0xff]  }
 0x31e   :  { %17105 = vst [vmem:[#allocation222_spill] sm:$0xff] %v13631_v2  ;;  %v13633_v20 = vpop.f32.mrf.mxu1 }
 0x31f   :  { %17106 = vst [vmem:[#allocation223_spill] sm:$0xff] %v13633_v20  ;;  %v5264_v19 = vpop.f32.mrf.mxu0 }
 0x320   :  { %v6169_v1 = vpop.f32.mrf.mxu1  ;;  %v11352_v19 = vld [vmem:[%s16765_s0 + $0xb98] ss:$20 sps:$4 sm:$0xff]  }
 0x321   :  { %v13647_v56 = vpop.f32.mrf.mxu0  ;;  %5458 = vmatmul.mubr.bf16.gmra.mxu0 %v11343_v11  ;;  %v11357_v11 = vld [vmem:[%s16765_s0 + $0xeb4] ss:$20 sps:$4 sm:$0xff]  }
 0x322   :  { %17107 = vst [vmem:[#allocation224_spill] sm:$0xff] %v13647_v56  ;;  %v13649_v38 = vpop.f32.mrf.mxu1  ;;  %6363 = vmatmul.mubr.bf16.gmra.mxu1 %v11346_v36  ;;  %5465 = vmatprep.mubr.bf16.mxu0 %v11351_v37 }
 0x323   :  { %17108 = vst [vmem:[#allocation225_spill] sm:$0xff] %v13649_v38  ;;  %6370 = vmatprep.mubr.bf16.mxu1 %v11354_v53  ;;  %v5269_v22 = vpop.f32.mrf.mxu0  ;;  %v11355_v38 = vld [vmem:[%s16765_s0 + $0xeb0] ss:$20 sps:$4 sm:$0xff]  }
 0x324   :  { %v6174_v2 = vpop.f32.mrf.mxu1 }
 0x325   :  { %v13651_v40 = vpop.f32.mrf.mxu0  ;;  %v11360_v2 = vld [vmem:[%s16765_s0 + $0xbc4] ss:$20 sps:$4 sm:$0xff]  }
 0x326   :  { %17109 = vst [vmem:[#allocation226_spill] sm:$0xff] %v13651_v40  ;;  %v13653_v20 = vpop.f32.mrf.mxu1 }
 0x327   :  { %17110 = vst [vmem:[#allocation227_spill] sm:$0xff] %v13653_v20  ;;  %v5272_v36 = vpop.f32.mrf.mxu0 }
 0x328   :  { %v6177_v37 = vpop.f32.mrf.mxu1  ;;  %v11358_v36 = vld [vmem:[%s16765_s0 + $0xbc0] ss:$20 sps:$4 sm:$0xff]  }
 0x329   :  { %v13667_v53 = vpop.f32.mrf.mxu0  ;;  %5466 = vmatmul.mubr.bf16.gmra.mxu0 %v11349_v12  ;;  %v11363_v12 = vld [vmem:[%s16765_s0 + $0xedc] ss:$20 sps:$4 sm:$0xff]  }
 0x32a   :  { %17111 = vst [vmem:[#allocation228_spill] sm:$0xff] %v13667_v53  ;;  %v13669_v1 = vpop.f32.mrf.mxu1  ;;  %6371 = vmatmul.mubr.bf16.gmra.mxu1 %v11352_v19  ;;  %5473 = vmatprep.mubr.bf16.mxu0 %v11357_v11 }
 0x32b   :  { %17112 = vst [vmem:[#allocation229_spill] sm:$0xff] %v13669_v1  ;;  %6378 = vmatprep.mubr.bf16.mxu1 %v11360_v2  ;;  %v5277_v22 = vpop.f32.mrf.mxu0  ;;  %v11361_v1 = vld [vmem:[%s16765_s0 + $0xed8] ss:$20 sps:$4 sm:$0xff]  }
 0x32c   :  { %v6182_v40 = vpop.f32.mrf.mxu1 }
 0x32d   :  { %v13671_v56 = vpop.f32.mrf.mxu0  ;;  %v11366_v40 = vld [vmem:[%s16765_s0 + $0xbec] ss:$20 sps:$4 sm:$0xff]  }
 0x32e   :  { %17113 = vst [vmem:[#allocation230_spill] sm:$0xff] %v13671_v56  ;;  %v13673_v20 = vpop.f32.mrf.mxu1 }
 0x32f   :  { %17114 = vst [vmem:[#allocation231_spill] sm:$0xff] %v13673_v20  ;;  %v5280_v19 = vpop.f32.mrf.mxu0 }
 0x330   :  { %v6185_v11 = vpop.f32.mrf.mxu1  ;;  %v11364_v19 = vld [vmem:[%s16765_s0 + $0xbe8] ss:$20 sps:$4 sm:$0xff]  }
 0x331   :  { %v13687_v2 = vpop.f32.mrf.mxu0  ;;  %5474 = vmatmul.mubr.bf16.gmra.mxu0 %v11355_v38  ;;  %v11369_v38 = vld [vmem:[%s16765_s0 + $0xf04] ss:$20 sps:$4 sm:$0xff]  }
 0x332   :  { %17115 = vst [vmem:[#allocation232_spill] sm:$0xff] %v13687_v2  ;;  %v13689_v37 = vpop.f32.mrf.mxu1  ;;  %6379 = vmatmul.mubr.bf16.gmra.mxu1 %v11358_v36  ;;  %5481 = vmatprep.mubr.bf16.mxu0 %v11363_v12 }
 0x333   :  { %17116 = vst [vmem:[#allocation233_spill] sm:$0xff] %v13689_v37  ;;  %6386 = vmatprep.mubr.bf16.mxu1 %v11366_v40  ;;  %v5285_v22 = vpop.f32.mrf.mxu0  ;;  %v11367_v37 = vld [vmem:[%s16765_s0 + $0xf00] ss:$20 sps:$4 sm:$0xff]  }
 0x334   :  { %v6190_v56 = vpop.f32.mrf.mxu1 }
 0x335   :  { %v13691_v53 = vpop.f32.mrf.mxu0  ;;  %v11372_v56 = vld [vmem:[%s16765_s0 + $0xc14] ss:$20 sps:$4 sm:$0xff]  }
 0x336   :  { %17117 = vst [vmem:[#allocation234_spill] sm:$0xff] %v13691_v53  ;;  %v13693_v20 = vpop.f32.mrf.mxu1 }
 0x337   :  { %17118 = vst [vmem:[#allocation235_spill] sm:$0xff] %v13693_v20  ;;  %v5288_v36 = vpop.f32.mrf.mxu0 }
 0x338   :  { %v6193_v12 = vpop.f32.mrf.mxu1  ;;  %v11370_v36 = vld [vmem:[%s16765_s0 + $0xc10] ss:$20 sps:$4 sm:$0xff]  }
 0x339   :  { %v13707_v40 = vpop.f32.mrf.mxu0  ;;  %5482 = vmatmul.mubr.bf16.gmra.mxu0 %v11361_v1  ;;  %v11375_v1 = vld [vmem:[%s16765_s0 + $0xf2c] ss:$20 sps:$4 sm:$0xff]  }
 0x33a   :  { %17119 = vst [vmem:[#allocation236_spill] sm:$0xff] %v13707_v40  ;;  %v13709_v11 = vpop.f32.mrf.mxu1  ;;  %6387 = vmatmul.mubr.bf16.gmra.mxu1 %v11364_v19  ;;  %5489 = vmatprep.mubr.bf16.mxu0 %v11369_v38 }
 0x33b   :  { %17120 = vst [vmem:[#allocation237_spill] sm:$0xff] %v13709_v11  ;;  %6394 = vmatprep.mubr.bf16.mxu1 %v11372_v56  ;;  %v5293_v22 = vpop.f32.mrf.mxu0  ;;  %v11373_v11 = vld [vmem:[%s16765_s0 + $0xf28] ss:$20 sps:$4 sm:$0xff]  }
 0x33c   :  { %v6198_v53 = vpop.f32.mrf.mxu1 }
 0x33d   :  { %v13711_v2 = vpop.f32.mrf.mxu0  ;;  %v11378_v53 = vld [vmem:[%s16765_s0 + $0xc3c] ss:$20 sps:$4 sm:$0xff]  }
 0x33e   :  { %17121 = vst [vmem:[#allocation238_spill] sm:$0xff] %v13711_v2  ;;  %v13713_v20 = vpop.f32.mrf.mxu1 }
 0x33f   :  { %17122 = vst [vmem:[#allocation239_spill] sm:$0xff] %v13713_v20  ;;  %v5296_v19 = vpop.f32.mrf.mxu0 }
 0x340   :  { %v6201_v38 = vpop.f32.mrf.mxu1  ;;  %v11376_v19 = vld [vmem:[%s16765_s0 + $0xc38] ss:$20 sps:$4 sm:$0xff]  }
 0x341   :  { %v13727_v56 = vpop.f32.mrf.mxu0  ;;  %5490 = vmatmul.mubr.bf16.gmra.mxu0 %v11367_v37  ;;  %v11381_v37 = vld [vmem:[%s16765_s0 + $0xf54] ss:$20 sps:$4 sm:$0xff]  }
 0x342   :  { %17123 = vst [vmem:[#allocation240_spill] sm:$0xff] %v13727_v56  ;;  %v13729_v12 = vpop.f32.mrf.mxu1  ;;  %6395 = vmatmul.mubr.bf16.gmra.mxu1 %v11370_v36  ;;  %5497 = vmatprep.mubr.bf16.mxu0 %v11375_v1 }
 0x343   :  { %17124 = vst [vmem:[#allocation241_spill] sm:$0xff] %v13729_v12  ;;  %6402 = vmatprep.mubr.bf16.mxu1 %v11378_v53  ;;  %v5301_v22 = vpop.f32.mrf.mxu0  ;;  %v11379_v12 = vld [vmem:[%s16765_s0 + $0xf50] ss:$20 sps:$4 sm:$0xff]  }
 0x344   :  { %v6206_v2 = vpop.f32.mrf.mxu1 }
 0x345   :  { %v13731_v40 = vpop.f32.mrf.mxu0  ;;  %v11384_v2 = vld [vmem:[%s16765_s0 + $0xc64] ss:$20 sps:$4 sm:$0xff]  }
 0x346   :  { %17125 = vst [vmem:[#allocation242_spill] sm:$0xff] %v13731_v40  ;;  %v13733_v20 = vpop.f32.mrf.mxu1 }
 0x347   :  { %17126 = vst [vmem:[#allocation243_spill] sm:$0xff] %v13733_v20  ;;  %v5304_v36 = vpop.f32.mrf.mxu0 }
 0x348   :  { %v6209_v1 = vpop.f32.mrf.mxu1  ;;  %v11382_v36 = vld [vmem:[%s16765_s0 + $0xc60] ss:$20 sps:$4 sm:$0xff]  }
 0x349   :  { %v13747_v53 = vpop.f32.mrf.mxu0  ;;  %5498 = vmatmul.mubr.bf16.gmra.mxu0 %v11373_v11  ;;  %v11387_v11 = vld [vmem:[%s16765_s0 + $0xf7c] ss:$20 sps:$4 sm:$0xff]  }
 0x34a   :  { %17127 = vst [vmem:[#allocation244_spill] sm:$0xff] %v13747_v53  ;;  %v13749_v38 = vpop.f32.mrf.mxu1  ;;  %6403 = vmatmul.mubr.bf16.gmra.mxu1 %v11376_v19  ;;  %5505 = vmatprep.mubr.bf16.mxu0 %v11381_v37 }
 0x34b   :  { %17128 = vst [vmem:[#allocation245_spill] sm:$0xff] %v13749_v38  ;;  %6410 = vmatprep.mubr.bf16.mxu1 %v11384_v2  ;;  %v5309_v22 = vpop.f32.mrf.mxu0  ;;  %v11385_v38 = vld [vmem:[%s16765_s0 + $0xf78] ss:$20 sps:$4 sm:$0xff]  }
 0x34c   :  { %v6214_v40 = vpop.f32.mrf.mxu1 }
 0x34d   :  { %v13751_v56 = vpop.f32.mrf.mxu0  ;;  %v11390_v40 = vld [vmem:[%s16765_s0 + $0xc8c] ss:$20 sps:$4 sm:$0xff]  }
 0x34e   :  { %17129 = vst [vmem:[#allocation246_spill] sm:$0xff] %v13751_v56  ;;  %v13753_v20 = vpop.f32.mrf.mxu1 }
 0x34f   :  { %17130 = vst [vmem:[#allocation247_spill] sm:$0xff] %v13753_v20  ;;  %v5312_v19 = vpop.f32.mrf.mxu0 }
 0x350   :  { %v6217_v37 = vpop.f32.mrf.mxu1  ;;  %v11388_v19 = vld [vmem:[%s16765_s0 + $0xc88] ss:$20 sps:$4 sm:$0xff]  }
 0x351   :  { %v13767_v2 = vpop.f32.mrf.mxu0  ;;  %5506 = vmatmul.mubr.bf16.gmra.mxu0 %v11379_v12  ;;  %v11393_v12 = vld [vmem:[%s16765_s0 + $0xfa4] ss:$20 sps:$4 sm:$0xff]  }
 0x352   :  { %17131 = vst [vmem:[#allocation248_spill] sm:$0xff] %v13767_v2  ;;  %v13769_v1 = vpop.f32.mrf.mxu1  ;;  %6411 = vmatmul.mubr.bf16.gmra.mxu1 %v11382_v36  ;;  %5513 = vmatprep.mubr.bf16.mxu0 %v11387_v11 }
 0x353   :  { %17132 = vst [vmem:[#allocation249_spill] sm:$0xff] %v13769_v1  ;;  %6418 = vmatprep.mubr.bf16.mxu1 %v11390_v40  ;;  %v5317_v22 = vpop.f32.mrf.mxu0  ;;  %v11391_v1 = vld [vmem:[%s16765_s0 + $0xfa0] ss:$20 sps:$4 sm:$0xff]  }
 0x354   :  { %v6222_v56 = vpop.f32.mrf.mxu1 }
 0x355   :  { %v13771_v53 = vpop.f32.mrf.mxu0  ;;  %v11396_v56 = vld [vmem:[%s16765_s0 + $0xcb4] ss:$20 sps:$4 sm:$0xff]  }
 0x356   :  { %17133 = vst [vmem:[#allocation250_spill] sm:$0xff] %v13771_v53  ;;  %v13773_v20 = vpop.f32.mrf.mxu1 }
 0x357   :  { %17134 = vst [vmem:[#allocation251_spill] sm:$0xff] %v13773_v20  ;;  %v5320_v36 = vpop.f32.mrf.mxu0 }
 0x358   :  { %v6225_v11 = vpop.f32.mrf.mxu1  ;;  %v11394_v36 = vld [vmem:[%s16765_s0 + $0xcb0] ss:$20 sps:$4 sm:$0xff]  }
 0x359   :  { %v13787_v40 = vpop.f32.mrf.mxu0  ;;  %5514 = vmatmul.mubr.bf16.gmra.mxu0 %v11385_v38  ;;  %v11399_v38 = vld [vmem:[%s16765_s0 + $0xfcc] ss:$20 sps:$4 sm:$0xff]  }
 0x35a   :  { %17135 = vst [vmem:[#allocation252_spill] sm:$0xff] %v13787_v40  ;;  %v13789_v37 = vpop.f32.mrf.mxu1  ;;  %6419 = vmatmul.mubr.bf16.gmra.mxu1 %v11388_v19  ;;  %5521 = vmatprep.mubr.bf16.mxu0 %v11393_v12 }
 0x35b   :  { %17136 = vst [vmem:[#allocation253_spill] sm:$0xff] %v13789_v37  ;;  %6426 = vmatprep.mubr.bf16.mxu1 %v11396_v56  ;;  %v5325_v22 = vpop.f32.mrf.mxu0  ;;  %v11397_v37 = vld [vmem:[%s16765_s0 + $0xfc8] ss:$20 sps:$4 sm:$0xff]  }
 0x35c   :  { %v6230_v53 = vpop.f32.mrf.mxu1 }
 0x35d   :  { %v13791_v2 = vpop.f32.mrf.mxu0  ;;  %v11402_v53 = vld [vmem:[%s16765_s0 + $0xcdc] ss:$20 sps:$4 sm:$0xff]  }
 0x35e   :  { %17137 = vst [vmem:[#allocation254_spill] sm:$0xff] %v13791_v2  ;;  %v13793_v20 = vpop.f32.mrf.mxu1 }
 0x35f   :  { %17138 = vst [vmem:[#allocation255_spill] sm:$0xff] %v13793_v20  ;;  %v5328_v19 = vpop.f32.mrf.mxu0 }
 0x360   :  { %v6233_v12 = vpop.f32.mrf.mxu1  ;;  %v11400_v19 = vld [vmem:[%s16765_s0 + $0xcd8] ss:$20 sps:$4 sm:$0xff]  }
 0x361   :  { %v13807_v56 = vpop.f32.mrf.mxu0  ;;  %5522 = vmatmul.mubr.bf16.gmra.mxu0 %v11391_v1  ;;  %v11405_v1 = vld [vmem:[%s16765_s0 + $0xff4] ss:$20 sps:$4 sm:$0xff]  }
 0x362   :  { %17139 = vst [vmem:[#allocation256_spill] sm:$0xff] %v13807_v56  ;;  %v13809_v11 = vpop.f32.mrf.mxu1  ;;  %6427 = vmatmul.mubr.bf16.gmra.mxu1 %v11394_v36  ;;  %5529 = vmatprep.mubr.bf16.mxu0 %v11399_v38 }
 0x363   :  { %17140 = vst [vmem:[#allocation257_spill] sm:$0xff] %v13809_v11  ;;  %6434 = vmatprep.mubr.bf16.mxu1 %v11402_v53  ;;  %v5333_v22 = vpop.f32.mrf.mxu0  ;;  %v11403_v11 = vld [vmem:[%s16765_s0 + $0xff0] ss:$20 sps:$4 sm:$0xff]  }
 0x364   :  { %v6238_v2 = vpop.f32.mrf.mxu1 }
 0x365   :  { %v13811_v40 = vpop.f32.mrf.mxu0  ;;  %v11408_v2 = vld [vmem:[%s16765_s0 + $0xd04] ss:$20 sps:$4 sm:$0xff]  }
 0x366   :  { %17141 = vst [vmem:[#allocation258_spill] sm:$0xff] %v13811_v40  ;;  %v13813_v20 = vpop.f32.mrf.mxu1 }
 0x367   :  { %17142 = vst [vmem:[#allocation259_spill] sm:$0xff] %v13813_v20  ;;  %v5336_v36 = vpop.f32.mrf.mxu0 }
 0x368   :  { %v6241_v38 = vpop.f32.mrf.mxu1  ;;  %v11406_v36 = vld [vmem:[%s16765_s0 + $0xd00] ss:$20 sps:$4 sm:$0xff]  }
 0x369   :  { %v13827_v53 = vpop.f32.mrf.mxu0  ;;  %5530 = vmatmul.mubr.bf16.gmra.mxu0 %v11397_v37  ;;  %v11411_v37 = vld [vmem:[%s16765_s0 + $0x101c] ss:$20 sps:$4 sm:$0xff]  }
 0x36a   :  { %17143 = vst [vmem:[#allocation260_spill] sm:$0xff] %v13827_v53  ;;  %v13829_v12 = vpop.f32.mrf.mxu1  ;;  %6435 = vmatmul.mubr.bf16.gmra.mxu1 %v11400_v19  ;;  %5537 = vmatprep.mubr.bf16.mxu0 %v11405_v1 }
 0x36b   :  { %17144 = vst [vmem:[#allocation261_spill] sm:$0xff] %v13829_v12  ;;  %6442 = vmatprep.mubr.bf16.mxu1 %v11408_v2  ;;  %v5341_v22 = vpop.f32.mrf.mxu0  ;;  %v11409_v12 = vld [vmem:[%s16765_s0 + $0x1018] ss:$20 sps:$4 sm:$0xff]  }
 0x36c   :  { %v6246_v40 = vpop.f32.mrf.mxu1 }
 0x36d   :  { %v13831_v56 = vpop.f32.mrf.mxu0  ;;  %v11414_v40 = vld [vmem:[%s16765_s0 + $0xd2c] ss:$20 sps:$4 sm:$0xff]  }
 0x36e   :  { %17145 = vst [vmem:[#allocation262_spill] sm:$0xff] %v13831_v56  ;;  %v13833_v20 = vpop.f32.mrf.mxu1 }
 0x36f   :  { %17146 = vst [vmem:[#allocation263_spill] sm:$0xff] %v13833_v20  ;;  %v5344_v19 = vpop.f32.mrf.mxu0 }
 0x370   :  { %v6249_v1 = vpop.f32.mrf.mxu1  ;;  %v11412_v19 = vld [vmem:[%s16765_s0 + $0xd28] ss:$20 sps:$4 sm:$0xff]  }
 0x371   :  { %v13847_v2 = vpop.f32.mrf.mxu0  ;;  %5538 = vmatmul.mubr.bf16.gmra.mxu0 %v11403_v11  ;;  %v11418_v11 = vld [vmem:[%s16765_s0 + $0x1044] ss:$20 sps:$4 sm:$0xff]  }
 0x372   :  { %17147 = vst [vmem:[#allocation264_spill] sm:$0xff] %v13847_v2  ;;  %v13849_v38 = vpop.f32.mrf.mxu1  ;;  %6443 = vmatmul.mubr.bf16.gmra.mxu1 %v11406_v36  ;;  %5545 = vmatprep.mubr.bf16.mxu0 %v11411_v37 }
 0x373   :  { %17148 = vst [vmem:[#allocation265_spill] sm:$0xff] %v13849_v38  ;;  %6450 = vmatprep.mubr.bf16.mxu1 %v11414_v40  ;;  %v5349_v22 = vpop.f32.mrf.mxu0  ;;  %v11416_v38 = vld [vmem:[%s16765_s0 + $0x1040] ss:$20 sps:$4 sm:$0xff]  }
 0x374   :  { %v6254_v56 = vpop.f32.mrf.mxu1 }
 0x375   :  { %v13851_v53 = vpop.f32.mrf.mxu0  ;;  %v11421_v56 = vld [vmem:[%s16765_s0 + $0xd54] ss:$20 sps:$4 sm:$0xff]  }
 0x376   :  { %17149 = vst [vmem:[#allocation266_spill] sm:$0xff] %v13851_v53  ;;  %v13853_v20 = vpop.f32.mrf.mxu1 }
 0x377   :  { %17150 = vst [vmem:[#allocation267_spill] sm:$0xff] %v13853_v20  ;;  %v5352_v36 = vpop.f32.mrf.mxu0 }
 0x378   :  { %v6257_v37 = vpop.f32.mrf.mxu1  ;;  %v11419_v36 = vld [vmem:[%s16765_s0 + $0xd50] ss:$20 sps:$4 sm:$0xff]  }
 0x379   :  { %v13867_v40 = vpop.f32.mrf.mxu0  ;;  %5546 = vmatmul.mubr.bf16.gmra.mxu0 %v11409_v12  ;;  %v11424_v12 = vld [vmem:[%s16765_s0 + $0x106c] ss:$20 sps:$4 sm:$0xff]  }
 0x37a   :  { %17151 = vst [vmem:[#allocation268_spill] sm:$0xff] %v13867_v40  ;;  %v13869_v1 = vpop.f32.mrf.mxu1  ;;  %6451 = vmatmul.mubr.bf16.gmra.mxu1 %v11412_v19  ;;  %5553 = vmatprep.mubr.bf16.mxu0 %v11418_v11  ;;  %v11501_v19 = vld [vmem:[%s16766_s4 + $0x18] sm:$0xff]  }
 0x37b   :  { %17152 = vst [vmem:[#allocation269_spill] sm:$0xff] %v13869_v1  ;;  %6458 = vmatprep.mubr.bf16.mxu1 %v11421_v56  ;;  %v5357_v22 = vpop.f32.mrf.mxu0  ;;  %10586 = vmatprep.subr.bf16.mxu1 %v11501_v19 }
 0x37c   :  { %v6262_v53 = vpop.f32.mrf.mxu1  ;;  %10587 = vmatpush3.bf16.msra.mxu1 %v11501_v19 }
 0x37d   :  { %v13871_v2 = vpop.f32.mrf.mxu0  ;;  %v11427_v53 = vld [vmem:[%s16765_s0 + $0xd7c] ss:$20 sps:$4 sm:$0xff]  }
 0x37e   :  { %17153 = vst [vmem:[#allocation270_spill] sm:$0xff] %v13871_v2  ;;  %v13873_v20 = vpop.f32.mrf.mxu1 }
 0x37f   :  { %17154 = vst [vmem:[#allocation271_spill] sm:$0xff] %v13873_v20  ;;  %v5360_v11 = vpop.f32.mrf.mxu0 }
 0x380   :  { %v6265_v56 = vpop.f32.mrf.mxu1  ;;  %v11422_v11 = vld [vmem:[%s16765_s0 + $0x1068] ss:$20 sps:$4 sm:$0xff]  }
 0x381   :  { %v13890_v37 = vpop.f32.mrf.mxu0  ;;  %5554 = vmatmul.mubr.bf16.gmra.mxu0 %v11416_v38  ;;  %v11425_v38 = vld [vmem:[%s16765_s0 + $0xd78] ss:$20 sps:$4 sm:$0xff]  }
 0x382   :  { %17155 = vst [vmem:[#allocation272_spill] sm:$0xff] %v13890_v37  ;;  %v13892_v22 = vpop.f32.mrf.mxu1  ;;  %6459 = vmatmul.mubr.bf16.gmra.mxu1 %v11419_v36  ;;  %5561 = vmatprep.mubr.bf16.mxu0 %v11424_v12  ;;  %v11430_v36 = vld [vmem:[%s16765_s0 + $0x1094] ss:$20 sps:$4 sm:$0xff]  }
 0x383   :  { %17156 = vst [vmem:[#allocation273_spill] sm:$0xff] %v13892_v22  ;;  %6466 = vmatprep.mubr.bf16.mxu1 %v11427_v53  ;;  %v5365_v2 = vpop.f32.mrf.mxu0  ;;  %v11428_v22 = vld [vmem:[%s16765_s0 + $0x1090] ss:$20 sps:$4 sm:$0xff]  }
 0x384   :  { %v6270_v40 = vpop.f32.mrf.mxu1  ;;  %v11433_v2 = vld [vmem:[%s16765_s0 + $0xda4] ss:$20 sps:$4 sm:$0xff]  }
 0x385   :  { %v13894_v20 = vpop.f32.mrf.mxu0 }
 0x386   :  { %17157 = vst [vmem:[#allocation274_spill] sm:$0xff] %v13894_v20  ;;  %v13896_v1 = vpop.f32.mrf.mxu1 }
 0x387   :  { %17158 = vst [vmem:[#allocation275_spill] sm:$0xff] %v13896_v1  ;;  %v5368_v40 = vpop.f32.mrf.mxu0 }
 0x388   :  { %v6273_v12 = vpop.f32.mrf.mxu1  ;;  %v11431_v40 = vld [vmem:[%s16765_s0 + $0xda0] ss:$20 sps:$4 sm:$0xff]  }
 0x389   :  { %v13910_v53 = vpop.f32.mrf.mxu0  ;;  %5562 = vmatmul.mubr.bf16.gmra.mxu0 %v11422_v11  ;;  %v11436_v11 = vld [vmem:[%s16765_s0 + $0x10bc] ss:$20 sps:$4 sm:$0xff]  }
 0x38a   :  { %17159 = vst [vmem:[#allocation276_spill] sm:$0xff] %v13910_v53  ;;  %v13912_v19 = vpop.f32.mrf.mxu1  ;;  %6467 = vmatmul.mubr.bf16.gmra.mxu1 %v11425_v38  ;;  %5569 = vmatprep.mubr.bf16.mxu0 %v11430_v36 }
 0x38b   :  { %17160 = vst [vmem:[#allocation277_spill] sm:$0xff] %v13912_v19  ;;  %6474 = vmatprep.mubr.bf16.mxu1 %v11433_v2  ;;  %v5373_v56 = vpop.f32.mrf.mxu0  ;;  %v11434_v19 = vld [vmem:[%s16765_s0 + $0x10b8] ss:$20 sps:$4 sm:$0xff]  }
 0x38c   :  { %v6278_v20 = vpop.f32.mrf.mxu1 }
 0x38d   :  { %v13914_v37 = vpop.f32.mrf.mxu0  ;;  %v11439_v20 = vld [vmem:[%s16765_s0 + $0xdcc] ss:$20 sps:$4 sm:$0xff]  }
 0x38e   :  { %17161 = vst [vmem:[#allocation278_spill] sm:$0xff] %v13914_v37  ;;  %v13916_v1 = vpop.f32.mrf.mxu1 }
 0x38f   :  { %17162 = vst [vmem:[#allocation279_spill] sm:$0xff] %v13916_v1  ;;  %v5376_v38 = vpop.f32.mrf.mxu0 }
 0x390   :  { %v6281_v36 = vpop.f32.mrf.mxu1  ;;  %v11437_v38 = vld [vmem:[%s16765_s0 + $0xdc8] ss:$20 sps:$4 sm:$0xff]  }
 0x391   :  { %v13930_v2 = vpop.f32.mrf.mxu0  ;;  %5570 = vmatmul.mubr.bf16.gmra.mxu0 %v11428_v22  ;;  %v11442_v22 = vld [vmem:[%s16765_s0 + $0x10e4] ss:$20 sps:$4 sm:$0xff]  }
 0x392   :  { %17163 = vst [vmem:[#allocation280_spill] sm:$0xff] %v13930_v2  ;;  %v13932_v12 = vpop.f32.mrf.mxu1  ;;  %6475 = vmatmul.mubr.bf16.gmra.mxu1 %v11431_v40  ;;  %5577 = vmatprep.mubr.bf16.mxu0 %v11436_v11 }
 0x393   :  { %17164 = vst [vmem:[#allocation281_spill] sm:$0xff] %v13932_v12  ;;  %6482 = vmatprep.mubr.bf16.mxu1 %v11439_v20  ;;  %v5381_v56 = vpop.f32.mrf.mxu0  ;;  %v11440_v12 = vld [vmem:[%s16765_s0 + $0x10e0] ss:$20 sps:$4 sm:$0xff]  }
 0x394   :  { %v6286_v37 = vpop.f32.mrf.mxu1 }
 0x395   :  { %v13934_v53 = vpop.f32.mrf.mxu0  ;;  %v11445_v37 = vld [vmem:[%s16765_s0 + $0xdf4] ss:$20 sps:$4 sm:$0xff]  }
 0x396   :  { %17165 = vst [vmem:[#allocation282_spill] sm:$0xff] %v13934_v53  ;;  %v13936_v1 = vpop.f32.mrf.mxu1 }
 0x397   :  { %17166 = vst [vmem:[#allocation283_spill] sm:$0xff] %v13936_v1  ;;  %v5384_v40 = vpop.f32.mrf.mxu0 }
 0x398   :  { %v6289_v11 = vpop.f32.mrf.mxu1  ;;  %v11443_v40 = vld [vmem:[%s16765_s0 + $0xdf0] ss:$20 sps:$4 sm:$0xff]  }
 0x399   :  { %v13950_v20 = vpop.f32.mrf.mxu0  ;;  %5578 = vmatmul.mubr.bf16.gmra.mxu0 %v11434_v19  ;;  %v11448_v19 = vld [vmem:[%s16765_s0 + $0xe1c] ss:$20 sps:$4 sm:$0xff]  }
 0x39a   :  { %17167 = vst [vmem:[#allocation284_spill] sm:$0xff] %v13950_v20  ;;  %v13952_v36 = vpop.f32.mrf.mxu1  ;;  %6483 = vmatmul.mubr.bf16.gmra.mxu1 %v11437_v38  ;;  %5585 = vmatprep.mubr.bf16.mxu0 %v11442_v22 }
 0x39b   :  { %17168 = vst [vmem:[#allocation285_spill] sm:$0xff] %v13952_v36  ;;  %6490 = vmatprep.mubr.bf16.mxu1 %v11445_v37  ;;  %v5389_v56 = vpop.f32.mrf.mxu0 }
 0x39c   :  { %v6294_v53 = vpop.f32.mrf.mxu1 }
 0x39d   :  { %v13954_v2 = vpop.f32.mrf.mxu0  ;;  %v11449_v53 = vld [vmem:[%s16765_s0 + $0x10] ss:$20 sps:$4 sm:$0xff]  }
 0x39e   :  { %17169 = vst [vmem:[#allocation286_spill] sm:$0xff] %v13954_v2  ;;  %v13956_v1 = vpop.f32.mrf.mxu1 }
 0x39f   :  { %17170 = vst [vmem:[#allocation287_spill] sm:$0xff] %v13956_v1  ;;  %v5392_v38 = vpop.f32.mrf.mxu0 }
 0x3a0   :  { %v6297_v22 = vpop.f32.mrf.mxu1  ;;  %v11446_v38 = vld [vmem:[%s16765_s0 + $0xe18] ss:$20 sps:$4 sm:$0xff]  }
 0x3a1   :  { %v13970_v37 = vpop.f32.mrf.mxu0  ;;  %5586 = vmatmul.mubr.bf16.gmra.mxu0 %v11440_v12  ;;  %v11450_v12 = vld [vmem:[%s16765_s0 + $0x38] ss:$20 sps:$4 sm:$0xff]  }
 0x3a2   :  { %17171 = vst [vmem:[#allocation288_spill] sm:$0xff] %v13970_v37  ;;  %v13972_v11 = vpop.f32.mrf.mxu1  ;;  %6491 = vmatmul.mubr.bf16.gmra.mxu1 %v11443_v40  ;;  %10322 = vmatprep.mubr.msk.bf16.mxu0 %vm4304_vm0, %v11449_v53  ;;  %v11453_v40 = vld [vmem:[%s16765_s0 + $0xe44] ss:$20 sps:$4 sm:$0xff]  }
 0x3a3   :  { %17172 = vst [vmem:[#allocation289_spill] sm:$0xff] %v13972_v11  ;;  %6498 = vmatprep.mubr.bf16.mxu1 %v11448_v19  ;;  %v5397_v56 = vpop.f32.mrf.mxu0 }
 0x3a4   :  { %v6302_v2 = vpop.f32.mrf.mxu1 }
 0x3a5   :  { %v13975_v20 = vpop.f32.mrf.mxu0  ;;  %v11454_v2 = vld [vmem:[%s16765_s0 + $0x60] ss:$20 sps:$4 sm:$0xff]  }
 0x3a6   :  { %17173 = vst [vmem:[#allocation290_spill] sm:$0xff] %v13975_v20  ;;  %v13977_v1 = vpop.f32.mrf.mxu1 }
 0x3a7   :  { %17174 = vst [vmem:[#allocation291_spill] sm:$0xff] %v13977_v1  ;;  %v5400_v19 = vpop.f32.mrf.mxu0 }
 0x3a8   :  { %v6305_v53 = vpop.f32.mrf.mxu1  ;;  %v11451_v19 = vld [vmem:[%s16765_s0 + $0xe40] ss:$20 sps:$4 sm:$0xff]  }
 0x3a9   :  { %v13991_v22 = vpop.f32.mrf.mxu0  ;;  %10323 = vmatmul.mubr.msk.bf16.vlgmr.msra.gmra.mxu0 %vm4304_vm0, %v11450_v12  ;;  %v11455_v53 = vld [vmem:[%s16765_s0 + $0x88] ss:$20 sps:$4 sm:$0xff]  }
 0x3aa   :  { %17175 = vst [vmem:[#allocation292_spill] sm:$0xff] %v13991_v22  ;;  %v13993_v56 = vpop.f32.mrf.mxu1  ;;  %6499 = vmatmul.mubr.bf16.gmra.mxu1 %v11446_v38  ;;  %10326 = vmatprep.mubr.msk.bf16.mxu0 %vm4304_vm0, %v11454_v2  ;;  %v11458_v38 = vld [vmem:[%s16765_s0 + $0xe6c] ss:$20 sps:$4 sm:$0xff]  }
 0x3ab   :  { %17176 = vst [vmem:[#allocation293_spill] sm:$0xff] %v13993_v56  ;;  %6506 = vmatprep.mubr.bf16.mxu1 %v11453_v40  ;;  %v5405_v20 = vpop.f32.mrf.mxu0 }
 0x3ac   :  { %v6310_v37 = vpop.f32.mrf.mxu1  ;;  %v11459_v20 = vld [vmem:[%s16765_s0 + $0xb0] ss:$20 sps:$4 sm:$0xff]  }
 0x3ad   :  { %v13997_v1 = vpop.f32.mrf.mxu0 }
 0x3ae   :  { %17177 = vst [vmem:[#allocation294_spill] sm:$0xff] %v13997_v1  ;;  %v13999_v36 = vpop.f32.mrf.mxu1 }
 0x3af   :  { %17178 = vst [vmem:[#allocation295_spill] sm:$0xff] %v13999_v36  ;;  %v5408_v37 = vpop.f32.mrf.mxu0 }
 0x3b0   :  { %v6313_v12 = vpop.f32.mrf.mxu1  ;;  %v11456_v37 = vld [vmem:[%s16765_s0 + $0xe68] ss:$20 sps:$4 sm:$0xff]  }
 0x3b1   :  { %v14013_v40 = vpop.f32.mrf.mxu0  ;;  %10327 = vmatmul.mubr.msk.bf16.gmra.mxu0 %vm4304_vm0, %v11455_v53  ;;  %v11460_v12 = vld [vmem:[%s16765_s0 + $0xd8] ss:$20 sps:$4 sm:$0xff]  }
 0x3b2   :  { %17179 = vst [vmem:[#allocation296_spill] sm:$0xff] %v14013_v40  ;;  %v14015_v2 = vpop.f32.mrf.mxu1  ;;  %6507 = vmatmul.mubr.bf16.gmra.mxu1 %v11451_v19  ;;  %10330 = vmatprep.mubr.msk.bf16.mxu0 %vm4304_vm0, %v11459_v20  ;;  %v11463_v19 = vld [vmem:[%s16765_s0 + $0xe94] ss:$20 sps:$4 sm:$0xff]  }
 0x3b3   :  { %17180 = vst [vmem:[#allocation297_spill] sm:$0xff] %v14015_v2  ;;  %6514 = vmatprep.mubr.bf16.mxu1 %v11458_v38  ;;  %v5413_v1 = vpop.f32.mrf.mxu0 }
 0x3b4   :  { %v6318_v22 = vpop.f32.mrf.mxu1  ;;  %v11464_v1 = vld [vmem:[%s16765_s0 + $0x100] ss:$20 sps:$4 sm:$0xff]  }
 0x3b5   :  { %v14019_v36 = vpop.f32.mrf.mxu0 }
 0x3b6   :  { %17181 = vst [vmem:[#allocation298_spill] sm:$0xff] %v14019_v36  ;;  %v14021_v56 = vpop.f32.mrf.mxu1 }
 0x3b7   :  { %17182 = vst [vmem:[#allocation299_spill] sm:$0xff] %v14021_v56  ;;  %v5416_v22 = vpop.f32.mrf.mxu0 }
 0x3b8   :  { %v6321_v53 = vpop.f32.mrf.mxu1  ;;  %v11461_v22 = vld [vmem:[%s16765_s0 + $0xe90] ss:$20 sps:$4 sm:$0xff]  }
 0x3b9   :  { %v14035_v38 = vpop.f32.mrf.mxu0  ;;  %10331 = vmatmul.mubr.msk.bf16.gmra.mxu0 %vm4304_vm0, %v11460_v12  ;;  %v11465_v53 = vld [vmem:[%s16765_s0 + $0x128] ss:$20 sps:$4 sm:$0xff]  }
 0x3ba   :  { %17183 = vst [vmem:[#allocation300_spill] sm:$0xff] %v14035_v38  ;;  %v14037_v20 = vpop.f32.mrf.mxu1  ;;  %6515 = vmatmul.mubr.bf16.gmra.mxu1 %v11456_v37  ;;  %10334 = vmatprep.mubr.msk.bf16.mxu0 %vm4304_vm0, %v11464_v1  ;;  %v11468_v37 = vld [vmem:[%s16765_s0 + $0xebc] ss:$20 sps:$4 sm:$0xff]  }
 0x3bb   :  { %17184 = vst [vmem:[#allocation301_spill] sm:$0xff] %v14037_v20  ;;  %6522 = vmatprep.mubr.bf16.mxu1 %v11463_v19  ;;  %v5421_v36 = vpop.f32.mrf.mxu0 }
 0x3bc   :  { %v6326_v40 = vpop.f32.mrf.mxu1  ;;  %v11469_v36 = vld [vmem:[%s16765_s0 + $0x150] ss:$20 sps:$4 sm:$0xff]  }
 0x3bd   :  { %v14041_v56 = vpop.f32.mrf.mxu0 }
 0x3be   :  { %17185 = vst [vmem:[#allocation302_spill] sm:$0xff] %v14041_v56  ;;  %v14043_v2 = vpop.f32.mrf.mxu1 }
 0x3bf   :  { %17186 = vst [vmem:[#allocation303_spill] sm:$0xff] %v14043_v2  ;;  %v5424_v40 = vpop.f32.mrf.mxu0 }
 0x3c0   :  { %v6329_v12 = vpop.f32.mrf.mxu1  ;;  %v11466_v40 = vld [vmem:[%s16765_s0 + $0xeb8] ss:$20 sps:$4 sm:$0xff]  }
 0x3c1   :  { %v14057_v19 = vpop.f32.mrf.mxu0  ;;  %10335 = vmatmul.mubr.msk.bf16.gmra.mxu0 %vm4304_vm0, %v11465_v53  ;;  %v11470_v12 = vld [vmem:[%s16765_s0 + $0x178] ss:$20 sps:$4 sm:$0xff]  }
 0x3c2   :  { %17187 = vst [vmem:[#allocation304_spill] sm:$0xff] %v14057_v19  ;;  %v14059_v1 = vpop.f32.mrf.mxu1  ;;  %6523 = vmatmul.mubr.bf16.gmra.mxu1 %v11461_v22  ;;  %10338 = vmatprep.mubr.msk.bf16.mxu0 %vm4304_vm0, %v11469_v36  ;;  %v11473_v22 = vld [vmem:[%s16765_s0 + $0xee4] ss:$20 sps:$4 sm:$0xff]  }
 0x3c3   :  { %17188 = vst [vmem:[#allocation305_spill] sm:$0xff] %v14059_v1  ;;  %6530 = vmatprep.mubr.bf16.mxu1 %v11468_v37  ;;  %v5429_v56 = vpop.f32.mrf.mxu0 }
 0x3c4   :  { %v6334_v38 = vpop.f32.mrf.mxu1  ;;  %v11474_v56 = vld [vmem:[%s16765_s0 + $0x1a0] ss:$20 sps:$4 sm:$0xff]  }
 0x3c5   :  { %v14063_v2 = vpop.f32.mrf.mxu0 }
 0x3c6   :  { %17189 = vst [vmem:[#allocation306_spill] sm:$0xff] %v14063_v2  ;;  %v14065_v20 = vpop.f32.mrf.mxu1 }
 0x3c7   :  { %17190 = vst [vmem:[#allocation307_spill] sm:$0xff] %v14065_v20  ;;  %v5432_v38 = vpop.f32.mrf.mxu0 }
 0x3c8   :  { %v6337_v53 = vpop.f32.mrf.mxu1  ;;  %v11471_v38 = vld [vmem:[%s16765_s0 + $0xee0] ss:$20 sps:$4 sm:$0xff]  }
 0x3c9   :  { %v14079_v37 = vpop.f32.mrf.mxu0  ;;  %10339 = vmatmul.mubr.msk.bf16.gmra.mxu0 %vm4304_vm0, %v11470_v12  ;;  %v11475_v53 = vld [vmem:[%s16765_s0 + $0x1c8] ss:$20 sps:$4 sm:$0xff]  }
 0x3ca   :  { %17191 = vst [vmem:[#allocation308_spill] sm:$0xff] %v14079_v37  ;;  %v14081_v36 = vpop.f32.mrf.mxu1  ;;  %6531 = vmatmul.mubr.bf16.gmra.mxu1 %v11466_v40  ;;  %10342 = vmatprep.mubr.msk.bf16.mxu0 %vm4304_vm0, %v11474_v56  ;;  %v11478_v40 = vld [vmem:[%s16765_s0 + $0xf0c] ss:$20 sps:$4 sm:$0xff]  }
 0x3cb   :  { %17192 = vst [vmem:[#allocation309_spill] sm:$0xff] %v14081_v36  ;;  %6538 = vmatprep.mubr.bf16.mxu1 %v11473_v22  ;;  %v5437_v2 = vpop.f32.mrf.mxu0 }
 0x3cc   :  { %v6342_v19 = vpop.f32.mrf.mxu1  ;;  %v11479_v2 = vld [vmem:[%s16765_s0 + $0x1f0] ss:$20 sps:$4 sm:$0xff]  }
 0x3cd   :  { %v14085_v20 = vpop.f32.mrf.mxu0 }
 0x3ce   :  { %17193 = vst [vmem:[#allocation310_spill] sm:$0xff] %v14085_v20  ;;  %v14087_v1 = vpop.f32.mrf.mxu1 }
 0x3cf   :  { %17194 = vst [vmem:[#allocation311_spill] sm:$0xff] %v14087_v1  ;;  %v5440_v19 = vpop.f32.mrf.mxu0 }
 0x3d0   :  { %v6345_v12 = vpop.f32.mrf.mxu1  ;;  %v11476_v19 = vld [vmem:[%s16765_s0 + $0xf08] ss:$20 sps:$4 sm:$0xff]  }
 0x3d1   :  { %v14101_v22 = vpop.f32.mrf.mxu0  ;;  %10343 = vmatmul.mubr.msk.bf16.gmra.mxu0 %vm4304_vm0, %v11475_v53  ;;  %v11480_v12 = vld [vmem:[%s16765_s0 + $0x218] ss:$20 sps:$4 sm:$0xff]  }
 0x3d2   :  { %17195 = vst [vmem:[#allocation312_spill] sm:$0xff] %v14101_v22  ;;  %v14103_v56 = vpop.f32.mrf.mxu1  ;;  %6539 = vmatmul.mubr.bf16.gmra.mxu1 %v11471_v38  ;;  %10346 = vmatprep.mubr.msk.bf16.mxu0 %vm4304_vm0, %v11479_v2  ;;  %v11483_v38 = vld [vmem:[%s16765_s0 + $0xf34] ss:$20 sps:$4 sm:$0xff]  }
 0x3d3   :  { %17196 = vst [vmem:[#allocation313_spill] sm:$0xff] %v14103_v56  ;;  %6546 = vmatprep.mubr.bf16.mxu1 %v11478_v40  ;;  %v5445_v20 = vpop.f32.mrf.mxu0 }
 0x3d4   :  { %v6350_v37 = vpop.f32.mrf.mxu1  ;;  %v11484_v20 = vld [vmem:[%s16765_s0 + $0x240] ss:$20 sps:$4 sm:$0xff]  }
 0x3d5   :  { %v14107_v1 = vpop.f32.mrf.mxu0 }
 0x3d6   :  { %17197 = vst [vmem:[#allocation314_spill] sm:$0xff] %v14107_v1  ;;  %v14109_v36 = vpop.f32.mrf.mxu1 }
 0x3d7   :  { %17198 = vst [vmem:[#allocation315_spill] sm:$0xff] %v14109_v36  ;;  %v5448_v37 = vpop.f32.mrf.mxu0 }
 0x3d8   :  { %v6353_v53 = vpop.f32.mrf.mxu1  ;;  %v11481_v37 = vld [vmem:[%s16765_s0 + $0xf30] ss:$20 sps:$4 sm:$0xff]  }
 0x3d9   :  { %v14123_v40 = vpop.f32.mrf.mxu0  ;;  %10347 = vmatmul.mubr.msk.bf16.gmra.mxu0 %vm4304_vm0, %v11480_v12  ;;  %v11485_v53 = vld [vmem:[%s16765_s0 + $0x268] ss:$20 sps:$4 sm:$0xff]  }
 0x3da   :  { %17199 = vst [vmem:[#allocation316_spill] sm:$0xff] %v14123_v40  ;;  %v14125_v2 = vpop.f32.mrf.mxu1  ;;  %6547 = vmatmul.mubr.bf16.gmra.mxu1 %v11476_v19  ;;  %10350 = vmatprep.mubr.msk.bf16.mxu0 %vm4304_vm0, %v11484_v20  ;;  %v11488_v19 = vld [vmem:[%s16765_s0 + $0xf5c] ss:$20 sps:$4 sm:$0xff]  }
 0x3db   :  { %17200 = vst [vmem:[#allocation317_spill] sm:$0xff] %v14125_v2  ;;  %6554 = vmatprep.mubr.bf16.mxu1 %v11483_v38  ;;  %v5453_v1 = vpop.f32.mrf.mxu0 }
 0x3dc   :  { %v6358_v22 = vpop.f32.mrf.mxu1  ;;  %v11489_v1 = vld [vmem:[%s16765_s0 + $0x290] ss:$20 sps:$4 sm:$0xff]  }
 0x3dd   :  { %v14129_v36 = vpop.f32.mrf.mxu0 }
 0x3de   :  { %17201 = vst [vmem:[#allocation318_spill] sm:$0xff] %v14129_v36  ;;  %v14131_v56 = vpop.f32.mrf.mxu1 }
 0x3df   :  { %17202 = vst [vmem:[#allocation319_spill] sm:$0xff] %v14131_v56  ;;  %v5456_v22 = vpop.f32.mrf.mxu0 }
 0x3e0   :  { %v6361_v12 = vpop.f32.mrf.mxu1  ;;  %v11486_v22 = vld [vmem:[%s16765_s0 + $0xf58] ss:$20 sps:$4 sm:$0xff]  }
 0x3e1   :  { %v14145_v38 = vpop.f32.mrf.mxu0  ;;  %10351 = vmatmul.mubr.msk.bf16.gmra.mxu0 %vm4304_vm0, %v11485_v53  ;;  %v11490_v12 = vld [vmem:[%s16765_s0 + $0x2b8] ss:$20 sps:$4 sm:$0xff]  }
 0x3e2   :  { %17203 = vst [vmem:[#allocation320_spill] sm:$0xff] %v14145_v38  ;;  %v14147_v20 = vpop.f32.mrf.mxu1  ;;  %6555 = vmatmul.mubr.bf16.gmra.mxu1 %v11481_v37  ;;  %10354 = vmatprep.mubr.msk.bf16.mxu0 %vm4304_vm0, %v11489_v1  ;;  %v11493_v37 = vld [vmem:[%s16765_s0 + $0xf84] ss:$20 sps:$4 sm:$0xff]  }
 0x3e3   :  { %17204 = vst [vmem:[#allocation321_spill] sm:$0xff] %v14147_v20  ;;  %6562 = vmatprep.mubr.bf16.mxu1 %v11488_v19  ;;  %v5461_v36 = vpop.f32.mrf.mxu0 }
 0x3e4   :  { %v6366_v40 = vpop.f32.mrf.mxu1  ;;  %v11494_v36 = vld [vmem:[%s16765_s0 + $0x2e0] ss:$20 sps:$4 sm:$0xff]  }
 0x3e5   :  { %v14151_v56 = vpop.f32.mrf.mxu0 }
 0x3e6   :  { %17205 = vst [vmem:[#allocation322_spill] sm:$0xff] %v14151_v56  ;;  %v14153_v2 = vpop.f32.mrf.mxu1 }
 0x3e7   :  { %17206 = vst [vmem:[#allocation323_spill] sm:$0xff] %v14153_v2  ;;  %v5464_v40 = vpop.f32.mrf.mxu0 }
 0x3e8   :  { %v6369_v53 = vpop.f32.mrf.mxu1  ;;  %v11491_v40 = vld [vmem:[%s16765_s0 + $0xf80] ss:$20 sps:$4 sm:$0xff]  }
 0x3e9   :  { %v14167_v19 = vpop.f32.mrf.mxu0  ;;  %10355 = vmatmul.mubr.msk.bf16.gmra.mxu0 %vm4304_vm0, %v11490_v12  ;;  %v11495_v53 = vld [vmem:[%s16765_s0 + $0x308] ss:$20 sps:$4 sm:$0xff]  }
 0x3ea   :  { %17207 = vst [vmem:[#allocation324_spill] sm:$0xff] %v14167_v19  ;;  %v14169_v1 = vpop.f32.mrf.mxu1  ;;  %6563 = vmatmul.mubr.bf16.gmra.mxu1 %v11486_v22  ;;  %10358 = vmatprep.mubr.msk.bf16.mxu0 %vm4304_vm0, %v11494_v36  ;;  %v11498_v22 = vld [vmem:[%s16765_s0 + $0xfac] ss:$20 sps:$4 sm:$0xff]  }
 0x3eb   :  { %17208 = vst [vmem:[#allocation325_spill] sm:$0xff] %v14169_v1  ;;  %6570 = vmatprep.mubr.bf16.mxu1 %v11493_v37  ;;  %v5469_v56 = vpop.f32.mrf.mxu0 }
 0x3ec   :  { %v6374_v38 = vpop.f32.mrf.mxu1  ;;  %v11499_v56 = vld [vmem:[%s16765_s0 + $0x330] ss:$20 sps:$4 sm:$0xff]  }
 0x3ed   :  { %v14173_v2 = vpop.f32.mrf.mxu0 }
 0x3ee   :  { %17209 = vst [vmem:[#allocation326_spill] sm:$0xff] %v14173_v2  ;;  %v14175_v20 = vpop.f32.mrf.mxu1 }
 0x3ef   :  { %17210 = vst [vmem:[#allocation327_spill] sm:$0xff] %v14175_v20  ;;  %v5472_v38 = vpop.f32.mrf.mxu0 }
 0x3f0   :  { %v6377_v12 = vpop.f32.mrf.mxu1  ;;  %v11496_v38 = vld [vmem:[%s16765_s0 + $0xfa8] ss:$20 sps:$4 sm:$0xff]  }
 0x3f1   :  { %v14189_v37 = vpop.f32.mrf.mxu0  ;;  %10359 = vmatmul.mubr.msk.bf16.gmra.mxu0 %vm4304_vm0, %v11495_v53  ;;  %v11500_v12 = vld [vmem:[%s16765_s0 + $0x358] ss:$20 sps:$4 sm:$0xff]  }
 0x3f2   :  { %17211 = vst [vmem:[#allocation328_spill] sm:$0xff] %v14189_v37  ;;  %v14191_v36 = vpop.f32.mrf.mxu1  ;;  %6571 = vmatmul.mubr.bf16.gmra.mxu1 %v11491_v40  ;;  %10362 = vmatprep.mubr.msk.bf16.mxu0 %vm4304_vm0, %v11499_v56  ;;  %v11504_v40 = vld [vmem:[%s16765_s0 + $0xfd4] ss:$20 sps:$4 sm:$0xff]  }
 0x3f3   :  { %17212 = vst [vmem:[#allocation329_spill] sm:$0xff] %v14191_v36  ;;  %6578 = vmatprep.mubr.bf16.mxu1 %v11498_v22  ;;  %v5477_v2 = vpop.f32.mrf.mxu0 }
 0x3f4   :  { %v6382_v19 = vpop.f32.mrf.mxu1  ;;  %v11505_v2 = vld [vmem:[%s16765_s0 + $0x380] ss:$20 sps:$4 sm:$0xff]  }
 0x3f5   :  { %v14195_v20 = vpop.f32.mrf.mxu0 }
 0x3f6   :  { %17213 = vst [vmem:[#allocation330_spill] sm:$0xff] %v14195_v20  ;;  %v14197_v1 = vpop.f32.mrf.mxu1 }
 0x3f7   :  { %17214 = vst [vmem:[#allocation331_spill] sm:$0xff] %v14197_v1  ;;  %v5480_v19 = vpop.f32.mrf.mxu0 }
 0x3f8   :  { %v6385_v53 = vpop.f32.mrf.mxu1  ;;  %v11502_v19 = vld [vmem:[%s16765_s0 + $0xfd0] ss:$20 sps:$4 sm:$0xff]  }
 0x3f9   :  { %v14211_v22 = vpop.f32.mrf.mxu0  ;;  %10363 = vmatmul.mubr.msk.bf16.gmra.mxu0 %vm4304_vm0, %v11500_v12  ;;  %v11506_v53 = vld [vmem:[%s16765_s0 + $0x3a8] ss:$20 sps:$4 sm:$0xff]  }
 0x3fa   :  { %17215 = vst [vmem:[#allocation332_spill] sm:$0xff] %v14211_v22  ;;  %v14213_v56 = vpop.f32.mrf.mxu1  ;;  %6579 = vmatmul.mubr.bf16.gmra.mxu1 %v11496_v38  ;;  %10366 = vmatprep.mubr.msk.bf16.mxu0 %vm4304_vm0, %v11505_v2  ;;  %v11509_v38 = vld [vmem:[%s16765_s0 + $0xffc] ss:$20 sps:$4 sm:$0xff]  }
 0x3fb   :  { %17216 = vst [vmem:[#allocation333_spill] sm:$0xff] %v14213_v56  ;;  %6586 = vmatprep.mubr.bf16.mxu1 %v11504_v40  ;;  %v5485_v20 = vpop.f32.mrf.mxu0 }
 0x3fc   :  { %v6390_v37 = vpop.f32.mrf.mxu1  ;;  %v11510_v20 = vld [vmem:[%s16765_s0 + $0x3d0] ss:$20 sps:$4 sm:$0xff]  }
 0x3fd   :  { %v14217_v1 = vpop.f32.mrf.mxu0  ;;  %v11582_v37 = vld [vmem:[%s16766_s4 + $0x10] sm:$0xff]  }
 0x3fe   :  { %17217 = vst [vmem:[#allocation334_spill] sm:$0xff] %v14217_v1  ;;  %v14219_v36 = vpop.f32.mrf.mxu1  ;;  %10588 = vmatprep.subr.bf16.mxu1 %v11582_v37 }
 0x3ff   :  { %17218 = vst [vmem:[#allocation335_spill] sm:$0xff] %v14219_v36  ;;  %v5488_v12 = vpop.f32.mrf.mxu0  ;;  %10589 = vmatpush3.bf16.msra.mxu1 %v11582_v37 }
 0x400   :  { %v6393_v40 = vpop.f32.mrf.mxu1  ;;  %v11507_v12 = vld [vmem:[%s16765_s0 + $0xff8] ss:$20 sps:$4 sm:$0xff]  }
 0x401   :  { %v14236_v2 = vpop.f32.mrf.mxu0  ;;  %10367 = vmatmul.mubr.msk.bf16.gmra.mxu0 %vm4304_vm0, %v11506_v53  ;;  %v11514_v53 = vld [vmem:[%s16765_s0 + $0x1024] ss:$20 sps:$4 sm:$0xff]  }
 0x402   :  { %17219 = vst [vmem:[#allocation336_spill] sm:$0xff] %v14236_v2  ;;  %v14238_v1 = vpop.f32.mrf.mxu1  ;;  %6587 = vmatmul.mubr.bf16.gmra.mxu1 %v11502_v19  ;;  %10370 = vmatprep.mubr.msk.bf16.mxu0 %vm4304_vm0, %v11510_v20  ;;  %v11511_v19 = vld [vmem:[%s16765_s0 + $0x3f8] ss:$20 sps:$4 sm:$0xff]  }
 0x403   :  { %17220 = vst [vmem:[#allocation337_spill] sm:$0xff] %v14238_v1  ;;  %6594 = vmatprep.mubr.bf16.mxu1 %v11509_v38  ;;  %v5493_v22 = vpop.f32.mrf.mxu0 }
 0x404   :  { %v6398_v36 = vpop.f32.mrf.mxu1 }
 0x405   :  { %v14242_v56 = vpop.f32.mrf.mxu0  ;;  %v11515_v36 = vld [vmem:[%s16765_s0 + $0x420] ss:$20 sps:$4 sm:$0xff]  }
 0x406   :  { %17221 = vst [vmem:[#allocation338_spill] sm:$0xff] %v14242_v56  ;;  %v14244_v11 = vpop.f32.mrf.mxu1 }
 0x407   :  { %17222 = vst [vmem:[#allocation339_spill] sm:$0xff] %v14244_v11  ;;  %v5496_v22 = vpop.f32.mrf.mxu0 }
 0x408   :  { %v6401_v38 = vpop.f32.mrf.mxu1  ;;  %v11512_v22 = vld [vmem:[%s16765_s0 + $0x1020] ss:$20 sps:$4 sm:$0xff]  }
 0x409   :  { %v14258_v20 = vpop.f32.mrf.mxu0  ;;  %10371 = vmatmul.mubr.msk.bf16.gmra.mxu0 %vm4304_vm0, %v11511_v19  ;;  %v11516_v38 = vld [vmem:[%s16765_s0 + $0x448] ss:$20 sps:$4 sm:$0xff]  }
 0x40a   :  { %17223 = vst [vmem:[#allocation340_spill] sm:$0xff] %v14258_v20  ;;  %v14260_v37 = vpop.f32.mrf.mxu1  ;;  %6595 = vmatmul.mubr.bf16.gmra.mxu1 %v11507_v12  ;;  %10374 = vmatprep.mubr.msk.bf16.mxu0 %vm4304_vm0, %v11515_v36  ;;  %v11519_v12 = vld [vmem:[%s16765_s0 + $0x104c] ss:$20 sps:$4 sm:$0xff]  }
 0x40b   :  { %17224 = vst [vmem:[#allocation341_spill] sm:$0xff] %v14260_v37  ;;  %6602 = vmatprep.mubr.bf16.mxu1 %v11514_v53  ;;  %v5501_v40 = vpop.f32.mrf.mxu0 }
 0x40c   :  { %v6406_v56 = vpop.f32.mrf.mxu1 }
 0x40d   :  { %v14264_v2 = vpop.f32.mrf.mxu0  ;;  %v11520_v56 = vld [vmem:[%s16765_s0 + $0x470] ss:$20 sps:$4 sm:$0xff]  }
 0x40e   :  { %17225 = vst [vmem:[#allocation342_spill] sm:$0xff] %v14264_v2  ;;  %v14266_v11 = vpop.f32.mrf.mxu1 }
 0x40f   :  { %17226 = vst [vmem:[#allocation343_spill] sm:$0xff] %v14266_v11  ;;  %v5504_v19 = vpop.f32.mrf.mxu0 }
 0x410   :  { %v6409_v53 = vpop.f32.mrf.mxu1  ;;  %v11517_v19 = vld [vmem:[%s16765_s0 + $0x1048] ss:$20 sps:$4 sm:$0xff]  }
 0x411   :  { %v14280_v36 = vpop.f32.mrf.mxu0  ;;  %10375 = vmatmul.mubr.msk.bf16.gmra.mxu0 %vm4304_vm0, %v11516_v38  ;;  %v11521_v53 = vld [vmem:[%s16765_s0 + $0x498] ss:$20 sps:$4 sm:$0xff]  }
 0x412   :  { %17227 = vst [vmem:[#allocation344_spill] sm:$0xff] %v14280_v36  ;;  %v14282_v40 = vpop.f32.mrf.mxu1  ;;  %6603 = vmatmul.mubr.bf16.gmra.mxu1 %v11512_v22  ;;  %10378 = vmatprep.mubr.msk.bf16.mxu0 %vm4304_vm0, %v11520_v56  ;;  %v11524_v22 = vld [vmem:[%s16765_s0 + $0x1074] ss:$20 sps:$4 sm:$0xff]  }
 0x413   :  { %17228 = vst [vmem:[#allocation345_spill] sm:$0xff] %v14282_v40  ;;  %6610 = vmatprep.mubr.bf16.mxu1 %v11519_v12  ;;  %v5509_v2 = vpop.f32.mrf.mxu0 }
 0x414   :  { %v6414_v20 = vpop.f32.mrf.mxu1  ;;  %v11525_v2 = vld [vmem:[%s16765_s0 + $0x4c0] ss:$20 sps:$4 sm:$0xff]  }
 0x415   :  { %v14286_v11 = vpop.f32.mrf.mxu0 }
 0x416   :  { %17229 = vst [vmem:[#allocation346_spill] sm:$0xff] %v14286_v11  ;;  %v14288_v37 = vpop.f32.mrf.mxu1 }
 0x417   :  { %17230 = vst [vmem:[#allocation347_spill] sm:$0xff] %v14288_v37  ;;  %v5512_v20 = vpop.f32.mrf.mxu0 }
 0x418   :  { %v6417_v38 = vpop.f32.mrf.mxu1  ;;  %v11522_v20 = vld [vmem:[%s16765_s0 + $0x1070] ss:$20 sps:$4 sm:$0xff]  }
 0x419   :  { %v14302_v12 = vpop.f32.mrf.mxu0  ;;  %10379 = vmatmul.mubr.msk.bf16.gmra.mxu0 %vm4304_vm0, %v11521_v53  ;;  %v11526_v38 = vld [vmem:[%s16765_s0 + $0x4e8] ss:$20 sps:$4 sm:$0xff]  }
 0x41a   :  { %17231 = vst [vmem:[#allocation348_spill] sm:$0xff] %v14302_v12  ;;  %v14304_v56 = vpop.f32.mrf.mxu1  ;;  %6611 = vmatmul.mubr.bf16.gmra.mxu1 %v11517_v19  ;;  %10382 = vmatprep.mubr.msk.bf16.mxu0 %vm4304_vm0, %v11525_v2  ;;  %v11529_v19 = vld [vmem:[%s16765_s0 + $0x109c] ss:$20 sps:$4 sm:$0xff]  }
 0x41b   :  { %17232 = vst [vmem:[#allocation349_spill] sm:$0xff] %v14304_v56  ;;  %6618 = vmatprep.mubr.bf16.mxu1 %v11524_v22  ;;  %v5517_v11 = vpop.f32.mrf.mxu0 }
 0x41c   :  { %v6422_v36 = vpop.f32.mrf.mxu1  ;;  %v11530_v11 = vld [vmem:[%s16765_s0 + $0x510] ss:$20 sps:$4 sm:$0xff]  }
 0x41d   :  { %v14308_v37 = vpop.f32.mrf.mxu0 }
 0x41e   :  { %17233 = vst [vmem:[#allocation350_spill] sm:$0xff] %v14308_v37  ;;  %v14310_v40 = vpop.f32.mrf.mxu1 }
 0x41f   :  { %17234 = vst [vmem:[#allocation351_spill] sm:$0xff] %v14310_v40  ;;  %v5520_v36 = vpop.f32.mrf.mxu0 }
 0x420   :  { %v6425_v53 = vpop.f32.mrf.mxu1  ;;  %v11527_v36 = vld [vmem:[%s16765_s0 + $0x1098] ss:$20 sps:$4 sm:$0xff]  }
 0x421   :  { %v14324_v22 = vpop.f32.mrf.mxu0  ;;  %10383 = vmatmul.mubr.msk.bf16.gmra.mxu0 %vm4304_vm0, %v11526_v38  ;;  %v11531_v53 = vld [vmem:[%s16765_s0 + $0x538] ss:$20 sps:$4 sm:$0xff]  }
 0x422   :  { %17235 = vst [vmem:[#allocation352_spill] sm:$0xff] %v14324_v22  ;;  %v14326_v2 = vpop.f32.mrf.mxu1  ;;  %6619 = vmatmul.mubr.bf16.gmra.mxu1 %v11522_v20  ;;  %10386 = vmatprep.mubr.msk.bf16.mxu0 %vm4304_vm0, %v11530_v11  ;;  %v11534_v20 = vld [vmem:[%s16765_s0 + $0x10c4] ss:$20 sps:$4 sm:$0xff]  }
 0x423   :  { %17236 = vst [vmem:[#allocation353_spill] sm:$0xff] %v14326_v2  ;;  %6626 = vmatprep.mubr.bf16.mxu1 %v11529_v19  ;;  %v5525_v37 = vpop.f32.mrf.mxu0 }
 0x424   :  { %v6430_v12 = vpop.f32.mrf.mxu1  ;;  %v11535_v37 = vld [vmem:[%s16765_s0 + $0x560] ss:$20 sps:$4 sm:$0xff]  }
 0x425   :  { %v14330_v40 = vpop.f32.mrf.mxu0 }
 0x426   :  { %17237 = vst [vmem:[#allocation354_spill] sm:$0xff] %v14330_v40  ;;  %v14332_v56 = vpop.f32.mrf.mxu1 }
 0x427   :  { %17238 = vst [vmem:[#allocation355_spill] sm:$0xff] %v14332_v56  ;;  %v5528_v12 = vpop.f32.mrf.mxu0 }
 0x428   :  { %v6433_v38 = vpop.f32.mrf.mxu1  ;;  %v11532_v12 = vld [vmem:[%s16765_s0 + $0x10c0] ss:$20 sps:$4 sm:$0xff]  }
 0x429   :  { %v14346_v19 = vpop.f32.mrf.mxu0  ;;  %10387 = vmatmul.mubr.msk.bf16.gmra.mxu0 %vm4304_vm0, %v11531_v53  ;;  %v11536_v38 = vld [vmem:[%s16765_s0 + $0x588] ss:$20 sps:$4 sm:$0xff]  }
 0x42a   :  { %17239 = vst [vmem:[#allocation356_spill] sm:$0xff] %v14346_v19  ;;  %v14348_v11 = vpop.f32.mrf.mxu1  ;;  %6627 = vmatmul.mubr.bf16.gmra.mxu1 %v11527_v36  ;;  %10390 = vmatprep.mubr.msk.bf16.mxu0 %vm4304_vm0, %v11535_v37  ;;  %v11539_v36 = vld [vmem:[%s16765_s0 + $0x10ec] ss:$20 sps:$4 sm:$0xff]  }
 0x42b   :  { %17240 = vst [vmem:[#allocation357_spill] sm:$0xff] %v14348_v11  ;;  %6634 = vmatprep.mubr.bf16.mxu1 %v11534_v20  ;;  %v5533_v40 = vpop.f32.mrf.mxu0 }
 0x42c   :  { %v6438_v22 = vpop.f32.mrf.mxu1  ;;  %v11540_v40 = vld [vmem:[%s16765_s0 + $0x5b0] ss:$20 sps:$4 sm:$0xff]  }
 0x42d   :  { %v14352_v56 = vpop.f32.mrf.mxu0 }
 0x42e   :  { %17241 = vst [vmem:[#allocation358_spill] sm:$0xff] %v14352_v56  ;;  %v14354_v2 = vpop.f32.mrf.mxu1 }
 0x42f   :  { %17242 = vst [vmem:[#allocation359_spill] sm:$0xff] %v14354_v2  ;;  %v5536_v22 = vpop.f32.mrf.mxu0 }
 0x430   :  { %v6441_v53 = vpop.f32.mrf.mxu1  ;;  %v11537_v22 = vld [vmem:[%s16765_s0 + $0x10e8] ss:$20 sps:$4 sm:$0xff]  }
 0x431   :  { %v14368_v20 = vpop.f32.mrf.mxu0  ;;  %10391 = vmatmul.mubr.msk.bf16.gmra.mxu0 %vm4304_vm0, %v11536_v38  ;;  %v11541_v53 = vld [vmem:[%s16765_s0 + $0x5d8] ss:$20 sps:$4 sm:$0xff]  }
 0x432   :  { %17243 = vst [vmem:[#allocation360_spill] sm:$0xff] %v14368_v20  ;;  %v14370_v37 = vpop.f32.mrf.mxu1  ;;  %6635 = vmatmul.mubr.bf16.gmra.mxu1 %v11532_v12  ;;  %10394 = vmatprep.mubr.msk.bf16.mxu0 %vm4304_vm0, %v11540_v40  ;;  %v11544_v12 = vld [vmem:[%s16765_s0 + $0x1114] ss:$20 sps:$4 sm:$0xff]  }
 0x433   :  { %17244 = vst [vmem:[#allocation361_spill] sm:$0xff] %v14370_v37  ;;  %6642 = vmatprep.mubr.bf16.mxu1 %v11539_v36  ;;  %v5541_v56 = vpop.f32.mrf.mxu0 }
 0x434   :  { %v6446_v19 = vpop.f32.mrf.mxu1  ;;  %v11545_v56 = vld [vmem:[%s16765_s0 + $0x600] ss:$20 sps:$4 sm:$0xff]  }
 0x435   :  { %v14374_v2 = vpop.f32.mrf.mxu0 }
 0x436   :  { %17245 = vst [vmem:[#allocation362_spill] sm:$0xff] %v14374_v2  ;;  %v14376_v11 = vpop.f32.mrf.mxu1 }
 0x437   :  { %17246 = vst [vmem:[#allocation363_spill] sm:$0xff] %v14376_v11  ;;  %v5544_v19 = vpop.f32.mrf.mxu0 }
 0x438   :  { %v6449_v38 = vpop.f32.mrf.mxu1  ;;  %v11542_v19 = vld [vmem:[%s16765_s0 + $0x1110] ss:$20 sps:$4 sm:$0xff]  }
 0x439   :  { %v14390_v36 = vpop.f32.mrf.mxu0  ;;  %10395 = vmatmul.mubr.msk.bf16.gmra.mxu0 %vm4304_vm0, %v11541_v53  ;;  %v11546_v38 = vld [vmem:[%s16765_s0 + $0x628] ss:$20 sps:$4 sm:$0xff]  }
 0x43a   :  { %17247 = vst [vmem:[#allocation364_spill] sm:$0xff] %v14390_v36  ;;  %v14392_v40 = vpop.f32.mrf.mxu1  ;;  %6643 = vmatmul.mubr.bf16.gmra.mxu1 %v11537_v22  ;;  %10398 = vmatprep.mubr.msk.bf16.mxu0 %vm4304_vm0, %v11545_v56  ;;  %v11549_v22 = vld [vmem:[%s16765_s0 + $0x113c] ss:$20 sps:$4 sm:$0xff]  }
 0x43b   :  { %17248 = vst [vmem:[#allocation365_spill] sm:$0xff] %v14392_v40  ;;  %6650 = vmatprep.mubr.bf16.mxu1 %v11544_v12  ;;  %v5549_v2 = vpop.f32.mrf.mxu0 }
 0x43c   :  { %v6454_v20 = vpop.f32.mrf.mxu1  ;;  %v11550_v2 = vld [vmem:[%s16765_s0 + $0x650] ss:$20 sps:$4 sm:$0xff]  }
 0x43d   :  { %v14396_v11 = vpop.f32.mrf.mxu0 }
 0x43e   :  { %17249 = vst [vmem:[#allocation366_spill] sm:$0xff] %v14396_v11  ;;  %v14398_v37 = vpop.f32.mrf.mxu1 }
 0x43f   :  { %17250 = vst [vmem:[#allocation367_spill] sm:$0xff] %v14398_v37  ;;  %v5552_v20 = vpop.f32.mrf.mxu0 }
 0x440   :  { %v6457_v53 = vpop.f32.mrf.mxu1  ;;  %v11547_v20 = vld [vmem:[%s16765_s0 + $0x1138] ss:$20 sps:$4 sm:$0xff]  }
 0x441   :  { %v14412_v12 = vpop.f32.mrf.mxu0  ;;  %10399 = vmatmul.mubr.msk.bf16.gmra.mxu0 %vm4304_vm0, %v11546_v38  ;;  %v11551_v53 = vld [vmem:[%s16765_s0 + $0x678] ss:$20 sps:$4 sm:$0xff]  }
 0x442   :  { %17251 = vst [vmem:[#allocation368_spill] sm:$0xff] %v14412_v12  ;;  %v14414_v56 = vpop.f32.mrf.mxu1  ;;  %6651 = vmatmul.mubr.bf16.gmra.mxu1 %v11542_v19  ;;  %10402 = vmatprep.mubr.msk.bf16.mxu0 %vm4304_vm0, %v11550_v2  ;;  %v11554_v19 = vld [vmem:[%s16765_s0 + $0x1164] ss:$20 sps:$4 sm:$0xff]  }
 0x443   :  { %17252 = vst [vmem:[#allocation369_spill] sm:$0xff] %v14414_v56  ;;  %6658 = vmatprep.mubr.bf16.mxu1 %v11549_v22  ;;  %v5557_v11 = vpop.f32.mrf.mxu0 }
 0x444   :  { %v6462_v36 = vpop.f32.mrf.mxu1  ;;  %v11555_v11 = vld [vmem:[%s16765_s0 + $0x6a0] ss:$20 sps:$4 sm:$0xff]  }
 0x445   :  { %v14418_v37 = vpop.f32.mrf.mxu0 }
 0x446   :  { %17253 = vst [vmem:[#allocation370_spill] sm:$0xff] %v14418_v37  ;;  %v14420_v40 = vpop.f32.mrf.mxu1 }
 0x447   :  { %17254 = vst [vmem:[#allocation371_spill] sm:$0xff] %v14420_v40  ;;  %v5560_v36 = vpop.f32.mrf.mxu0 }
 0x448   :  { %v6465_v38 = vpop.f32.mrf.mxu1  ;;  %v11552_v36 = vld [vmem:[%s16765_s0 + $0x1160] ss:$20 sps:$4 sm:$0xff]  }
 0x449   :  { %v14434_v22 = vpop.f32.mrf.mxu0  ;;  %10403 = vmatmul.mubr.msk.bf16.gmra.mxu0 %vm4304_vm0, %v11551_v53  ;;  %v11556_v38 = vld [vmem:[%s16765_s0 + $0x6c8] ss:$20 sps:$4 sm:$0xff]  }
 0x44a   :  { %17255 = vst [vmem:[#allocation372_spill] sm:$0xff] %v14434_v22  ;;  %v14436_v2 = vpop.f32.mrf.mxu1  ;;  %6659 = vmatmul.mubr.bf16.gmra.mxu1 %v11547_v20  ;;  %10406 = vmatprep.mubr.msk.bf16.mxu0 %vm4304_vm0, %v11555_v11  ;;  %v11559_v20 = vld [vmem:[%s16765_s0 + $0x118c] ss:$20 sps:$4 sm:$0xff]  }
 0x44b   :  { %17256 = vst [vmem:[#allocation373_spill] sm:$0xff] %v14436_v2  ;;  %6666 = vmatprep.mubr.bf16.mxu1 %v11554_v19  ;;  %v5565_v37 = vpop.f32.mrf.mxu0 }
 0x44c   :  { %v6470_v12 = vpop.f32.mrf.mxu1  ;;  %v11560_v37 = vld [vmem:[%s16765_s0 + $0x6f0] ss:$20 sps:$4 sm:$0xff]  }
 0x44d   :  { %v14440_v40 = vpop.f32.mrf.mxu0 }
 0x44e   :  { %17257 = vst [vmem:[#allocation374_spill] sm:$0xff] %v14440_v40  ;;  %v14442_v56 = vpop.f32.mrf.mxu1 }
 0x44f   :  { %17258 = vst [vmem:[#allocation375_spill] sm:$0xff] %v14442_v56  ;;  %v5568_v12 = vpop.f32.mrf.mxu0 }
 0x450   :  { %v6473_v53 = vpop.f32.mrf.mxu1  ;;  %v11557_v12 = vld [vmem:[%s16765_s0 + $0x1188] ss:$20 sps:$4 sm:$0xff]  }
 0x451   :  { %v14456_v19 = vpop.f32.mrf.mxu0  ;;  %10407 = vmatmul.mubr.msk.bf16.gmra.mxu0 %vm4304_vm0, %v11556_v38  ;;  %v11561_v53 = vld [vmem:[%s16765_s0 + $0x718] ss:$20 sps:$4 sm:$0xff]  }
 0x452   :  { %17259 = vst [vmem:[#allocation376_spill] sm:$0xff] %v14456_v19  ;;  %v14458_v11 = vpop.f32.mrf.mxu1  ;;  %6667 = vmatmul.mubr.bf16.gmra.mxu1 %v11552_v36  ;;  %10410 = vmatprep.mubr.msk.bf16.mxu0 %vm4304_vm0, %v11560_v37  ;;  %v11564_v36 = vld [vmem:[%s16765_s0 + $0x11b4] ss:$20 sps:$4 sm:$0xff]  }
 0x453   :  { %17260 = vst [vmem:[#allocation377_spill] sm:$0xff] %v14458_v11  ;;  %6674 = vmatprep.mubr.bf16.mxu1 %v11559_v20  ;;  %v5573_v40 = vpop.f32.mrf.mxu0 }
 0x454   :  { %v6478_v22 = vpop.f32.mrf.mxu1  ;;  %v11565_v40 = vld [vmem:[%s16765_s0 + $0x740] ss:$20 sps:$4 sm:$0xff]  }
 0x455   :  { %v14462_v56 = vpop.f32.mrf.mxu0 }
 0x456   :  { %17261 = vst [vmem:[#allocation378_spill] sm:$0xff] %v14462_v56  ;;  %v14464_v2 = vpop.f32.mrf.mxu1 }
 0x457   :  { %17262 = vst [vmem:[#allocation379_spill] sm:$0xff] %v14464_v2  ;;  %v5576_v22 = vpop.f32.mrf.mxu0 }
 0x458   :  { %v6481_v38 = vpop.f32.mrf.mxu1  ;;  %v11562_v22 = vld [vmem:[%s16765_s0 + $0x11b0] ss:$20 sps:$4 sm:$0xff]  }
 0x459   :  { %v14478_v20 = vpop.f32.mrf.mxu0  ;;  %10411 = vmatmul.mubr.msk.bf16.gmra.mxu0 %vm4304_vm0, %v11561_v53  ;;  %v11566_v38 = vld [vmem:[%s16765_s0 + $0x768] ss:$20 sps:$4 sm:$0xff]  }
 0x45a   :  { %17263 = vst [vmem:[#allocation380_spill] sm:$0xff] %v14478_v20  ;;  %v14480_v37 = vpop.f32.mrf.mxu1  ;;  %6675 = vmatmul.mubr.bf16.gmra.mxu1 %v11557_v12  ;;  %10414 = vmatprep.mubr.msk.bf16.mxu0 %vm4304_vm0, %v11565_v40  ;;  %v11569_v12 = vld [vmem:[%s16765_s0 + $0x11dc] ss:$20 sps:$4 sm:$0xff]  }
 0x45b   :  { %17264 = vst [vmem:[#allocation381_spill] sm:$0xff] %v14480_v37  ;;  %6682 = vmatprep.mubr.bf16.mxu1 %v11564_v36  ;;  %v5581_v56 = vpop.f32.mrf.mxu0 }
 0x45c   :  { %v6486_v19 = vpop.f32.mrf.mxu1  ;;  %v11570_v56 = vld [vmem:[%s16765_s0 + $0x790] ss:$20 sps:$4 sm:$0xff]  }
 0x45d   :  { %v14484_v2 = vpop.f32.mrf.mxu0 }
 0x45e   :  { %17265 = vst [vmem:[#allocation382_spill] sm:$0xff] %v14484_v2  ;;  %v14486_v11 = vpop.f32.mrf.mxu1 }
 0x45f   :  { %17266 = vst [vmem:[#allocation383_spill] sm:$0xff] %v14486_v11  ;;  %v5584_v19 = vpop.f32.mrf.mxu0 }
 0x460   :  { %v6489_v53 = vpop.f32.mrf.mxu1  ;;  %v11567_v19 = vld [vmem:[%s16765_s0 + $0x11d8] ss:$20 sps:$4 sm:$0xff]  }
 0x461   :  { %v14500_v36 = vpop.f32.mrf.mxu0  ;;  %10415 = vmatmul.mubr.msk.bf16.gmra.mxu0 %vm4304_vm0, %v11566_v38  ;;  %v11571_v53 = vld [vmem:[%s16765_s0 + $0x7b8] ss:$20 sps:$4 sm:$0xff]  }
 0x462   :  { %17267 = vst [vmem:[#allocation384_spill] sm:$0xff] %v14500_v36  ;;  %v14502_v40 = vpop.f32.mrf.mxu1  ;;  %6683 = vmatmul.mubr.bf16.gmra.mxu1 %v11562_v22  ;;  %10418 = vmatprep.mubr.msk.bf16.mxu0 %vm4304_vm0, %v11570_v56  ;;  %v11574_v22 = vld [vmem:[%s16765_s0 + $0x1204] ss:$20 sps:$4 sm:$0xff]   ;;  %v5781_v36 = vadd.f32 %v12657_v61, %v12269_v10  ;;  %v11576_v10 = vld [vmem:[%s16765_s0 + $0x808] ss:$20 sps:$4 sm:$0xff]   ;;  %v5784_v61 = vadd.f32 %v12661_v60, %v12279_v15 }
 0x463   :  { %17268 = vst [vmem:[#allocation385_spill] sm:$0xff] %v14502_v40  ;;  %6690 = vmatprep.mubr.bf16.mxu1 %v11569_v12  ;;  %v5589_v2 = vpop.f32.mrf.mxu0  ;;  %v5789_v12 = vadd.f32 %v12677_v26, %v12289_v21  ;;  %v5797_v60 = vadd.f32 %v12697_v50, %v12309_v33  ;;  %v11581_v33 = vld [vmem:[%s16765_s0 + $0x858] ss:$20 sps:$4 sm:$0xff]   ;;  %v5800_v50 = vadd.f32 %v12701_v58, %v12319_v39 }
 0x464   :  { %v6494_v20 = vpop.f32.mrf.mxu1  ;;  %v11575_v2 = vld [vmem:[%s16765_s0 + $0x7e0] ss:$20 sps:$4 sm:$0xff]   ;;  %v5813_v58 = vadd.f32 %v12737_v14, %v12349_v57  ;;  %v11587_v57 = vld [vmem:[%s16765_s0 + $0x8a8] ss:$20 sps:$4 sm:$0xff]   ;;  %v5816_v14 = vadd.f32 %v12741_v32, %v12359_v63 }
 0x465   :  { %v14506_v11 = vpop.f32.mrf.mxu0  ;;  %v11648_v63 = vld [vmem:[%s16766_s4 + $0x8] sm:$0xff]  }
 0x466   :  { %17269 = vst [vmem:[#allocation386_spill] sm:$0xff] %v14506_v11  ;;  %v14508_v37 = vpop.f32.mrf.mxu1  ;;  %10590 = vmatprep.subr.bf16.mxu1 %v11648_v63 }
 0x467   :  { %17270 = vst [vmem:[#allocation387_spill] sm:$0xff] %v14508_v37  ;;  %v5592_v20 = vpop.f32.mrf.mxu0  ;;  %10591 = vmatpush3.bf16.msra.mxu1 %v11648_v63 }
 0x468   :  { %v6497_v38 = vpop.f32.mrf.mxu1 }
 0x469   :  { %v10324_v11 = vpop.f32.mrf.mxu0  ;;  %10419 = vmatmul.mubr.msk.bf16.gmra.mxu0 %vm4304_vm0, %v11571_v53  ;;  %v5792_v38 = vadd.f32 %v12681_v24, %v12299_v27  ;;  %v11572_v53 = vld [vmem:[%s16765_s0 + $0x1200] ss:$20 sps:$4 sm:$0xff]   ;;  %v11580_v24 = vld [vmem:[%s16765_s0 + $0x830] ss:$20 sps:$4 sm:$0xff]  }
 0x46a   :  { %v14524_v56 = vpop.f32.mrf.mxu1  ;;  %6691 = vmatmul.mubr.bf16.gmra.mxu1 %v11567_v19  ;;  %v14529_v37 = vadd.f32 %v10324_v11, %v5789_v12  ;;  %10422 = vmatprep.mubr.msk.bf16.mxu0 %vm4304_vm0, %v11575_v2  ;;  %v11579_v27 = vld [vmem:[%s16765_s0 + $0x122c] ss:$20 sps:$4 sm:$0xff]  }
 0x46b   :  { %17271 = vst [vmem:[#allocation388_spill] sm:$0xff] %v14524_v56  ;;  %6698 = vmatprep.mubr.bf16.mxu1 %v11574_v22  ;;  %v6837_v20 = vpop.f32.mrf.mxu0  ;;  %v5805_v22 = vadd.f32 %v12717_v42, %v12329_v45  ;;  %v5808_v45 = vadd.f32 %v12721_v34, %v12339_v51  ;;  %v11585_v34 = vld [vmem:[%s16765_s0 + $0x1254] ss:$20 sps:$4 sm:$0xff]  }
 0x46c   :  { %v6502_v40 = vpop.f32.mrf.mxu1  ;;  %v14534_v21 = vadd.f32 %v6837_v20, %v5781_v36  ;;  %v11586_v51 = vld [vmem:[%s16765_s0 + $0x880] ss:$20 sps:$4 sm:$0xff]  }
 0x46d   :  { %v10325_v19 = vpop.f32.mrf.mxu0  ;;  %v17365_v56 = vld [vmem:[#allocation62_spill] sm:$0xff] }
 0x46e   :  { %v14536_v26 = vpop.f32.mrf.mxu1  ;;  %v14546_v11 = vadd.f32 %v10325_v19, %v5792_v38 }
 0x46f   :  { %17272 = vst [vmem:[#allocation389_spill] sm:$0xff] %v14536_v26  ;;  %v6840_v40 = vpop.f32.mrf.mxu0 }
 0x470   :  { %v6505_v36 = vpop.f32.mrf.mxu1  ;;  %v14556_v2 = vadd.f32 %v6840_v40, %v5784_v61  ;;  %v5821_v40 = vadd.f32 %v12757_v52, %v12369_v6  ;;  %v5824_v6 = vadd.f32 %v12761_v46, %v12379_v13  ;;  %v11590_v46 = vld [vmem:[%s16765_s0 + $0x127c] ss:$20 sps:$4 sm:$0xff]  }
 0x471   :  { %v10328_v15 = vpop.f32.mrf.mxu0  ;;  %10423 = vmatmul.mubr.msk.bf16.gmra.mxu0 %vm4304_vm0, %v11576_v10  ;;  %v11577_v10 = vld [vmem:[%s16765_s0 + $0x1228] ss:$20 sps:$4 sm:$0xff]   ;;  %v11591_v13 = vld [vmem:[%s16765_s0 + $0x8d0] ss:$20 sps:$4 sm:$0xff]  }
 0x472   :  { %v14558_v12 = vpop.f32.mrf.mxu1  ;;  %6699 = vmatmul.mubr.bf16.gmra.mxu1 %v11572_v53  ;;  %v14563_v20 = vadd.f32 %v10328_v15, %v5805_v22  ;;  %10426 = vmatprep.mubr.msk.bf16.mxu0 %vm4304_vm0, %v11580_v24 }
 0x473   :  { %17273 = vst [vmem:[#allocation390_spill] sm:$0xff] %v14558_v12  ;;  %6706 = vmatprep.mubr.bf16.mxu1 %v11579_v27  ;;  %v6853_v19 = vpop.f32.mrf.mxu0 }
 0x474   :  { %17274 = vst [vmem:[#allocation391_spill] sm:$0xff] %v14563_v20  ;;  %v6510_v38 = vpop.f32.mrf.mxu1  ;;  %v14568_v42 = vadd.f32 %v6853_v19, %v5797_v60 }
 0x475   :  { %v10329_v53 = vpop.f32.mrf.mxu0 }
 0x476   :  { %v14570_v61 = vpop.f32.mrf.mxu1  ;;  %v14580_v27 = vadd.f32 %v10329_v53, %v5808_v45 }
 0x477   :  { %17275 = vst [vmem:[#allocation392_spill] sm:$0xff] %v14570_v61  ;;  %v6856_v36 = vpop.f32.mrf.mxu0 }
 0x478   :  { %v6513_v24 = vpop.f32.mrf.mxu1  ;;  %v14590_v22 = vadd.f32 %v6856_v36, %v5800_v50 }
 0x479   :  { %v10332_v39 = vpop.f32.mrf.mxu0  ;;  %10427 = vmatmul.mubr.msk.bf16.gmra.mxu0 %vm4304_vm0, %v11581_v33 }
 0x47a   :  { %v14592_v15 = vpop.f32.mrf.mxu1  ;;  %6707 = vmatmul.mubr.bf16.gmra.mxu1 %v11577_v10  ;;  %v14597_v60 = vadd.f32 %v10332_v39, %v5821_v40  ;;  %10430 = vmatprep.mubr.msk.bf16.mxu0 %vm4304_vm0, %v11586_v51  ;;  %v11583_v10 = vld [vmem:[%s16765_s0 + $0x1250] ss:$20 sps:$4 sm:$0xff]   ;;  %v5837_v51 = vadd.f32 %v12797_v16, %v12409_v41  ;;  %v5829_v40 = vadd.f32 %v12777_v28, %v12389_v23  ;;  %v11588_v23 = vld [vmem:[%s16765_s0 + $0x1278] ss:$20 sps:$4 sm:$0xff]  }
 0x47b   :  { %17276 = vst [vmem:[#allocation393_spill] sm:$0xff] %v14592_v15  ;;  %6714 = vmatprep.mubr.bf16.mxu1 %v11585_v34  ;;  %v6869_v19 = vpop.f32.mrf.mxu0  ;;  %v11592_v28 = vld [vmem:[%s16765_s0 + $0x8f8] ss:$20 sps:$4 sm:$0xff]   ;;  %v17351_v15 = vld [vmem:[#allocation58_spill] sm:$0xff] }
 0x47c   :  { %17277 = vst [vmem:[#allocation394_spill] sm:$0xff] %v14597_v60  ;;  %v6518_v38 = vpop.f32.mrf.mxu1  ;;  %v14602_v52 = vadd.f32 %v6869_v19, %v5813_v58  ;;  %v5840_v58 = vadd.f32 %v12801_v30, %v12419_v49  ;;  %v11595_v49 = vld [vmem:[%s16765_s0 + $0x12a4] ss:$20 sps:$4 sm:$0xff]   ;;  %v11596_v30 = vld [vmem:[%s16765_s0 + $0x920] ss:$20 sps:$4 sm:$0xff]  }
 0x47d   :  { %v10333_v53 = vpop.f32.mrf.mxu0 }
 0x47e   :  { %17278 = vst [vmem:[#allocation395_spill] sm:$0xff] %v14602_v52  ;;  %v14604_v45 = vpop.f32.mrf.mxu1  ;;  %v14614_v33 = vadd.f32 %v10333_v53, %v5824_v6  ;;  %v5832_v53 = vadd.f32 %v12781_v5, %v12399_v31  ;;  %v5845_v5 = vadd.f32 %v12817_v7, %v12429_v59  ;;  %v11597_v59 = vld [vmem:[%s16765_s0 + $0x948] ss:$20 sps:$4 sm:$0xff]   ;;  %v5848_v7 = vadd.f32 %v12821_v62, %v12439_v4 }
 0x47f   :  { %17279 = vst [vmem:[#allocation396_spill] sm:$0xff] %v14604_v45  ;;  %v6872_v34 = vpop.f32.mrf.mxu0  ;;  %v5861_v62 = vadd.f32 %v12857_v54, %v12469_v43  ;;  %v11602_v43 = vld [vmem:[%s16765_s0 + $0x998] ss:$20 sps:$4 sm:$0xff]   ;;  %v5864_v54 = vadd.f32 %v12861_v3, %v12479_v55  ;;  %v17293_v3 = vld [vmem:[#allocation78_spill] sm:$0xff] }
 0x480   :  { %v6521_v50 = vpop.f32.mrf.mxu1  ;;  %v14624_v24 = vadd.f32 %v6872_v34, %v5816_v14 }
 0x481   :  { %v10336_v36 = vpop.f32.mrf.mxu0  ;;  %10431 = vmatmul.mubr.msk.bf16.gmra.mxu0 %vm4304_vm0, %v11587_v57 }
 0x482   :  { %v14629_v32 = vpop.f32.mrf.mxu1  ;;  %6715 = vmatmul.mubr.bf16.gmra.mxu1 %v11583_v10  ;;  %v14634_v39 = vadd.f32 %v10336_v36, %v5837_v51  ;;  %10434 = vmatprep.mubr.msk.bf16.mxu0 %vm4304_vm0, %v11591_v13 }
 0x483   :  { %17280 = vst [vmem:[#allocation397_spill] sm:$0xff] %v14629_v32  ;;  %6722 = vmatprep.mubr.bf16.mxu1 %v11590_v46  ;;  %v6885_v16 = vpop.f32.mrf.mxu0  ;;  %v5853_v46 = vadd.f32 %v12837_v44, %v12449_v17  ;;  %v5856_v17 = vadd.f32 %v12841_v18, %v12459_v29  ;;  %v11600_v18 = vld [vmem:[%s16765_s0 + $0x12cc] ss:$20 sps:$4 sm:$0xff]   ;;  %v11601_v29 = vld [vmem:[%s16765_s0 + $0x970] ss:$20 sps:$4 sm:$0xff]  }
 0x484   :  { %17281 = vst [vmem:[#allocation398_spill] sm:$0xff] %v14634_v39  ;;  %v6526_v41 = vpop.f32.mrf.mxu1  ;;  %v14639_v38 = vadd.f32 %v6885_v16, %v5829_v40 }
 0x485   :  { %v10337_v6 = vpop.f32.mrf.mxu0  ;;  %v11593_v41 = vld [vmem:[%s16765_s0 + $0x12a0] ss:$20 sps:$4 sm:$0xff]  }
 0x486   :  { %v14641_v19 = vpop.f32.mrf.mxu1  ;;  %v14651_v10 = vadd.f32 %v10337_v6, %v5840_v58 }
 0x487   :  { %17282 = vst [vmem:[#allocation399_spill] sm:$0xff] %v14641_v19  ;;  %v6888_v14 = vpop.f32.mrf.mxu0 }
 0x488   :  { %v6529_v57 = vpop.f32.mrf.mxu1  ;;  %v14661_v13 = vadd.f32 %v6888_v14, %v5832_v53 }
 0x489   :  { %v10340_v31 = vpop.f32.mrf.mxu0  ;;  %10435 = vmatmul.mubr.msk.bf16.gmra.mxu0 %vm4304_vm0, %v11592_v28 }
 0x48a   :  { %v14663_v50 = vpop.f32.mrf.mxu1  ;;  %6723 = vmatmul.mubr.bf16.gmra.mxu1 %v11588_v23  ;;  %v14668_v34 = vadd.f32 %v10340_v31, %v5853_v46  ;;  %10438 = vmatprep.mubr.msk.bf16.mxu0 %vm4304_vm0, %v11596_v30  ;;  %v5869_v23 = vadd.f32 %v12877_v9, %v12489_v8  ;;  %v5872_v8 = vadd.f32 %v12881_v48, %v12499_v25  ;;  %v11598_v31 = vld [vmem:[%s16765_s0 + $0x12c8] ss:$20 sps:$4 sm:$0xff]   ;;  %v11606_v48 = vld [vmem:[%s16765_s0 + $0x9c0] ss:$20 sps:$4 sm:$0xff]  }
 0x48b   :  { %17283 = vst [vmem:[#allocation400_spill] sm:$0xff] %v14663_v50  ;;  %6730 = vmatprep.mubr.bf16.mxu1 %v11595_v49  ;;  %v6901_v63 = vpop.f32.mrf.mxu0  ;;  %v11605_v25 = vld [vmem:[%s16765_s0 + $0x12f4] ss:$20 sps:$4 sm:$0xff]  }
 0x48c   :  { %17284 = vst [vmem:[#allocation401_spill] sm:$0xff] %v14668_v34  ;;  %v6534_v51 = vpop.f32.mrf.mxu1  ;;  %v14673_v44 = vadd.f32 %v6901_v63, %v5845_v5  ;;  %v17337_v50 = vld [vmem:[#allocation54_spill] sm:$0xff] }
 0x48d   :  { %v10341_v40 = vpop.f32.mrf.mxu0 }
 0x48e   :  { %v14675_v36 = vpop.f32.mrf.mxu1  ;;  %v14685_v16 = vadd.f32 %v10341_v40, %v5856_v17  ;;  %v5885_v17 = vadd.f32 %v12920_v0, %v12529_v35  ;;  %v17296_v35 = vld [vmem:[#allocation83_spill] sm:$0xff] }
 0x48f   :  { %17285 = vst [vmem:[#allocation402_spill] sm:$0xff] %v14675_v36  ;;  %v6904_v6 = vpop.f32.mrf.mxu0 }
 0x490   :  { %v6537_v58 = vpop.f32.mrf.mxu1  ;;  %v14695_v28 = vadd.f32 %v6904_v6, %v5848_v7 }
 0x491   :  { %v10344_v4 = vpop.f32.mrf.mxu0  ;;  %10439 = vmatmul.mubr.msk.bf16.gmra.mxu0 %vm4304_vm0, %v11597_v59  ;;  %v5877_v59 = vadd.f32 %v17293_v3, %v12509_v47  ;;  %v17295_v58 = vld [vmem:[#allocation31_spill] sm:$0xff] }
 0x492   :  { %v14697_v53 = vpop.f32.mrf.mxu1  ;;  %6731 = vmatmul.mubr.bf16.gmra.mxu1 %v11593_v41  ;;  %v14702_v49 = vadd.f32 %v10344_v4, %v5869_v23  ;;  %10442 = vmatprep.mubr.msk.bf16.mxu0 %vm4304_vm0, %v11601_v29  ;;  %v5888_v0 = vadd.f32 %v17296_v35, %v17295_v58  ;;  %v11607_v47 = vld [vmem:[%s16765_s0 + $0x9e8] ss:$20 sps:$4 sm:$0xff]  }
 0x493   :  { %17286 = vst [vmem:[#allocation403_spill] sm:$0xff] %v14697_v53  ;;  %6738 = vmatprep.mubr.bf16.mxu1 %v11600_v18  ;;  %v6917_v57 = vpop.f32.mrf.mxu0 }
 0x494   :  { %17287 = vst [vmem:[#allocation404_spill] sm:$0xff] %v14702_v49  ;;  %v6542_v30 = vpop.f32.mrf.mxu1  ;;  %v14707_v9 = vadd.f32 %v6917_v57, %v5861_v62  ;;  %v11603_v62 = vld [vmem:[%s16765_s0 + $0x12f0] ss:$20 sps:$4 sm:$0xff]  }
 0x495   :  { %v10345_v46 = vpop.f32.mrf.mxu0  ;;  %v17299_v30 = vld [vmem:[#allocation28_spill] sm:$0xff] }
 0x496   :  { %17288 = vst [vmem:[#allocation405_spill] sm:$0xff] %v14707_v9  ;;  %v14709_v14 = vpop.f32.mrf.mxu1  ;;  %v14719_v5 = vadd.f32 %v10345_v46, %v5872_v8  ;;  %v17300_v57 = vld [vmem:[#allocation80_spill] sm:$0xff]  ;;  %v17745_v9 = vld [vmem:[#allocation347_spill] sm:$0xff] }
 0x497   :  { %17289 = vst [vmem:[#allocation406_spill] sm:$0xff] %v14709_v14  ;;  %v6920_v63 = vpop.f32.mrf.mxu0  ;;  %v5880_v8 = vadd.f32 %v17300_v57, %v17299_v30  ;;  %v17310_v30 = vld [vmem:[#allocation91_spill] sm:$0xff] }
 0x498   :  { %17290 = vst [vmem:[#allocation407_spill] sm:$0xff] %v14719_v5  ;;  %v6545_v51 = vpop.f32.mrf.mxu1  ;;  %v14729_v40 = vadd.f32 %v6920_v63, %v5864_v54 }
 0x499   :  { %v10348_v55 = vpop.f32.mrf.mxu0  ;;  %10443 = vmatmul.mubr.msk.bf16.gmra.mxu0 %vm4304_vm0, %v11602_v43  ;;  %v11611_v43 = vld [vmem:[%s16765_s0 + $0xa10] ss:$20 sps:$4 sm:$0xff]   ;;  %v17303_v51 = vld [vmem:[#allocation89_spill] sm:$0xff] }
 0x49a   :  { %17291 = vst [vmem:[#allocation408_spill] sm:$0xff] %v14729_v40  ;;  %v14731_v41 = vpop.f32.mrf.mxu1  ;;  %6739 = vmatmul.mubr.bf16.gmra.mxu1 %v11598_v31  ;;  %v14736_v7 = vadd.f32 %v10348_v55, %v5885_v17  ;;  %10446 = vmatprep.mubr.msk.bf16.mxu0 %vm4304_vm0, %v11606_v48  ;;  %v11610_v31 = vld [vmem:[%s16765_s0 + $0x131c] ss:$20 sps:$4 sm:$0xff]   ;;  %v17302_v48 = vld [vmem:[#allocation37_spill] sm:$0xff] }
 0x49b   :  { %17292 = vst [vmem:[#allocation409_spill] sm:$0xff] %v14731_v41  ;;  %6746 = vmatprep.mubr.bf16.mxu1 %v11605_v25  ;;  %v6933_v29 = vpop.f32.mrf.mxu0  ;;  %v5901_v63 = vadd.f32 %v17303_v51, %v17302_v48  ;;  %v17323_v41 = vld [vmem:[#allocation47_spill] sm:$0xff] }
 0x49c   :  { %17294 = vst [vmem:[#allocation78_spill] sm:$0xff] %v14736_v7  ;;  %v6550_v18 = vpop.f32.mrf.mxu1  ;;  %v14741_v6 = vadd.f32 %v6933_v29, %v5877_v59  ;;  %v17306_v59 = vld [vmem:[#allocation33_spill] sm:$0xff] }
 0x49d   :  { %v10349_v4 = vpop.f32.mrf.mxu0  ;;  %v17307_v18 = vld [vmem:[#allocation85_spill] sm:$0xff] }
 0x49e   :  { %17297 = vst [vmem:[#allocation31_spill] sm:$0xff] %v14741_v6  ;;  %v14743_v23 = vpop.f32.mrf.mxu1  ;;  %v14753_v46 = vadd.f32 %v10349_v4, %v5888_v0  ;;  %v5893_v29 = vadd.f32 %v17307_v18, %v17306_v59  ;;  %v17309_v4 = vld [vmem:[#allocation39_spill] sm:$0xff] }
 0x49f   :  { %17298 = vst [vmem:[#allocation83_spill] sm:$0xff] %v14743_v23  ;;  %v6936_v25 = vpop.f32.mrf.mxu0  ;;  %v5904_v57 = vadd.f32 %v17310_v30, %v17309_v4 }
 0x4a0   :  { %17301 = vst [vmem:[#allocation28_spill] sm:$0xff] %v14753_v46  ;;  %v6553_v54 = vpop.f32.mrf.mxu1  ;;  %v14763_v17 = vadd.f32 %v6936_v25, %v5880_v8  ;;  %v17313_v25 = vld [vmem:[#allocation35_spill] sm:$0xff] }
 0x4a1   :  { %v10352_v3 = vpop.f32.mrf.mxu0  ;;  %10447 = vmatmul.mubr.msk.bf16.gmra.mxu0 %vm4304_vm0, %v11607_v47  ;;  %v11608_v47 = vld [vmem:[%s16765_s0 + $0x1318] ss:$20 sps:$4 sm:$0xff]  }
 0x4a2   :  { %17304 = vst [vmem:[#allocation80_spill] sm:$0xff] %v14763_v17  ;;  %v14765_v55 = vpop.f32.mrf.mxu1  ;;  %6747 = vmatmul.mubr.bf16.gmra.mxu1 %v11603_v62  ;;  %v14770_v58 = vadd.f32 %v10352_v3, %v5901_v63  ;;  %10450 = vmatprep.mubr.msk.bf16.mxu0 %vm4304_vm0, %v11611_v43  ;;  %v17314_v43 = vld [vmem:[#allocation87_spill] sm:$0xff]  ;;  %v11616_v3 = vld [vmem:[%s16765_s0 + $0xa60] ss:$20 sps:$4 sm:$0xff]  }
 0x4a3   :  { %17305 = vst [vmem:[#allocation37_spill] sm:$0xff] %v14765_v55  ;;  %6754 = vmatprep.mubr.bf16.mxu1 %v11610_v31  ;;  %v6949_v0 = vpop.f32.mrf.mxu0  ;;  %v11612_v31 = vld [vmem:[%s16765_s0 + $0xa38] ss:$20 sps:$4 sm:$0xff]   ;;  %v5896_v48 = vadd.f32 %v17314_v43, %v17313_v25  ;;  %v17719_v17 = vld [vmem:[#allocation254_spill] sm:$0xff] }
 0x4a4   :  { %17308 = vst [vmem:[#allocation89_spill] sm:$0xff] %v14770_v58  ;;  %v6558_v35 = vpop.f32.mrf.mxu1  ;;  %v14775_v8 = vadd.f32 %v6949_v0, %v5893_v29  ;;  %v11615_v63 = vld [vmem:[%s16765_s0 + $0x1344] ss:$20 sps:$4 sm:$0xff]   ;;  %v17316_v29 = vld [vmem:[#allocation45_spill] sm:$0xff] }
 0x4a5   :  { %v10353_v62 = vpop.f32.mrf.mxu0  ;;  %v17317_v35 = vld [vmem:[#allocation97_spill] sm:$0xff]  ;;  %v17720_v46 = vld [vmem:[#allocation331_spill] sm:$0xff] }
 0x4a6   :  { %17311 = vst [vmem:[#allocation33_spill] sm:$0xff] %v14775_v8  ;;  %v14777_v54 = vpop.f32.mrf.mxu1  ;;  %v14787_v51 = vadd.f32 %v10353_v62, %v5904_v57  ;;  %v5917_v0 = vadd.f32 %v17317_v35, %v17316_v29  ;;  %v17320_v62 = vld [vmem:[#allocation41_spill] sm:$0xff]  ;;  %v17324_v29 = vld [vmem:[#allocation99_spill] sm:$0xff]  ;;  %v6384_v6 = vadd.f32 %v17720_v46, %v17719_v17  ;;  %v17726_v17 = vld [vmem:[#allocation260_spill] sm:$0xff] }
 0x4a7   :  { %17312 = vst [vmem:[#allocation85_spill] sm:$0xff] %v14777_v54  ;;  %v6952_v18 = vpop.f32.mrf.mxu0  ;;  %v17321_v25 = vld [vmem:[#allocation93_spill] sm:$0xff] }
 0x4a8   :  { %17315 = vst [vmem:[#allocation39_spill] sm:$0xff] %v14787_v51  ;;  %v6561_v59 = vpop.f32.mrf.mxu1  ;;  %v14797_v4 = vadd.f32 %v6952_v18, %v5896_v48  ;;  %v5909_v43 = vadd.f32 %v17321_v25, %v17320_v62  ;;  %v5920_v48 = vadd.f32 %v17324_v29, %v17323_v41  ;;  %v11620_v41 = vld [vmem:[%s16765_s0 + $0x136c] ss:$20 sps:$4 sm:$0xff]   ;;  %v17710_v51 = vld [vmem:[#allocation323_spill] sm:$0xff] }
 0x4a9   :  { %v10356_v57 = vpop.f32.mrf.mxu0  ;;  %10451 = vmatmul.mubr.msk.bf16.gmra.mxu0 %vm4304_vm0, %v11612_v31  ;;  %v11613_v31 = vld [vmem:[%s16765_s0 + $0x1340] ss:$20 sps:$4 sm:$0xff]   ;;  %v17331_v29 = vld [vmem:[#allocation105_spill] sm:$0xff] }
 0x4aa   :  { %17318 = vst [vmem:[#allocation91_spill] sm:$0xff] %v14797_v4  ;;  %v14799_v30 = vpop.f32.mrf.mxu1  ;;  %6755 = vmatmul.mubr.bf16.gmra.mxu1 %v11608_v47  ;;  %v14804_v23 = vadd.f32 %v10356_v57, %v5917_v0  ;;  %10454 = vmatprep.mubr.msk.bf16.mxu0 %vm4304_vm0, %v11616_v3  ;;  %v17327_v0 = vld [vmem:[#allocation43_spill] sm:$0xff]  ;;  %v17709_v4 = vld [vmem:[#allocation246_spill] sm:$0xff] }
 0x4ab   :  { %17319 = vst [vmem:[#allocation35_spill] sm:$0xff] %v14799_v30  ;;  %6762 = vmatprep.mubr.bf16.mxu1 %v11615_v63  ;;  %v6965_v54 = vpop.f32.mrf.mxu0  ;;  %v11617_v63 = vld [vmem:[%s16765_s0 + $0xa88] ss:$20 sps:$4 sm:$0xff]   ;;  %v6368_v8 = vadd.f32 %v17710_v51, %v17709_v4  ;;  %v17714_v4 = vld [vmem:[#allocation252_spill] sm:$0xff] }
 0x4ac   :  { %17322 = vst [vmem:[#allocation87_spill] sm:$0xff] %v14804_v23  ;;  %v6566_v59 = vpop.f32.mrf.mxu1  ;;  %v14809_v18 = vadd.f32 %v6965_v54, %v5909_v43  ;;  %v17328_v3 = vld [vmem:[#allocation95_spill] sm:$0xff]  ;;  %v11621_v54 = vld [vmem:[%s16765_s0 + $0xab0] ss:$20 sps:$4 sm:$0xff]  }
 0x4ad   :  { %v10357_v47 = vpop.f32.mrf.mxu0  ;;  %v5912_v57 = vadd.f32 %v17328_v3, %v17327_v0  ;;  %v17330_v59 = vld [vmem:[#allocation53_spill] sm:$0xff] }
 0x4ae   :  { %17325 = vst [vmem:[#allocation45_spill] sm:$0xff] %v14809_v18  ;;  %v14811_v35 = vpop.f32.mrf.mxu1  ;;  %v14821_v62 = vadd.f32 %v10357_v47, %v5920_v48  ;;  %v17334_v47 = vld [vmem:[#allocation49_spill] sm:$0xff]  ;;  %v17700_v18 = vld [vmem:[#allocation315_spill] sm:$0xff] }
 0x4af   :  { %17326 = vst [vmem:[#allocation97_spill] sm:$0xff] %v14811_v35  ;;  %v6968_v43 = vpop.f32.mrf.mxu0  ;;  %v5933_v35 = vadd.f32 %v17331_v29, %v17330_v59  ;;  %v17335_v0 = vld [vmem:[#allocation101_spill] sm:$0xff]  ;;  %v17338_v59 = vld [vmem:[#allocation107_spill] sm:$0xff] }
 0x4b0   :  { %17329 = vst [vmem:[#allocation41_spill] sm:$0xff] %v14821_v62  ;;  %v6569_v25 = vpop.f32.mrf.mxu1  ;;  %v14831_v30 = vadd.f32 %v6968_v43, %v5912_v57  ;;  %v5925_v3 = vadd.f32 %v17335_v0, %v17334_v47  ;;  %v5936_v57 = vadd.f32 %v17338_v59, %v17337_v50  ;;  %v11625_v50 = vld [vmem:[%s16765_s0 + $0x1394] ss:$20 sps:$4 sm:$0xff]  }
 0x4b1   :  { %v10360_v48 = vpop.f32.mrf.mxu0  ;;  %10455 = vmatmul.mubr.msk.bf16.gmra.mxu0 %vm4304_vm0, %v11617_v63  ;;  %v11618_v63 = vld [vmem:[%s16765_s0 + $0x1368] ss:$20 sps:$4 sm:$0xff]  }
 0x4b2   :  { %17332 = vst [vmem:[#allocation93_spill] sm:$0xff] %v14831_v30  ;;  %v14833_v55 = vpop.f32.mrf.mxu1  ;;  %6763 = vmatmul.mubr.bf16.gmra.mxu1 %v11613_v31  ;;  %v14838_v36 = vadd.f32 %v10360_v48, %v5933_v35  ;;  %10458 = vmatprep.mubr.msk.bf16.mxu0 %vm4304_vm0, %v11621_v54  ;;  %v11622_v35 = vld [vmem:[%s16765_s0 + $0xad8] ss:$20 sps:$4 sm:$0xff]   ;;  %v17697_v30 = vld [vmem:[#allocation232_spill] sm:$0xff] }
 0x4b3   :  { %17333 = vst [vmem:[#allocation47_spill] sm:$0xff] %v14833_v55  ;;  %6770 = vmatprep.mubr.bf16.mxu1 %v11620_v41  ;;  %v6981_v14 = vpop.f32.mrf.mxu0  ;;  %v17341_v41 = vld [vmem:[#allocation51_spill] sm:$0xff]  ;;  %v17345_v59 = vld [vmem:[#allocation113_spill] sm:$0xff] }
 0x4b4   :  { %17336 = vst [vmem:[#allocation99_spill] sm:$0xff] %v14838_v36  ;;  %v6574_v25 = vpop.f32.mrf.mxu1  ;;  %v14843_v43 = vadd.f32 %v6981_v14, %v5925_v3  ;;  %v17342_v54 = vld [vmem:[#allocation103_spill] sm:$0xff]  ;;  %v11626_v14 = vld [vmem:[%s16765_s0 + $0xb00] ss:$20 sps:$4 sm:$0xff]  }
 0x4b5   :  { %v10361_v31 = vpop.f32.mrf.mxu0  ;;  %v5928_v48 = vadd.f32 %v17342_v54, %v17341_v41  ;;  %v17344_v25 = vld [vmem:[#allocation57_spill] sm:$0xff]  ;;  %v17568_v36 = vld [vmem:[#allocation166_spill] sm:$0xff] }
 0x4b6   :  { %17339 = vst [vmem:[#allocation43_spill] sm:$0xff] %v14843_v43  ;;  %v14845_v29 = vpop.f32.mrf.mxu1  ;;  %v14855_v47 = vadd.f32 %v10361_v31, %v5936_v57  ;;  %v17348_v31 = vld [vmem:[#allocation55_spill] sm:$0xff]  ;;  %v17349_v41 = vld [vmem:[#allocation109_spill] sm:$0xff] }
 0x4b7   :  { %17340 = vst [vmem:[#allocation95_spill] sm:$0xff] %v14845_v29  ;;  %v6984_v3 = vpop.f32.mrf.mxu0  ;;  %v5949_v29 = vadd.f32 %v17345_v59, %v17344_v25  ;;  %v5941_v54 = vadd.f32 %v17349_v41, %v17348_v31  ;;  %v17352_v25 = vld [vmem:[#allocation115_spill] sm:$0xff] }
 0x4b8   :  { %17343 = vst [vmem:[#allocation53_spill] sm:$0xff] %v14855_v47  ;;  %v6577_v0 = vpop.f32.mrf.mxu1  ;;  %v14865_v55 = vadd.f32 %v6984_v3, %v5928_v48  ;;  %v5952_v48 = vadd.f32 %v17352_v25, %v17351_v15  ;;  %v11630_v15 = vld [vmem:[%s16765_s0 + $0x13bc] ss:$20 sps:$4 sm:$0xff]   ;;  %v17359_v25 = vld [vmem:[#allocation121_spill] sm:$0xff] }
 0x4b9   :  { %v10364_v57 = vpop.f32.mrf.mxu0  ;;  %10459 = vmatmul.mubr.msk.bf16.gmra.mxu0 %vm4304_vm0, %v11622_v35  ;;  %v11623_v35 = vld [vmem:[%s16765_s0 + $0x1390] ss:$20 sps:$4 sm:$0xff]   ;;  %v17690_v43 = vld [vmem:[#allocation307_spill] sm:$0xff] }
 0x4ba   :  { %17346 = vst [vmem:[#allocation105_spill] sm:$0xff] %v14865_v55  ;;  %v14867_v53 = vpop.f32.mrf.mxu1  ;;  %6771 = vmatmul.mubr.bf16.gmra.mxu1 %v11618_v63  ;;  %v14872_v45 = vadd.f32 %v10364_v57, %v5949_v29  ;;  %10462 = vmatprep.mubr.msk.bf16.mxu0 %vm4304_vm0, %v11626_v14  ;;  %v11627_v29 = vld [vmem:[%s16765_s0 + $0xb28] ss:$20 sps:$4 sm:$0xff]  }
 0x4bb   :  { %17347 = vst [vmem:[#allocation49_spill] sm:$0xff] %v14867_v53  ;;  %6778 = vmatprep.mubr.bf16.mxu1 %v11625_v50  ;;  %v6997_v19 = vpop.f32.mrf.mxu0  ;;  %v17355_v50 = vld [vmem:[#allocation56_spill] sm:$0xff]  ;;  %v17356_v14 = vld [vmem:[#allocation111_spill] sm:$0xff] }
 0x4bc   :  { %17350 = vst [vmem:[#allocation101_spill] sm:$0xff] %v14872_v45  ;;  %v6582_v0 = vpop.f32.mrf.mxu1  ;;  %v14877_v3 = vadd.f32 %v6997_v19, %v5941_v54  ;;  %v5944_v57 = vadd.f32 %v17356_v14, %v17355_v50  ;;  %v11631_v19 = vld [vmem:[%s16765_s0 + $0xb50] ss:$20 sps:$4 sm:$0xff]   ;;  %v17363_v50 = vld [vmem:[#allocation117_spill] sm:$0xff] }
 0x4bd   :  { %v10365_v63 = vpop.f32.mrf.mxu0  ;;  %v17358_v0 = vld [vmem:[#allocation61_spill] sm:$0xff]  ;;  %v17582_v45 = vld [vmem:[#allocation174_spill] sm:$0xff] }
 0x4be   :  { %17353 = vst [vmem:[#allocation54_spill] sm:$0xff] %v14877_v3  ;;  %v14879_v59 = vpop.f32.mrf.mxu1  ;;  %v14889_v31 = vadd.f32 %v10365_v63, %v5952_v48  ;;  %v17362_v63 = vld [vmem:[#allocation59_spill] sm:$0xff] }
 0x4bf   :  { %17354 = vst [vmem:[#allocation107_spill] sm:$0xff] %v14879_v59  ;;  %v7000_v54 = vpop.f32.mrf.mxu0  ;;  %v5965_v59 = vadd.f32 %v17359_v25, %v17358_v0  ;;  %v5957_v14 = vadd.f32 %v17363_v50, %v17362_v63  ;;  %v17366_v0 = vld [vmem:[#allocation123_spill] sm:$0xff] }
 0x4c0   :  { %17357 = vst [vmem:[#allocation51_spill] sm:$0xff] %v14889_v31  ;;  %v6585_v41 = vpop.f32.mrf.mxu1  ;;  %v14899_v53 = vadd.f32 %v7000_v54, %v5944_v57  ;;  %v5968_v57 = vadd.f32 %v17366_v0, %v17365_v56  ;;  %v11635_v56 = vld [vmem:[%s16765_s0 + $0x13e4] ss:$20 sps:$4 sm:$0xff]   ;;  %v17373_v0 = vld [vmem:[#allocation129_spill] sm:$0xff] }
 0x4c1   :  { %v10368_v48 = vpop.f32.mrf.mxu0  ;;  %10463 = vmatmul.mubr.msk.bf16.gmra.mxu0 %vm4304_vm0, %v11627_v29  ;;  %v11628_v29 = vld [vmem:[%s16765_s0 + $0x13b8] ss:$20 sps:$4 sm:$0xff]  }
 0x4c2   :  { %17360 = vst [vmem:[#allocation103_spill] sm:$0xff] %v14899_v53  ;;  %v14901_v32 = vpop.f32.mrf.mxu1  ;;  %6779 = vmatmul.mubr.bf16.gmra.mxu1 %v11623_v35  ;;  %v14906_v26 = vadd.f32 %v10368_v48, %v5965_v59  ;;  %10466 = vmatprep.mubr.msk.bf16.mxu0 %vm4304_vm0, %v11631_v19  ;;  %v11632_v59 = vld [vmem:[%s16765_s0 + $0xb78] ss:$20 sps:$4 sm:$0xff]   ;;  %v17599_v53 = vld [vmem:[#allocation182_spill] sm:$0xff] }
 0x4c3   :  { %17361 = vst [vmem:[#allocation57_spill] sm:$0xff] %v14901_v32  ;;  %6786 = vmatprep.mubr.bf16.mxu1 %v11630_v15  ;;  %v7013_v61 = vpop.f32.mrf.mxu0  ;;  %v17369_v15 = vld [vmem:[#allocation60_spill] sm:$0xff]  ;;  %v17370_v19 = vld [vmem:[#allocation119_spill] sm:$0xff] }
 0x4c4   :  { %17364 = vst [vmem:[#allocation113_spill] sm:$0xff] %v14906_v26  ;;  %v6590_v41 = vpop.f32.mrf.mxu1  ;;  %v14911_v54 = vadd.f32 %v7013_v61, %v5957_v14  ;;  %v5960_v48 = vadd.f32 %v17370_v19, %v17369_v15  ;;  %v11636_v61 = vld [vmem:[%s16765_s0 + $0xba0] ss:$20 sps:$4 sm:$0xff]   ;;  %v17377_v15 = vld [vmem:[#allocation125_spill] sm:$0xff] }
 0x4c5   :  { %v10369_v35 = vpop.f32.mrf.mxu0  ;;  %v17372_v41 = vld [vmem:[#allocation65_spill] sm:$0xff] }
 0x4c6   :  { %17367 = vst [vmem:[#allocation55_spill] sm:$0xff] %v14911_v54  ;;  %v14913_v25 = vpop.f32.mrf.mxu1  ;;  %v14923_v63 = vadd.f32 %v10369_v35, %v5968_v57  ;;  %v17376_v35 = vld [vmem:[#allocation63_spill] sm:$0xff]  ;;  %v17379_v54 = vld [vmem:[#allocation66_spill] sm:$0xff]  ;;  %v17609_v26 = vld [vmem:[#allocation265_spill] sm:$0xff] }
 0x4c7   :  { %17368 = vst [vmem:[#allocation109_spill] sm:$0xff] %v14913_v25  ;;  %v7016_v14 = vpop.f32.mrf.mxu0  ;;  %v5981_v25 = vadd.f32 %v17373_v0, %v17372_v41  ;;  %v5973_v19 = vadd.f32 %v17377_v15, %v17376_v35  ;;  %v17380_v41 = vld [vmem:[#allocation131_spill] sm:$0xff] }
 0x4c8   :  { %17371 = vst [vmem:[#allocation58_spill] sm:$0xff] %v14923_v63  ;;  %v6593_v50 = vpop.f32.mrf.mxu1  ;;  %v14933_v32 = vadd.f32 %v7016_v14, %v5960_v48  ;;  %v5984_v48 = vadd.f32 %v17380_v41, %v17379_v54  ;;  %v11638_v54 = vld [vmem:[%s16765_s0 + $0xbf0] ss:$20 sps:$4 sm:$0xff]  }
 0x4c9   :  { %v10372_v57 = vpop.f32.mrf.mxu0  ;;  %10467 = vmatmul.mubr.msk.bf16.gmra.mxu0 %vm4304_vm0, %v11632_v59  ;;  %v11633_v59 = vld [vmem:[%s16765_s0 + $0x13e0] ss:$20 sps:$4 sm:$0xff]  }
 0x4ca   :  { %17374 = vst [vmem:[#allocation115_spill] sm:$0xff] %v14933_v32  ;;  %v14935_v12 = vpop.f32.mrf.mxu1  ;;  %6787 = vmatmul.mubr.bf16.gmra.mxu1 %v11628_v29  ;;  %v14940_v1 = vadd.f32 %v10372_v57, %v5981_v25  ;;  %10470 = vmatprep.mubr.msk.bf16.mxu0 %vm4304_vm0, %v11636_v61  ;;  %v11637_v25 = vld [vmem:[%s16765_s0 + $0xbc8] ss:$20 sps:$4 sm:$0xff]  }
 0x4cb   :  { %17375 = vst [vmem:[#allocation56_spill] sm:$0xff] %v14935_v12  ;;  %6794 = vmatprep.mubr.bf16.mxu1 %v11635_v56  ;;  %v7029_v63 = vpop.f32.mrf.mxu0  ;;  %v17383_v56 = vld [vmem:[#allocation64_spill] sm:$0xff]  ;;  %v17384_v61 = vld [vmem:[#allocation127_spill] sm:$0xff] }
 0x4cc   :  { %17378 = vst [vmem:[#allocation111_spill] sm:$0xff] %v14940_v1  ;;  %v6598_v50 = vpop.f32.mrf.mxu1  ;;  %v14945_v14 = vadd.f32 %v7029_v63, %v5973_v19  ;;  %v5976_v57 = vadd.f32 %v17384_v61, %v17383_v56  ;;  %v17386_v19 = vld [vmem:[#allocation69_spill] sm:$0xff]  ;;  %v17390_v56 = vld [vmem:[#allocation67_spill] sm:$0xff]  ;;  %v17393_v1 = vld [vmem:[#allocation70_spill] sm:$0xff] }
 0x4cd   :  { %v10373_v29 = vpop.f32.mrf.mxu0  ;;  %v17387_v50 = vld [vmem:[#allocation137_spill] sm:$0xff]  ;;  %v17394_v32 = vld [vmem:[#allocation139_spill] sm:$0xff] }
 0x4ce   :  { %17381 = vst [vmem:[#allocation61_spill] sm:$0xff] %v14945_v14  ;;  %v14947_v0 = vpop.f32.mrf.mxu1  ;;  %v14957_v35 = vadd.f32 %v10373_v29, %v5984_v48  ;;  %v5997_v41 = vadd.f32 %v17387_v50, %v17386_v19  ;;  %v17391_v48 = vld [vmem:[#allocation133_spill] sm:$0xff]  ;;  %v6000_v19 = vadd.f32 %v17394_v32, %v17393_v1  ;;  %v17397_v50 = vld [vmem:[#allocation68_spill] sm:$0xff] }
 0x4cf   :  { %17382 = vst [vmem:[#allocation121_spill] sm:$0xff] %v14947_v0  ;;  %v7032_v15 = vpop.f32.mrf.mxu0  ;;  %v5989_v29 = vadd.f32 %v17391_v48, %v17390_v56  ;;  %v17398_v56 = vld [vmem:[#allocation135_spill] sm:$0xff]  ;;  %v17400_v32 = vld [vmem:[#allocation73_spill] sm:$0xff] }
 0x4d0   :  { %17385 = vst [vmem:[#allocation59_spill] sm:$0xff] %v14957_v35  ;;  %v6601_v63 = vpop.f32.mrf.mxu1  ;;  %v14964_v0 = vadd.f32 %v7032_v15, %v5976_v57 }
 0x4d1   :  { %v10376_v14 = vpop.f32.mrf.mxu0  ;;  %10471 = vmatmul.mubr.msk.bf16.gmra.mxu0 %vm4304_vm0, %v11637_v25  ;;  %v11639_v25 = vld [vmem:[%s16765_s0 + $0xc18] ss:$20 sps:$4 sm:$0xff]  }
 0x4d2   :  { %17388 = vst [vmem:[#allocation117_spill] sm:$0xff] %v14964_v0  ;;  %v14966_v12 = vpop.f32.mrf.mxu1  ;;  %6795 = vmatmul.mubr.bf16.gmra.mxu1 %v11633_v59  ;;  %v14971_v61 = vadd.f32 %v10376_v14, %v5997_v41  ;;  %10474 = vmatprep.mubr.msk.bf16.mxu0 %vm4304_vm0, %v11638_v54  ;;  %v5992_v14 = vadd.f32 %v17398_v56, %v17397_v50  ;;  %v11640_v54 = vld [vmem:[%s16765_s0 + $0xc40] ss:$20 sps:$4 sm:$0xff]   ;;  %v17405_v50 = vld [vmem:[#allocation141_spill] sm:$0xff] }
 0x4d3   :  { %17389 = vst [vmem:[#allocation62_spill] sm:$0xff] %v14966_v12  ;;  %v7045_v35 = vpop.f32.mrf.mxu0 }
 0x4d4   :  { %17392 = vst [vmem:[#allocation123_spill] sm:$0xff] %v14971_v61  ;;  %v6606_v63 = vpop.f32.mrf.mxu1  ;;  %v14976_v57 = vadd.f32 %v7045_v35, %v5989_v29  ;;  %v17401_v35 = vld [vmem:[#allocation145_spill] sm:$0xff]  ;;  %v17408_v61 = vld [vmem:[#allocation147_spill] sm:$0xff] }
 0x4d5   :  { %v10377_v59 = vpop.f32.mrf.mxu0  ;;  %v6013_v29 = vadd.f32 %v17401_v35, %v17400_v32  ;;  %v17411_v35 = vld [vmem:[#allocation72_spill] sm:$0xff] }
 0x4d6   :  { %17395 = vst [vmem:[#allocation60_spill] sm:$0xff] %v14976_v57  ;;  %v14978_v15 = vpop.f32.mrf.mxu1  ;;  %v14985_v41 = vadd.f32 %v10377_v59, %v6000_v19  ;;  %v17404_v57 = vld [vmem:[#allocation71_spill] sm:$0xff] }
 0x4d7   :  { %17396 = vst [vmem:[#allocation119_spill] sm:$0xff] %v14978_v15  ;;  %v7048_v1 = vpop.f32.mrf.mxu0  ;;  %v6005_v19 = vadd.f32 %v17405_v50, %v17404_v57  ;;  %v17412_v57 = vld [vmem:[#allocation143_spill] sm:$0xff] }
 0x4d8   :  { %17399 = vst [vmem:[#allocation65_spill] sm:$0xff] %v14985_v41  ;;  %v6609_v48 = vpop.f32.mrf.mxu1  ;;  %v14992_v63 = vadd.f32 %v7048_v1, %v5992_v14  ;;  %v17407_v41 = vld [vmem:[#allocation74_spill] sm:$0xff] }
 0x4d9   :  { %v10380_v12 = vpop.f32.mrf.mxu0  ;;  %10475 = vmatmul.mubr.msk.bf16.gmra.mxu0 %vm4304_vm0, %v11639_v25  ;;  %v6016_v0 = vadd.f32 %v17408_v61, %v17407_v41  ;;  %v11641_v25 = vld [vmem:[%s16765_s0 + $0xc68] ss:$20 sps:$4 sm:$0xff]  }
 0x4da   :  { %17402 = vst [vmem:[#allocation129_spill] sm:$0xff] %v14992_v63  ;;  %v14994_v15 = vpop.f32.mrf.mxu1  ;;  %v14999_v59 = vadd.f32 %v10380_v12, %v6013_v29  ;;  %10478 = vmatprep.mubr.msk.bf16.mxu0 %vm4304_vm0, %v11640_v54  ;;  %v6008_v12 = vadd.f32 %v17412_v57, %v17411_v35  ;;  %v11642_v54 = vld [vmem:[%s16765_s0 + $0xc90] ss:$20 sps:$4 sm:$0xff]   ;;  %v17414_v41 = vld [vmem:[#allocation77_spill] sm:$0xff] }
 0x4db   :  { %17403 = vst [vmem:[#allocation63_spill] sm:$0xff] %v14994_v15  ;;  %v7061_v48 = vpop.f32.mrf.mxu0  ;;  %v17419_v35 = vld [vmem:[#allocation149_spill] sm:$0xff] }
 0x4dc   :  { %17406 = vst [vmem:[#allocation125_spill] sm:$0xff] %v14999_v59  ;;  %v6614_v56 = vpop.f32.mrf.mxu1  ;;  %v15004_v32 = vadd.f32 %v7061_v48, %v6005_v19  ;;  %v17415_v19 = vld [vmem:[#allocation153_spill] sm:$0xff]  ;;  %v17422_v59 = vld [vmem:[#allocation155_spill] sm:$0xff] }
 0x4dd   :  { %v10381_v1 = vpop.f32.mrf.mxu0  ;;  %v6029_v56 = vadd.f32 %v17415_v19, %v17414_v41  ;;  %v17425_v19 = vld [vmem:[#allocation76_spill] sm:$0xff] }
 0x4de   :  { %17409 = vst [vmem:[#allocation66_spill] sm:$0xff] %v15004_v32  ;;  %v15006_v14 = vpop.f32.mrf.mxu1  ;;  %v15013_v29 = vadd.f32 %v10381_v1, %v6016_v0  ;;  %v17418_v32 = vld [vmem:[#allocation75_spill] sm:$0xff] }
 0x4df   :  { %17410 = vst [vmem:[#allocation131_spill] sm:$0xff] %v15006_v14  ;;  %v7064_v61 = vpop.f32.mrf.mxu0  ;;  %v6021_v0 = vadd.f32 %v17419_v35, %v17418_v32  ;;  %v17426_v32 = vld [vmem:[#allocation151_spill] sm:$0xff] }
 0x4e0   :  { %17413 = vst [vmem:[#allocation64_spill] sm:$0xff] %v15013_v29  ;;  %v6617_v50 = vpop.f32.mrf.mxu1  ;;  %v15020_v48 = vadd.f32 %v7064_v61, %v6008_v12  ;;  %v17421_v29 = vld [vmem:[#allocation79_spill] sm:$0xff] }
 0x4e1   :  { %v10384_v15 = vpop.f32.mrf.mxu0  ;;  %10479 = vmatmul.mubr.msk.bf16.gmra.mxu0 %vm4304_vm0, %v11641_v25  ;;  %v6032_v63 = vadd.f32 %v17422_v59, %v17421_v29  ;;  %v11643_v25 = vld [vmem:[%s16765_s0 + $0xcb8] ss:$20 sps:$4 sm:$0xff]   ;;  %v17428_v29 = vld [vmem:[#allocation84_spill] sm:$0xff] }
 0x4e2   :  { %17416 = vst [vmem:[#allocation127_spill] sm:$0xff] %v15020_v48  ;;  %v15022_v14 = vpop.f32.mrf.mxu1  ;;  %v15027_v1 = vadd.f32 %v10384_v15, %v6029_v56  ;;  %10482 = vmatprep.mubr.msk.bf16.mxu0 %vm4304_vm0, %v11642_v54  ;;  %v6024_v15 = vadd.f32 %v17426_v32, %v17425_v19  ;;  %v11644_v54 = vld [vmem:[%s16765_s0 + $0xce0] ss:$20 sps:$4 sm:$0xff]   ;;  %v17433_v19 = vld [vmem:[#allocation157_spill] sm:$0xff] }
 0x4e3   :  { %17417 = vst [vmem:[#allocation69_spill] sm:$0xff] %v15022_v14  ;;  %v7077_v50 = vpop.f32.mrf.mxu0 }
 0x4e4   :  { %17420 = vst [vmem:[#allocation137_spill] sm:$0xff] %v15027_v1  ;;  %v6622_v57 = vpop.f32.mrf.mxu1  ;;  %v15032_v41 = vadd.f32 %v7077_v50, %v6021_v0  ;;  %v17429_v0 = vld [vmem:[#allocation161_spill] sm:$0xff]  ;;  %v17435_v1 = vld [vmem:[#allocation163_spill] sm:$0xff] }
 0x4e5   :  { %v10385_v61 = vpop.f32.mrf.mxu0  ;;  %v6045_v57 = vadd.f32 %v17429_v0, %v17428_v29  ;;  %v17439_v0 = vld [vmem:[#allocation159_spill] sm:$0xff] }
 0x4e6   :  { %17423 = vst [vmem:[#allocation67_spill] sm:$0xff] %v15032_v41  ;;  %v15034_v12 = vpop.f32.mrf.mxu1  ;;  %v15041_v56 = vadd.f32 %v10385_v61, %v6032_v63  ;;  %v17432_v41 = vld [vmem:[#allocation81_spill] sm:$0xff] }
 0x4e7   :  { %17424 = vst [vmem:[#allocation133_spill] sm:$0xff] %v15034_v12  ;;  %v7080_v59 = vpop.f32.mrf.mxu0  ;;  %v6037_v63 = vadd.f32 %v17433_v19, %v17432_v41  ;;  %v17438_v41 = vld [vmem:[#allocation82_spill] sm:$0xff] }
 0x4e8   :  { %17427 = vst [vmem:[#allocation70_spill] sm:$0xff] %v15041_v56  ;;  %v6625_v35 = vpop.f32.mrf.mxu1  ;;  %v15048_v50 = vadd.f32 %v7080_v59, %v6024_v15  ;;  %v17434_v56 = vld [vmem:[#allocation86_spill] sm:$0xff] }
 0x4e9   :  { %v10388_v14 = vpop.f32.mrf.mxu0  ;;  %10483 = vmatmul.mubr.msk.bf16.gmra.mxu0 %vm4304_vm0, %v11643_v25  ;;  %v6048_v48 = vadd.f32 %v17435_v1, %v17434_v56  ;;  %v11646_v1 = vld [vmem:[%s16765_s0 + $0xd30] ss:$20 sps:$4 sm:$0xff]  }
 0x4ea   :  { %17430 = vst [vmem:[#allocation139_spill] sm:$0xff] %v15048_v50  ;;  %v15050_v12 = vpop.f32.mrf.mxu1  ;;  %v15055_v61 = vadd.f32 %v10388_v14, %v6045_v57  ;;  %10486 = vmatprep.mubr.msk.bf16.mxu0 %vm4304_vm0, %v11644_v54  ;;  %v11645_v14 = vld [vmem:[%s16765_s0 + $0xd08] ss:$20 sps:$4 sm:$0xff]   ;;  %v6040_v54 = vadd.f32 %v17439_v0, %v17438_v41 }
 0x4eb   :  { %17431 = vst [vmem:[#allocation68_spill] sm:$0xff] %v15050_v12  ;;  %v7093_v35 = vpop.f32.mrf.mxu0 }
 0x4ec   :  { %v6630_v32 = vpop.f32.mrf.mxu1  ;;  %v15062_v59 = vadd.f32 %v7093_v35, %v6037_v63  ;;  %v17442_v35 = vld [vmem:[#allocation169_spill] sm:$0xff] }
 0x4ed   :  { %v10389_v25 = vpop.f32.mrf.mxu0  ;;  %v17441_v32 = vld [vmem:[#allocation92_spill] sm:$0xff] }
 0x4ee   :  { %17436 = vst [vmem:[#allocation135_spill] sm:$0xff] %v15062_v59  ;;  %v15064_v29 = vpop.f32.mrf.mxu1  ;;  %v15073_v19 = vadd.f32 %v10389_v25, %v6048_v48  ;;  %v6061_v15 = vadd.f32 %v17442_v35, %v17441_v32  ;;  %v17444_v48 = vld [vmem:[#allocation88_spill] sm:$0xff]  ;;  %v17445_v25 = vld [vmem:[#allocation165_spill] sm:$0xff] }
 0x4ef   :  { %17437 = vst [vmem:[#allocation73_spill] sm:$0xff] %v15064_v29  ;;  %v7096_v63 = vpop.f32.mrf.mxu0  ;;  %v6053_v57 = vadd.f32 %v17445_v25, %v17444_v48  ;;  %v17447_v29 = vld [vmem:[#allocation94_spill] sm:$0xff]  ;;  %v17452_v25 = vld [vmem:[#allocation167_spill] sm:$0xff] }
 0x4f0   :  { %17440 = vst [vmem:[#allocation145_spill] sm:$0xff] %v15073_v19  ;;  %v6633_v56 = vpop.f32.mrf.mxu1  ;;  %v15082_v12 = vadd.f32 %v7096_v63, %v6040_v54  ;;  %v17448_v54 = vld [vmem:[#allocation171_spill] sm:$0xff] }
 0x4f1   :  { %v10392_v0 = vpop.f32.mrf.mxu0  ;;  %10487 = vmatmul.mubr.msk.bf16.gmra.mxu0 %vm4304_vm0, %v11645_v14  ;;  %v6064_v63 = vadd.f32 %v17448_v54, %v17447_v29  ;;  %v11649_v29 = vld [vmem:[%s16765_s0 + $0xd80] ss:$20 sps:$4 sm:$0xff]  }
 0x4f2   :  { %v15084_v41 = vpop.f32.mrf.mxu1  ;;  %v15091_v59 = vadd.f32 %v10392_v0, %v6061_v15  ;;  %10490 = vmatprep.mubr.msk.bf16.mxu0 %vm4304_vm0, %v11646_v1  ;;  %v11647_v15 = vld [vmem:[%s16765_s0 + $0xd58] ss:$20 sps:$4 sm:$0xff]   ;;  %v17451_v0 = vld [vmem:[#allocation90_spill] sm:$0xff]  ;;  %v17454_v54 = vld [vmem:[#allocation100_spill] sm:$0xff] }
 0x4f3   :  { %17443 = vst [vmem:[#allocation71_spill] sm:$0xff] %v15084_v41  ;;  %v7109_v35 = vpop.f32.mrf.mxu0  ;;  %v6056_v1 = vadd.f32 %v17452_v25, %v17451_v0  ;;  %v17455_v41 = vld [vmem:[#allocation177_spill] sm:$0xff] }
 0x4f4   :  { %17446 = vst [vmem:[#allocation141_spill] sm:$0xff] %v15091_v59  ;;  %v6638_v32 = vpop.f32.mrf.mxu1  ;;  %v15098_v19 = vadd.f32 %v7109_v35, %v6053_v57  ;;  %v17460_v59 = vld [vmem:[#allocation102_spill] sm:$0xff] }
 0x4f5   :  { %v10393_v48 = vpop.f32.mrf.mxu0 }
 0x4f6   :  { %17449 = vst [vmem:[#allocation74_spill] sm:$0xff] %v15098_v19  ;;  %v15100_v14 = vpop.f32.mrf.mxu1  ;;  %v15109_v56 = vadd.f32 %v10393_v48, %v6064_v63  ;;  %v17457_v63 = vld [vmem:[#allocation96_spill] sm:$0xff]  ;;  %v17458_v48 = vld [vmem:[#allocation173_spill] sm:$0xff] }
 0x4f7   :  { %17450 = vst [vmem:[#allocation147_spill] sm:$0xff] %v15100_v14  ;;  %v7112_v35 = vpop.f32.mrf.mxu0  ;;  %v6077_v14 = vadd.f32 %v17455_v41, %v17454_v54  ;;  %v6069_v32 = vadd.f32 %v17458_v48, %v17457_v63  ;;  %v17465_v48 = vld [vmem:[#allocation175_spill] sm:$0xff] }
 0x4f8   :  { %17453 = vst [vmem:[#allocation72_spill] sm:$0xff] %v15109_v56  ;;  %v6641_v57 = vpop.f32.mrf.mxu1  ;;  %v15118_v20 = vadd.f32 %v7112_v35, %v6056_v1  ;;  %v17461_v1 = vld [vmem:[#allocation179_spill] sm:$0xff] }
 0x4f9   :  { %v10396_v25 = vpop.f32.mrf.mxu0  ;;  %10491 = vmatmul.mubr.msk.bf16.gmra.mxu0 %vm4304_vm0, %v11647_v15  ;;  %v6080_v35 = vadd.f32 %v17461_v1, %v17460_v59  ;;  %v11651_v59 = vld [vmem:[%s16765_s0 + $0xdd0] ss:$20 sps:$4 sm:$0xff]  }
 0x4fa   :  { %v15120_v0 = vpop.f32.mrf.mxu1  ;;  %v15127_v19 = vadd.f32 %v10396_v25, %v6077_v14  ;;  %10494 = vmatprep.mubr.msk.bf16.mxu0 %vm4304_vm0, %v11649_v29  ;;  %v11650_v14 = vld [vmem:[%s16765_s0 + $0xda8] ss:$20 sps:$4 sm:$0xff]   ;;  %v17464_v25 = vld [vmem:[#allocation98_spill] sm:$0xff] }
 0x4fb   :  { %17456 = vst [vmem:[#allocation143_spill] sm:$0xff] %v15120_v0  ;;  %v7125_v54 = vpop.f32.mrf.mxu0  ;;  %v6072_v29 = vadd.f32 %v17465_v48, %v17464_v25  ;;  %v17466_v0 = vld [vmem:[#allocation108_spill] sm:$0xff] }
 0x4fc   :  { %17459 = vst [vmem:[#allocation77_spill] sm:$0xff] %v15127_v19  ;;  %v6646_v41 = vpop.f32.mrf.mxu1  ;;  %v15134_v56 = vadd.f32 %v7125_v54, %v6069_v32  ;;  %v11681_v32 = vld [vmem:[%s16766_s4] sm:$0xff]   ;;  %s11731_s4 = smov 96  }
 0x4fd   :  { %v10397_v63 = vpop.f32.mrf.mxu0  ;;  %10592 = vmatprep.subr.bf16.mxu1 %v11681_v32  ;;  %v17469_v41 = vld [vmem:[#allocation104_spill] sm:$0xff] }
 0x4fe   :  { %17462 = vst [vmem:[#allocation153_spill] sm:$0xff] %v15134_v56  ;;  %v15136_v15 = vpop.f32.mrf.mxu1  ;;  %v15145_v57 = vadd.f32 %v10397_v63, %v6080_v35  ;;  %10593 = vmatpush3.bf16.msra.mxu1 %v11681_v32  ;;  %v17470_v56 = vld [vmem:[#allocation181_spill] sm:$0xff] }
 0x4ff   :  { %17463 = vst [vmem:[#allocation75_spill] sm:$0xff] %v15136_v15  ;;  %v7128_v1 = vpop.f32.mrf.mxu0  ;;  %v17467_v15 = vld [vmem:[#allocation185_spill] sm:$0xff]  ;;  %v6085_v52 = vadd.f32 %v17470_v56, %v17469_v41  ;;  %v17476_v41 = vld [vmem:[#allocation106_spill] sm:$0xff] }
 0x500   :  { %v6649_v54 = vpop.f32.mrf.mxu1  ;;  %v6093_v19 = vadd.f32 %v17467_v15, %v17466_v0  ;;  %v15157_v48 = vadd.f32 %v7128_v1, %v6072_v29  ;;  %v17472_v29 = vld [vmem:[#allocation110_spill] sm:$0xff]  ;;  %v17473_v1 = vld [vmem:[#allocation187_spill] sm:$0xff] }
 0x501   :  { %v10400_v63 = vpop.f32.mrf.mxu0  ;;  %10495 = vmatmul.mubr.msk.bf16.gmra.mxu0 %vm4304_vm0, %v11650_v14  ;;  %v6096_v25 = vadd.f32 %v17473_v1, %v17472_v29  ;;  %v17479_v1 = vld [vmem:[#allocation116_spill] sm:$0xff] }
 0x502   :  { %v15159_v35 = vpop.f32.mrf.mxu1  ;;  %v15166_v60 = vadd.f32 %v10400_v63, %v6093_v19  ;;  %10498 = vmatprep.mubr.msk.bf16.mxu0 %vm4304_vm0, %v11651_v59  ;;  %v11652_v19 = vld [vmem:[%s16765_s0 + $0xdf8] ss:$20 sps:$4 sm:$0xff]  }
 0x503   :  { %17468 = vst [vmem:[#allocation149_spill] sm:$0xff] %v15159_v35  ;;  %v7141_v15 = vpop.f32.mrf.mxu0  ;;  %v17477_v63 = vld [vmem:[#allocation183_spill] sm:$0xff]  ;;  %v17480_v35 = vld [vmem:[#allocation193_spill] sm:$0xff] }
 0x504   :  { %17471 = vst [vmem:[#allocation79_spill] sm:$0xff] %v15166_v60  ;;  %v6654_v0 = vpop.f32.mrf.mxu1  ;;  %v15173_v14 = vadd.f32 %v7141_v15, %v6085_v52  ;;  %v6088_v59 = vadd.f32 %v17477_v63, %v17476_v41  ;;  %v11653_v52 = vld [vmem:[%s16765_s0 + $0xe20] ss:$20 sps:$4 sm:$0xff]  }
 0x505   :  { %v10401_v56 = vpop.f32.mrf.mxu0  ;;  %v17485_v60 = vld [vmem:[#allocation118_spill] sm:$0xff] }
 0x506   :  { %17474 = vst [vmem:[#allocation155_spill] sm:$0xff] %v15173_v14  ;;  %v15175_v32 = vpop.f32.mrf.mxu1  ;;  %v15184_v54 = vadd.f32 %v10401_v56, %v6096_v25  ;;  %v17482_v25 = vld [vmem:[#allocation112_spill] sm:$0xff]  ;;  %v17483_v56 = vld [vmem:[#allocation189_spill] sm:$0xff] }
 0x507   :  { %17475 = vst [vmem:[#allocation76_spill] sm:$0xff] %v15175_v32  ;;  %v7144_v29 = vpop.f32.mrf.mxu0  ;;  %v6109_v32 = vadd.f32 %v17480_v35, %v17479_v1  ;;  %v6101_v0 = vadd.f32 %v17483_v56, %v17482_v25  ;;  %v17490_v56 = vld [vmem:[#allocation191_spill] sm:$0xff] }
 0x508   :  { %17478 = vst [vmem:[#allocation151_spill] sm:$0xff] %v15184_v54  ;;  %v6657_v15 = vpop.f32.mrf.mxu1  ;;  %v15193_v39 = vadd.f32 %v7144_v29, %v6088_v59  ;;  %v17486_v59 = vld [vmem:[#allocation195_spill] sm:$0xff] }
 0x509   :  { %v10404_v63 = vpop.f32.mrf.mxu0  ;;  %10499 = vmatmul.mubr.msk.bf16.gmra.mxu0 %vm4304_vm0, %v11652_v19  ;;  %v6112_v29 = vadd.f32 %v17486_v59, %v17485_v60  ;;  %v11655_v60 = vld [vmem:[%s16765_s0 + $0xe70] ss:$20 sps:$4 sm:$0xff]  }
 0x50a   :  { %v15195_v41 = vpop.f32.mrf.mxu1  ;;  %v15202_v14 = vadd.f32 %v10404_v63, %v6109_v32  ;;  %10502 = vmatprep.mubr.msk.bf16.mxu0 %vm4304_vm0, %v11653_v52  ;;  %v11654_v32 = vld [vmem:[%s16765_s0 + $0xe48] ss:$20 sps:$4 sm:$0xff]   ;;  %v17489_v63 = vld [vmem:[#allocation114_spill] sm:$0xff]  ;;  %v17492_v59 = vld [vmem:[#allocation124_spill] sm:$0xff] }
 0x50b   :  { %17481 = vst [vmem:[#allocation84_spill] sm:$0xff] %v15195_v41  ;;  %v7157_v1 = vpop.f32.mrf.mxu0  ;;  %v6104_v52 = vadd.f32 %v17490_v56, %v17489_v63  ;;  %v17493_v41 = vld [vmem:[#allocation201_spill] sm:$0xff] }
 0x50c   :  { %17484 = vst [vmem:[#allocation161_spill] sm:$0xff] %v15202_v14  ;;  %v6662_v35 = vpop.f32.mrf.mxu1  ;;  %v15209_v54 = vadd.f32 %v7157_v1, %v6101_v0  ;;  %v17498_v14 = vld [vmem:[#allocation126_spill] sm:$0xff] }
 0x50d   :  { %v10405_v25 = vpop.f32.mrf.mxu0 }
 0x50e   :  { %17487 = vst [vmem:[#allocation81_spill] sm:$0xff] %v15209_v54  ;;  %v15211_v19 = vpop.f32.mrf.mxu1  ;;  %v15220_v15 = vadd.f32 %v10405_v25, %v6112_v29  ;;  %v17495_v29 = vld [vmem:[#allocation120_spill] sm:$0xff]  ;;  %v17496_v25 = vld [vmem:[#allocation197_spill] sm:$0xff] }
 0x50f   :  { %17488 = vst [vmem:[#allocation157_spill] sm:$0xff] %v15211_v19  ;;  %v7160_v1 = vpop.f32.mrf.mxu0  ;;  %v6125_v19 = vadd.f32 %v17493_v41, %v17492_v59  ;;  %v6117_v35 = vadd.f32 %v17496_v25, %v17495_v29  ;;  %v17503_v25 = vld [vmem:[#allocation199_spill] sm:$0xff] }
 0x510   :  { %17491 = vst [vmem:[#allocation86_spill] sm:$0xff] %v15220_v15  ;;  %v6665_v0 = vpop.f32.mrf.mxu1  ;;  %v15229_v34 = vadd.f32 %v7160_v1, %v6104_v52  ;;  %v17499_v52 = vld [vmem:[#allocation203_spill] sm:$0xff] }
 0x511   :  { %v10408_v56 = vpop.f32.mrf.mxu0  ;;  %10503 = vmatmul.mubr.msk.bf16.gmra.mxu0 %vm4304_vm0, %v11654_v32  ;;  %v6128_v1 = vadd.f32 %v17499_v52, %v17498_v14  ;;  %v11657_v14 = vld [vmem:[%s16765_s0 + $0xec0] ss:$20 sps:$4 sm:$0xff]  }
 0x512   :  { %v15231_v63 = vpop.f32.mrf.mxu1  ;;  %v15238_v54 = vadd.f32 %v10408_v56, %v6125_v19  ;;  %10506 = vmatprep.mubr.msk.bf16.mxu0 %vm4304_vm0, %v11655_v60  ;;  %v11656_v19 = vld [vmem:[%s16765_s0 + $0xe98] ss:$20 sps:$4 sm:$0xff]   ;;  %v17502_v56 = vld [vmem:[#allocation122_spill] sm:$0xff]  ;;  %v17505_v52 = vld [vmem:[#allocation132_spill] sm:$0xff] }
 0x513   :  { %17494 = vst [vmem:[#allocation163_spill] sm:$0xff] %v15231_v63  ;;  %v7173_v59 = vpop.f32.mrf.mxu0  ;;  %v6120_v60 = vadd.f32 %v17503_v25, %v17502_v56  ;;  %v17506_v63 = vld [vmem:[#allocation209_spill] sm:$0xff] }
 0x514   :  { %17497 = vst [vmem:[#allocation82_spill] sm:$0xff] %v15238_v54  ;;  %v6670_v41 = vpop.f32.mrf.mxu1  ;;  %v15245_v15 = vadd.f32 %v7173_v59, %v6117_v35  ;;  %v17512_v54 = vld [vmem:[#allocation134_spill] sm:$0xff] }
 0x515   :  { %v10409_v29 = vpop.f32.mrf.mxu0 }
 0x516   :  { %17500 = vst [vmem:[#allocation159_spill] sm:$0xff] %v15245_v15  ;;  %v15247_v32 = vpop.f32.mrf.mxu1  ;;  %v15256_v0 = vadd.f32 %v10409_v29, %v6128_v1  ;;  %v17509_v1 = vld [vmem:[#allocation128_spill] sm:$0xff]  ;;  %v17510_v29 = vld [vmem:[#allocation205_spill] sm:$0xff] }
 0x517   :  { %17501 = vst [vmem:[#allocation92_spill] sm:$0xff] %v15247_v32  ;;  %v7176_v59 = vpop.f32.mrf.mxu0  ;;  %v6141_v32 = vadd.f32 %v17506_v63, %v17505_v52  ;;  %v6133_v41 = vadd.f32 %v17510_v29, %v17509_v1  ;;  %v17517_v29 = vld [vmem:[#allocation207_spill] sm:$0xff] }
 0x518   :  { %17504 = vst [vmem:[#allocation169_spill] sm:$0xff] %v15256_v0  ;;  %v6673_v35 = vpop.f32.mrf.mxu1  ;;  %v15265_v49 = vadd.f32 %v7176_v59, %v6120_v60  ;;  %v17513_v60 = vld [vmem:[#allocation211_spill] sm:$0xff] }
 0x519   :  { %v10412_v25 = vpop.f32.mrf.mxu0  ;;  %10507 = vmatmul.mubr.msk.bf16.gmra.mxu0 %vm4304_vm0, %v11656_v19  ;;  %v6144_v59 = vadd.f32 %v17513_v60, %v17512_v54  ;;  %v11659_v54 = vld [vmem:[%s16765_s0 + $0xf10] ss:$20 sps:$4 sm:$0xff]  }
 0x51a   :  { %17507 = vst [vmem:[#allocation88_spill] sm:$0xff] %v15265_v49  ;;  %v15267_v56 = vpop.f32.mrf.mxu1  ;;  %v15274_v15 = vadd.f32 %v10412_v25, %v6141_v32  ;;  %10510 = vmatprep.mubr.msk.bf16.mxu0 %vm4304_vm0, %v11657_v14  ;;  %v11658_v32 = vld [vmem:[%s16765_s0 + $0xee8] ss:$20 sps:$4 sm:$0xff]   ;;  %v17516_v25 = vld [vmem:[#allocation130_spill] sm:$0xff]  ;;  %v17519_v60 = vld [vmem:[#allocation140_spill] sm:$0xff] }
 0x51b   :  { %17508 = vst [vmem:[#allocation165_spill] sm:$0xff] %v15267_v56  ;;  %v7189_v52 = vpop.f32.mrf.mxu0  ;;  %v6136_v14 = vadd.f32 %v17517_v29, %v17516_v25  ;;  %v17520_v56 = vld [vmem:[#allocation217_spill] sm:$0xff] }
 0x51c   :  { %17511 = vst [vmem:[#allocation94_spill] sm:$0xff] %v15274_v15  ;;  %v6678_v63 = vpop.f32.mrf.mxu1  ;;  %v15281_v0 = vadd.f32 %v7189_v52, %v6133_v41  ;;  %v17526_v15 = vld [vmem:[#allocation142_spill] sm:$0xff]  ;;  %v17730_v49 = vld [vmem:[#allocation333_spill] sm:$0xff] }
 0x51d   :  { %v10413_v1 = vpop.f32.mrf.mxu0 }
 0x51e   :  { %17514 = vst [vmem:[#allocation171_spill] sm:$0xff] %v15281_v0  ;;  %v15283_v19 = vpop.f32.mrf.mxu1  ;;  %v15292_v35 = vadd.f32 %v10413_v1, %v6144_v59  ;;  %v17523_v59 = vld [vmem:[#allocation136_spill] sm:$0xff]  ;;  %v17524_v1 = vld [vmem:[#allocation213_spill] sm:$0xff] }
 0x51f   :  { %17515 = vst [vmem:[#allocation90_spill] sm:$0xff] %v15283_v19  ;;  %v7192_v52 = vpop.f32.mrf.mxu0  ;;  %v6157_v19 = vadd.f32 %v17520_v56, %v17519_v60  ;;  %v6149_v63 = vadd.f32 %v17524_v1, %v17523_v59  ;;  %v17531_v1 = vld [vmem:[#allocation215_spill] sm:$0xff] }
 0x520   :  { %17518 = vst [vmem:[#allocation167_spill] sm:$0xff] %v15292_v35  ;;  %v6681_v41 = vpop.f32.mrf.mxu1  ;;  %v15301_v7 = vadd.f32 %v7192_v52, %v6136_v14  ;;  %v17527_v14 = vld [vmem:[#allocation219_spill] sm:$0xff] }
 0x521   :  { %v10416_v29 = vpop.f32.mrf.mxu0  ;;  %10511 = vmatmul.mubr.msk.bf16.gmra.mxu0 %vm4304_vm0, %v11658_v32  ;;  %v6160_v52 = vadd.f32 %v17527_v14, %v17526_v15  ;;  %v11661_v15 = vld [vmem:[%s16765_s0 + $0xf60] ss:$20 sps:$4 sm:$0xff]  }
 0x522   :  { %17521 = vst [vmem:[#allocation100_spill] sm:$0xff] %v15301_v7  ;;  %v15303_v25 = vpop.f32.mrf.mxu1  ;;  %v15310_v0 = vadd.f32 %v10416_v29, %v6157_v19  ;;  %10514 = vmatprep.mubr.msk.bf16.mxu0 %vm4304_vm0, %v11659_v54  ;;  %v11660_v19 = vld [vmem:[%s16765_s0 + $0xf38] ss:$20 sps:$4 sm:$0xff]   ;;  %v17530_v29 = vld [vmem:[#allocation138_spill] sm:$0xff]  ;;  %v17533_v14 = vld [vmem:[#allocation148_spill] sm:$0xff] }
 0x523   :  { %17522 = vst [vmem:[#allocation177_spill] sm:$0xff] %v15303_v25  ;;  %v7205_v60 = vpop.f32.mrf.mxu0  ;;  %v6152_v54 = vadd.f32 %v17531_v1, %v17530_v29  ;;  %v17534_v25 = vld [vmem:[#allocation225_spill] sm:$0xff]  ;;  %v17717_v7 = vld [vmem:[#allocation248_spill] sm:$0xff] }
 0x524   :  { %17525 = vst [vmem:[#allocation96_spill] sm:$0xff] %v15310_v0  ;;  %v6686_v56 = vpop.f32.mrf.mxu1  ;;  %v15317_v35 = vadd.f32 %v7205_v60, %v6149_v63  ;;  %v17540_v0 = vld [vmem:[#allocation150_spill] sm:$0xff] }
 0x525   :  { %v10417_v59 = vpop.f32.mrf.mxu0 }
 0x526   :  { %17528 = vst [vmem:[#allocation173_spill] sm:$0xff] %v15317_v35  ;;  %v15319_v32 = vpop.f32.mrf.mxu1  ;;  %v15328_v41 = vadd.f32 %v10417_v59, %v6160_v52  ;;  %v17537_v52 = vld [vmem:[#allocation144_spill] sm:$0xff]  ;;  %v17538_v59 = vld [vmem:[#allocation221_spill] sm:$0xff] }
 0x527   :  { %17529 = vst [vmem:[#allocation102_spill] sm:$0xff] %v15319_v32  ;;  %v7208_v60 = vpop.f32.mrf.mxu0  ;;  %v6173_v32 = vadd.f32 %v17534_v25, %v17533_v14  ;;  %v6165_v56 = vadd.f32 %v17538_v59, %v17537_v52  ;;  %v17545_v59 = vld [vmem:[#allocation223_spill] sm:$0xff] }
 0x528   :  { %17532 = vst [vmem:[#allocation179_spill] sm:$0xff] %v15328_v41  ;;  %v6689_v63 = vpop.f32.mrf.mxu1  ;;  %v15337_v58 = vadd.f32 %v7208_v60, %v6152_v54  ;;  %v17541_v54 = vld [vmem:[#allocation227_spill] sm:$0xff] }
 0x529   :  { %v10420_v1 = vpop.f32.mrf.mxu0  ;;  %10515 = vmatmul.mubr.msk.bf16.gmra.mxu0 %vm4304_vm0, %v11660_v19  ;;  %v6176_v60 = vadd.f32 %v17541_v54, %v17540_v0  ;;  %v11663_v0 = vld [vmem:[%s16765_s0 + $0xfb0] ss:$20 sps:$4 sm:$0xff]  }
 0x52a   :  { %17535 = vst [vmem:[#allocation98_spill] sm:$0xff] %v15337_v58  ;;  %v15339_v29 = vpop.f32.mrf.mxu1  ;;  %v15346_v35 = vadd.f32 %v10420_v1, %v6173_v32  ;;  %10518 = vmatprep.mubr.msk.bf16.mxu0 %vm4304_vm0, %v11661_v15  ;;  %v11662_v32 = vld [vmem:[%s16765_s0 + $0xf88] ss:$20 sps:$4 sm:$0xff]   ;;  %v17544_v1 = vld [vmem:[#allocation146_spill] sm:$0xff]  ;;  %v17547_v54 = vld [vmem:[#allocation156_spill] sm:$0xff] }
 0x52b   :  { %17536 = vst [vmem:[#allocation175_spill] sm:$0xff] %v15339_v29  ;;  %v7221_v14 = vpop.f32.mrf.mxu0  ;;  %v6168_v15 = vadd.f32 %v17545_v59, %v17544_v1  ;;  %v17548_v29 = vld [vmem:[#allocation233_spill] sm:$0xff]  ;;  %v17707_v58 = vld [vmem:[#allocation240_spill] sm:$0xff] }
 0x52c   :  { %17539 = vst [vmem:[#allocation108_spill] sm:$0xff] %v15346_v35  ;;  %v6694_v25 = vpop.f32.mrf.mxu1  ;;  %v15353_v41 = vadd.f32 %v7221_v14, %v6165_v56  ;;  %v17554_v35 = vld [vmem:[#allocation158_spill] sm:$0xff] }
 0x52d   :  { %v10421_v52 = vpop.f32.mrf.mxu0 }
 0x52e   :  { %17542 = vst [vmem:[#allocation185_spill] sm:$0xff] %v15353_v41  ;;  %v15355_v19 = vpop.f32.mrf.mxu1  ;;  %v15364_v63 = vadd.f32 %v10421_v52, %v6176_v60  ;;  %v17551_v60 = vld [vmem:[#allocation152_spill] sm:$0xff]  ;;  %v17552_v52 = vld [vmem:[#allocation229_spill] sm:$0xff] }
 0x52f   :  { %17543 = vst [vmem:[#allocation104_spill] sm:$0xff] %v15355_v19  ;;  %v7224_v14 = vpop.f32.mrf.mxu0  ;;  %v6189_v19 = vadd.f32 %v17548_v29, %v17547_v54  ;;  %v6181_v25 = vadd.f32 %v17552_v52, %v17551_v60  ;;  %v17559_v52 = vld [vmem:[#allocation231_spill] sm:$0xff] }
 0x530   :  { %17546 = vst [vmem:[#allocation181_spill] sm:$0xff] %v15364_v63  ;;  %v6697_v56 = vpop.f32.mrf.mxu1  ;;  %v15373_v23 = vadd.f32 %v7224_v14, %v6168_v15  ;;  %v17555_v15 = vld [vmem:[#allocation235_spill] sm:$0xff]  ;;  %v17562_v63 = vld [vmem:[#allocation241_spill] sm:$0xff] }
 0x531   :  { %v10424_v59 = vpop.f32.mrf.mxu0  ;;  %10519 = vmatmul.mubr.msk.bf16.gmra.mxu0 %vm4304_vm0, %v11662_v32  ;;  %v6192_v14 = vadd.f32 %v17555_v15, %v17554_v35  ;;  %v11665_v35 = vld [vmem:[%s16765_s0 + $0x1000] ss:$20 sps:$4 sm:$0xff]  }
 0x532   :  { %17549 = vst [vmem:[#allocation110_spill] sm:$0xff] %v15373_v23  ;;  %v15375_v1 = vpop.f32.mrf.mxu1  ;;  %v15382_v41 = vadd.f32 %v10424_v59, %v6189_v19  ;;  %10522 = vmatprep.mubr.msk.bf16.mxu0 %vm4304_vm0, %v11663_v0  ;;  %v11664_v19 = vld [vmem:[%s16765_s0 + $0xfd8] ss:$20 sps:$4 sm:$0xff]   ;;  %v17558_v59 = vld [vmem:[#allocation154_spill] sm:$0xff]  ;;  %v17561_v15 = vld [vmem:[#allocation164_spill] sm:$0xff] }
 0x533   :  { %17550 = vst [vmem:[#allocation187_spill] sm:$0xff] %v15375_v1  ;;  %v7237_v54 = vpop.f32.mrf.mxu0  ;;  %v6184_v0 = vadd.f32 %v17559_v52, %v17558_v59 }
 0x534   :  { %17553 = vst [vmem:[#allocation106_spill] sm:$0xff] %v15382_v41  ;;  %v6702_v29 = vpop.f32.mrf.mxu1  ;;  %v15389_v62 = vadd.f32 %v7237_v54, %v6181_v25  ;;  %v6205_v41 = vadd.f32 %v17562_v63, %v17561_v15 }
 0x535   :  { %v10425_v60 = vpop.f32.mrf.mxu0 }
 0x536   :  { %17556 = vst [vmem:[#allocation183_spill] sm:$0xff] %v15389_v62  ;;  %v15391_v32 = vpop.f32.mrf.mxu1  ;;  %v15400_v56 = vadd.f32 %v10425_v60, %v6192_v14  ;;  %v17565_v14 = vld [vmem:[#allocation160_spill] sm:$0xff]  ;;  %v17566_v60 = vld [vmem:[#allocation237_spill] sm:$0xff] }
 0x537   :  { %17557 = vst [vmem:[#allocation116_spill] sm:$0xff] %v15391_v32  ;;  %v7240_v54 = vpop.f32.mrf.mxu0  ;;  %v6197_v29 = vadd.f32 %v17566_v60, %v17565_v14  ;;  %v17573_v60 = vld [vmem:[#allocation239_spill] sm:$0xff]  ;;  %v17699_v32 = vld [vmem:[#allocation238_spill] sm:$0xff] }
 0x538   :  { %17560 = vst [vmem:[#allocation193_spill] sm:$0xff] %v15400_v56  ;;  %v6705_v25 = vpop.f32.mrf.mxu1  ;;  %v15409_v23 = vadd.f32 %v7240_v54, %v6184_v0  ;;  %v17569_v0 = vld [vmem:[#allocation243_spill] sm:$0xff]  ;;  %v17576_v56 = vld [vmem:[#allocation249_spill] sm:$0xff]  ;;  %v6352_v1 = vadd.f32 %v17700_v18, %v17699_v32  ;;  %v17704_v32 = vld [vmem:[#allocation244_spill] sm:$0xff] }
 0x539   :  { %v10428_v52 = vpop.f32.mrf.mxu0  ;;  %10523 = vmatmul.mubr.msk.bf16.gmra.mxu0 %vm4304_vm0, %v11664_v19  ;;  %v6208_v54 = vadd.f32 %v17569_v0, %v17568_v36  ;;  %v11667_v36 = vld [vmem:[%s16765_s0 + $0x1050] ss:$20 sps:$4 sm:$0xff]  }
 0x53a   :  { %17563 = vst [vmem:[#allocation112_spill] sm:$0xff] %v15409_v23  ;;  %v15411_v59 = vpop.f32.mrf.mxu1  ;;  %v15418_v62 = vadd.f32 %v10428_v52, %v6205_v41  ;;  %10526 = vmatprep.mubr.msk.bf16.mxu0 %vm4304_vm0, %v11665_v35  ;;  %v11666_v41 = vld [vmem:[%s16765_s0 + $0x1028] ss:$20 sps:$4 sm:$0xff]   ;;  %v17572_v52 = vld [vmem:[#allocation162_spill] sm:$0xff]  ;;  %v17575_v0 = vld [vmem:[#allocation172_spill] sm:$0xff] }
 0x53b   :  { %17564 = vst [vmem:[#allocation189_spill] sm:$0xff] %v15411_v59  ;;  %v7253_v15 = vpop.f32.mrf.mxu0  ;;  %v6200_v35 = vadd.f32 %v17573_v60, %v17572_v52  ;;  %v17680_v23 = vld [vmem:[#allocation299_spill] sm:$0xff]  ;;  %v17689_v59 = vld [vmem:[#allocation230_spill] sm:$0xff] }
 0x53c   :  { %17567 = vst [vmem:[#allocation118_spill] sm:$0xff] %v15418_v62  ;;  %v6710_v63 = vpop.f32.mrf.mxu1  ;;  %v15425_v47 = vadd.f32 %v7253_v15, %v6197_v29  ;;  %v6221_v62 = vadd.f32 %v17576_v56, %v17575_v0 }
 0x53d   :  { %v10429_v14 = vpop.f32.mrf.mxu0 }
 0x53e   :  { %17570 = vst [vmem:[#allocation195_spill] sm:$0xff] %v15425_v47  ;;  %v15427_v19 = vpop.f32.mrf.mxu1  ;;  %v15436_v25 = vadd.f32 %v10429_v14, %v6208_v54  ;;  %v17579_v54 = vld [vmem:[#allocation168_spill] sm:$0xff]  ;;  %v17580_v14 = vld [vmem:[#allocation245_spill] sm:$0xff] }
 0x53f   :  { %17571 = vst [vmem:[#allocation114_spill] sm:$0xff] %v15427_v19  ;;  %v7256_v15 = vpop.f32.mrf.mxu0  ;;  %v6213_v63 = vadd.f32 %v17580_v14, %v17579_v54  ;;  %v17587_v14 = vld [vmem:[#allocation247_spill] sm:$0xff] }
 0x540   :  { %17574 = vst [vmem:[#allocation191_spill] sm:$0xff] %v15436_v25  ;;  %v6713_v29 = vpop.f32.mrf.mxu1  ;;  %v15445_v19 = vadd.f32 %v7256_v15, %v6200_v35  ;;  %v17583_v35 = vld [vmem:[#allocation251_spill] sm:$0xff]  ;;  %v17591_v25 = vld [vmem:[#allocation257_spill] sm:$0xff] }
 0x541   :  { %v10432_v60 = vpop.f32.mrf.mxu0  ;;  %10527 = vmatmul.mubr.msk.bf16.gmra.mxu0 %vm4304_vm0, %v11666_v41  ;;  %v6224_v15 = vadd.f32 %v17583_v35, %v17582_v45  ;;  %v11669_v45 = vld [vmem:[%s16765_s0 + $0x10a0] ss:$20 sps:$4 sm:$0xff]  }
 0x542   :  { %17577 = vst [vmem:[#allocation124_spill] sm:$0xff] %v15445_v19  ;;  %v15447_v52 = vpop.f32.mrf.mxu1  ;;  %v15454_v47 = vadd.f32 %v10432_v60, %v6221_v62  ;;  %10530 = vmatprep.mubr.msk.bf16.mxu0 %vm4304_vm0, %v11667_v36  ;;  %v11668_v62 = vld [vmem:[%s16765_s0 + $0x1078] ss:$20 sps:$4 sm:$0xff]   ;;  %v17586_v60 = vld [vmem:[#allocation170_spill] sm:$0xff]  ;;  %v17590_v35 = vld [vmem:[#allocation180_spill] sm:$0xff] }
 0x543   :  { %17578 = vst [vmem:[#allocation201_spill] sm:$0xff] %v15447_v52  ;;  %v7269_v0 = vpop.f32.mrf.mxu0  ;;  %v6216_v36 = vadd.f32 %v17587_v14, %v17586_v60  ;;  %v6336_v52 = vadd.f32 %v17690_v43, %v17689_v59  ;;  %v17694_v59 = vld [vmem:[#allocation236_spill] sm:$0xff] }
 0x544   :  { %17581 = vst [vmem:[#allocation120_spill] sm:$0xff] %v15454_v47  ;;  %v6718_v56 = vpop.f32.mrf.mxu1  ;;  %v15461_v31 = vadd.f32 %v7269_v0, %v6213_v63  ;;  %v6237_v47 = vadd.f32 %v17591_v25, %v17590_v35 }
 0x545   :  { %v10433_v54 = vpop.f32.mrf.mxu0 }
 0x546   :  { %17584 = vst [vmem:[#allocation197_spill] sm:$0xff] %v15461_v31  ;;  %v15463_v41 = vpop.f32.mrf.mxu1  ;;  %v15472_v19 = vadd.f32 %v10433_v54, %v6224_v15  ;;  %v17595_v15 = vld [vmem:[#allocation176_spill] sm:$0xff]  ;;  %v17596_v54 = vld [vmem:[#allocation253_spill] sm:$0xff]  ;;  %v17617_v31 = vld [vmem:[#allocation190_spill] sm:$0xff] }
 0x547   :  { %17585 = vst [vmem:[#allocation126_spill] sm:$0xff] %v15463_v41  ;;  %v7272_v0 = vpop.f32.mrf.mxu0  ;;  %v6229_v29 = vadd.f32 %v17596_v54, %v17595_v15  ;;  %v17605_v54 = vld [vmem:[#allocation255_spill] sm:$0xff]  ;;  %v17687_v41 = vld [vmem:[#allocation224_spill] sm:$0xff] }
 0x548   :  { %17589 = vst [vmem:[#allocation203_spill] sm:$0xff] %v15472_v19  ;;  %v6721_v63 = vpop.f32.mrf.mxu1  ;;  %v15481_v3 = vadd.f32 %v7272_v0, %v6216_v36  ;;  %v17600_v36 = vld [vmem:[#allocation259_spill] sm:$0xff]  ;;  %v17627_v19 = vld [vmem:[#allocation273_spill] sm:$0xff] }
 0x549   :  { %v10436_v14 = vpop.f32.mrf.mxu0  ;;  %10531 = vmatmul.mubr.msk.bf16.gmra.mxu0 %vm4304_vm0, %v11668_v62  ;;  %v6240_v0 = vadd.f32 %v17600_v36, %v17599_v53  ;;  %v11671_v53 = vld [vmem:[%s16765_s0 + $0x10f0] ss:$20 sps:$4 sm:$0xff]  }
 0x54a   :  { %17593 = vst [vmem:[#allocation122_spill] sm:$0xff] %v15481_v3  ;;  %v15483_v60 = vpop.f32.mrf.mxu1  ;;  %v15490_v56 = vadd.f32 %v10436_v14, %v6237_v47  ;;  %10534 = vmatprep.mubr.msk.bf16.mxu0 %vm4304_vm0, %v11669_v45  ;;  %v11670_v47 = vld [vmem:[%s16765_s0 + $0x10c8] ss:$20 sps:$4 sm:$0xff]   ;;  %v17604_v14 = vld [vmem:[#allocation178_spill] sm:$0xff]  ;;  %v17608_v36 = vld [vmem:[#allocation188_spill] sm:$0xff] }
 0x54b   :  { %17594 = vst [vmem:[#allocation199_spill] sm:$0xff] %v15483_v60  ;;  %v7285_v35 = vpop.f32.mrf.mxu0  ;;  %v6232_v45 = vadd.f32 %v17605_v54, %v17604_v14 }
 0x54c   :  { %17598 = vst [vmem:[#allocation132_spill] sm:$0xff] %v15490_v56  ;;  %v6726_v25 = vpop.f32.mrf.mxu1  ;;  %v15497_v60 = vadd.f32 %v7285_v35, %v6229_v29  ;;  %v6253_v56 = vadd.f32 %v17609_v26, %v17608_v36 }
 0x54d   :  { %v10437_v15 = vpop.f32.mrf.mxu0 }
 0x54e   :  { %17602 = vst [vmem:[#allocation209_spill] sm:$0xff] %v15497_v60  ;;  %v15499_v62 = vpop.f32.mrf.mxu1  ;;  %v15508_v3 = vadd.f32 %v10437_v15, %v6240_v0  ;;  %v17613_v0 = vld [vmem:[#allocation184_spill] sm:$0xff]  ;;  %v17614_v15 = vld [vmem:[#allocation261_spill] sm:$0xff]  ;;  %v17635_v60 = vld [vmem:[#allocation198_spill] sm:$0xff] }
 0x54f   :  { %17603 = vst [vmem:[#allocation128_spill] sm:$0xff] %v15499_v62  ;;  %v7288_v35 = vpop.f32.mrf.mxu0  ;;  %v6245_v63 = vadd.f32 %v17614_v15, %v17613_v0  ;;  %v17623_v15 = vld [vmem:[#allocation263_spill] sm:$0xff] }
 0x550   :  { %17607 = vst [vmem:[#allocation205_spill] sm:$0xff] %v15508_v3  ;;  %v6729_v29 = vpop.f32.mrf.mxu1  ;;  %v15517_v62 = vadd.f32 %v7288_v35, %v6232_v45  ;;  %v17618_v45 = vld [vmem:[#allocation267_spill] sm:$0xff]  ;;  %v17645_v3 = vld [vmem:[#allocation281_spill] sm:$0xff] }
 0x551   :  { %v10440_v54 = vpop.f32.mrf.mxu0  ;;  %10535 = vmatmul.mubr.msk.bf16.gmra.mxu0 %vm4304_vm0, %v11670_v47  ;;  %v6256_v35 = vadd.f32 %v17618_v45, %v17617_v31  ;;  %v11673_v31 = vld [vmem:[%s16765_s0 + $0x1140] ss:$20 sps:$4 sm:$0xff]  }
 0x552   :  { %17611 = vst [vmem:[#allocation134_spill] sm:$0xff] %v15517_v62  ;;  %v15519_v14 = vpop.f32.mrf.mxu1  ;;  %v15526_v25 = vadd.f32 %v10440_v54, %v6253_v56  ;;  %10538 = vmatprep.mubr.msk.bf16.mxu0 %vm4304_vm0, %v11671_v53  ;;  %v11672_v56 = vld [vmem:[%s16765_s0 + $0x1118] ss:$20 sps:$4 sm:$0xff]   ;;  %v17622_v54 = vld [vmem:[#allocation186_spill] sm:$0xff]  ;;  %v17626_v45 = vld [vmem:[#allocation196_spill] sm:$0xff] }
 0x553   :  { %17612 = vst [vmem:[#allocation211_spill] sm:$0xff] %v15519_v14  ;;  %v7301_v36 = vpop.f32.mrf.mxu0  ;;  %v6248_v53 = vadd.f32 %v17623_v15, %v17622_v54 }
 0x554   :  { %17616 = vst [vmem:[#allocation130_spill] sm:$0xff] %v15526_v25  ;;  %v6734_v26 = vpop.f32.mrf.mxu1  ;;  %v15533_v14 = vadd.f32 %v7301_v36, %v6245_v63  ;;  %v6269_v25 = vadd.f32 %v17627_v19, %v17626_v45 }
 0x555   :  { %v10441_v0 = vpop.f32.mrf.mxu0 }
 0x556   :  { %17620 = vst [vmem:[#allocation207_spill] sm:$0xff] %v15533_v14  ;;  %v15535_v47 = vpop.f32.mrf.mxu1  ;;  %v15544_v62 = vadd.f32 %v10441_v0, %v6256_v35  ;;  %v17631_v35 = vld [vmem:[#allocation192_spill] sm:$0xff]  ;;  %v17632_v0 = vld [vmem:[#allocation269_spill] sm:$0xff]  ;;  %v17653_v14 = vld [vmem:[#allocation206_spill] sm:$0xff] }
 0x557   :  { %17621 = vst [vmem:[#allocation140_spill] sm:$0xff] %v15535_v47  ;;  %v7304_v36 = vpop.f32.mrf.mxu0  ;;  %v6261_v29 = vadd.f32 %v17632_v0, %v17631_v35  ;;  %v17641_v0 = vld [vmem:[#allocation271_spill] sm:$0xff] }
 0x558   :  { %17625 = vst [vmem:[#allocation217_spill] sm:$0xff] %v15544_v62  ;;  %v6737_v63 = vpop.f32.mrf.mxu1  ;;  %v15553_v47 = vadd.f32 %v7304_v36, %v6248_v53  ;;  %v17636_v53 = vld [vmem:[#allocation275_spill] sm:$0xff]  ;;  %v17663_v62 = vld [vmem:[#allocation289_spill] sm:$0xff] }
 0x559   :  { %v10444_v15 = vpop.f32.mrf.mxu0  ;;  %10539 = vmatmul.mubr.msk.bf16.gmra.mxu0 %vm4304_vm0, %v11672_v56  ;;  %v6272_v36 = vadd.f32 %v17636_v53, %v17635_v60  ;;  %v11675_v60 = vld [vmem:[%s16765_s0 + $0x1190] ss:$20 sps:$4 sm:$0xff]  }
 0x55a   :  { %17629 = vst [vmem:[#allocation136_spill] sm:$0xff] %v15553_v47  ;;  %v15555_v54 = vpop.f32.mrf.mxu1  ;;  %v15562_v26 = vadd.f32 %v10444_v15, %v6269_v25  ;;  %10542 = vmatprep.mubr.msk.bf16.mxu0 %vm4304_vm0, %v11673_v31  ;;  %v11674_v25 = vld [vmem:[%s16765_s0 + $0x1168] ss:$20 sps:$4 sm:$0xff]   ;;  %v17640_v15 = vld [vmem:[#allocation194_spill] sm:$0xff]  ;;  %v17644_v53 = vld [vmem:[#allocation204_spill] sm:$0xff] }
 0x55b   :  { %17630 = vst [vmem:[#allocation213_spill] sm:$0xff] %v15555_v54  ;;  %v7317_v45 = vpop.f32.mrf.mxu0  ;;  %v6264_v31 = vadd.f32 %v17641_v0, %v17640_v15 }
 0x55c   :  { %17634 = vst [vmem:[#allocation142_spill] sm:$0xff] %v15562_v26  ;;  %v6742_v19 = vpop.f32.mrf.mxu1  ;;  %v15569_v54 = vadd.f32 %v7317_v45, %v6261_v29  ;;  %v6285_v26 = vadd.f32 %v17645_v3, %v17644_v53 }
 0x55d   :  { %v10445_v35 = vpop.f32.mrf.mxu0 }
 0x55e   :  { %17638 = vst [vmem:[#allocation219_spill] sm:$0xff] %v15569_v54  ;;  %v15571_v56 = vpop.f32.mrf.mxu1  ;;  %v15580_v47 = vadd.f32 %v10445_v35, %v6272_v36  ;;  %v17649_v36 = vld [vmem:[#allocation200_spill] sm:$0xff]  ;;  %v17650_v35 = vld [vmem:[#allocation277_spill] sm:$0xff]  ;;  %v17669_v54 = vld [vmem:[#allocation214_spill] sm:$0xff] }
 0x55f   :  { %17639 = vst [vmem:[#allocation138_spill] sm:$0xff] %v15571_v56  ;;  %v7320_v45 = vpop.f32.mrf.mxu0  ;;  %v6277_v63 = vadd.f32 %v17650_v35, %v17649_v36  ;;  %v17659_v35 = vld [vmem:[#allocation279_spill] sm:$0xff] }
 0x560   :  { %17643 = vst [vmem:[#allocation215_spill] sm:$0xff] %v15580_v47  ;;  %v6745_v29 = vpop.f32.mrf.mxu1  ;;  %v15589_v56 = vadd.f32 %v7320_v45, %v6264_v31  ;;  %v17654_v31 = vld [vmem:[#allocation283_spill] sm:$0xff] }
 0x561   :  { %v10448_v0 = vpop.f32.mrf.mxu0  ;;  %10543 = vmatmul.mubr.msk.bf16.gmra.mxu0 %vm4304_vm0, %v11674_v25  ;;  %v6288_v45 = vadd.f32 %v17654_v31, %v17653_v14  ;;  %v11677_v14 = vld [vmem:[%s16765_s0 + $0x11e0] ss:$20 sps:$4 sm:$0xff]  }
 0x562   :  { %17647 = vst [vmem:[#allocation148_spill] sm:$0xff] %v15589_v56  ;;  %v15591_v15 = vpop.f32.mrf.mxu1  ;;  %v15598_v19 = vadd.f32 %v10448_v0, %v6285_v26  ;;  %10546 = vmatprep.mubr.msk.bf16.mxu0 %vm4304_vm0, %v11675_v60  ;;  %v11676_v26 = vld [vmem:[%s16765_s0 + $0x11b8] ss:$20 sps:$4 sm:$0xff]   ;;  %v17658_v0 = vld [vmem:[#allocation202_spill] sm:$0xff]  ;;  %v17662_v31 = vld [vmem:[#allocation212_spill] sm:$0xff] }
 0x563   :  { %17648 = vst [vmem:[#allocation225_spill] sm:$0xff] %v15591_v15  ;;  %v7333_v53 = vpop.f32.mrf.mxu0  ;;  %v6280_v60 = vadd.f32 %v17659_v35, %v17658_v0 }
 0x564   :  { %17652 = vst [vmem:[#allocation144_spill] sm:$0xff] %v15598_v19  ;;  %v6750_v3 = vpop.f32.mrf.mxu1  ;;  %v15605_v15 = vadd.f32 %v7333_v53, %v6277_v63  ;;  %v6301_v19 = vadd.f32 %v17663_v62, %v17662_v31 }
 0x565   :  { %v10449_v36 = vpop.f32.mrf.mxu0 }
 0x566   :  { %17656 = vst [vmem:[#allocation221_spill] sm:$0xff] %v15605_v15  ;;  %v15607_v25 = vpop.f32.mrf.mxu1  ;;  %v15616_v56 = vadd.f32 %v10449_v36, %v6288_v45  ;;  %v17667_v45 = vld [vmem:[#allocation208_spill] sm:$0xff]  ;;  %v17668_v36 = vld [vmem:[#allocation285_spill] sm:$0xff] }
 0x567   :  { %17657 = vst [vmem:[#allocation150_spill] sm:$0xff] %v15607_v25  ;;  %v7336_v53 = vpop.f32.mrf.mxu0  ;;  %v6293_v29 = vadd.f32 %v17668_v36, %v17667_v45  ;;  %v11678_v45 = vld [vmem:[%s16765_s0 + $0x1208] ss:$20 sps:$4 sm:$0xff]   ;;  %v17672_v36 = vld [vmem:[#allocation210_spill] sm:$0xff] }
 0x568   :  { %17661 = vst [vmem:[#allocation227_spill] sm:$0xff] %v15616_v56  ;;  %v6753_v63 = vpop.f32.mrf.mxu1  ;;  %v15625_v25 = vadd.f32 %v7336_v53, %v6280_v60  ;;  %v17670_v60 = vld [vmem:[#allocation291_spill] sm:$0xff] }
 0x569   :  { %v10452_v35 = vpop.f32.mrf.mxu0  ;;  %10547 = vmatmul.mubr.msk.bf16.gmra.mxu0 %vm4304_vm0, %v11676_v26  ;;  %v6304_v53 = vadd.f32 %v17670_v60, %v17669_v54  ;;  %v17673_v63 = vld [vmem:[#allocation287_spill] sm:$0xff] }
 0x56a   :  { %17665 = vst [vmem:[#allocation146_spill] sm:$0xff] %v15625_v25  ;;  %v15627_v0 = vpop.f32.mrf.mxu1  ;;  %v15634_v15 = vadd.f32 %v10452_v35, %v6301_v19  ;;  %10550 = vmatprep.mubr.msk.bf16.mxu0 %vm4304_vm0, %v11677_v14  ;;  %v6296_v19 = vadd.f32 %v17673_v63, %v17672_v36  ;;  %v11679_v14 = vld [vmem:[%s16765_s0 + $0x1230] ss:$20 sps:$4 sm:$0xff]   ;;  %v17678_v63 = vld [vmem:[#allocation293_spill] sm:$0xff] }
 0x56b   :  { %17666 = vst [vmem:[#allocation223_spill] sm:$0xff] %v15627_v0  ;;  %v7349_v31 = vpop.f32.mrf.mxu0  ;;  %v17679_v0 = vld [vmem:[#allocation222_spill] sm:$0xff] }
 0x56c   :  { %v6758_v62 = vpop.f32.mrf.mxu1  ;;  %v15639_v56 = vadd.f32 %v7349_v31, %v6293_v29  ;;  %v17674_v29 = vld [vmem:[#allocation220_spill] sm:$0xff]  ;;  %v17675_v31 = vld [vmem:[#allocation297_spill] sm:$0xff]  ;;  %v6320_v55 = vadd.f32 %v17680_v23, %v17679_v0 }
 0x56d   :  { %v10453_v26 = vpop.f32.mrf.mxu0  ;;  %v6317_v60 = vadd.f32 %v17675_v31, %v17674_v29  ;;  %v17682_v31 = vld [vmem:[#allocation218_spill] sm:$0xff]  ;;  %v17684_v0 = vld [vmem:[#allocation228_spill] sm:$0xff] }
 0x56e   :  { %v15641_v47 = vpop.f32.mrf.mxu1  ;;  %v15648_v35 = vadd.f32 %v10453_v26, %v6304_v53 }
 0x56f   :  { %17671 = vst [vmem:[#allocation156_spill] sm:$0xff] %v15641_v47  ;;  %v7352_v54 = vpop.f32.mrf.mxu0  ;;  %v17677_v47 = vld [vmem:[#allocation216_spill] sm:$0xff] }
 0x570   :  { %v6761_v62 = vpop.f32.mrf.mxu1  ;;  %v15655_v25 = vadd.f32 %v7352_v54, %v6296_v19  ;;  %v6309_v53 = vadd.f32 %v17678_v63, %v17677_v47  ;;  %v17683_v47 = vld [vmem:[#allocation295_spill] sm:$0xff] }
 0x571   :  { %v10456_v3 = vpop.f32.mrf.mxu0  ;;  %10551 = vmatmul.mubr.msk.bf16.gmra.mxu0 %vm4304_vm0, %v11678_v45  ;;  %v11680_v45 = vld [vmem:[%s16765_s0 + $0x1258] ss:$20 sps:$4 sm:$0xff]  }
 0x572   :  { %v15657_v50 = vpop.f32.mrf.mxu1  ;;  %v15662_v26 = vadd.f32 %v10456_v3, %v6317_v60  ;;  %10554 = vmatprep.mubr.msk.bf16.mxu0 %vm4304_vm0, %v11679_v14  ;;  %v6312_v3 = vadd.f32 %v17683_v47, %v17682_v31  ;;  %v11682_v14 = vld [vmem:[%s16765_s0 + $0x1280] ss:$20 sps:$4 sm:$0xff]   ;;  %v17688_v31 = vld [vmem:[#allocation301_spill] sm:$0xff] }
 0x573   :  { %17676 = vst [vmem:[#allocation233_spill] sm:$0xff] %v15657_v50  ;;  %v7365_v62 = vpop.f32.mrf.mxu0 }
 0x574   :  { %v6766_v36 = vpop.f32.mrf.mxu1  ;;  %v15667_v29 = vadd.f32 %v7365_v62, %v6309_v53  ;;  %v17685_v53 = vld [vmem:[#allocation305_spill] sm:$0xff] }
 0x575   :  { %v10457_v54 = vpop.f32.mrf.mxu0  ;;  %v6333_v36 = vadd.f32 %v17685_v53, %v17684_v0  ;;  %v17692_v53 = vld [vmem:[#allocation226_spill] sm:$0xff] }
 0x576   :  { %v15669_v19 = vpop.f32.mrf.mxu1  ;;  %v15676_v60 = vadd.f32 %v10457_v54, %v6320_v55  ;;  %v6325_v55 = vadd.f32 %v17688_v31, %v17687_v41  ;;  %v17693_v41 = vld [vmem:[#allocation303_spill] sm:$0xff] }
 0x577   :  { %17681 = vst [vmem:[#allocation152_spill] sm:$0xff] %v15669_v19  ;;  %v7368_v23 = vpop.f32.mrf.mxu0 }
 0x578   :  { %v6769_v63 = vpop.f32.mrf.mxu1  ;;  %v15683_v62 = vadd.f32 %v7368_v23, %v6312_v3 }
 0x579   :  { %v10460_v50 = vpop.f32.mrf.mxu0  ;;  %10555 = vmatmul.mubr.msk.bf16.gmra.mxu0 %vm4304_vm0, %v11680_v45  ;;  %v11683_v45 = vld [vmem:[%s16765_s0 + $0x12a8] ss:$20 sps:$4 sm:$0xff]  }
 0x57a   :  { %v15685_v19 = vpop.f32.mrf.mxu1  ;;  %v15690_v54 = vadd.f32 %v10460_v50, %v6333_v36  ;;  %10558 = vmatprep.mubr.msk.bf16.mxu0 %vm4304_vm0, %v11682_v14  ;;  %v6328_v50 = vadd.f32 %v17693_v41, %v17692_v53  ;;  %v11684_v14 = vld [vmem:[%s16765_s0 + $0x12d0] ss:$20 sps:$4 sm:$0xff]   ;;  %v17698_v53 = vld [vmem:[#allocation309_spill] sm:$0xff] }
 0x57b   :  { %17686 = vst [vmem:[#allocation229_spill] sm:$0xff] %v15685_v19  ;;  %v7381_v63 = vpop.f32.mrf.mxu0 }
 0x57c   :  { %v6774_v47 = vpop.f32.mrf.mxu1  ;;  %v15695_v0 = vadd.f32 %v7381_v63, %v6325_v55  ;;  %v17695_v55 = vld [vmem:[#allocation313_spill] sm:$0xff] }
 0x57d   :  { %v10461_v23 = vpop.f32.mrf.mxu0  ;;  %v6349_v47 = vadd.f32 %v17695_v55, %v17694_v59  ;;  %v17702_v55 = vld [vmem:[#allocation234_spill] sm:$0xff] }
 0x57e   :  { %v15697_v3 = vpop.f32.mrf.mxu1  ;;  %v15704_v36 = vadd.f32 %v10461_v23, %v6336_v52  ;;  %v6341_v52 = vadd.f32 %v17698_v53, %v17697_v30  ;;  %v17703_v30 = vld [vmem:[#allocation311_spill] sm:$0xff] }
 0x57f   :  { %17691 = vst [vmem:[#allocation158_spill] sm:$0xff] %v15697_v3  ;;  %v7384_v43 = vpop.f32.mrf.mxu0 }
 0x580   :  { %v6777_v31 = vpop.f32.mrf.mxu1  ;;  %v15711_v63 = vadd.f32 %v7384_v43, %v6328_v50 }
 0x581   :  { %v10464_v19 = vpop.f32.mrf.mxu0  ;;  %10559 = vmatmul.mubr.msk.bf16.gmra.mxu0 %vm4304_vm0, %v11683_v45  ;;  %v11685_v45 = vld [vmem:[%s16765_s0 + $0x12f8] ss:$20 sps:$4 sm:$0xff]  }
 0x582   :  { %v15713_v3 = vpop.f32.mrf.mxu1  ;;  %v15718_v23 = vadd.f32 %v10464_v19, %v6349_v47  ;;  %10562 = vmatprep.mubr.msk.bf16.mxu0 %vm4304_vm0, %v11684_v14  ;;  %v6344_v19 = vadd.f32 %v17703_v30, %v17702_v55  ;;  %v11686_v14 = vld [vmem:[%s16765_s0 + $0x1320] ss:$20 sps:$4 sm:$0xff]   ;;  %v17708_v55 = vld [vmem:[#allocation317_spill] sm:$0xff] }
 0x583   :  { %17696 = vst [vmem:[#allocation235_spill] sm:$0xff] %v15713_v3  ;;  %v7397_v31 = vpop.f32.mrf.mxu0 }
 0x584   :  { %v6782_v41 = vpop.f32.mrf.mxu1  ;;  %v15723_v59 = vadd.f32 %v7397_v31, %v6341_v52  ;;  %v17705_v52 = vld [vmem:[#allocation321_spill] sm:$0xff] }
 0x585   :  { %v10465_v43 = vpop.f32.mrf.mxu0  ;;  %v6365_v41 = vadd.f32 %v17705_v52, %v17704_v32  ;;  %v17712_v52 = vld [vmem:[#allocation242_spill] sm:$0xff] }
 0x586   :  { %v15725_v50 = vpop.f32.mrf.mxu1  ;;  %v15732_v47 = vadd.f32 %v10465_v43, %v6352_v1  ;;  %v6357_v1 = vadd.f32 %v17708_v55, %v17707_v58  ;;  %v17713_v58 = vld [vmem:[#allocation319_spill] sm:$0xff] }
 0x587   :  { %17701 = vst [vmem:[#allocation154_spill] sm:$0xff] %v15725_v50  ;;  %v7400_v18 = vpop.f32.mrf.mxu0 }
 0x588   :  { %v6785_v53 = vpop.f32.mrf.mxu1  ;;  %v15739_v31 = vadd.f32 %v7400_v18, %v6344_v19 }
 0x589   :  { %v10468_v3 = vpop.f32.mrf.mxu0  ;;  %10563 = vmatmul.mubr.msk.bf16.gmra.mxu0 %vm4304_vm0, %v11685_v45  ;;  %v11687_v45 = vld [vmem:[%s16765_s0 + $0x1348] ss:$20 sps:$4 sm:$0xff]  }
 0x58a   :  { %v15741_v50 = vpop.f32.mrf.mxu1  ;;  %v15746_v43 = vadd.f32 %v10468_v3, %v6365_v41  ;;  %10566 = vmatprep.mubr.msk.bf16.mxu0 %vm4304_vm0, %v11686_v14  ;;  %v6360_v3 = vadd.f32 %v17713_v58, %v17712_v52  ;;  %v11688_v14 = vld [vmem:[%s16765_s0 + $0x1370] ss:$20 sps:$4 sm:$0xff]   ;;  %v17718_v52 = vld [vmem:[#allocation325_spill] sm:$0xff] }
 0x58b   :  { %17706 = vst [vmem:[#allocation231_spill] sm:$0xff] %v15741_v50  ;;  %v7413_v53 = vpop.f32.mrf.mxu0 }
 0x58c   :  { %v6790_v30 = vpop.f32.mrf.mxu1  ;;  %v15751_v32 = vadd.f32 %v7413_v53, %v6357_v1  ;;  %v17715_v1 = vld [vmem:[#allocation329_spill] sm:$0xff] }
 0x58d   :  { %v10469_v18 = vpop.f32.mrf.mxu0  ;;  %v6381_v30 = vadd.f32 %v17715_v1, %v17714_v4  ;;  %v17723_v1 = vld [vmem:[#allocation250_spill] sm:$0xff] }
 0x58e   :  { %v15753_v19 = vpop.f32.mrf.mxu1  ;;  %v15760_v41 = vadd.f32 %v10469_v18, %v6368_v8  ;;  %v6373_v8 = vadd.f32 %v17718_v52, %v17717_v7  ;;  %v17724_v7 = vld [vmem:[#allocation327_spill] sm:$0xff] }
 0x58f   :  { %17711 = vst [vmem:[#allocation164_spill] sm:$0xff] %v15753_v19  ;;  %v7416_v51 = vpop.f32.mrf.mxu0 }
 0x590   :  { %v6793_v55 = vpop.f32.mrf.mxu1  ;;  %v15767_v53 = vadd.f32 %v7416_v51, %v6360_v3 }
 0x591   :  { %v10472_v50 = vpop.f32.mrf.mxu0  ;;  %10567 = vmatmul.mubr.msk.bf16.gmra.mxu0 %vm4304_vm0, %v11687_v45  ;;  %v11689_v45 = vld [vmem:[%s16765_s0 + $0x1398] ss:$20 sps:$4 sm:$0xff]  }
 0x592   :  { %v15769_v19 = vpop.f32.mrf.mxu1  ;;  %v15774_v18 = vadd.f32 %v10472_v50, %v6381_v30  ;;  %10570 = vmatprep.mubr.msk.bf16.mxu0 %vm4304_vm0, %v11688_v14  ;;  %v6376_v50 = vadd.f32 %v17724_v7, %v17723_v1  ;;  %v11690_v14 = vld [vmem:[%s16765_s0 + $0x13c0] ss:$20 sps:$4 sm:$0xff]   ;;  %v17733_v7 = vld [vmem:[#allocation339_spill] sm:$0xff] }
 0x593   :  { %17716 = vst [vmem:[#allocation241_spill] sm:$0xff] %v15769_v19  ;;  %v7429_v55 = vpop.f32.mrf.mxu0  ;;  %v17729_v19 = vld [vmem:[#allocation256_spill] sm:$0xff] }
 0x594   :  { %v6798_v58 = vpop.f32.mrf.mxu1  ;;  %v15779_v4 = vadd.f32 %v7429_v55, %v6373_v8  ;;  %v17727_v8 = vld [vmem:[#allocation337_spill] sm:$0xff]  ;;  %v6389_v40 = vadd.f32 %v17730_v49, %v17729_v19  ;;  %v17738_v19 = vld [vmem:[#allocation268_spill] sm:$0xff] }
 0x595   :  { %v10473_v51 = vpop.f32.mrf.mxu0  ;;  %v6397_v58 = vadd.f32 %v17727_v8, %v17726_v17 }
 0x596   :  { %17721 = vst [vmem:[#allocation160_spill] sm:$0xff] %v15779_v4  ;;  %v15781_v3 = vpop.f32.mrf.mxu1  ;;  %v15788_v30 = vadd.f32 %v10473_v51, %v6384_v6  ;;  %v17732_v51 = vld [vmem:[#allocation262_spill] sm:$0xff] }
 0x597   :  { %17722 = vst [vmem:[#allocation237_spill] sm:$0xff] %v15781_v3  ;;  %v7432_v52 = vpop.f32.mrf.mxu0  ;;  %v6400_v5 = vadd.f32 %v17733_v7, %v17732_v51 }
 0x598   :  { %17725 = vst [vmem:[#allocation166_spill] sm:$0xff] %v15788_v30  ;;  %v6801_v46 = vpop.f32.mrf.mxu1  ;;  %v15795_v55 = vadd.f32 %v7432_v52, %v6376_v50  ;;  %v11691_v50 = vld [vmem:[%s16765_s0 + $0x13e8] ss:$20 sps:$4 sm:$0xff]   ;;  %v17735_v52 = vld [vmem:[#allocation258_spill] sm:$0xff] }
 0x599   :  { %v10476_v3 = vpop.f32.mrf.mxu0  ;;  %10571 = vmatmul.mubr.msk.bf16.gmra.mxu0 %vm4304_vm0, %v11689_v45  ;;  %v17736_v45 = vld [vmem:[#allocation335_spill] sm:$0xff] }
 0x59a   :  { %17728 = vst [vmem:[#allocation243_spill] sm:$0xff] %v15795_v55  ;;  %v15800_v1 = vadd.f32 %v10476_v3, %v6397_v58  ;;  %10574 = vmatprep.mubr.msk.bf16.mxu0 %vm4304_vm0, %v11690_v14  ;;  %v6392_v17 = vadd.f32 %v17736_v45, %v17735_v52  ;;  %v17739_v3 = vld [vmem:[#allocation345_spill] sm:$0xff]  ;;  %v17744_v55 = vld [vmem:[#allocation270_spill] sm:$0xff] }
 0x59b   :  { %v7445_v6 = vpop.f32.mrf.mxu0  ;;  %v6413_v14 = vadd.f32 %v17739_v3, %v17738_v19  ;;  %v6416_v52 = vadd.f32 %v17745_v9, %v17744_v55  ;;  %v17747_v45 = vld [vmem:[#allocation266_spill] sm:$0xff]  ;;  %v17750_v3 = vld [vmem:[#allocation276_spill] sm:$0xff] }
 0x59c   :  { %17731 = vst [vmem:[#allocation162_spill] sm:$0xff] %v15800_v1  ;;  %v15805_v46 = vadd.f32 %v7445_v6, %v6389_v40  ;;  %v17741_v40 = vld [vmem:[#allocation264_spill] sm:$0xff]  ;;  %v17742_v6 = vld [vmem:[#allocation341_spill] sm:$0xff]  ;;  %v17756_v55 = vld [vmem:[#allocation278_spill] sm:$0xff] }
 0x59d   :  { %v10477_v30 = vpop.f32.mrf.mxu0  ;;  %v6405_v51 = vadd.f32 %v17742_v6, %v17741_v40  ;;  %v17754_v40 = vld [vmem:[#allocation349_spill] sm:$0xff] }
 0x59e   :  { %17734 = vst [vmem:[#allocation239_spill] sm:$0xff] %v15805_v46  ;;  %v15812_v8 = vadd.f32 %v10477_v30, %v6400_v5 }
 0x59f   :  { %v7448_v49 = vpop.f32.mrf.mxu0 }
 0x5a0   :  { %17737 = vst [vmem:[#allocation172_spill] sm:$0xff] %v15812_v8  ;;  %v15816_v58 = vadd.f32 %v7448_v49, %v6392_v17  ;;  %v17748_v8 = vld [vmem:[#allocation343_spill] sm:$0xff] }
 0x5a1   :  { %v10480_v1 = vpop.f32.mrf.mxu0  ;;  %10575 = vmatmul.mubr.msk.bf16.gmra.mxu0 %vm4304_vm0, %v11691_v50  ;;  %v6408_v19 = vadd.f32 %v17748_v8, %v17747_v45  ;;  %v17751_v50 = vld [vmem:[#allocation353_spill] sm:$0xff] }
 0x5a2   :  { %17740 = vst [vmem:[#allocation249_spill] sm:$0xff] %v15816_v58  ;;  %v15821_v7 = vadd.f32 %v10480_v1, %v6413_v14  ;;  %v6429_v58 = vadd.f32 %v17751_v50, %v17750_v3  ;;  %v17753_v14 = vld [vmem:[#allocation272_spill] sm:$0xff]  ;;  %v17763_v3 = vld [vmem:[#allocation361_spill] sm:$0xff] }
 0x5a3   :  { %v7461_v46 = vpop.f32.mrf.mxu0  ;;  %v6421_v6 = vadd.f32 %v17754_v40, %v17753_v14  ;;  %v17766_v14 = vld [vmem:[#allocation357_spill] sm:$0xff] }
 0x5a4   :  { %17743 = vst [vmem:[#allocation168_spill] sm:$0xff] %v15821_v7  ;;  %v15825_v5 = vadd.f32 %v7461_v46, %v6405_v51  ;;  %v17757_v46 = vld [vmem:[#allocation355_spill] sm:$0xff] }
 0x5a5   :  { %v10481_v30 = vpop.f32.mrf.mxu0  ;;  %v6432_v51 = vadd.f32 %v17757_v46, %v17756_v55  ;;  %v17769_v55 = vld [vmem:[#allocation363_spill] sm:$0xff] }
 0x5a6   :  { %17746 = vst [vmem:[#allocation245_spill] sm:$0xff] %v15825_v5  ;;  %v15829_v17 = vadd.f32 %v10481_v30, %v6416_v52  ;;  %v17759_v52 = vld [vmem:[#allocation274_spill] sm:$0xff]  ;;  %v17760_v30 = vld [vmem:[#allocation351_spill] sm:$0xff] }
 0x5a7   :  { %v7464_v49 = vpop.f32.mrf.mxu0  ;;  %v6424_v45 = vadd.f32 %v17760_v30, %v17759_v52  ;;  %v17772_v52 = vld [vmem:[#allocation359_spill] sm:$0xff] }
 0x5a8   :  { %17749 = vst [vmem:[#allocation174_spill] sm:$0xff] %v15829_v17  ;;  %v15833_v4 = vadd.f32 %v7464_v49, %v6408_v19  ;;  %v17762_v49 = vld [vmem:[#allocation284_spill] sm:$0xff] }
 0x5a9   :  { %v10484_v1 = vpop.f32.mrf.mxu0  ;;  %v6445_v50 = vadd.f32 %v17763_v3, %v17762_v49  ;;  %v17775_v49 = vld [vmem:[#allocation369_spill] sm:$0xff] }
 0x5aa   :  { %17752 = vst [vmem:[#allocation251_spill] sm:$0xff] %v15833_v4  ;;  %v15837_v7 = vadd.f32 %v10484_v1, %v6429_v58  ;;  %v17765_v1 = vld [vmem:[#allocation280_spill] sm:$0xff] }
 0x5ab   :  { %v7477_v9 = vpop.f32.mrf.mxu0  ;;  %v6437_v40 = vadd.f32 %v17766_v14, %v17765_v1  ;;  %v17778_v1 = vld [vmem:[#allocation365_spill] sm:$0xff] }
 0x5ac   :  { %17755 = vst [vmem:[#allocation170_spill] sm:$0xff] %v15837_v7  ;;  %v15841_v5 = vadd.f32 %v7477_v9, %v6421_v6  ;;  %v17768_v9 = vld [vmem:[#allocation286_spill] sm:$0xff] }
 0x5ad   :  { %v10485_v8 = vpop.f32.mrf.mxu0  ;;  %v6448_v46 = vadd.f32 %v17769_v55, %v17768_v9  ;;  %v17781_v9 = vld [vmem:[#allocation371_spill] sm:$0xff] }
 0x5ae   :  { %17758 = vst [vmem:[#allocation247_spill] sm:$0xff] %v15841_v5  ;;  %v15845_v17 = vadd.f32 %v10485_v8, %v6432_v51  ;;  %v17771_v8 = vld [vmem:[#allocation282_spill] sm:$0xff] }
 0x5af   :  { %v7480_v19 = vpop.f32.mrf.mxu0  ;;  %v6440_v30 = vadd.f32 %v17772_v52, %v17771_v8  ;;  %v17784_v8 = vld [vmem:[#allocation367_spill] sm:$0xff] }
 0x5b0   :  { %17761 = vst [vmem:[#allocation180_spill] sm:$0xff] %v15845_v17  ;;  %v15849_v4 = vadd.f32 %v7480_v19, %v6424_v45  ;;  %v17774_v19 = vld [vmem:[#allocation292_spill] sm:$0xff] }
 0x5b1   :  { %v10488_v58 = vpop.f32.mrf.mxu0  ;;  %v6461_v3 = vadd.f32 %v17775_v49, %v17774_v19  ;;  %v17787_v19 = vld [vmem:[#allocation377_spill] sm:$0xff] }
 0x5b2   :  { %17764 = vst [vmem:[#allocation257_spill] sm:$0xff] %v15849_v4  ;;  %v15853_v7 = vadd.f32 %v10488_v58, %v6445_v50  ;;  %v17777_v58 = vld [vmem:[#allocation288_spill] sm:$0xff] }
 0x5b3   :  { %v7493_v6 = vpop.f32.mrf.mxu0  ;;  %v6453_v14 = vadd.f32 %v17778_v1, %v17777_v58  ;;  %v17790_v58 = vld [vmem:[#allocation373_spill] sm:$0xff] }
 0x5b4   :  { %17767 = vst [vmem:[#allocation176_spill] sm:$0xff] %v15853_v7  ;;  %v15857_v5 = vadd.f32 %v7493_v6, %v6437_v40  ;;  %v17780_v6 = vld [vmem:[#allocation294_spill] sm:$0xff] }
 0x5b5   :  { %v10489_v51 = vpop.f32.mrf.mxu0  ;;  %v6464_v55 = vadd.f32 %v17781_v9, %v17780_v6  ;;  %v17793_v6 = vld [vmem:[#allocation379_spill] sm:$0xff] }
 0x5b6   :  { %17770 = vst [vmem:[#allocation253_spill] sm:$0xff] %v15857_v5  ;;  %v15861_v17 = vadd.f32 %v10489_v51, %v6448_v46  ;;  %v17783_v51 = vld [vmem:[#allocation290_spill] sm:$0xff] }
 0x5b7   :  { %v7496_v45 = vpop.f32.mrf.mxu0  ;;  %v6456_v52 = vadd.f32 %v17784_v8, %v17783_v51  ;;  %v17796_v51 = vld [vmem:[#allocation375_spill] sm:$0xff] }
 0x5b8   :  { %17773 = vst [vmem:[#allocation182_spill] sm:$0xff] %v15861_v17  ;;  %v15865_v4 = vadd.f32 %v7496_v45, %v6440_v30  ;;  %v17786_v45 = vld [vmem:[#allocation300_spill] sm:$0xff] }
 0x5b9   :  { %v10492_v50 = vpop.f32.mrf.mxu0  ;;  %v6477_v49 = vadd.f32 %v17787_v19, %v17786_v45  ;;  %v17799_v45 = vld [vmem:[#allocation385_spill] sm:$0xff] }
 0x5ba   :  { %17776 = vst [vmem:[#allocation259_spill] sm:$0xff] %v15865_v4  ;;  %v15869_v7 = vadd.f32 %v10492_v50, %v6461_v3  ;;  %v17789_v50 = vld [vmem:[#allocation296_spill] sm:$0xff] }
 0x5bb   :  { %v7509_v40 = vpop.f32.mrf.mxu0  ;;  %v6469_v1 = vadd.f32 %v17790_v58, %v17789_v50  ;;  %v17802_v50 = vld [vmem:[#allocation381_spill] sm:$0xff] }
 0x5bc   :  { %17779 = vst [vmem:[#allocation178_spill] sm:$0xff] %v15869_v7  ;;  %v15873_v5 = vadd.f32 %v7509_v40, %v6453_v14  ;;  %v17792_v40 = vld [vmem:[#allocation302_spill] sm:$0xff] }
 0x5bd   :  { %v10493_v46 = vpop.f32.mrf.mxu0  ;;  %v6480_v9 = vadd.f32 %v17793_v6, %v17792_v40  ;;  %v17805_v40 = vld [vmem:[#allocation387_spill] sm:$0xff] }
 0x5be   :  { %17782 = vst [vmem:[#allocation255_spill] sm:$0xff] %v15873_v5  ;;  %v15877_v17 = vadd.f32 %v10493_v46, %v6464_v55  ;;  %v17795_v46 = vld [vmem:[#allocation298_spill] sm:$0xff] }
 0x5bf   :  { %v7512_v30 = vpop.f32.mrf.mxu0  ;;  %v6472_v8 = vadd.f32 %v17796_v51, %v17795_v46  ;;  %v17808_v46 = vld [vmem:[#allocation383_spill] sm:$0xff] }
 0x5c0   :  { %17785 = vst [vmem:[#allocation188_spill] sm:$0xff] %v15877_v17  ;;  %v15881_v4 = vadd.f32 %v7512_v30, %v6456_v52  ;;  %v17798_v30 = vld [vmem:[#allocation308_spill] sm:$0xff] }
 0x5c1   :  { %v10496_v3 = vpop.f32.mrf.mxu0  ;;  %v6493_v19 = vadd.f32 %v17799_v45, %v17798_v30  ;;  %v17811_v30 = vld [vmem:[#allocation390_spill] sm:$0xff] }
 0x5c2   :  { %17788 = vst [vmem:[#allocation265_spill] sm:$0xff] %v15881_v4  ;;  %v15885_v7 = vadd.f32 %v10496_v3, %v6477_v49  ;;  %v17801_v3 = vld [vmem:[#allocation304_spill] sm:$0xff] }
 0x5c3   :  { %v7525_v14 = vpop.f32.mrf.mxu0  ;;  %v6485_v58 = vadd.f32 %v17802_v50, %v17801_v3  ;;  %v17814_v3 = vld [vmem:[#allocation388_spill] sm:$0xff] }
 0x5c4   :  { %17791 = vst [vmem:[#allocation184_spill] sm:$0xff] %v15885_v7  ;;  %v15889_v5 = vadd.f32 %v7525_v14, %v6469_v1  ;;  %v17804_v14 = vld [vmem:[#allocation310_spill] sm:$0xff] }
 0x5c5   :  { %v10497_v55 = vpop.f32.mrf.mxu0  ;;  %v6496_v6 = vadd.f32 %v17805_v40, %v17804_v14  ;;  %v17817_v14 = vld [vmem:[#allocation392_spill] sm:$0xff] }
 0x5c6   :  { %17794 = vst [vmem:[#allocation261_spill] sm:$0xff] %v15889_v5  ;;  %v15893_v17 = vadd.f32 %v10497_v55, %v6480_v9  ;;  %v17807_v55 = vld [vmem:[#allocation306_spill] sm:$0xff] }
 0x5c7   :  { %v7528_v52 = vpop.f32.mrf.mxu0  ;;  %v6488_v51 = vadd.f32 %v17808_v46, %v17807_v55  ;;  %v17820_v55 = vld [vmem:[#allocation389_spill] sm:$0xff] }
 0x5c8   :  { %17797 = vst [vmem:[#allocation190_spill] sm:$0xff] %v15893_v17  ;;  %v15897_v4 = vadd.f32 %v7528_v52, %v6472_v8  ;;  %v17810_v52 = vld [vmem:[#allocation316_spill] sm:$0xff] }
 0x5c9   :  { %v10500_v49 = vpop.f32.mrf.mxu0  ;;  %v6509_v45 = vadd.f32 %v17811_v30, %v17810_v52  ;;  %v17823_v52 = vld [vmem:[#allocation397_spill] sm:$0xff] }
 0x5ca   :  { %17800 = vst [vmem:[#allocation267_spill] sm:$0xff] %v15897_v4  ;;  %v15901_v7 = vadd.f32 %v10500_v49, %v6493_v19  ;;  %v17813_v49 = vld [vmem:[#allocation312_spill] sm:$0xff] }
 0x5cb   :  { %v7541_v1 = vpop.f32.mrf.mxu0  ;;  %v6501_v50 = vadd.f32 %v17814_v3, %v17813_v49  ;;  %v17826_v49 = vld [vmem:[#allocation393_spill] sm:$0xff] }
 0x5cc   :  { %17803 = vst [vmem:[#allocation186_spill] sm:$0xff] %v15901_v7  ;;  %v15905_v5 = vadd.f32 %v7541_v1, %v6485_v58  ;;  %v17816_v1 = vld [vmem:[#allocation318_spill] sm:$0xff] }
 0x5cd   :  { %v10501_v9 = vpop.f32.mrf.mxu0  ;;  %v6512_v40 = vadd.f32 %v17817_v14, %v17816_v1  ;;  %v17829_v1 = vld [vmem:[#allocation399_spill] sm:$0xff] }
 0x5ce   :  { %17806 = vst [vmem:[#allocation263_spill] sm:$0xff] %v15905_v5  ;;  %v15909_v17 = vadd.f32 %v10501_v9, %v6496_v6  ;;  %v17819_v9 = vld [vmem:[#allocation314_spill] sm:$0xff] }
 0x5cf   :  { %v7544_v8 = vpop.f32.mrf.mxu0  ;;  %v6504_v46 = vadd.f32 %v17820_v55, %v17819_v9  ;;  %v17832_v9 = vld [vmem:[#allocation396_spill] sm:$0xff] }
 0x5d0   :  { %17809 = vst [vmem:[#allocation196_spill] sm:$0xff] %v15909_v17  ;;  %v15913_v4 = vadd.f32 %v7544_v8, %v6488_v51  ;;  %v17822_v8 = vld [vmem:[#allocation324_spill] sm:$0xff] }
 0x5d1   :  { %v10504_v19 = vpop.f32.mrf.mxu0  ;;  %v6525_v30 = vadd.f32 %v17823_v52, %v17822_v8  ;;  %v17835_v8 = vld [vmem:[#allocation403_spill] sm:$0xff] }
 0x5d2   :  { %17812 = vst [vmem:[#allocation273_spill] sm:$0xff] %v15913_v4  ;;  %v15917_v7 = vadd.f32 %v10504_v19, %v6509_v45  ;;  %v17825_v19 = vld [vmem:[#allocation320_spill] sm:$0xff] }
 0x5d3   :  { %v7557_v58 = vpop.f32.mrf.mxu0  ;;  %v6517_v3 = vadd.f32 %v17826_v49, %v17825_v19  ;;  %v17838_v19 = vld [vmem:[#allocation400_spill] sm:$0xff] }
 0x5d4   :  { %17815 = vst [vmem:[#allocation192_spill] sm:$0xff] %v15917_v7  ;;  %v15921_v5 = vadd.f32 %v7557_v58, %v6501_v50  ;;  %v17828_v58 = vld [vmem:[#allocation326_spill] sm:$0xff] }
 0x5d5   :  { %v10505_v6 = vpop.f32.mrf.mxu0  ;;  %v6528_v14 = vadd.f32 %v17829_v1, %v17828_v58  ;;  %v17841_v58 = vld [vmem:[#allocation406_spill] sm:$0xff] }
 0x5d6   :  { %17818 = vst [vmem:[#allocation269_spill] sm:$0xff] %v15921_v5  ;;  %v15925_v17 = vadd.f32 %v10505_v6, %v6512_v40  ;;  %v17831_v6 = vld [vmem:[#allocation322_spill] sm:$0xff] }
 0x5d7   :  { %v7560_v51 = vpop.f32.mrf.mxu0  ;;  %v6520_v55 = vadd.f32 %v17832_v9, %v17831_v6  ;;  %v17844_v6 = vld [vmem:[#allocation402_spill] sm:$0xff] }
 0x5d8   :  { %17821 = vst [vmem:[#allocation198_spill] sm:$0xff] %v15925_v17  ;;  %v15929_v4 = vadd.f32 %v7560_v51, %v6504_v46  ;;  %v17834_v51 = vld [vmem:[#allocation332_spill] sm:$0xff] }
 0x5d9   :  { %v10508_v45 = vpop.f32.mrf.mxu0  ;;  %v6541_v52 = vadd.f32 %v17835_v8, %v17834_v51  ;;  %v17847_v51 = vld [vmem:[#allocation37_spill] sm:$0xff] }
 0x5da   :  { %17824 = vst [vmem:[#allocation275_spill] sm:$0xff] %v15929_v4  ;;  %v15933_v7 = vadd.f32 %v10508_v45, %v6525_v30  ;;  %v17837_v45 = vld [vmem:[#allocation328_spill] sm:$0xff] }
 0x5db   :  { %v7573_v50 = vpop.f32.mrf.mxu0  ;;  %v6533_v49 = vadd.f32 %v17838_v19, %v17837_v45  ;;  %v17849_v45 = vld [vmem:[#allocation409_spill] sm:$0xff] }
 0x5dc   :  { %17827 = vst [vmem:[#allocation194_spill] sm:$0xff] %v15933_v7  ;;  %v15937_v5 = vadd.f32 %v7573_v50, %v6517_v3  ;;  %v17840_v50 = vld [vmem:[#allocation334_spill] sm:$0xff] }
 0x5dd   :  { %v10509_v40 = vpop.f32.mrf.mxu0  ;;  %v6544_v1 = vadd.f32 %v17841_v58, %v17840_v50 }
 0x5de   :  { %17830 = vst [vmem:[#allocation271_spill] sm:$0xff] %v15937_v5  ;;  %v15941_v17 = vadd.f32 %v10509_v40, %v6528_v14  ;;  %v17843_v40 = vld [vmem:[#allocation330_spill] sm:$0xff] }
 0x5df   :  { %v7576_v46 = vpop.f32.mrf.mxu0  ;;  %v6536_v9 = vadd.f32 %v17844_v6, %v17843_v40  ;;  %v17853_v6 = vld [vmem:[#allocation83_spill] sm:$0xff] }
 0x5e0   :  { %17833 = vst [vmem:[#allocation204_spill] sm:$0xff] %v15941_v17  ;;  %v15945_v4 = vadd.f32 %v7576_v46, %v6520_v55  ;;  %v17846_v46 = vld [vmem:[#allocation340_spill] sm:$0xff] }
 0x5e1   :  { %v10512_v30 = vpop.f32.mrf.mxu0  ;;  %v6557_v8 = vadd.f32 %v17847_v51, %v17846_v46  ;;  %v15976_v46 = vld [vmem:[%s16767_s3] ss:$0 sm:$0xff] }
 0x5e2   :  { %17836 = vst [vmem:[#allocation281_spill] sm:$0xff] %v15945_v4  ;;  %v15949_v7 = vadd.f32 %v10512_v30, %v6541_v52  ;;  %v17848_v30 = vld [vmem:[#allocation336_spill] sm:$0xff] }
 0x5e3   :  { %v7589_v3 = vpop.f32.mrf.mxu0  ;;  %v6549_v19 = vadd.f32 %v17849_v45, %v17848_v30  ;;  %v17855_v30 = vld [vmem:[#allocation348_spill] sm:$0xff]  ;;  %v17857_v45 = vld [vmem:[#allocation135_spill] sm:$0xff] }
 0x5e4   :  { %17839 = vst [vmem:[#allocation200_spill] sm:$0xff] %v15949_v7  ;;  %v15953_v5 = vadd.f32 %v7589_v3, %v6533_v49  ;;  %v17850_v49 = vld [vmem:[#allocation342_spill] sm:$0xff]  ;;  %v17851_v3 = vld [vmem:[#allocation85_spill] sm:$0xff] }
 0x5e5   :  { %v10513_v14 = vpop.f32.mrf.mxu0  ;;  %v6560_v58 = vadd.f32 %v17851_v3, %v17850_v49  ;;  %v17859_v3 = vld [vmem:[#allocation344_spill] sm:$0xff] }
 0x5e6   :  { %17842 = vst [vmem:[#allocation277_spill] sm:$0xff] %v15953_v5  ;;  %v15957_v17 = vadd.f32 %v10513_v14, %v6544_v1  ;;  %v17852_v14 = vld [vmem:[#allocation338_spill] sm:$0xff] }
 0x5e7   :  { %v7592_v55 = vpop.f32.mrf.mxu0 }
 0x5e8   :  { %17845 = vst [vmem:[#allocation206_spill] sm:$0xff] %v15957_v17  ;;  %v15961_v4 = vadd.f32 %v7592_v55, %v6536_v9  ;;  %v6552_v17 = vadd.f32 %v17853_v6, %v17852_v14  ;;  %v17854_v9 = vmax.f32 %v14529_v37, %v15055_v61  ;;  %v17860_v14 = vld [vmem:[#allocation35_spill] sm:$0xff] }
 0x5e9   :  { %v10516_v52 = vpop.f32.mrf.mxu0  ;;  %v6565_v6 = vadd.f32 %v17860_v14, %v17859_v3 }
 0x5ea   :  { %v7614_v7 = vadd.f32 %v10516_v52, %v6557_v8 }
 0x5eb   :  { %v7605_v50 = vpop.f32.mrf.mxu0 }
 0x5ec   :  { %v7926_v5 = vmax.f32 %v15634_v15, %v7614_v7  ;;  %v7606_v40 = vadd.f32 %v7605_v50, %v6549_v19  ;;  %v17856_v15 = vld [vmem:[#allocation47_spill] sm:$0xff]  ;;  %v17858_v19 = vmax.f32 %v14534_v21, %v17857_v45 }
 0x5ed   :  { %v10517_v1 = vpop.f32.mrf.mxu0  ;;  %v6573_v7 = vadd.f32 %v17856_v15, %v17855_v30  ;;  %v17863_v30 = vld [vmem:[#allocation350_spill] sm:$0xff]  ;;  %v17864_v15 = vld [vmem:[#allocation95_spill] sm:$0xff] }
 0x5ee   :  { %v7990_v55 = vmax.f32 %v17854_v9, %v7926_v5  ;;  %v7924_v51 = vmax.f32 %v15639_v56, %v7606_v40  ;;  %v7617_v8 = vadd.f32 %v10517_v1, %v6560_v58  ;;  %v17861_v56 = vld [vmem:[#allocation145_spill] sm:$0xff]  ;;  %v6576_v21 = vadd.f32 %v17864_v15, %v17863_v30 }
 0x5ef   :  { %v7608_v52 = vpop.f32.mrf.mxu0  ;;  %v17862_v58 = vmax.f32 %v14546_v11, %v17861_v56  ;;  %v17869_v56 = vld [vmem:[#allocation346_spill] sm:$0xff] }
 0x5f0   :  { %v7988_v50 = vmax.f32 %v17858_v19, %v7924_v51  ;;  %v7927_v49 = vmax.f32 %v15648_v35, %v7617_v8  ;;  %v7609_v37 = vadd.f32 %v7608_v52, %v6552_v17  ;;  %v8061_v61 = vadd.f32 %v15976_v46, %v7990_v55 }
 0x5f1   :  { %v10520_v5 = vpop.f32.mrf.mxu0  ;;  %v17865_v17 = vmax.f32 %v14556_v2, %v15082_v12 }
 0x5f2   :  { %v7991_v40 = vmax.f32 %v17862_v58, %v7927_v49  ;;  %v7925_v1 = vmax.f32 %v15655_v25, %v7609_v37  ;;  %v7630_v9 = vadd.f32 %v10520_v5, %v6573_v7  ;;  %v8125_v45 = vmax.f32 %v8061_v61, 0.0  ;;  %v17866_v25 = vld [vmem:[#allocation391_spill] sm:$0xff]  ;;  %v17867_v7 = vld [vmem:[#allocation141_spill] sm:$0xff] }
 0x5f3   :  { %v7621_v51 = vpop.f32.mrf.mxu0  ;;  %v8059_v11 = vadd.f32 %v15976_v46, %v7988_v50  ;;  %v17868_v37 = vmax.f32 %v17866_v25, %v17867_v7  ;;  %v17870_v58 = vld [vmem:[#allocation97_spill] sm:$0xff]  ;;  %v17873_v50 = vld [vmem:[#allocation74_spill] sm:$0xff] }
 0x5f4   :  { %v8062_v35 = vadd.f32 %v15976_v46, %v7991_v40  ;;  %v7989_v55 = vmax.f32 %v17865_v17, %v7925_v1  ;;  %v7930_v8 = vmax.f32 %v15662_v26, %v7630_v9  ;;  %v7622_v52 = vadd.f32 %v7621_v51, %v6565_v6  ;;  %v17871_v26 = vld [vmem:[#allocation356_spill] sm:$0xff]  ;;  %v17872_v6 = vld [vmem:[#allocation57_spill] sm:$0xff] }
 0x5f5   :  { %v10521_v19 = vpop.f32.mrf.mxu0  ;;  %v6568_v40 = vadd.f32 %v17870_v58, %v17869_v56  ;;  %v6589_v61 = vadd.f32 %v17872_v6, %v17871_v26  ;;  %v17874_v9 = vmax.f32 %v14568_v42, %v17873_v50  ;;  %v17875_v17 = vld [vmem:[#allocation352_spill] sm:$0xff]  ;;  %v17885_v50 = vld [vmem:[#allocation77_spill] sm:$0xff] }
 0x5f6   :  { %v8126_v49 = vmax.f32 %v8062_v35, 0.0  ;;  %v7994_v5 = vmax.f32 %v17868_v37, %v7930_v8  ;;  %v7928_v3 = vmax.f32 %v15667_v29, %v7622_v52  ;;  %v7633_v14 = vadd.f32 %v10521_v19, %v6576_v21  ;;  %v17876_v8 = vld [vmem:[#allocation49_spill] sm:$0xff]  ;;  %v17877_v19 = vld [vmem:[#allocation72_spill] sm:$0xff] }
 0x5f7   :  { %v7624_v2 = vpop.f32.mrf.mxu0  ;;  %v8060_v12 = vadd.f32 %v15976_v46, %v7989_v55  ;;  %v8123_v29 = vmax.f32 %v8059_v11, 0.0  ;;  %v6581_v52 = vadd.f32 %v17876_v8, %v17875_v17  ;;  %v17878_v55 = vmax.f32 %v14580_v27, %v17877_v19  ;;  %v17887_v17 = vld [vmem:[#allocation364_spill] sm:$0xff]  ;;  %v17889_v8 = vld [vmem:[#allocation395_spill] sm:$0xff] }
 0x5f8   :  { %v8188_v1 = vpack.c.bf16 %v8126_v49, %v8125_v45  ;;  %v7992_v30 = vmax.f32 %v17874_v9, %v7928_v3  ;;  %v7931_v15 = vmax.f32 %v15676_v60, %v7633_v14  ;;  %v7625_v51 = vadd.f32 %v7624_v2, %v6568_v40  ;;  %v17879_v3 = vld [vmem:[#allocation358_spill] sm:$0xff]  ;;  %v17880_v60 = vld [vmem:[#allocation109_spill] sm:$0xff]  ;;  %v17882_v2 = vld [vmem:[#allocation107_spill] sm:$0xff] }
 0x5f9   :  { %v10524_v35 = vpop.f32.mrf.mxu0  ;;  %v8124_v21 = vmax.f32 %v8060_v12, 0.0  ;;  %v8065_v45 = vadd.f32 %v15976_v46, %v7994_v5  ;;  %v6592_v14 = vadd.f32 %v17880_v60, %v17879_v3  ;;  %v17881_v40 = vld [vmem:[#allocation354_spill] sm:$0xff]  ;;  %v17883_v27 = vmax.f32 %v14590_v22, %v15118_v20 }
 0x5fa   :  { %v7995_v25 = vmax.f32 %v17878_v55, %v7931_v15  ;;  %v7646_v7 = vadd.f32 %v10524_v35, %v6589_v61  ;;  %v7929_v49 = vmax.f32 %v15683_v62, %v7625_v51  ;;  %v6584_v12 = vadd.f32 %v17882_v2, %v17881_v40  ;;  %v17884_v61 = vld [vmem:[#allocation394_spill] sm:$0xff] }
 0x5fb   :  { %v7637_v42 = vpop.f32.mrf.mxu0  ;;  %v8187_v37 = vpack.c.bf16 %v8124_v21, %v8123_v29  ;;  %v8063_v62 = vadd.f32 %v15976_v46, %v7992_v30  ;;  %v17886_v9 = vmax.f32 %v17884_v61, %v17885_v50  ;;  %v8129_v35 = vmax.f32 %v8065_v45, 0.0  ;;  %v17888_v20 = vld [vmem:[#allocation62_spill] sm:$0xff] }
 0x5fc   :  { %v8066_v11 = vadd.f32 %v15976_v46, %v7995_v25  ;;  %v7934_v56 = vmax.f32 %v15690_v54, %v7646_v7  ;;  %v7638_v58 = vadd.f32 %v7637_v42, %v6581_v52  ;;  %v7993_v26 = vmax.f32 %v17883_v27, %v7929_v49  ;;  %v17890_v52 = vld [vmem:[#allocation153_spill] sm:$0xff] }
 0x5fd   :  { %10594 = vmatprep.mubr.bf16.mxu1 %v8187_v37  ;;  %v10525_v5 = vpop.f32.mrf.mxu0  ;;  %v6605_v22 = vadd.f32 %v17888_v20, %v17887_v17  ;;  %v17891_v19 = vmax.f32 %v17889_v8, %v17890_v52  ;;  %v8127_v49 = vmax.f32 %v8063_v62, 0.0  ;;  %v17892_v37 = vld [vmem:[#allocation360_spill] sm:$0xff]  ;;  %v17894_v3 = vmax.f32 %v14614_v33, %v15145_v57  ;;  %v17898_v57 = vld [vmem:[#allocation362_spill] sm:$0xff]  ;;  %v17904_v20 = vld [vmem:[#allocation69_spill] sm:$0xff] }
 0x5fe   :  { %v8130_v6 = vmax.f32 %v8066_v11, 0.0  ;;  %v7998_v15 = vmax.f32 %v17886_v9, %v7934_v56  ;;  %v7932_v51 = vmax.f32 %v15695_v0, %v7638_v58  ;;  %v7649_v54 = vadd.f32 %v10525_v5, %v6592_v14  ;;  %10595 = vmatmul.mubr.bf16.vlgmr.msra.gmra.mxu1 %v8188_v1  ;;  %v17893_v1 = vld [vmem:[#allocation56_spill] sm:$0xff]  ;;  %v17895_v56 = vld [vmem:[#allocation366_spill] sm:$0xff]  ;;  %v17896_v58 = vld [vmem:[#allocation119_spill] sm:$0xff] }
 0x5ff   :  { %v7640_v29 = vpop.f32.mrf.mxu0  ;;  %v8064_v21 = vadd.f32 %v15976_v46, %v7993_v26  ;;  %v6597_v45 = vadd.f32 %v17893_v1, %v17892_v37  ;;  %v6608_v40 = vadd.f32 %v17896_v58, %v17895_v56  ;;  %v17897_v26 = vmax.f32 %v14624_v24, %v15157_v48  ;;  %v17903_v17 = vld [vmem:[#allocation372_spill] sm:$0xff]  ;;  %v17905_v8 = vld [vmem:[#allocation155_spill] sm:$0xff] }
 0x600   :  { %v7996_v30 = vmax.f32 %v17891_v19, %v7932_v51  ;;  %v7935_v55 = vmax.f32 %v15704_v36, %v7649_v54  ;;  %v7641_v25 = vadd.f32 %v7640_v29, %v6584_v12  ;;  %v8190_v0 = vpack.c.bf16 %v8130_v6, %v8129_v35  ;;  %v17899_v6 = vld [vmem:[#allocation121_spill] sm:$0xff]  ;;  %v17901_v51 = vld [vmem:[#allocation79_spill] sm:$0xff] }
 0x601   :  { %v10528_v7 = vpop.f32.mrf.mxu0  ;;  %v8128_v42 = vmax.f32 %v8064_v21, 0.0  ;;  %v8069_v36 = vadd.f32 %v15976_v46, %v7998_v15  ;;  %v17900_v15 = vld [vmem:[#allocation398_spill] sm:$0xff]  ;;  %v17906_v52 = vmax.f32 %v14639_v38, %v17905_v8  ;;  %v17909_v1 = vld [vmem:[#allocation151_spill] sm:$0xff]  ;;  %v17912_v38 = vld [vmem:[#allocation133_spill] sm:$0xff] }
 0x602   :  { %v7999_v60 = vmax.f32 %v17894_v3, %v7935_v55  ;;  %v7933_v14 = vmax.f32 %v15711_v63, %v7641_v25  ;;  %v7662_v11 = vadd.f32 %v10528_v7, %v6605_v22  ;;  %v6600_v63 = vadd.f32 %v17899_v6, %v17898_v57  ;;  %v17916_v6 = vld [vmem:[#allocation401_spill] sm:$0xff]  ;;  %v17923_v8 = vld [vmem:[#allocation376_spill] sm:$0xff] }
 0x603   :  { %v7653_v2 = vpop.f32.mrf.mxu0  ;;  %v8189_v12 = vpack.c.bf16 %v8128_v42, %v8127_v49  ;;  %v8067_v50 = vadd.f32 %v15976_v46, %v7996_v30  ;;  %v17902_v54 = vmax.f32 %v17900_v15, %v17901_v51  ;;  %v8133_v24 = vmax.f32 %v8069_v36, 0.0  ;;  %v17907_v42 = vld [vmem:[#allocation368_spill] sm:$0xff] }
 0x604   :  { %v8070_v27 = vadd.f32 %v15976_v46, %v7999_v60  ;;  %v7997_v5 = vmax.f32 %v17897_v26, %v7933_v14  ;;  %v7938_v62 = vmax.f32 %v15718_v23, %v7662_v11  ;;  %v7654_v33 = vadd.f32 %v7653_v2, %v6597_v45  ;;  %v17911_v11 = vld [vmem:[#allocation374_spill] sm:$0xff]  ;;  %v17919_v51 = vld [vmem:[#allocation380_spill] sm:$0xff] }
 0x605   :  { %10598 = vmatprep.mubr.bf16.mxu1 %v8189_v12  ;;  %v10529_v61 = vpop.f32.mrf.mxu0  ;;  %v6621_v22 = vadd.f32 %v17904_v20, %v17903_v17  ;;  %v8131_v7 = vmax.f32 %v8067_v50, 0.0  ;;  %v17910_v45 = vmax.f32 %v14651_v10, %v17909_v1  ;;  %v6624_v56 = vadd.f32 %v17912_v38, %v17911_v11  ;;  %v17914_v26 = vld [vmem:[#allocation370_spill] sm:$0xff]  ;;  %v17931_v11 = vld [vmem:[#allocation73_spill] sm:$0xff] }
 0x606   :  { %v8134_v9 = vmax.f32 %v8070_v27, 0.0  ;;  %v8002_v35 = vmax.f32 %v17902_v54, %v7938_v62  ;;  %v7936_v29 = vmax.f32 %v15723_v59, %v7654_v33  ;;  %v7665_v21 = vadd.f32 %v10529_v61, %v6608_v40  ;;  %10599 = vmatmul.mubr.bf16.gmra.mxu1 %v8190_v0  ;;  %v17908_v0 = vld [vmem:[#allocation63_spill] sm:$0xff] }
 0x607   :  { %v7656_v48 = vpop.f32.mrf.mxu0  ;;  %v8068_v23 = vadd.f32 %v15976_v46, %v7997_v5  ;;  %v6613_v37 = vadd.f32 %v17908_v0, %v17907_v42  ;;  %v17913_v2 = vmax.f32 %v14661_v13, %v15193_v39  ;;  %v17915_v5 = vld [vmem:[#allocation131_spill] sm:$0xff] }
 0x608   :  { %v8000_v19 = vmax.f32 %v17906_v52, %v7936_v29  ;;  %v7939_v30 = vmax.f32 %v15732_v47, %v7665_v21  ;;  %v7657_v55 = vadd.f32 %v7656_v48, %v6600_v63  ;;  %v8192_v59 = vpack.c.bf16 %v8134_v9, %v8133_v24  ;;  %v17917_v63 = vld [vmem:[#allocation161_spill] sm:$0xff]  ;;  %v17920_v54 = vld [vmem:[#allocation71_spill] sm:$0xff]  ;;  %v17924_v52 = vld [vmem:[#allocation68_spill] sm:$0xff] }
 0x609   :  { %v10532_v25 = vpop.f32.mrf.mxu0  ;;  %v8132_v49 = vmax.f32 %v8068_v23, 0.0  ;;  %v8073_v47 = vadd.f32 %v15976_v46, %v8002_v35  ;;  %v17918_v61 = vmax.f32 %v17916_v6, %v17917_v63  ;;  %v6637_v35 = vadd.f32 %v17920_v54, %v17919_v51  ;;  %v17921_v29 = vld [vmem:[#allocation81_spill] sm:$0xff]  ;;  %v17941_v63 = vld [vmem:[#allocation166_spill] sm:$0xff]  ;;  %v17943_v51 = vld [vmem:[#allocation143_spill] sm:$0xff] }
 0x60a   :  { %v8003_v3 = vmax.f32 %v17910_v45, %v7939_v30  ;;  %v7937_v60 = vmax.f32 %v15739_v31, %v7657_v55  ;;  %v7678_v14 = vadd.f32 %v10532_v25, %v6621_v22  ;;  %v6616_v31 = vadd.f32 %v17915_v5, %v17914_v26  ;;  %v17925_v30 = vld [vmem:[#allocation86_spill] sm:$0xff]  ;;  %v17936_v26 = vld [vmem:[#allocation3_spill] sm:$0xff]  ;;  %v17937_v5 = vld [vmem:[#allocation149_spill] sm:$0xff] }
 0x60b   :  { %v7669_v58 = vpop.f32.mrf.mxu0  ;;  %v8191_v40 = vpack.c.bf16 %v8132_v49, %v8131_v7  ;;  %v8071_v33 = vadd.f32 %v15976_v46, %v8000_v19  ;;  %v8137_v39 = vmax.f32 %v8073_v47, 0.0  ;;  %v17922_v21 = vmax.f32 %v14673_v44, %v17921_v29  ;;  %v17928_v44 = vld [vmem:[#allocation147_spill] sm:$0xff]  ;;  %v17945_v29 = vld [vmem:[#allocation169_spill] sm:$0xff] }
 0x60c   :  { %v8074_v36 = vadd.f32 %v15976_v46, %v8003_v3  ;;  %v8001_v12 = vmax.f32 %v17913_v2, %v7937_v60  ;;  %v7942_v27 = vmax.f32 %v15746_v43, %v7678_v14  ;;  %v7670_v10 = vadd.f32 %v7669_v58, %v6613_v37  ;;  %v17930_v14 = vld [vmem:[#allocation378_spill] sm:$0xff]  ;;  %v17932_v58 = vld [vmem:[#allocation404_spill] sm:$0xff] }
 0x60d   :  { %10602 = vmatprep.mubr.bf16.mxu1 %v8191_v40  ;;  %v10533_v62 = vpop.f32.mrf.mxu0  ;;  %v8135_v20 = vmax.f32 %v8071_v33, 0.0  ;;  %v6629_v19 = vadd.f32 %v17924_v52, %v17923_v8  ;;  %v17926_v55 = vmax.f32 %v14685_v16, %v17925_v30  ;;  %v17929_v45 = vmax.f32 %v14695_v28, %v15229_v34  ;;  %v17933_v40 = vld [vmem:[#allocation82_spill] sm:$0xff]  ;;  %v17939_v33 = vld [vmem:[#allocation159_spill] sm:$0xff] }
 0x60e   :  { %v8138_v57 = vmax.f32 %v8074_v36, 0.0  ;;  %v8006_v50 = vmax.f32 %v17918_v61, %v7942_v27  ;;  %v7940_v9 = vmax.f32 %v15751_v32, %v7670_v10  ;;  %v7681_v15 = vadd.f32 %v10533_v62, %v6624_v56  ;;  %10603 = vmatmul.mubr.bf16.gmra.mxu1 %v8192_v59  ;;  %v17927_v59 = vld [vmem:[#allocation382_spill] sm:$0xff]  ;;  %v17938_v62 = vld [vmem:[#allocation405_spill] sm:$0xff] }
 0x60f   :  { %v7672_v13 = vpop.f32.mrf.mxu0  ;;  %v8072_v43 = vadd.f32 %v15976_v46, %v8001_v12  ;;  %v6640_v42 = vadd.f32 %v17928_v44, %v17927_v59  ;;  %v17934_v36 = vmax.f32 %v17932_v58, %v17933_v40  ;;  %v17935_v12 = vld [vmem:[#allocation160_spill] sm:$0xff]  ;;  %v17953_v59 = vld [vmem:[#allocation162_spill] sm:$0xff] }
 0x610   :  { %v8004_v24 = vmax.f32 %v17922_v21, %v7940_v9  ;;  %v7943_v48 = vmax.f32 %v15760_v41, %v7681_v15  ;;  %v7673_v23 = vadd.f32 %v7672_v13, %v6616_v31  ;;  %v8194_v32 = vpack.c.bf16 %v8138_v57, %v8137_v39 }
 0x611   :  { %v10536_v17 = vpop.f32.mrf.mxu0  ;;  %v8136_v22 = vmax.f32 %v8072_v43, 0.0  ;;  %v8077_v41 = vadd.f32 %v15976_v46, %v8006_v50  ;;  %v6653_v31 = vadd.f32 %v17937_v5, %v17936_v26  ;;  %v17940_v57 = vmax.f32 %v17938_v62, %v17939_v33  ;;  %v17942_v43 = vld [vmem:[#allocation384_spill] sm:$0xff] }
 0x612   :  { %v8007_v25 = vmax.f32 %v17926_v55, %v7943_v48  ;;  %v7941_v7 = vmax.f32 %v15767_v53, %v7673_v23  ;;  %v7694_v49 = vadd.f32 %v10536_v17, %v6637_v35  ;;  %v6632_v53 = vadd.f32 %v17931_v11, %v17930_v14  ;;  %v17944_v35 = vld [vmem:[#allocation407_spill] sm:$0xff]  ;;  %v17950_v55 = vld [vmem:[#allocation408_spill] sm:$0xff] }
 0x613   :  { %v7685_v0 = vpop.f32.mrf.mxu0  ;;  %v8193_v37 = vpack.c.bf16 %v8136_v22, %v8135_v20  ;;  %v8075_v56 = vadd.f32 %v15976_v46, %v8004_v24  ;;  %v8141_v34 = vmax.f32 %v8077_v41, 0.0  ;;  %v6645_v54 = vadd.f32 %v17943_v51, %v17942_v43  ;;  %v17947_v48 = vld [vmem:[#allocation243_spill] sm:$0xff]  ;;  %v17948_v20 = vld [vmem:[#allocation4_spill] sm:$0xff]  ;;  %v17954_v41 = vld [vmem:[#allocation386_spill] sm:$0xff] }
 0x614   :  { %v8078_v1 = vadd.f32 %v15976_v46, %v8007_v25  ;;  %v8005_v3 = vmax.f32 %v17929_v45, %v7941_v7  ;;  %v7946_v60 = vmax.f32 %v15774_v18, %v7694_v49  ;;  %v7686_v16 = vadd.f32 %v7685_v0, %v6629_v19  ;;  %v17949_v22 = vld [vmem:[#allocation76_spill] sm:$0xff]  ;;  %v17955_v0 = vld [vmem:[#allocation75_spill] sm:$0xff] }
 0x615   :  { %10606 = vmatprep.mubr.bf16.mxu1 %v8193_v37  ;;  %v10537_v38 = vpop.f32.mrf.mxu0  ;;  %v8139_v15 = vmax.f32 %v8075_v56, 0.0  ;;  %v17946_v21 = vmax.f32 %v17944_v35, %v17945_v29  ;;  %v17951_v25 = vld [vmem:[#allocation88_spill] sm:$0xff]  ;;  %v6648_v37 = vadd.f32 %v17955_v0, %v17954_v41 }
 0x616   :  { %v8142_v47 = vmax.f32 %v8078_v1, 0.0  ;;  %v8010_v2 = vmax.f32 %v17934_v36, %v7946_v60  ;;  %v7944_v27 = vmax.f32 %v17935_v12, %v7686_v16  ;;  %v7697_v10 = vadd.f32 %v10537_v38, %v6640_v42  ;;  %10607 = vmatmul.mubr.bf16.gmra.mxu1 %v8194_v32  ;;  %v17956_v60 = vld [vmem:[#allocation78_spill] sm:$0xff]  ;;  %v17960_v36 = vld [vmem:[#allocation7_spill] sm:$0xff]  ;;  %v17973_v35 = vld [vmem:[#allocation92_spill] sm:$0xff] }
 0x617   :  { %v7688_v28 = vpop.f32.mrf.mxu0  ;;  %v8076_v18 = vadd.f32 %v15976_v46, %v8005_v3  ;;  %v6656_v32 = vadd.f32 %v17949_v22, %v17948_v20  ;;  %v17952_v7 = vmax.f32 %v17950_v55, %v17951_v25  ;;  %v17957_v16 = vld [vmem:[#allocation94_spill] sm:$0xff]  ;;  %v17975_v20 = vld [vmem:[#allocation100_spill] sm:$0xff]  ;;  %v17979_v55 = vld [vmem:[#allocation157_spill] sm:$0xff] }
 0x618   :  { %v8008_v6 = vmax.f32 %v17940_v57, %v7944_v27  ;;  %v7947_v61 = vmax.f32 %v17941_v63, %v7697_v10  ;;  %v7689_v50 = vadd.f32 %v7688_v28, %v6632_v53  ;;  %v8196_v13 = vpack.c.bf16 %v8142_v47, %v8141_v34  ;;  %v17959_v53 = vld [vmem:[#allocation239_spill] sm:$0xff]  ;;  %v17967_v63 = vld [vmem:[#allocation84_spill] sm:$0xff] }
 0x619   :  { %v10540_v9 = vpop.f32.mrf.mxu0  ;;  %v8140_v39 = vmax.f32 %v8076_v18, 0.0  ;;  %v8081_v8 = vadd.f32 %v15976_v46, %v8010_v2  ;;  %v17958_v14 = vmax.f32 %v17956_v60, %v17957_v16  ;;  %v17961_v2 = vld [vmem:[#allocation163_spill] sm:$0xff]  ;;  %v17965_v18 = vld [vmem:[#allocation172_spill] sm:$0xff] }
 0x61a   :  { %v8011_v24 = vmax.f32 %v17946_v21, %v7947_v61  ;;  %v7945_v23 = vmax.f32 %v17947_v48, %v7689_v50  ;;  %v7710_v17 = vadd.f32 %v10540_v9, %v6653_v31  ;;  %v8079_v45 = vadd.f32 %v15976_v46, %v8008_v6  ;;  %v17962_v27 = vld [vmem:[#allocation31_spill] sm:$0xff]  ;;  %v17966_v6 = vld [vmem:[#allocation5_spill] sm:$0xff]  ;;  %v17968_v50 = vld [vmem:[#allocation28_spill] sm:$0xff] }
 0x61b   :  { %v7701_v52 = vpop.f32.mrf.mxu0  ;;  %v8195_v19 = vpack.c.bf16 %v8140_v39, %v8139_v15  ;;  %v8145_v47 = vmax.f32 %v8081_v8, 0.0  ;;  %v6669_v12 = vadd.f32 %v17961_v2, %v17960_v36  ;;  %v17963_v10 = vld [vmem:[#allocation171_spill] sm:$0xff]  ;;  %v6661_v61 = vadd.f32 %v17967_v63, %v17966_v6  ;;  %v17977_v8 = vld [vmem:[#allocation168_spill] sm:$0xff] }
 0x61c   :  { %v8082_v30 = vadd.f32 %v15976_v46, %v8011_v24  ;;  %v8009_v49 = vmax.f32 %v17952_v7, %v7945_v23  ;;  %v7950_v44 = vmax.f32 %v17953_v59, %v7710_v17  ;;  %v7702_v42 = vadd.f32 %v7701_v52, %v6645_v54  ;;  %v17969_v9 = vld [vmem:[#allocation167_spill] sm:$0xff]  ;;  %v17972_v54 = vld [vmem:[#allocation8_spill] sm:$0xff] }
 0x61d   :  { %10610 = vmatprep.mubr.bf16.mxu1 %v8195_v19  ;;  %v10541_v1 = vpop.f32.mrf.mxu0  ;;  %v17964_v34 = vmax.f32 %v17962_v27, %v17963_v10  ;;  %v8143_v62 = vmax.f32 %v8079_v45, 0.0  ;;  %v17970_v15 = vmax.f32 %v17968_v50, %v17969_v9  ;;  %v6672_v29 = vadd.f32 %v17973_v35, %v17972_v54  ;;  %v17974_v17 = vld [vmem:[#allocation80_spill] sm:$0xff]  ;;  %v17997_v50 = vld [vmem:[#allocation102_spill] sm:$0xff] }
 0x61e   :  { %v8146_v3 = vmax.f32 %v8082_v30, 0.0  ;;  %v8014_v11 = vmax.f32 %v17958_v14, %v7950_v44  ;;  %v7948_v38 = vmax.f32 %v17959_v53, %v7702_v42  ;;  %v7713_v56 = vadd.f32 %v10541_v1, %v6656_v32  ;;  %10611 = vmatmul.mubr.bf16.gmra.mxu1 %v8196_v13  ;;  %v17971_v13 = vld [vmem:[#allocation249_spill] sm:$0xff]  ;;  %v17978_v30 = vld [vmem:[#allocation6_spill] sm:$0xff]  ;;  %v17981_v42 = vld [vmem:[#allocation96_spill] sm:$0xff] }
 0x61f   :  { %v7704_v58 = vpop.f32.mrf.mxu0  ;;  %v8080_v40 = vadd.f32 %v15976_v46, %v8009_v49  ;;  %v17976_v22 = vmax.f32 %v17974_v17, %v17975_v20  ;;  %v6664_v25 = vadd.f32 %v17979_v55, %v17978_v30  ;;  %v17980_v44 = vld [vmem:[#allocation89_spill] sm:$0xff]  ;;  %v17984_v14 = vld [vmem:[#allocation11_spill] sm:$0xff]  ;;  %v17999_v54 = vld [vmem:[#allocation98_spill] sm:$0xff] }
 0x620   :  { %v8012_v28 = vmax.f32 %v17964_v34, %v7948_v38  ;;  %v7951_v26 = vmax.f32 %v17965_v18, %v7713_v56  ;;  %v7705_v5 = vadd.f32 %v7704_v58, %v6648_v37  ;;  %v8198_v57 = vpack.c.bf16 %v8146_v3, %v8145_v47  ;;  %v17983_v37 = vld [vmem:[#allocation245_spill] sm:$0xff]  ;;  %v18003_v17 = vld [vmem:[#allocation90_spill] sm:$0xff] }
 0x621   :  { %v10544_v31 = vpop.f32.mrf.mxu0  ;;  %v8144_v33 = vmax.f32 %v8080_v40, 0.0  ;;  %v8085_v21 = vadd.f32 %v15976_v46, %v8014_v11  ;;  %v17982_v41 = vmax.f32 %v17980_v44, %v17981_v42  ;;  %v17985_v11 = vld [vmem:[#allocation177_spill] sm:$0xff]  ;;  %v17989_v40 = vld [vmem:[#allocation174_spill] sm:$0xff] }
 0x622   :  { %v8015_v39 = vmax.f32 %v17970_v15, %v7951_v26  ;;  %v7949_v43 = vmax.f32 %v17971_v13, %v7705_v5  ;;  %v7726_v51 = vadd.f32 %v10544_v31, %v6669_v12  ;;  %v8083_v49 = vadd.f32 %v15976_v46, %v8012_v28  ;;  %v17986_v38 = vld [vmem:[#allocation33_spill] sm:$0xff]  ;;  %v17992_v5 = vld [vmem:[#allocation39_spill] sm:$0xff] }
 0x623   :  { %v7717_v24 = vpop.f32.mrf.mxu0  ;;  %v8197_v48 = vpack.c.bf16 %v8144_v33, %v8143_v62  ;;  %v8149_v3 = vmax.f32 %v8085_v21, 0.0  ;;  %v6685_v53 = vadd.f32 %v17985_v11, %v17984_v14  ;;  %v17987_v56 = vld [vmem:[#allocation173_spill] sm:$0xff]  ;;  %v17993_v31 = vld [vmem:[#allocation179_spill] sm:$0xff]  ;;  %v18001_v21 = vld [vmem:[#allocation170_spill] sm:$0xff] }
 0x624   :  { %v8086_v23 = vadd.f32 %v15976_v46, %v8015_v39  ;;  %v8013_v32 = vmax.f32 %v17976_v22, %v7949_v43  ;;  %v7954_v52 = vmax.f32 %v17977_v8, %v7726_v51  ;;  %v7718_v19 = vadd.f32 %v7717_v24, %v6661_v61  ;;  %v17990_v28 = vld [vmem:[#allocation9_spill] sm:$0xff]  ;;  %v17996_v61 = vld [vmem:[#allocation12_spill] sm:$0xff]  ;;  %v17998_v51 = vld [vmem:[#allocation91_spill] sm:$0xff] }
 0x625   :  { %10614 = vmatprep.mubr.bf16.mxu1 %v8197_v48  ;;  %v10545_v7 = vpop.f32.mrf.mxu0  ;;  %v17988_v47 = vmax.f32 %v17986_v38, %v17987_v56  ;;  %v8147_v27 = vmax.f32 %v8083_v49, 0.0  ;;  %v17991_v18 = vld [vmem:[#allocation165_spill] sm:$0xff]  ;;  %v17994_v62 = vmax.f32 %v17992_v5, %v17993_v31  ;;  %v6688_v9 = vadd.f32 %v17997_v50, %v17996_v61  ;;  %v18021_v5 = vld [vmem:[#allocation116_spill] sm:$0xff]  ;;  %v18023_v61 = vld [vmem:[#allocation110_spill] sm:$0xff] }
 0x626   :  { %v8150_v59 = vmax.f32 %v8086_v23, 0.0  ;;  %v8018_v0 = vmax.f32 %v17982_v41, %v7954_v52  ;;  %v7952_v1 = vmax.f32 %v17983_v37, %v7718_v19  ;;  %v7729_v45 = vadd.f32 %v10545_v7, %v6672_v29  ;;  %10615 = vmatmul.mubr.bf16.gmra.mxu1 %v8198_v57  ;;  %v17995_v57 = vld [vmem:[#allocation251_spill] sm:$0xff]  ;;  %v18002_v23 = vld [vmem:[#allocation10_spill] sm:$0xff]  ;;  %v18005_v19 = vld [vmem:[#allocation108_spill] sm:$0xff] }
 0x627   :  { %v7720_v60 = vpop.f32.mrf.mxu0  ;;  %v8084_v16 = vadd.f32 %v15976_v46, %v8013_v32  ;;  %v6677_v26 = vadd.f32 %v17991_v18, %v17990_v28  ;;  %v18000_v35 = vmax.f32 %v17998_v51, %v17999_v54  ;;  %v6680_v20 = vadd.f32 %v18003_v17, %v18002_v23  ;;  %v18004_v52 = vld [vmem:[#allocation87_spill] sm:$0xff]  ;;  %v18027_v51 = vld [vmem:[#allocation104_spill] sm:$0xff] }
 0x628   :  { %v8016_v58 = vmax.f32 %v17988_v47, %v7952_v1  ;;  %v7955_v36 = vmax.f32 %v17989_v40, %v7729_v45  ;;  %v7721_v2 = vadd.f32 %v7720_v60, %v6664_v25  ;;  %v8200_v34 = vpack.c.bf16 %v8150_v59, %v8149_v3  ;;  %v18007_v25 = vld [vmem:[#allocation247_spill] sm:$0xff]  ;;  %v18010_v1 = vld [vmem:[#allocation45_spill] sm:$0xff] }
 0x629   :  { %v10548_v12 = vpop.f32.mrf.mxu0  ;;  %v8148_v10 = vmax.f32 %v8084_v16, 0.0  ;;  %v8089_v15 = vadd.f32 %v15976_v46, %v8018_v0  ;;  %v18006_v30 = vmax.f32 %v18004_v52, %v18005_v19  ;;  %v18008_v41 = vld [vmem:[#allocation15_spill] sm:$0xff]  ;;  %v18011_v45 = vld [vmem:[#allocation185_spill] sm:$0xff]  ;;  %v18013_v16 = vld [vmem:[#allocation180_spill] sm:$0xff] }
 0x62a   :  { %v8019_v33 = vmax.f32 %v17994_v62, %v7955_v36  ;;  %v7953_v6 = vmax.f32 %v17995_v57, %v7721_v2  ;;  %v7742_v63 = vadd.f32 %v10548_v12, %v6685_v53  ;;  %v8087_v32 = vadd.f32 %v15976_v46, %v8016_v58  ;;  %v18009_v0 = vld [vmem:[#allocation187_spill] sm:$0xff]  ;;  %v18014_v58 = vld [vmem:[#allocation13_spill] sm:$0xff] }
 0x62b   :  { %v7733_v39 = vpop.f32.mrf.mxu0  ;;  %v8199_v13 = vpack.c.bf16 %v8148_v10, %v8147_v27  ;;  %v8153_v59 = vmax.f32 %v8089_v15, 0.0  ;;  %v6701_v37 = vadd.f32 %v18009_v0, %v18008_v41  ;;  %v18012_v3 = vmax.f32 %v18010_v1, %v18011_v45  ;;  %v18015_v40 = vld [vmem:[#allocation175_spill] sm:$0xff]  ;;  %v18016_v2 = vld [vmem:[#allocation41_spill] sm:$0xff]  ;;  %v18025_v15 = vld [vmem:[#allocation176_spill] sm:$0xff] }
 0x62c   :  { %v8090_v43 = vadd.f32 %v15976_v46, %v8019_v33  ;;  %v8017_v29 = vmax.f32 %v18000_v35, %v7953_v6  ;;  %v7958_v24 = vmax.f32 %v18001_v21, %v7742_v63  ;;  %v7734_v48 = vadd.f32 %v7733_v39, %v6677_v26  ;;  %v18017_v12 = vld [vmem:[#allocation181_spill] sm:$0xff]  ;;  %v18020_v26 = vld [vmem:[#allocation16_spill] sm:$0xff] }
 0x62d   :  { %10618 = vmatprep.mubr.bf16.mxu1 %v8199_v13  ;;  %v10549_v22 = vpop.f32.mrf.mxu0  ;;  %v8151_v38 = vmax.f32 %v8087_v32, 0.0  ;;  %v6693_v36 = vadd.f32 %v18015_v40, %v18014_v58  ;;  %v18018_v27 = vmax.f32 %v18016_v2, %v18017_v12  ;;  %v6704_v31 = vadd.f32 %v18021_v5, %v18020_v26  ;;  %v18022_v63 = vld [vmem:[#allocation93_spill] sm:$0xff]  ;;  %v18045_v2 = vld [vmem:[#allocation126_spill] sm:$0xff]  ;;  %v18047_v26 = vld [vmem:[#allocation112_spill] sm:$0xff] }
 0x62e   :  { %v8154_v8 = vmax.f32 %v8090_v43, 0.0  ;;  %v8022_v55 = vmax.f32 %v18006_v30, %v7958_v24  ;;  %v7956_v7 = vmax.f32 %v18007_v25, %v7734_v48  ;;  %v7745_v49 = vadd.f32 %v10549_v22, %v6688_v9  ;;  %10619 = vmatmul.mubr.bf16.gmra.mxu1 %v8200_v34  ;;  %v18019_v34 = vld [vmem:[#allocation257_spill] sm:$0xff]  ;;  %v18026_v43 = vld [vmem:[#allocation14_spill] sm:$0xff]  ;;  %v18028_v24 = vld [vmem:[#allocation99_spill] sm:$0xff] }
 0x62f   :  { %v7736_v44 = vpop.f32.mrf.mxu0  ;;  %v8088_v42 = vadd.f32 %v15976_v46, %v8017_v29  ;;  %v18024_v50 = vmax.f32 %v18022_v63, %v18023_v61  ;;  %v6696_v54 = vadd.f32 %v18027_v51, %v18026_v43  ;;  %v18029_v48 = vld [vmem:[#allocation106_spill] sm:$0xff]  ;;  %v18032_v30 = vld [vmem:[#allocation19_spill] sm:$0xff] }
 0x630   :  { %v8020_v60 = vmax.f32 %v18012_v3, %v7956_v7  ;;  %v7959_v14 = vmax.f32 %v18013_v16, %v7745_v49  ;;  %v7737_v11 = vadd.f32 %v7736_v44, %v6680_v20  ;;  %v8202_v47 = vpack.c.bf16 %v8154_v8, %v8153_v59  ;;  %v18031_v20 = vld [vmem:[#allocation253_spill] sm:$0xff]  ;;  %v18034_v7 = vld [vmem:[#allocation43_spill] sm:$0xff]  ;;  %v18051_v63 = vld [vmem:[#allocation114_spill] sm:$0xff] }
 0x631   :  { %v10552_v53 = vpop.f32.mrf.mxu0  ;;  %v8152_v56 = vmax.f32 %v8088_v42, 0.0  ;;  %v8093_v62 = vadd.f32 %v15976_v46, %v8022_v55  ;;  %v18030_v23 = vmax.f32 %v18028_v24, %v18029_v48  ;;  %v18033_v55 = vld [vmem:[#allocation201_spill] sm:$0xff]  ;;  %v18035_v49 = vld [vmem:[#allocation183_spill] sm:$0xff]  ;;  %v18037_v42 = vld [vmem:[#allocation182_spill] sm:$0xff] }
 0x632   :  { %v8023_v10 = vmax.f32 %v18018_v27, %v7959_v14  ;;  %v7957_v28 = vmax.f32 %v18019_v34, %v7737_v11  ;;  %v7758_v18 = vadd.f32 %v10552_v53, %v6701_v37  ;;  %v8091_v29 = vadd.f32 %v15976_v46, %v8020_v60  ;;  %v18038_v60 = vld [vmem:[#allocation17_spill] sm:$0xff] }
 0x633   :  { %v7749_v33 = vpop.f32.mrf.mxu0  ;;  %v8201_v57 = vpack.c.bf16 %v8152_v56, %v8151_v38  ;;  %v8157_v8 = vmax.f32 %v8093_v62, 0.0  ;;  %v6717_v25 = vadd.f32 %v18033_v55, %v18032_v30  ;;  %v18036_v59 = vmax.f32 %v18034_v7, %v18035_v49  ;;  %v18039_v16 = vld [vmem:[#allocation189_spill] sm:$0xff]  ;;  %v18049_v62 = vld [vmem:[#allocation178_spill] sm:$0xff] }
 0x634   :  { %v8094_v6 = vadd.f32 %v15976_v46, %v8023_v10  ;;  %v8021_v9 = vmax.f32 %v18024_v50, %v7957_v28  ;;  %v7962_v39 = vmax.f32 %v18025_v15, %v7758_v18  ;;  %v7750_v13 = vadd.f32 %v7749_v33, %v6693_v36  ;;  %v18040_v11 = vld [vmem:[#allocation53_spill] sm:$0xff]  ;;  %v18044_v36 = vld [vmem:[#allocation20_spill] sm:$0xff] }
 0x635   :  { %10622 = vmatprep.mubr.bf16.mxu1 %v8201_v57  ;;  %v10553_v35 = vpop.f32.mrf.mxu0  ;;  %v8155_v1 = vmax.f32 %v8091_v29, 0.0  ;;  %v6709_v14 = vadd.f32 %v18039_v16, %v18038_v60  ;;  %v18041_v53 = vld [vmem:[#allocation193_spill] sm:$0xff]  ;;  %v6720_v12 = vadd.f32 %v18045_v2, %v18044_v36  ;;  %v18071_v36 = vld [vmem:[#allocation124_spill] sm:$0xff] }
 0x636   :  { %v8158_v21 = vmax.f32 %v8094_v6, 0.0  ;;  %v8026_v17 = vmax.f32 %v18030_v23, %v7962_v39  ;;  %v7960_v22 = vmax.f32 %v18031_v20, %v7750_v13  ;;  %v7761_v32 = vadd.f32 %v10553_v35, %v6704_v31  ;;  %10623 = vmatmul.mubr.bf16.gmra.mxu1 %v8202_v47  ;;  %v18043_v47 = vld [vmem:[#allocation259_spill] sm:$0xff]  ;;  %v18046_v18 = vld [vmem:[#allocation105_spill] sm:$0xff]  ;;  %v18050_v6 = vld [vmem:[#allocation18_spill] sm:$0xff] }
 0x637   :  { %v7752_v52 = vpop.f32.mrf.mxu0  ;;  %v8092_v19 = vadd.f32 %v15976_v46, %v8021_v9  ;;  %v18042_v38 = vmax.f32 %v18040_v11, %v18041_v53  ;;  %v18048_v5 = vmax.f32 %v18046_v18, %v18047_v26  ;;  %v6712_v61 = vadd.f32 %v18051_v63, %v18050_v6  ;;  %v18052_v39 = vld [vmem:[#allocation101_spill] sm:$0xff]  ;;  %v18053_v13 = vld [vmem:[#allocation118_spill] sm:$0xff]  ;;  %v18056_v23 = vld [vmem:[#allocation23_spill] sm:$0xff] }
 0x638   :  { %v8024_v44 = vmax.f32 %v18036_v59, %v7960_v22  ;;  %v7963_v41 = vmax.f32 %v18037_v42, %v7761_v32  ;;  %v7753_v0 = vadd.f32 %v7752_v52, %v6696_v54  ;;  %v8204_v3 = vpack.c.bf16 %v8158_v21, %v8157_v8  ;;  %v18055_v54 = vld [vmem:[#allocation255_spill] sm:$0xff]  ;;  %v18058_v22 = vld [vmem:[#allocation54_spill] sm:$0xff]  ;;  %v18069_v11 = vld [vmem:[#allocation140_spill] sm:$0xff] }
 0x639   :  { %v10556_v37 = vpop.f32.mrf.mxu0  ;;  %v8156_v45 = vmax.f32 %v8092_v19, 0.0  ;;  %v8097_v27 = vadd.f32 %v15976_v46, %v8026_v17  ;;  %v18054_v43 = vmax.f32 %v18052_v39, %v18053_v13  ;;  %v18057_v17 = vld [vmem:[#allocation211_spill] sm:$0xff]  ;;  %v18061_v19 = vld [vmem:[#allocation188_spill] sm:$0xff] }
 0x63a   :  { %v8027_v56 = vmax.f32 %v18042_v38, %v7963_v41  ;;  %v7961_v58 = vmax.f32 %v18043_v47, %v7753_v0  ;;  %v7774_v40 = vadd.f32 %v10556_v37, %v6717_v25  ;;  %v8095_v9 = vadd.f32 %v15976_v46, %v8024_v44  ;;  %v18059_v32 = vld [vmem:[#allocation195_spill] sm:$0xff]  ;;  %v18062_v44 = vld [vmem:[#allocation21_spill] sm:$0xff]  ;;  %v18075_v18 = vld [vmem:[#allocation128_spill] sm:$0xff] }
 0x63b   :  { %v7765_v10 = vpop.f32.mrf.mxu0  ;;  %v8203_v34 = vpack.c.bf16 %v8156_v45, %v8155_v1  ;;  %v8161_v21 = vmax.f32 %v8097_v27, 0.0  ;;  %v6733_v20 = vadd.f32 %v18057_v17, %v18056_v23  ;;  %v18060_v8 = vmax.f32 %v18058_v22, %v18059_v32  ;;  %v18063_v42 = vld [vmem:[#allocation199_spill] sm:$0xff]  ;;  %v18073_v27 = vld [vmem:[#allocation184_spill] sm:$0xff] }
 0x63c   :  { %v8098_v28 = vadd.f32 %v15976_v46, %v8027_v56  ;;  %v8025_v31 = vmax.f32 %v18048_v5, %v7961_v58  ;;  %v7966_v33 = vmax.f32 %v18049_v62, %v7774_v40  ;;  %v7766_v57 = vadd.f32 %v7765_v10, %v6709_v14  ;;  %v18064_v0 = vld [vmem:[#allocation51_spill] sm:$0xff]  ;;  %v18068_v14 = vld [vmem:[#allocation24_spill] sm:$0xff] }
 0x63d   :  { %10626 = vmatprep.mubr.bf16.mxu1 %v8203_v34  ;;  %v10557_v50 = vpop.f32.mrf.mxu0  ;;  %v8159_v7 = vmax.f32 %v8095_v9, 0.0  ;;  %v6725_v41 = vadd.f32 %v18063_v42, %v18062_v44  ;;  %v18065_v37 = vld [vmem:[#allocation191_spill] sm:$0xff]  ;;  %v6736_v53 = vadd.f32 %v18069_v11, %v18068_v14  ;;  %v18095_v14 = vld [vmem:[#allocation122_spill] sm:$0xff] }
 0x63e   :  { %v8162_v15 = vmax.f32 %v8098_v28, 0.0  ;;  %v8030_v51 = vmax.f32 %v18054_v43, %v7966_v33  ;;  %v7964_v35 = vmax.f32 %v18055_v54, %v7766_v57  ;;  %v7777_v29 = vadd.f32 %v10557_v50, %v6720_v12  ;;  %10627 = vmatmul.mubr.bf16.gmra.mxu1 %v8204_v3  ;;  %v18067_v3 = vld [vmem:[#allocation265_spill] sm:$0xff]  ;;  %v18070_v40 = vld [vmem:[#allocation103_spill] sm:$0xff]  ;;  %v18074_v28 = vld [vmem:[#allocation22_spill] sm:$0xff] }
 0x63f   :  { %v7768_v24 = vpop.f32.mrf.mxu0  ;;  %v8096_v48 = vadd.f32 %v15976_v46, %v8025_v31  ;;  %v18066_v1 = vmax.f32 %v18064_v0, %v18065_v37  ;;  %v18072_v2 = vmax.f32 %v18070_v40, %v18071_v36  ;;  %v6728_v26 = vadd.f32 %v18075_v18, %v18074_v28  ;;  %v18076_v33 = vld [vmem:[#allocation113_spill] sm:$0xff]  ;;  %v18077_v57 = vld [vmem:[#allocation120_spill] sm:$0xff]  ;;  %v18080_v43 = vld [vmem:[#allocation27_spill] sm:$0xff] }
 0x640   :  { %v8028_v52 = vmax.f32 %v18060_v8, %v7964_v35  ;;  %v7967_v30 = vmax.f32 %v18061_v19, %v7777_v29  ;;  %v7769_v55 = vadd.f32 %v7768_v24, %v6712_v61  ;;  %v8206_v59 = vpack.c.bf16 %v8162_v15, %v8161_v21  ;;  %v18079_v61 = vld [vmem:[#allocation261_spill] sm:$0xff]  ;;  %v18082_v35 = vld [vmem:[#allocation55_spill] sm:$0xff]  ;;  %v18093_v0 = vld [vmem:[#allocation150_spill] sm:$0xff] }
 0x641   :  { %v10560_v25 = vpop.f32.mrf.mxu0  ;;  %v8160_v49 = vmax.f32 %v8096_v48, 0.0  ;;  %v8101_v38 = vadd.f32 %v15976_v46, %v8030_v51  ;;  %v18078_v6 = vmax.f32 %v18076_v33, %v18077_v57  ;;  %v18081_v51 = vld [vmem:[#allocation225_spill] sm:$0xff]  ;;  %v18085_v48 = vld [vmem:[#allocation190_spill] sm:$0xff] }
 0x642   :  { %v8031_v45 = vmax.f32 %v18066_v1, %v7967_v30  ;;  %v7965_v60 = vmax.f32 %v18067_v3, %v7769_v55  ;;  %v7790_v16 = vadd.f32 %v10560_v25, %v6733_v20  ;;  %v8099_v31 = vadd.f32 %v15976_v46, %v8028_v52  ;;  %v18083_v29 = vld [vmem:[#allocation197_spill] sm:$0xff]  ;;  %v18088_v55 = vld [vmem:[#allocation58_spill] sm:$0xff]  ;;  %v18089_v25 = vld [vmem:[#allocation203_spill] sm:$0xff] }
 0x643   :  { %v7781_v56 = vpop.f32.mrf.mxu0  ;;  %v8205_v47 = vpack.c.bf16 %v8160_v49, %v8159_v7  ;;  %v8165_v15 = vmax.f32 %v8101_v38, 0.0  ;;  %v6749_v54 = vadd.f32 %v18081_v51, %v18080_v43  ;;  %v18084_v21 = vmax.f32 %v18082_v35, %v18083_v29  ;;  %v18086_v52 = vld [vmem:[#allocation25_spill] sm:$0xff]  ;;  %v18097_v38 = vld [vmem:[#allocation186_spill] sm:$0xff] }
 0x644   :  { %v8102_v58 = vadd.f32 %v15976_v46, %v8031_v45  ;;  %v8029_v12 = vmax.f32 %v18072_v2, %v7965_v60  ;;  %v7970_v10 = vmax.f32 %v18073_v27, %v7790_v16  ;;  %v7782_v34 = vadd.f32 %v7781_v56, %v6725_v41  ;;  %v18087_v19 = vld [vmem:[#allocation213_spill] sm:$0xff]  ;;  %v18094_v16 = vld [vmem:[#allocation115_spill] sm:$0xff]  ;;  %v18099_v40 = vld [vmem:[#allocation138_spill] sm:$0xff] }
 0x645   :  { %10630 = vmatprep.mubr.bf16.mxu1 %v8205_v47  ;;  %v10561_v5 = vpop.f32.mrf.mxu0  ;;  %v8163_v22 = vmax.f32 %v8099_v31, 0.0  ;;  %v6741_v30 = vadd.f32 %v18087_v19, %v18086_v52  ;;  %v18090_v7 = vmax.f32 %v18088_v55, %v18089_v25  ;;  %v18092_v41 = vld [vmem:[#allocation29_spill] sm:$0xff]  ;;  %v18096_v11 = vmax.f32 %v18094_v16, %v18095_v14  ;;  %v18117_v55 = vld [vmem:[#allocation152_spill] sm:$0xff] }
 0x646   :  { %v8166_v62 = vmax.f32 %v8102_v58, 0.0  ;;  %v8034_v63 = vmax.f32 %v18078_v6, %v7970_v10  ;;  %v7968_v50 = vmax.f32 %v18079_v61, %v7782_v34  ;;  %v7793_v9 = vadd.f32 %v10561_v5, %v6736_v53  ;;  %10631 = vmatmul.mubr.bf16.gmra.mxu1 %v8206_v59  ;;  %v18091_v59 = vld [vmem:[#allocation267_spill] sm:$0xff]  ;;  %v18098_v58 = vld [vmem:[#allocation26_spill] sm:$0xff]  ;;  %v18101_v34 = vld [vmem:[#allocation132_spill] sm:$0xff] }
 0x647   :  { %v7784_v39 = vpop.f32.mrf.mxu0  ;;  %v8100_v13 = vadd.f32 %v15976_v46, %v8029_v12  ;;  %v6752_v37 = vadd.f32 %v18093_v0, %v18092_v41  ;;  %v6744_v36 = vadd.f32 %v18099_v40, %v18098_v58  ;;  %v18100_v10 = vld [vmem:[#allocation111_spill] sm:$0xff]  ;;  %v18104_v6 = vld [vmem:[#allocation34_spill] sm:$0xff]  ;;  %v18123_v16 = vld [vmem:[#allocation156_spill] sm:$0xff] }
 0x648   :  { %v8032_v24 = vmax.f32 %v18084_v21, %v7968_v50  ;;  %v7971_v23 = vmax.f32 %v18085_v48, %v7793_v9  ;;  %v7785_v17 = vadd.f32 %v7784_v39, %v6728_v26  ;;  %v8208_v8 = vpack.c.bf16 %v8166_v62, %v8165_v15  ;;  %v18103_v26 = vld [vmem:[#allocation263_spill] sm:$0xff]  ;;  %v18106_v50 = vld [vmem:[#allocation61_spill] sm:$0xff]  ;;  %v18119_v41 = vld [vmem:[#allocation134_spill] sm:$0xff] }
 0x649   :  { %v10564_v20 = vpop.f32.mrf.mxu0  ;;  %v8164_v32 = vmax.f32 %v8100_v13, 0.0  ;;  %v8105_v1 = vadd.f32 %v15976_v46, %v8034_v63  ;;  %v18102_v28 = vmax.f32 %v18100_v10, %v18101_v34  ;;  %v18105_v63 = vld [vmem:[#allocation233_spill] sm:$0xff]  ;;  %v18109_v13 = vld [vmem:[#allocation196_spill] sm:$0xff]  ;;  %v18111_v48 = vld [vmem:[#allocation223_spill] sm:$0xff] }
 0x64a   :  { %v8035_v49 = vmax.f32 %v18090_v7, %v7971_v23  ;;  %v7969_v44 = vmax.f32 %v18091_v59, %v7785_v17  ;;  %v7806_v42 = vadd.f32 %v10564_v20, %v6749_v54  ;;  %v8103_v12 = vadd.f32 %v15976_v46, %v8032_v24  ;;  %v18107_v9 = vld [vmem:[#allocation209_spill] sm:$0xff]  ;;  %v18110_v24 = vld [vmem:[#allocation30_spill] sm:$0xff]  ;;  %v18112_v17 = vld [vmem:[#allocation59_spill] sm:$0xff] }
 0x64b   :  { %v7797_v45 = vpop.f32.mrf.mxu0  ;;  %v8207_v3 = vpack.c.bf16 %v8164_v32, %v8163_v22  ;;  %v8169_v62 = vmax.f32 %v8105_v1, 0.0  ;;  %v6765_v61 = vadd.f32 %v18105_v63, %v18104_v6  ;;  %v18108_v15 = vmax.f32 %v18106_v50, %v18107_v9  ;;  %v18113_v20 = vld [vmem:[#allocation205_spill] sm:$0xff]  ;;  %v18121_v1 = vld [vmem:[#allocation192_spill] sm:$0xff] }
 0x64c   :  { %v8106_v60 = vadd.f32 %v15976_v46, %v8035_v49  ;;  %v8033_v53 = vmax.f32 %v18096_v11, %v7969_v44  ;;  %v7974_v56 = vmax.f32 %v18097_v38, %v7806_v42  ;;  %v7798_v47 = vadd.f32 %v7797_v45, %v6741_v30  ;;  %v18116_v30 = vld [vmem:[#allocation36_spill] sm:$0xff]  ;;  %v18118_v42 = vld [vmem:[#allocation117_spill] sm:$0xff] }
 0x64d   :  { %10634 = vmatprep.mubr.bf16.mxu1 %v8207_v3  ;;  %v10565_v2 = vpop.f32.mrf.mxu0  ;;  %v8167_v35 = vmax.f32 %v8103_v12, 0.0  ;;  %v6757_v23 = vadd.f32 %v18111_v48, %v18110_v24  ;;  %v18114_v22 = vmax.f32 %v18112_v17, %v18113_v20  ;;  %v6768_v25 = vadd.f32 %v18117_v55, %v18116_v30  ;;  %v18141_v17 = vld [vmem:[#allocation154_spill] sm:$0xff]  ;;  %v18143_v30 = vld [vmem:[#allocation136_spill] sm:$0xff] }
 0x64e   :  { %v8170_v27 = vmax.f32 %v8106_v60, 0.0  ;;  %v8038_v18 = vmax.f32 %v18102_v28, %v7974_v56  ;;  %v7972_v5 = vmax.f32 %v18103_v26, %v7798_v47  ;;  %v7809_v31 = vadd.f32 %v10565_v2, %v6752_v37  ;;  %10635 = vmatmul.mubr.bf16.gmra.mxu1 %v8208_v8  ;;  %v18115_v8 = vld [vmem:[#allocation273_spill] sm:$0xff]  ;;  %v18122_v60 = vld [vmem:[#allocation32_spill] sm:$0xff]  ;;  %v18124_v56 = vld [vmem:[#allocation123_spill] sm:$0xff] }
 0x64f   :  { %v7800_v33 = vpop.f32.mrf.mxu0  ;;  %v8104_v57 = vadd.f32 %v15976_v46, %v8033_v53  ;;  %v18120_v0 = vmax.f32 %v18118_v42, %v18119_v41  ;;  %v6760_v14 = vadd.f32 %v18123_v16, %v18122_v60  ;;  %v18125_v47 = vld [vmem:[#allocation130_spill] sm:$0xff] }
 0x650   :  { %v8036_v39 = vmax.f32 %v18108_v15, %v7972_v5  ;;  %v7975_v43 = vmax.f32 %v18109_v13, %v7809_v31  ;;  %v7801_v51 = vadd.f32 %v7800_v33, %v6744_v36  ;;  %v8210_v21 = vpack.c.bf16 %v8170_v27, %v8169_v62  ;;  %v18127_v36 = vld [vmem:[#allocation269_spill] sm:$0xff]  ;;  %v18128_v28 = vld [vmem:[#allocation42_spill] sm:$0xff]  ;;  %v18130_v5 = vld [vmem:[#allocation60_spill] sm:$0xff] }
 0x651   :  { %v10568_v54 = vpop.f32.mrf.mxu0  ;;  %v8168_v29 = vmax.f32 %v8104_v57, 0.0  ;;  %v8109_v7 = vadd.f32 %v15976_v46, %v8038_v18  ;;  %v18126_v58 = vmax.f32 %v18124_v56, %v18125_v47  ;;  %v18129_v18 = vld [vmem:[#allocation235_spill] sm:$0xff]  ;;  %v18133_v57 = vld [vmem:[#allocation198_spill] sm:$0xff]  ;;  %v18135_v13 = vld [vmem:[#allocation229_spill] sm:$0xff] }
 0x652   :  { %v8039_v32 = vmax.f32 %v18114_v22, %v7975_v43  ;;  %v7973_v52 = vmax.f32 %v18115_v8, %v7801_v51  ;;  %v7822_v19 = vadd.f32 %v10568_v54, %v6765_v61  ;;  %v8107_v53 = vadd.f32 %v15976_v46, %v8036_v39  ;;  %v18131_v31 = vld [vmem:[#allocation207_spill] sm:$0xff]  ;;  %v18134_v39 = vld [vmem:[#allocation38_spill] sm:$0xff]  ;;  %v18136_v51 = vld [vmem:[#allocation65_spill] sm:$0xff] }
 0x653   :  { %v7813_v49 = vpop.f32.mrf.mxu0  ;;  %v8209_v59 = vpack.c.bf16 %v8168_v29, %v8167_v35  ;;  %v8173_v27 = vmax.f32 %v8109_v7, 0.0  ;;  %v6781_v26 = vadd.f32 %v18129_v18, %v18128_v28  ;;  %v18132_v62 = vmax.f32 %v18130_v5, %v18131_v31  ;;  %v18137_v54 = vld [vmem:[#allocation217_spill] sm:$0xff]  ;;  %v18145_v7 = vld [vmem:[#allocation194_spill] sm:$0xff] }
 0x654   :  { %v8110_v44 = vadd.f32 %v15976_v46, %v8039_v32  ;;  %v8037_v37 = vmax.f32 %v18120_v0, %v7973_v52  ;;  %v7978_v45 = vmax.f32 %v18121_v1, %v7822_v19  ;;  %v7814_v3 = vadd.f32 %v7813_v49, %v6757_v23  ;;  %v18140_v23 = vld [vmem:[#allocation44_spill] sm:$0xff]  ;;  %v18142_v19 = vld [vmem:[#allocation129_spill] sm:$0xff]  ;;  %v18147_v42 = vld [vmem:[#allocation158_spill] sm:$0xff] }
 0x655   :  { %10638 = vmatprep.mubr.bf16.mxu1 %v8209_v59  ;;  %v10569_v11 = vpop.f32.mrf.mxu0  ;;  %v8171_v50 = vmax.f32 %v8107_v53, 0.0  ;;  %v6773_v43 = vadd.f32 %v18135_v13, %v18134_v39  ;;  %v18138_v35 = vmax.f32 %v18136_v51, %v18137_v54  ;;  %v6784_v20 = vadd.f32 %v18141_v17, %v18140_v23  ;;  %v18165_v51 = vld [vmem:[#allocation237_spill] sm:$0xff]  ;;  %v18167_v23 = vld [vmem:[#allocation148_spill] sm:$0xff] }
 0x656   :  { %v8174_v38 = vmax.f32 %v8110_v44, 0.0  ;;  %v8042_v40 = vmax.f32 %v18126_v58, %v7978_v45  ;;  %v7976_v2 = vmax.f32 %v18127_v36, %v7814_v3  ;;  %v7825_v12 = vadd.f32 %v10569_v11, %v6768_v25  ;;  %10639 = vmatmul.mubr.bf16.gmra.mxu1 %v8210_v21  ;;  %v18139_v21 = vld [vmem:[#allocation275_spill] sm:$0xff]  ;;  %v18146_v44 = vld [vmem:[#allocation40_spill] sm:$0xff]  ;;  %v18148_v45 = vld [vmem:[#allocation125_spill] sm:$0xff] }
 0x657   :  { %v7816_v10 = vpop.f32.mrf.mxu0  ;;  %v8108_v34 = vadd.f32 %v15976_v46, %v8037_v37  ;;  %v18144_v55 = vmax.f32 %v18142_v19, %v18143_v30  ;;  %v6776_v41 = vadd.f32 %v18147_v42, %v18146_v44  ;;  %v18149_v3 = vld [vmem:[#allocation142_spill] sm:$0xff]  ;;  %v18171_v19 = vld [vmem:[#allocation164_spill] sm:$0xff] }
 0x658   :  { %v8040_v33 = vmax.f32 %v18132_v62, %v7976_v2  ;;  %v7979_v6 = vmax.f32 %v18133_v57, %v7825_v12  ;;  %v7817_v63 = vadd.f32 %v7816_v10, %v6760_v14  ;;  %v8212_v15 = vpack.c.bf16 %v8174_v38, %v8173_v27  ;;  %v18151_v14 = vld [vmem:[#allocation271_spill] sm:$0xff]  ;;  %v18152_v58 = vld [vmem:[#allocation50_spill] sm:$0xff] }
 0x659   :  { %v10572_v61 = vpop.f32.mrf.mxu0  ;;  %v8172_v9 = vmax.f32 %v8108_v34, 0.0  ;;  %v8113_v22 = vadd.f32 %v15976_v46, %v8042_v40  ;;  %v18150_v60 = vmax.f32 %v18148_v45, %v18149_v3  ;;  %v18153_v40 = vld [vmem:[#allocation241_spill] sm:$0xff]  ;;  %v18154_v2 = vld [vmem:[#allocation66_spill] sm:$0xff]  ;;  %v18155_v12 = vld [vmem:[#allocation219_spill] sm:$0xff] }
 0x65a   :  { %v8043_v29 = vmax.f32 %v18138_v35, %v7979_v6  ;;  %v7977_v24 = vmax.f32 %v18139_v21, %v7817_v63  ;;  %v7838_v48 = vadd.f32 %v10572_v61, %v6781_v26  ;;  %v8111_v37 = vadd.f32 %v15976_v46, %v8040_v33  ;;  %v18157_v34 = vld [vmem:[#allocation204_spill] sm:$0xff]  ;;  %v18158_v33 = vld [vmem:[#allocation46_spill] sm:$0xff]  ;;  %v18159_v57 = vld [vmem:[#allocation231_spill] sm:$0xff] }
 0x65b   :  { %v7829_v32 = vpop.f32.mrf.mxu0  ;;  %v8211_v8 = vpack.c.bf16 %v8172_v9, %v8171_v50  ;;  %v8177_v38 = vmax.f32 %v8113_v22, 0.0  ;;  %v6797_v36 = vadd.f32 %v18153_v40, %v18152_v58  ;;  %v18156_v27 = vmax.f32 %v18154_v2, %v18155_v12  ;;  %v18160_v63 = vld [vmem:[#allocation64_spill] sm:$0xff]  ;;  %v18161_v61 = vld [vmem:[#allocation215_spill] sm:$0xff]  ;;  %v18180_v2 = vld [vmem:[#allocation70_spill] sm:$0xff] }
 0x65c   :  { %v8114_v52 = vadd.f32 %v15976_v46, %v8043_v29  ;;  %v8041_v25 = vmax.f32 %v18144_v55, %v7977_v24  ;;  %v7982_v49 = vmax.f32 %v18145_v7, %v7838_v48  ;;  %v7830_v59 = vadd.f32 %v7829_v32, %v6773_v43  ;;  %v18164_v43 = vld [vmem:[#allocation52_spill] sm:$0xff]  ;;  %v18166_v48 = vld [vmem:[#allocation127_spill] sm:$0xff] }
 0x65d   :  { %10642 = vmatprep.mubr.bf16.mxu1 %v8211_v8  ;;  %v10573_v0 = vpop.f32.mrf.mxu0  ;;  %v8175_v5 = vmax.f32 %v8111_v37, 0.0  ;;  %v6789_v6 = vadd.f32 %v18159_v57, %v18158_v33  ;;  %v18162_v50 = vmax.f32 %v18160_v63, %v18161_v61  ;;  %v6800_v54 = vadd.f32 %v18165_v51, %v18164_v43  ;;  %v18169_v22 = vld [vmem:[#allocation200_spill] sm:$0xff]  ;;  %v18181_v12 = vld [vmem:[#allocation227_spill] sm:$0xff] }
 0x65e   :  { %v8178_v1 = vmax.f32 %v8114_v52, 0.0  ;;  %v8046_v16 = vmax.f32 %v18150_v60, %v7982_v49  ;;  %v7980_v11 = vmax.f32 %v18151_v14, %v7830_v59  ;;  %v7841_v53 = vadd.f32 %v10573_v0, %v6784_v20  ;;  %10643 = vmatmul.mubr.bf16.gmra.mxu1 %v8212_v15  ;;  %v18163_v15 = vld [vmem:[#allocation281_spill] sm:$0xff]  ;;  %v18170_v52 = vld [vmem:[#allocation48_spill] sm:$0xff]  ;;  %v18176_v60 = vld [vmem:[#allocation67_spill] sm:$0xff] }
 0x65f   :  { %v7832_v56 = vpop.f32.mrf.mxu0  ;;  %v8112_v47 = vadd.f32 %v15976_v46, %v8041_v25  ;;  %v18168_v17 = vmax.f32 %v18166_v48, %v18167_v23  ;;  %v6792_v30 = vadd.f32 %v18171_v19, %v18170_v52  ;;  %v18172_v49 = vld [vmem:[#allocation137_spill] sm:$0xff]  ;;  %v18173_v59 = vld [vmem:[#allocation144_spill] sm:$0xff]  ;;  %v16885_v48 = vmov 3   ;;  %v11692_v23 = vld [vmem:[%s16769_s8 + $0x78] sm:$0xff]  }
 0x660   :  { %v8044_v10 = vmax.f32 %v18156_v27, %v7980_v11  ;;  %v7983_v28 = vmax.f32 %v18157_v34, %v7841_v53  ;;  %v7833_v18 = vadd.f32 %v7832_v56, %v6776_v41  ;;  %v8214_v62 = vpack.c.bf16 %v8178_v1, %v8177_v38  ;;  %v18175_v41 = vld [vmem:[#allocation277_spill] sm:$0xff]  ;;  %v18179_v53 = vld [vmem:[#allocation206_spill] sm:$0xff]  ;;  %10273 = vmatprep.subr.bf16.mxu1 %v11692_v23 }
 0x661   :  { %v10576_v26 = vpop.f32.mrf.mxu0  ;;  %v8176_v31 = vmax.f32 %v8112_v47, 0.0  ;;  %v8117_v35 = vadd.f32 %v15976_v46, %v8046_v16  ;;  %v18174_v44 = vmax.f32 %v18172_v49, %v18173_v59  ;;  %v18177_v16 = vld [vmem:[#allocation221_spill] sm:$0xff]  ;;  %v18182_v27 = vmax.f32 %v18180_v2, %v18181_v12  ;;  %v11700_v59 = vld [vmem:[%s16769_s8 + $0x58] sm:$0xff]  }
 0x662   :  { %v8047_v9 = vmax.f32 %v18162_v50, %v7983_v28  ;;  %v7981_v39 = vmax.f32 %v18163_v15, %v7833_v18  ;;  %v7854_v13 = vadd.f32 %v10576_v26, %v6797_v36  ;;  %v8115_v25 = vadd.f32 %v15976_v46, %v8044_v10  ;;  %v18183_v26 = vld [vmem:[#allocation139_spill] sm:$0xff]  ;;  %v11696_v52 = vld [vmem:[%s16769_s8 + $0x68] sm:$0xff]  }
 0x663   :  { %v7845_v29 = vpop.f32.mrf.mxu0  ;;  %v8213_v21 = vpack.c.bf16 %v8176_v31, %v8175_v5  ;;  %v8181_v1 = vmax.f32 %v8117_v35, 0.0  ;;  %v18178_v14 = vmax.f32 %v18176_v60, %v18177_v16  ;;  %v18184_v5 = vld [vmem:[#allocation146_spill] sm:$0xff] }
 0x664   :  { %v8118_v24 = vadd.f32 %v15976_v46, %v8047_v9  ;;  %v8045_v20 = vmax.f32 %v18168_v17, %v7981_v39  ;;  %v7986_v32 = vmax.f32 %v18169_v22, %v7854_v13  ;;  %v7846_v8 = vadd.f32 %v7845_v29, %v6789_v6  ;;  %v11693_v17 = vld [vmem:[%s16769_s8 + $0x38] sm:$0xff]   ;;  %v11694_v22 = vld [vmem:[%s16769_s8 + $0x70] sm:$0xff]  }
 0x665   :  { %10646 = vmatprep.mubr.bf16.mxu1 %v8213_v21  ;;  %v10577_v55 = vpop.f32.mrf.mxu0  ;;  %v8179_v47 = vmax.f32 %v8115_v25, 0.0  ;;  %v18185_v31 = vmax.f32 %v18183_v26, %v18184_v5  ;;  %v11725_v39 = vmov 1   ;;  %v11726_v29 = vmov 2   ;;  %10274 = vmatpush3.bf16.msra.mxu1 %v11693_v17  ;;  %v11698_v25 = vld [vmem:[%s16769_s8 + $0x60] sm:$0xff]  }
 0x666   :  { %v8182_v7 = vmax.f32 %v8118_v24, 0.0  ;;  %v8050_v42 = vmax.f32 %v18174_v44, %v7986_v32  ;;  %v7984_v0 = vmax.f32 %v18175_v41, %v7846_v8  ;;  %v7857_v37 = vadd.f32 %v10577_v55, %v6800_v54  ;;  %10647 = vmatmul.mubr.bf16.gmra.mxu1 %v8214_v62  ;;  %10748 = vset.pattern.permute.xlu0 %v11725_v39  ;;  %v11695_v32 = vld [vmem:[%s16769_s8 + $0x30] sm:$0xff]  }
 0x667   :  { %v7848_v45 = vpop.f32.mrf.mxu0  ;;  %v8116_v3 = vadd.f32 %v15976_v46, %v8045_v20  ;;  %10275 = vmatprep.subr.bf16.mxu1 %v11694_v22 }
 0x668   :  { %v8048_v11 = vmax.f32 %v18178_v14, %v7984_v0  ;;  %v7987_v38 = vmax.f32 %v18179_v53, %v7857_v37  ;;  %v7849_v56 = vadd.f32 %v7848_v45, %v6792_v30  ;;  %v8216_v40 = vpack.c.bf16 %v8182_v7, %v8181_v1  ;;  %v11697_v30 = vld [vmem:[%s16769_s8 + $0x28] sm:$0xff]   ;;  %v11699_v7 = vld [vmem:[%s16769_s8 + $0x20] sm:$0xff]  }
 0x669   :  { %v8180_v58 = vmax.f32 %v8116_v3, 0.0  ;;  %v8121_v36 = vadd.f32 %v15976_v46, %v8050_v42  ;;  %10276 = vmatpush3.bf16.msra.mxu1 %v11695_v32  ;;  %v11701_v42 = vld [vmem:[%s16769_s8 + $0x18] sm:$0xff]  }
 0x66a   :  { %v8051_v10 = vmax.f32 %v18182_v27, %v7987_v38  ;;  %v7985_v34 = vmax.f32 %v15961_v4, %v7849_v56  ;;  %v8119_v33 = vadd.f32 %v15976_v46, %v8048_v11  ;;  %v16417_v4 = vld [vmem:[%s16768_s1] sm:$0xff]  ;;  %10277 = vmatprep.subr.bf16.mxu1 %v11696_v52 }
 0x66b   :  { %v8215_v28 = vpack.c.bf16 %v8180_v58, %v8179_v47  ;;  %v8185_v57 = vmax.f32 %v8121_v36, 0.0  ;;  %8663 = vperm.xlu1 %10747, %v16417_v4   ;;  %8672 = vperm.xlu0 %10748, %v16417_v4  }
 0x66c   :  { %v8122_v18 = vadd.f32 %v15976_v46, %v8051_v10  ;;  %v8049_v62 = vmax.f32 %v18185_v31, %v7985_v34  ;;  %v8183_v61 = vmax.f32 %v8119_v33, 0.0 }
 0x66d   :  { %10650 = vmatprep.mubr.bf16.mxu1 %v8215_v28  ;;  %10278 = vmatpush3.bf16.msra.mxu1 %v11697_v30 }
 0x66e   :  { %v8186_v6 = vmax.f32 %v8122_v18, 0.0  ;;  %10651 = vmatmul.mubr.bf16.gmra.mxu1 %v8216_v40  ;;  %v8120_v63 = vadd.f32 %v15976_v46, %v8049_v62  ;;  %10279 = vmatprep.subr.bf16.mxu1 %v11698_v25 }
 0x66f   :  { %10749 = vset.pattern.permute.xlu0 %v11726_v29  ;;  %10750 = vset.pattern.permute.xlu1 %v16885_v48 }
 0x670   :  { %v8184_v50 = vmax.f32 %v8120_v63, 0.0  ;;  %v8218_v9 = vpack.c.bf16 %v8186_v6, %v8185_v57 }
 0x671   :  { %10280 = vmatpush3.bf16.msra.mxu1 %v11699_v7  ;;  %v11702_v7 = vld [vmem:[%s16769_s8 + $0x50] sm:$0xff]  }
 0x672   :  { %v8217_v15 = vpack.c.bf16 %v8184_v50, %v8183_v61  ;;  %10281 = vmatprep.subr.bf16.mxu1 %v11700_v59  ;;  %v11703_v59 = vld [vmem:[%s16769_s8 + $0x10] sm:$0xff]   ;;  %v16566_v50 = vld [vmem:[%s16770_s5] ss:$0 sm:$0xff]  ;;  %s11728_s5 = smov 32  }
 0x674   :  { %10654 = vmatprep.mubr.bf16.mxu1 %v8217_v15 }
 0x675   :  { %10282 = vmatpush3.bf16.msra.mxu1 %v11701_v42 }
 0x676   :  { %10655 = vmatmul.mubr.bf16.gmra.mxu1 %v8218_v9  ;;  %10283 = vmatprep.subr.bf16.mxu1 %v11702_v7 }
 0x679   :  { %10284 = vmatpush3.bf16.msra.mxu1 %v11703_v59 }
 0x6be   :  { %v16421_v13 = vpop.f32.mrf.mxu1 }
 0x6c0   :  { %v16423_v46 = vpop.f32.mrf.mxu1 }
 0x6c2   :  { %v16425_v43 = vpop.f32.mrf.mxu1 }
 0x6c4   :  { %v16427_v51 = vpop.f32.mrf.mxu1 }
 0x6c6   :  { %v16429_v54 = vpop.f32.mrf.mxu1 }
 0x6c8   :  { %v16431_v35 = vpop.f32.mrf.mxu1 }
 0x6ca   :  { %v16433_v21 = vpop.f32.mrf.mxu1 }
 0x6cc   :  { %v16435_v24 = vpop.f32.mrf.mxu1 }
 0x6ce   :  { %v16444_v20 = vpop.f32.mrf.mxu1 }
 0x6d0   :  { %v16452_v8 = vpop.f32.mrf.mxu1 }
 0x6d2   :  { %v16457_v19 = vpop.f32.mrf.mxu1 }
 0x6d4   :  { %v16462_v55 = vpop.f32.mrf.mxu1 }
 0x6d6   :  { %v16470_v49 = vpop.f32.mrf.mxu1 }
 0x6d8   :  { %v16475_v44 = vpop.f32.mrf.mxu1 }
 0x6da   :  { %v16480_v41 = vpop.f32.mrf.mxu1 }
 0x6dc   :  { %v16482_v0 = vpop.f32.mrf.mxu1 }
 0x6de   :  { %v10612_v37 = vpop.f32.mrf.mxu1 }
 0x6df   :  { %v8574_v1 = vmax.f32 %v16421_v13, %v10612_v37 }
 0x6e0   :  { %v8381_v45 = vpop.f32.mrf.mxu1 }
 0x6e1   :  { %v8572_v3 = vmax.f32 %v16423_v46, %v8381_v45 }
 0x6e2   :  { %v10613_v60 = vpop.f32.mrf.mxu1 }
 0x6e3   :  { %v8575_v16 = vmax.f32 %v16425_v43, %v10613_v60 }
 0x6e4   :  { %v16487_v14 = vpop.f32.mrf.mxu1 }
 0x6e5   :  { %v8573_v11 = vmax.f32 %v16427_v51, %v16487_v14 }
 0x6e6   :  { %v16491_v53 = vpop.f32.mrf.mxu1 }
 0x6e7   :  { %v8578_v38 = vmax.f32 %v16429_v54, %v16491_v53  ;;  %v11704_v54 = vld [vmem:[%s16769_s8 + $0x48] sm:$0xff]  }
 0x6e8   :  { %v16495_v56 = vpop.f32.mrf.mxu1  ;;  %v11705_v53 = vld [vmem:[%s16769_s8 + $0x8] sm:$0xff]   ;;  %10285 = vmatprep.subr.bf16.mxu1 %v11704_v54 }
 0x6e9   :  { %v18186_v51 = vmax.f32 %v16431_v35, %v16495_v56  ;;  %10286 = vmatpush3.bf16.msra.mxu1 %v11705_v53 }
 0x6ea   :  { %v16499_v58 = vpop.f32.mrf.mxu1 }
 0x6ec   :  { %v16503_v36 = vpop.f32.mrf.mxu1 }
 0x6ee   :  { %v16507_v12 = vpop.f32.mrf.mxu1 }
 0x6f0   :  { %v16511_v10 = vpop.f32.mrf.mxu1 }
 0x6f2   :  { %v16515_v28 = vpop.f32.mrf.mxu1 }
 0x6f4   :  { %v16519_v26 = vpop.f32.mrf.mxu1 }
 0x6f6   :  { %v16523_v31 = vpop.f32.mrf.mxu1 }
 0x6f8   :  { %v16527_v33 = vpop.f32.mrf.mxu1 }
 0x6fa   :  { %v16531_v6 = vpop.f32.mrf.mxu1 }
 0x6fc   :  { %v16535_v61 = vpop.f32.mrf.mxu1 }
 0x6fe   :  { %v10628_v9 = vpop.f32.mrf.mxu1 }
 0x700   :  { %v8445_v15 = vpop.f32.mrf.mxu1 }
 0x702   :  { %v10629_v39 = vpop.f32.mrf.mxu1 }
 0x704   :  { %v8448_v13 = vpop.f32.mrf.mxu1 }
 0x706   :  { %v10632_v46 = vpop.f32.mrf.mxu1 }
 0x708   :  { %v8461_v43 = vpop.f32.mrf.mxu1 }
 0x70a   :  { %v16539_v29 = vpop.f32.mrf.mxu1 }
 0x70c   :  { %v8464_v23 = vpop.f32.mrf.mxu1 }
 0x70e   :  { %v16541_v17 = vpop.f32.mrf.mxu1 }
 0x710   :  { %v16543_v22 = vpop.f32.mrf.mxu1 }
 0x712   :  { %v16545_v32 = vpop.f32.mrf.mxu1 }
 0x714   :  { %v16547_v52 = vpop.f32.mrf.mxu1 }
 0x716   :  { %v16549_v30 = vpop.f32.mrf.mxu1 }
 0x718   :  { %v16551_v25 = vpop.f32.mrf.mxu1 }
 0x71a   :  { %v16559_v42 = vpop.f32.mrf.mxu1 }
 0x71c   :  { %v16561_v37 = vpop.f32.mrf.mxu1 }
 0x71e   :  { %v10644_v45 = vpop.f32.mrf.mxu1 }
 0x71f   :  { %v8590_v60 = vmax.f32 %v10628_v9, %v10644_v45 }
 0x720   :  { %v8509_v48 = vpop.f32.mrf.mxu1 }
 0x721   :  { %v8606_v63 = vmax.f32 %v8574_v1, %v8590_v60  ;;  %v8588_v40 = vmax.f32 %v8445_v15, %v8509_v48 }
 0x722   :  { %v10645_v57 = vpop.f32.mrf.mxu1 }
 0x723   :  { %v8604_v62 = vmax.f32 %v8572_v3, %v8588_v40  ;;  %v8591_v5 = vmax.f32 %v10629_v39, %v10645_v57  ;;  %v8629_v18 = vadd.f32 %v16566_v50, %v8606_v63 }
 0x724   :  { %v8512_v34 = vpop.f32.mrf.mxu1 }
 0x725   :  { %v8627_v7 = vadd.f32 %v16566_v50, %v8604_v62  ;;  %v8607_v27 = vmax.f32 %v8575_v16, %v8591_v5  ;;  %v8589_v59 = vmax.f32 %v8448_v13, %v8512_v34  ;;  %v8645_v2 = vmax.f32 %v8629_v18, 0.0 }
 0x726   :  { %v10648_v9 = vpop.f32.mrf.mxu1  ;;  %v18188_v13 = vmax.f32 %v16444_v20, %v16507_v12 }
 0x727   :  { %v8643_v45 = vmax.f32 %v8627_v7, 0.0  ;;  %v8605_v47 = vmax.f32 %v8573_v11, %v8589_v59  ;;  %v8594_v1 = vmax.f32 %v10632_v46, %v10648_v9  ;;  %8719 = vrot.lane.b32.xlu1 %v8645_v2, %s11728_s5  ;;  %v8630_v48 = vadd.f32 %v16566_v50, %v8607_v27 }
 0x728   :  { %v8525_v3 = vpop.f32.mrf.mxu1  ;;  %v18187_v27 = vmax.f32 %v16435_v24, %v16503_v36  ;;  %v18190_v59 = vmax.f32 %v16457_v19, %v16515_v28  ;;  %v18192_v28 = vmax.f32 %v16470_v49, %v16523_v31  ;;  %v18194_v31 = vmax.f32 %v16433_v21, %v16499_v58 }
 0x729   :  { %v8610_v16 = vmax.f32 %v8578_v38, %v8594_v1  ;;  %v8592_v40 = vmax.f32 %v8461_v43, %v8525_v3  ;;  %v8646_v34 = vmax.f32 %v8630_v48, 0.0  ;;  %v8628_v18 = vadd.f32 %v16566_v50, %v8605_v47  ;;  %8711 = vst.msk [vmem:[#allocation2] sm:$0xff] %vm8710_vm1, %v8643_v45 }
 0x72a   :  { %v10649_v5 = vpop.f32.mrf.mxu1  ;;  %v18196_v58 = vmax.f32 %v16482_v0, %v16535_v61  ;;  %v11735_v61 = vmov 0.0  }
 0x72b   :  { %v8608_v14 = vmax.f32 %v18186_v51, %v8592_v40  ;;  %8725 = vrot.lane.b32.xlu1 %v8646_v34, %s11729_s25  ;;  %v8644_v11 = vmax.f32 %v8628_v18, 0.0  ;;  %v8633_v2 = vadd.f32 %v16566_v50, %v8610_v16  ;;  %v8595_v40 = vmax.f32 %v16539_v29, %v10649_v5 }
 0x72c   :  { %v8528_v38 = vpop.f32.mrf.mxu1 }
 0x72d   :  { %v8593_v47 = vmax.f32 %v8464_v23, %v8528_v38  ;;  %8713 = vrot.lane.b32.xlu0 %v8644_v11, %s11730_s30  ;;  %v8631_v35 = vadd.f32 %v16566_v50, %v8608_v14  ;;  %v8649_v63 = vmax.f32 %v8633_v2, 0.0  ;;  %v18189_v23 = vmax.f32 %v16452_v8, %v16511_v10  ;;  %v11706_v11 = vld [vmem:[%s16769_s8 + $0x40] sm:$0xff]  }
 0x72e   :  { %v10652_v56 = vpop.f32.mrf.mxu1  ;;  %10287 = vmatprep.subr.bf16.mxu1 %v11706_v11  ;;  %v11711_v11 = vld [vmem:[%s16769_s8 + $0x80] sm:$0xff]  }
 0x72f   :  { %v8609_v62 = vmax.f32 %v18187_v27, %v8593_v47  ;;  %v8598_v57 = vmax.f32 %v16541_v17, %v10652_v56  ;;  %v8647_v15 = vmax.f32 %v8631_v35, 0.0  ;;  %v18197_v56 = vmov 3   ;;  %v8664_v27 = vpop.permute.xlu1 %8663 }
 0x730   :  { %v8541_v39 = vpop.f32.mrf.mxu1 }
 0x731   :  { %v8614_v46 = vmax.f32 %v18188_v13, %v8598_v57  ;;  %v8596_v43 = vmax.f32 %v16543_v22, %v8541_v39  ;;  %8743 = vrot.lane.b32.xlu0 %v8649_v63, %s11731_s4  ;;  %8731 = vrot.lane.b32.xlu1 %v8647_v15, %s11732_s15  ;;  %v8632_v24 = vadd.f32 %v16566_v50, %v8609_v62  ;;  %v8673_v62 = vpop.permute.xlu0 %8672 }
 0x732   :  { %v10653_v36 = vpop.f32.mrf.mxu1 }
 0x733   :  { %v8612_v17 = vmax.f32 %v18189_v23, %v8596_v43  ;;  %v8599_v60 = vmax.f32 %v16545_v32, %v10653_v36  ;;  %v8648_v7 = vmax.f32 %v8632_v24, 0.0  ;;  %v8637_v20 = vadd.f32 %v16566_v50, %v8614_v46 }
 0x734   :  { %v8544_v12 = vpop.f32.mrf.mxu1  ;;  %v18191_v32 = vmax.f32 %v16462_v55, %v16519_v26  ;;  %v18193_v26 = vmax.f32 %v16475_v44, %v16527_v33  ;;  %v11707_v44 = vld [vmem:[%s16769_s8] sm:$0xff]   ;;  %v18195_v33 = vmax.f32 %v16480_v41, %v16531_v6  ;;  %v8666_v36 = vlaneseq }
 0x735   :  { %v8635_v22 = vadd.f32 %v16566_v50, %v8612_v17  ;;  %v8615_v9 = vmax.f32 %v18190_v59, %v8599_v60  ;;  %v8597_v45 = vmax.f32 %v16547_v52, %v8544_v12  ;;  %8737 = vrot.lane.b32.xlu1 %v8648_v7, %s11733_s16  ;;  %v8653_v8 = vmax.f32 %v8637_v20, 0.0  ;;  %10288 = vmatpush3.bf16.msra.mxu1 %v11707_v44  ;;  %v8660_v59 = vld [vmem:[%s16772_s6] sm:$0xf] }
 0x736   :  { %v10656_v1 = vpop.f32.mrf.mxu1  ;;  %10658 = vmatprep.subr.bf16.mxu1 %v11735_v61  ;;  %v8667_v60 = vshrl.u32 %v8666_v36, 7  ;;  %v10086_v36 = vld [vmem:[%s16776_s11] ss:$0 sm:$0xff] }
 0x737   :  { %v8651_v10 = vmax.f32 %v8635_v22, 0.0  ;;  %v8613_v48 = vmax.f32 %v18191_v32, %v8597_v45  ;;  %v8602_v3 = vmax.f32 %v16549_v30, %v10656_v1  ;;  %v8638_v16 = vadd.f32 %v16566_v50, %v8615_v9 }
 0x738   :  { %v8557_v19 = vpop.f32.mrf.mxu1  ;;  %v8668_v12 = vsub.s32 0, %v8667_v60  ;;  %v8677_v22 = vsub.s32 1, %v8667_v60  ;;  %v8687_v1 = vsub.s32 2, %v8667_v60 }
 0x739   :  { %v8618_v52 = vmax.f32 %v18192_v28, %v8602_v3  ;;  %v8600_v34 = vmax.f32 %v16551_v25, %v8557_v19  ;;  %8761 = vrot.lane.b32.xlu1 %v8653_v8, %s11728_s5  ;;  %v8654_v18 = vmax.f32 %v8638_v16, 0.0  ;;  %v8636_v51 = vadd.f32 %v16566_v50, %v8613_v48  ;;  %8754 = vst.msk [vmem:[#allocation2 + $0x8] sm:$0xff] %vm8710_vm1, %v8651_v10  ;;  %v11708_v28 = vld [vmem:[%s16769_s8 + $0x98] sm:$0xff]  }
 0x73a   :  { %v10657_v55 = vpop.f32.mrf.mxu1  ;;  %v8611_v25 = vmax.f32 %v18194_v31, %v8595_v40  ;;  %v8669_v9 = vrot.slane %v8660_v59, %v8668_v12  ;;  %v8678_v45 = vrot.slane %v8660_v59, %v8677_v22  ;;  %v8697_v8 = vsub.s32 3, %v8667_v60 }
 0x73b   :  { %v8616_v30 = vmax.f32 %v18193_v26, %v8600_v34  ;;  %v8603_v29 = vmax.f32 %v16559_v42, %v10657_v55  ;;  %8766 = vrot.lane.b32.xlu0 %v8654_v18, %s11729_s25  ;;  %v8641_v49 = vadd.f32 %v16566_v50, %v8618_v52  ;;  %v8652_v14 = vmax.f32 %v8636_v51, 0.0 }
 0x73c   :  { %v8560_v5 = vpop.f32.mrf.mxu1  ;;  %v8634_v6 = vadd.f32 %v16566_v50, %v8611_v25  ;;  %v8670_v32 = vmul.f32 %v8669_v9, %v8664_v27  ;;  %v8679_v48 = vmul.f32 %v8678_v45, %v8673_v62  ;;  %v8688_v16 = vrot.slane %v8660_v59, %v8687_v1  ;;  %v11710_v25 = vld [vmem:[%s16769_s8 + $0x88] sm:$0xff]  }
 0x73d   :  { %v8619_v42 = vmax.f32 %v18195_v33, %v8603_v29  ;;  %v8601_v2 = vmax.f32 %v16561_v37, %v8560_v5  ;;  %v8657_v54 = vmax.f32 %v8641_v49, 0.0  ;;  %v8639_v21 = vadd.f32 %v16566_v50, %v8616_v30  ;;  %v11709_v30 = vld [vmem:[%s16769_s8 + $0x90] sm:$0xff]   ;;  %v10063_v49 = vld [vmem:[%s16773_s7] ss:$0 sm:$0xff]  ;;  %v11712_v33 = vld [vmem:[%s16771_s10 + $0x38] sm:$0xff]  }
 0x73e   :  { %v8650_v35 = vmax.f32 %v8634_v6, 0.0  ;;  %v8698_v40 = vrot.slane %v8660_v59, %v8697_v8  ;;  %v8680_v51 = vadd.f32 %v8679_v48, %v8670_v32 }
 0x73f   :  { %v8617_v53 = vmax.f32 %v18196_v58, %v8601_v2  ;;  %8756 = vrot.lane.b32.xlu0 %v8652_v14, %s11730_s30  ;;  %8781 = vrot.lane.b32.xlu1 %v8657_v54, %s11731_s4  ;;  %v8642_v38 = vadd.f32 %v16566_v50, %v8619_v42  ;;  %v8655_v47 = vmax.f32 %v8639_v21, 0.0  ;;  %v11713_v2 = vld [vmem:[%s16771_s10 + $0x30] sm:$0xff]   ;;  %v11714_v54 = vld [vmem:[%s16771_s10 + $0x28] sm:$0xff]  }
 0x740   :  { %v11715_v21 = vld [vmem:[%s16771_s10 + $0x20] sm:$0xff]   ;;  %v11716_v58 = vld [vmem:[%s16771_s10 + $0x18] sm:$0xff]  }
 0x741   :  { %v8658_v41 = vmax.f32 %v8642_v38, 0.0  ;;  %v8640_v37 = vadd.f32 %v16566_v50, %v8617_v53  ;;  %v11717_v53 = vld [vmem:[%s16771_s10 + $0x10] sm:$0xff]   ;;  %v11718_v38 = vld [vmem:[%s16771_s10 + $0x8] sm:$0xff]  }
 0x743   :  { %8771 = vrot.lane.b32.xlu0 %v8655_v47, %s11732_s15  ;;  %8786 = vrot.lane.b32.xlu1 %v8658_v41, %s11734_s20  ;;  %v8656_v0 = vmax.f32 %v8640_v37, 0.0  ;;  %v11719_v47 = vld [vmem:[%s16771_s10] sm:$0xff]  }
 0x747   :  { %8749 = vrot.lane.b32.xlu1 %v8650_v35, %s11734_s20  ;;  %8776 = vrot.lane.b32.xlu0 %v8656_v0, %s11733_s16 }
 0x74b   :  { %8682 = vperm.xlu0 %10749, %v16417_v4   ;;  %8692 = vperm.xlu1 %10750, %v16417_v4  }
 0x74f   :  { %10751 = vset.pattern.permute.xlu0 %v18197_v56  ;;  %v10064_v56 = vld [vmem:[%s16775_s9] ss:$0 sm:$0xff] }
 0x799   :  { %v8720_v50 = vpop.permute.xlu1 %8719 }
 0x79d   :  { %v8726_v57 = vpop.permute.xlu1 %8725 }
 0x79f   :  { %v8714_v63 = vpop.permute.xlu0 %8713 }
 0x7a0   :  { %8717 = vst.msk [vmem:[#allocation2] sm:$0xff] %vm8716_vm2, %v8714_v63 }
 0x7a1   :  { %8723 = vst.msk [vmem:[#allocation2] sm:$0xff] %vm8722_vm3, %v8720_v50 }
 0x7a2   :  { %8729 = vst.msk [vmem:[#allocation2] sm:$0xff] %vm8728_vm4, %v8726_v57 }
 0x7a3   :  { %v8732_v4 = vpop.permute.xlu1 %8731  ;;  %v8744_v39 = vpop.permute.xlu0 %8743 }
 0x7a4   :  { %8735 = vst.msk [vmem:[#allocation2] sm:$0xff] %vm8734_vm5, %v8732_v4 }
 0x7a7   :  { %v8738_v15 = vpop.permute.xlu1 %8737 }
 0x7a8   :  { %8741 = vst.msk [vmem:[#allocation2] sm:$0xff] %vm8740_vm6, %v8738_v15  ;;  %v11720_v15 = vld [vmem:[%s16774_s12 + $0x18] sm:$0xff]  }
 0x7a9   :  { %8747 = vst.msk [vmem:[#allocation2] sm:$0xff] %vm8746_vm7, %v8744_v39 }
 0x7ab   :  { %v8762_v13 = vpop.permute.xlu1 %8761 }
 0x7ad   :  { %v8767_v46 = vpop.permute.xlu0 %8766 }
 0x7b1   :  { %v8757_v43 = vpop.permute.xlu0 %8756  ;;  %v8782_v24 = vpop.permute.xlu1 %8781 }
 0x7b2   :  { %8759 = vst.msk [vmem:[#allocation2 + $0x8] sm:$0xff] %vm8716_vm2, %v8757_v43  ;;  %v11722_v43 = vld [vmem:[%s16774_s12 + $0x8] sm:$0xff]  }
 0x7b3   :  { %8764 = vst.msk [vmem:[#allocation2 + $0x8] sm:$0xff] %vm8722_vm3, %v8762_v13 }
 0x7b4   :  { %8769 = vst.msk [vmem:[#allocation2 + $0x8] sm:$0xff] %vm8728_vm4, %v8767_v46  ;;  %v11721_v46 = vld [vmem:[%s16774_s12 + $0x10] sm:$0xff]  }
 0x7b5   :  { %v8772_v23 = vpop.permute.xlu0 %8771  ;;  %v8787_v17 = vpop.permute.xlu1 %8786 }
 0x7b6   :  { %8774 = vst.msk [vmem:[#allocation2 + $0x8] sm:$0xff] %vm8734_vm5, %v8772_v23 }
 0x7b9   :  { %v8750_v7 = vpop.permute.xlu1 %8749  ;;  %v8777_v20 = vpop.permute.xlu0 %8776 }
 0x7ba   :  { %8753 = vst.msk [vmem:[#allocation2] sm:$0xff] %vm8752_vm8, %v8750_v7 }
 0x7bb   :  { %8779 = vst.msk [vmem:[#allocation2 + $0x8] sm:$0xff] %vm8740_vm6, %v8777_v20 }
 0x7bc   :  { %8784 = vst.msk [vmem:[#allocation2 + $0x8] sm:$0xff] %vm8746_vm7, %v8782_v24  ;;  %v11723_v24 = vld [vmem:[%s16774_s12] sm:$0xff]  }
 0x7bd   :  { %8789 = vst.msk [vmem:[#allocation2 + $0x8] sm:$0xff] %vm8752_vm8, %v8787_v17 }
 0x7c1   :  { %v8791_v10 = vld [vmem:[#allocation2] sm:$0xff] }
 0x7c2   :  { %v8794_v52 = vpack.c.bf16 %v8791_v10, %v8791_v10 }
 0x7c4   :  { %v8792_v3 = vld [vmem:[#allocation2 + $0x8] sm:$0xff] }
 0x7c5   :  { %v8795_v19 = vpack.c.bf16 %v8792_v3, %v8792_v3 }
 0x7c6   :  { %v8683_v34 = vpop.permute.xlu0 %8682  ;;  %v8693_v18 = vpop.permute.xlu1 %8692 }
 0x7c7   :  { %8999 = vmatprep.mubr.bf16.mxu1 %v8795_v19  ;;  %v8689_v55 = vmul.f32 %v8688_v16, %v8683_v34  ;;  %v8699_v26 = vmul.f32 %v8698_v40, %v8693_v18 }
 0x7c8   :  { %9000 = vmatmul.mubr.bf16.vlgmr.msra.gmra.mxu1 %v8794_v52 }
 0x7c9   :  { %10659 = vmatpush3.bf16.msra.mxu1 %v11708_v28  ;;  %10666 = vmatprep.mubr.msk.bf16.mxu1 %vm11736_vm9, %v11735_v61  ;;  %v8690_v29 = vadd.f32 %v8689_v55, %v8680_v51 }
 0x7ca   :  { %10660 = vmatprep.subr.bf16.mxu1 %v11735_v61 }
 0x7cb   :  { %v8700_v31 = vadd.f32 %v8699_v26, %v8690_v29 }
 0x7cd   :  { %10661 = vmatpush3.bf16.msra.mxu1 %v11709_v30  ;;  %v8708_v5 = vadd.f32 %v10063_v49, %v8700_v31 }
 0x7ce   :  { %10662 = vmatprep.subr.bf16.mxu1 %v11735_v61 }
 0x7cf   :  { %v8709_v14 = vmax.f32 %v8708_v5, 0.0 }
 0x7d1   :  { %10663 = vmatpush3.bf16.msra.mxu1 %v11710_v25  ;;  %8790 = vst.msk [vmem:[#allocation2 + $0x10] sm:$0xff] %vm4304_vm0, %v8709_v14 }
 0x7d2   :  { %10664 = vmatprep.subr.bf16.mxu1 %v11735_v61 }
 0x7d5   :  { %10665 = vmatpush3.bf16.msra.mxu1 %v11711_v11 }
 0x7d6   :  { %10670 = vmatprep.subr.bf16.mxu1 %v11735_v61 }
 0x7d8   :  { %v8793_v44 = vld [vmem:[#allocation2 + $0x10] sm:$0xff] }
 0x7d9   :  { %v8796_v42 = vpack.c.bf16 %v8793_v44, %v8793_v44 }
 0x7db   :  { %10667 = vmatmul.mubr.msk.bf16.vlgmr.msra.gmra.mxu1 %vm4304_vm0, %v8796_v42 }
 0x7dc   :  { %10671 = vmatpush3.bf16.msra.mxu1 %v11712_v33  ;;  %10686 = vmatprep.mubr.msk.bf16.mxu1 %vm11736_vm9, %v11735_v61 }
 0x7dd   :  { %10672 = vmatprep.subr.bf16.mxu1 %v11735_v61 }
 0x7e0   :  { %10673 = vmatpush3.bf16.msra.mxu1 %v11713_v2 }
 0x7e1   :  { %10674 = vmatprep.subr.bf16.mxu1 %v11735_v61 }
 0x7e4   :  { %10675 = vmatpush3.bf16.msra.mxu1 %v11714_v54 }
 0x7e5   :  { %10676 = vmatprep.subr.bf16.mxu1 %v11735_v61 }
 0x7e8   :  { %10677 = vmatpush3.bf16.msra.mxu1 %v11715_v21 }
 0x7e9   :  { %10678 = vmatprep.subr.bf16.mxu1 %v11735_v61 }
 0x7ec   :  { %10679 = vmatpush3.bf16.msra.mxu1 %v11716_v58 }
 0x7ed   :  { %10680 = vmatprep.subr.bf16.mxu1 %v11735_v61 }
 0x7f0   :  { %10681 = vmatpush3.bf16.msra.mxu1 %v11717_v53 }
 0x7f1   :  { %10682 = vmatprep.subr.bf16.mxu1 %v11735_v61 }
 0x7f4   :  { %10683 = vmatpush3.bf16.msra.mxu1 %v11718_v38 }
 0x7f5   :  { %10684 = vmatprep.subr.bf16.mxu1 %v11735_v61 }
 0x7f8   :  { %10685 = vmatpush3.bf16.msra.mxu1 %v11719_v47 }
 0x7f9   :  { %10690 = vmatprep.subr.bf16.mxu1 %v11735_v61 }
 0x888   :  { %v10289_v41 = vpop.f32.mrf.mxu1 }
 0x88a   :  { %v10290_v6 = vpop.f32.mrf.mxu1 }
 0x88b   :  { %v10291_v0 = vadd.f32 %v10290_v6, %v10289_v41 }
 0x88c   :  { %v10292_v37 = vpop.f32.mrf.mxu1 }
 0x88d   :  { %v9002_v27 = vadd.f32 %v10291_v0, %v10064_v56 }
 0x88e   :  { %v10293_v35 = vpop.f32.mrf.mxu1 }
 0x89b   :  { %v9041_v50 = vpop.f32.mrf.mxu1 }
 0x89c   :  { %v9042_v62 = vadd.f32 %v9041_v50, %v9002_v27 }
 0x89d   :  { %v10668_v57 = vpop.f32.mrf.mxu1 }
 0x89e   :  { %v9047_v63 = vmax.f32 %v9042_v62, 0.0 }
 0x89f   :  { %v9044_v4 = vpop.f32.mrf.mxu1 }
 0x8a0   :  { %v9048_v39 = vpack.c.bf16 %v9047_v63, %v9047_v63 }
 0x8a1   :  { %v10669_v13 = vpop.f32.mrf.mxu1 }
 0x8a2   :  { %10687 = vmatmul.mubr.bf16.vlgmr.msra.gmra.mxu1 %v9048_v39 }
 0x8a3   :  { %10691 = vmatpush3.bf16.msra.mxu1 %v11720_v15  ;;  %10698 = vmatprep.mubr.msk.bf16.mxu1 %vm11736_vm9, %v11735_v61 }
 0x8a4   :  { %10692 = vmatprep.subr.bf16.mxu1 %v11735_v61 }
 0x8a7   :  { %10693 = vmatpush3.bf16.msra.mxu1 %v11721_v46 }
 0x8a8   :  { %10694 = vmatprep.subr.bf16.mxu1 %v11735_v61 }
 0x8ab   :  { %10695 = vmatpush3.bf16.msra.mxu1 %v11722_v43 }
 0x8ac   :  { %10696 = vmatprep.subr.bf16.mxu1 %v11735_v61  ;;  %v10095_v61 = vld [vmem:[%s16777_s13] ss:$0 sm:$0xff] }
 0x8af   :  { %10697 = vmatpush3.bf16.msra.mxu1 %v11723_v24 }
 0x962   :  { %v9154_v23 = vpop.f32.mrf.mxu1 }
 0x963   :  { %v9155_v17 = vadd.f32 %v10086_v36, %v9154_v23 }
 0x964   :  { %v10688_v60 = vpop.f32.mrf.mxu1 }
 0x965   :  { %v9160_v7 = vmax.f32 %v9155_v17, 0.0 }
 0x966   :  { %v9157_v20 = vpop.f32.mrf.mxu1 }
 0x967   :  { %v9161_v12 = vpack.c.bf16 %v9160_v7, %v9160_v7 }
 0x968   :  { %v10689_v22 = vpop.f32.mrf.mxu1 }
 0x969   :  { %10699 = vmatmul.mubr.msk.bf16.vlgmr.msra.gmra.mxu1 %vm4304_vm0, %v9161_v12 }
 0xa29   :  { %v9238_v59 = vpop.f32.mrf.mxu1 }
 0xa2a   :  { %v9239_v9 = vadd.f32 %v10095_v61, %v9238_v59 }
 0xa2b   :  { %v10700_v45 = vpop.f32.mrf.mxu1 }
 0xa2c   :  { %9244 = vst [vmem:[%s16778_s14] sm:$0xff] %v9239_v9 }
 0xa2d   :  { %v9241_v1 = vpop.f32.mrf.mxu1 }
 0xa2f   :  { %v10701_v8 = vpop.f32.mrf.mxu1 }

</bundles_post_ra>
